<compile_context>
chip_gen: v5e
topology: v5e:2x2
jax: 0.10.0
libtpu: 0.0.40
codegen_flags: <defaults>
</compile_context>

<pallas_src>
import jax
import jax.numpy as jnp
from jax.experimental import pallas as pl
from jax.experimental.pallas import tpu as pltpu

KH = KW = 3
DIL = 2
PAD = 2


def _dilated_conv_kernel(x_ref, w_ref, o_ref):
    """x_ref: (Hp, Wp, Cin) bf16 ReLU'd, zero-padded activations (whole image, VMEM)
       w_ref: (KH*KW*Cin, Cout) bf16 weights in im2col row order (kh, kw, cin)
       o_ref: (TH, W, Cout) output row-block for this grid step."""
    TH, W, Cout = o_ref.shape
    Cin = x_ref.shape[-1]

    hb = pl.program_id(1)
    row0 = pl.multiple_of(hb * TH, TH)

    # Rows feeding this output tile: TH + (KH-1)*DIL of them.
    win = x_ref[pl.ds(row0, TH + (KH - 1) * DIL), :, :]

    # 9 per-tap accumulating matmuls; no im2col materialization.  Only 3
    # sublane-unaligned W-shift slices (one per kw); the kh slices are on the
    # cheap leading dim.  Accumulation stays in f32.
    acc = jnp.zeros((TH * W, Cout), jnp.float32)
    for kw in range(KW):
        xs = win[:, kw * DIL: kw * DIL + W, :]            # (TH+4, W, Cin)
        for kh in range(KH):
            tap = xs[kh * DIL: kh * DIL + TH].reshape(TH * W, Cin)
            t = kh * KW + kw                               # tap row-block in w_ref
            acc = acc + jnp.dot(tap, w_ref[t * Cin:(t + 1) * Cin, :],
                                preferred_element_type=jnp.float32)

    o_ref[...] = acc.reshape(TH, W, Cout).astype(o_ref.dtype)


def _pick_row_block(h, w):
    """Smallest divisor TH of h with TH*W >= 256 (fills the 256-wide MXU on
    v6e/v7x, halves grid-step overhead); falls back to the whole image."""
    target = -(-256 // w)  # ceil(256 / w)
    for th in range(1, h + 1):
        if h % th == 0 and th >= target:
            return th
    return h


@jax.jit
def relu_conv2d(x_nchw, w_oihw):
    """x_nchw: (N, Cin, H, W) f32;  w_oihw: (Cout, Cin, KH, KW) f32.
       Returns (N, Cout, H, W) f32 (pad=2, dil=2, k=3 -> same spatial size)."""
    N, Cin, H, W = x_nchw.shape
    Cout = w_oihw.shape[0]
    TH = _pick_row_block(H, W)
    Hp = H + 2 * PAD
    Wp = W + 2 * PAD
    Wp_pad = ((Wp + 7) // 8) * 8          # sublane-align the padded width

    # Glue (one fused XLA pass over the input): NCHW->NHWC, ReLU, bf16 cast,
    # zero padding.  ReLU(0)=0 so applying ReLU before zero-pad is equivalent.
    x_nhwc = jnp.transpose(x_nchw, (0, 2, 3, 1))
    x_act = jnp.maximum(x_nhwc, 0.0).astype(jnp.bfloat16)
    x_pad = jnp.pad(x_act, ((0, 0), (PAD, PAD), (PAD, Wp_pad - W - PAD), (0, 0)))

    # (Cout,Cin,KH,KW) -> (KH,KW,Cin,Cout) -> (KH*KW*Cin, Cout), cast to bf16 once.
    w_mat = jnp.transpose(w_oihw, (2, 3, 1, 0)).reshape(KH * KW * Cin, Cout)
    w_mat = w_mat.astype(jnp.bfloat16)

    flops = 2 * N * H * W * KH * KW * Cin * Cout
    bytes_accessed = x_pad.size * 2 + w_mat.size * 2 + N * H * W * Cout * 4

    out_nhwc = pl.pallas_call(
        _dilated_conv_kernel,
        out_shape=jax.ShapeDtypeStruct((N, H, W, Cout), x_nchw.dtype),
        grid=(N, H // TH),
        in_specs=[
            # Whole padded bf16 image per batch element; index map is constant
            # over hb -> DMA'd once per n, rows sliced in-kernel.
            pl.BlockSpec((None, Hp, Wp_pad, Cin), lambda n, hb: (n, 0, 0, 0)),
            # Weights (1.2 MB bf16) stay resident across the entire grid.
            pl.BlockSpec((KH * KW * Cin, Cout), lambda n, hb: (0, 0)),
        ],
        out_specs=pl.BlockSpec((None, TH, W, Cout), lambda n, hb: (n, hb, 0, 0)),
        compiler_params=pltpu.CompilerParams(
            dimension_semantics=("parallel", "parallel"),
            vmem_limit_bytes=32 * 1024 * 1024,
        ),
        cost_estimate=pl.CostEstimate(
            flops=flops, transcendentals=0, bytes_accessed=bytes_accessed),
    )(x_pad, w_mat)

    return jnp.transpose(out_nhwc, (0, 3, 1, 2))


if __name__ == "__main__":
    # Module fixes Cin = Cout = 256; keep batch/spatial small for the test.
    N, C, H, W = 2, 256, 16, 16

    key = jax.random.PRNGKey(0)
    kx, kw = jax.random.split(key)
    x = jax.random.normal(kx, (N, C, H, W), dtype=jnp.float32)
    # Deterministic weight init, scaled like kaiming (1/sqrt(fan_in)).
    fan_in = C * KH * KW
    w = jax.random.normal(kw, (C, C, KH, KW), dtype=jnp.float32) / jnp.sqrt(fan_in)

    y = relu_conv2d(x, w)
    y = jax.block_until_ready(y)

    # Sanity check against XLA's dilated conv of ReLU(x).
    ref = jax.lax.conv_general_dilated(
        jnp.maximum(x, 0.0), w,
        window_strides=(1, 1),
        padding=((PAD, PAD), (PAD, PAD)),
        rhs_dilation=(DIL, DIL),
        dimension_numbers=("NCHW", "OIHW", "NCHW"),
        precision=jax.lax.Precision.HIGHEST,
    )
    assert y.shape == (N, C, H, W)
    max_err = float(jnp.max(jnp.abs(y - ref)))
    scale = float(jnp.max(jnp.abs(ref))) + 1e-6
    assert max_err / scale < 2e-2, f"mismatch: max_err={max_err}, scale={scale}"

    print("KERNEL_OK")
</pallas_src>

<mosaic_0001>
module attributes {stable_mosaic.version = 11 : i64} {
  func.func @_dilated_conv_kernel(%arg0: i32, %arg1: i32, %arg2: memref<1x20x24x256xbf16, #tpu.memory_space<vmem>>, %arg3: memref<2304x256xbf16, #tpu.memory_space<vmem>>, %arg4: memref<1x16x16x256xf32, #tpu.memory_space<vmem>>) attributes {dimension_semantics = [#tpu.dimension_semantics<parallel>, #tpu.dimension_semantics<parallel>], iteration_bounds = array<i64: 2, 1>, scalar_prefetch = 0 : i64, scratch_operands = 0 : i64, tpu.core_type = #tpu.core_type<tc>, window_params = [{transform_indices = @transform_0, window_bounds = array<i64: 1, 20, 24, 256>}, {pipeline_mode = #tpu.pipeline_mode<synchronous>, transform_indices = @transform_1, window_bounds = array<i64: 2304, 256>}, {transform_indices = @transform_2, window_bounds = array<i64: 1, 16, 16, 256>}]} {
    %c16_i32 = arith.constant 16 : i32
    %0 = arith.muli %arg1, %c16_i32 : i32
    %1 = tpu.assume_multiple %0, 16 : i32
    %c0 = arith.constant 0 : index
    %2 = arith.index_cast %1 : i32 to index
    %c0_0 = arith.constant 0 : index
    %c0_1 = arith.constant 0 : index
    %3 = vector.load %arg2[%c0, %2, %c0_0, %c0_1] : memref<1x20x24x256xbf16, #tpu.memory_space<vmem>>, vector<1x20x24x256xbf16>
    %4 = vector.shape_cast %3 : vector<1x20x24x256xbf16> to vector<20x24x256xbf16>
    %cst = arith.constant 0.000000e+00 : f32
    %5 = vector.broadcast %cst : f32 to vector<256x256xf32>
    %6 = vector.extract_strided_slice %4 {offsets = [0, 0, 0], sizes = [20, 16, 256], strides = [1, 1, 1]} : vector<20x24x256xbf16> to vector<20x16x256xbf16>
    %7 = vector.extract_strided_slice %6 {offsets = [0, 0, 0], sizes = [16, 16, 256], strides = [1, 1, 1]} : vector<20x16x256xbf16> to vector<16x16x256xbf16>
    %8 = vector.shape_cast %7 : vector<16x16x256xbf16> to vector<256x256xbf16>
    %c0_2 = arith.constant 0 : index
    %c0_3 = arith.constant 0 : index
    %9 = vector.load %arg3[%c0_2, %c0_3] : memref<2304x256xbf16, #tpu.memory_space<vmem>>, vector<256x256xbf16>
    %cst_4 = arith.constant dense<0.000000e+00> : vector<256x256xf32>
    %10 = tpu.matmul %8, %9, %cst_4 {dimension_numbers = #tpu.dot_dimension_numbers<[1], [0], [0], [1], [0, 0, 1, 1], [], []>} : vector<256x256xbf16>, vector<256x256xbf16>, vector<256x256xf32> -> vector<256x256xf32>
    %11 = arith.addf %5, %10 : vector<256x256xf32>
    %12 = vector.extract_strided_slice %6 {offsets = [2, 0, 0], sizes = [16, 16, 256], strides = [1, 1, 1]} : vector<20x16x256xbf16> to vector<16x16x256xbf16>
    %13 = vector.shape_cast %12 : vector<16x16x256xbf16> to vector<256x256xbf16>
    %c768 = arith.constant 768 : index
    %c0_5 = arith.constant 0 : index
    %14 = vector.load %arg3[%c768, %c0_5] : memref<2304x256xbf16, #tpu.memory_space<vmem>>, vector<256x256xbf16>
    %cst_6 = arith.constant dense<0.000000e+00> : vector<256x256xf32>
    %15 = tpu.matmul %13, %14, %cst_6 {dimension_numbers = #tpu.dot_dimension_numbers<[1], [0], [0], [1], [0, 0, 1, 1], [], []>} : vector<256x256xbf16>, vector<256x256xbf16>, vector<256x256xf32> -> vector<256x256xf32>
    %16 = arith.addf %11, %15 : vector<256x256xf32>
    %17 = vector.extract_strided_slice %6 {offsets = [4, 0, 0], sizes = [16, 16, 256], strides = [1, 1, 1]} : vector<20x16x256xbf16> to vector<16x16x256xbf16>
    %18 = vector.shape_cast %17 : vector<16x16x256xbf16> to vector<256x256xbf16>
    %c1536 = arith.constant 1536 : index
    %c0_7 = arith.constant 0 : index
    %19 = vector.load %arg3[%c1536, %c0_7] : memref<2304x256xbf16, #tpu.memory_space<vmem>>, vector<256x256xbf16>
    %cst_8 = arith.constant dense<0.000000e+00> : vector<256x256xf32>
    %20 = tpu.matmul %18, %19, %cst_8 {dimension_numbers = #tpu.dot_dimension_numbers<[1], [0], [0], [1], [0, 0, 1, 1], [], []>} : vector<256x256xbf16>, vector<256x256xbf16>, vector<256x256xf32> -> vector<256x256xf32>
    %21 = arith.addf %16, %20 : vector<256x256xf32>
    %22 = vector.extract_strided_slice %4 {offsets = [0, 2, 0], sizes = [20, 16, 256], strides = [1, 1, 1]} : vector<20x24x256xbf16> to vector<20x16x256xbf16>
    %23 = vector.extract_strided_slice %22 {offsets = [0, 0, 0], sizes = [16, 16, 256], strides = [1, 1, 1]} : vector<20x16x256xbf16> to vector<16x16x256xbf16>
    %24 = vector.shape_cast %23 : vector<16x16x256xbf16> to vector<256x256xbf16>
    %c256 = arith.constant 256 : index
    %c0_9 = arith.constant 0 : index
    %25 = vector.load %arg3[%c256, %c0_9] : memref<2304x256xbf16, #tpu.memory_space<vmem>>, vector<256x256xbf16>
    %cst_10 = arith.constant dense<0.000000e+00> : vector<256x256xf32>
    %26 = tpu.matmul %24, %25, %cst_10 {dimension_numbers = #tpu.dot_dimension_numbers<[1], [0], [0], [1], [0, 0, 1, 1], [], []>} : vector<256x256xbf16>, vector<256x256xbf16>, vector<256x256xf32> -> vector<256x256xf32>
    %27 = arith.addf %21, %26 : vector<256x256xf32>
    %28 = vector.extract_strided_slice %22 {offsets = [2, 0, 0], sizes = [16, 16, 256], strides = [1, 1, 1]} : vector<20x16x256xbf16> to vector<16x16x256xbf16>
    %29 = vector.shape_cast %28 : vector<16x16x256xbf16> to vector<256x256xbf16>
    %c1024 = arith.constant 1024 : index
    %c0_11 = arith.constant 0 : index
    %30 = vector.load %arg3[%c1024, %c0_11] : memref<2304x256xbf16, #tpu.memory_space<vmem>>, vector<256x256xbf16>
    %cst_12 = arith.constant dense<0.000000e+00> : vector<256x256xf32>
    %31 = tpu.matmul %29, %30, %cst_12 {dimension_numbers = #tpu.dot_dimension_numbers<[1], [0], [0], [1], [0, 0, 1, 1], [], []>} : vector<256x256xbf16>, vector<256x256xbf16>, vector<256x256xf32> -> vector<256x256xf32>
    %32 = arith.addf %27, %31 : vector<256x256xf32>
    %33 = vector.extract_strided_slice %22 {offsets = [4, 0, 0], sizes = [16, 16, 256], strides = [1, 1, 1]} : vector<20x16x256xbf16> to vector<16x16x256xbf16>
    %34 = vector.shape_cast %33 : vector<16x16x256xbf16> to vector<256x256xbf16>
    %c1792 = arith.constant 1792 : index
    %c0_13 = arith.constant 0 : index
    %35 = vector.load %arg3[%c1792, %c0_13] : memref<2304x256xbf16, #tpu.memory_space<vmem>>, vector<256x256xbf16>
    %cst_14 = arith.constant dense<0.000000e+00> : vector<256x256xf32>
    %36 = tpu.matmul %34, %35, %cst_14 {dimension_numbers = #tpu.dot_dimension_numbers<[1], [0], [0], [1], [0, 0, 1, 1], [], []>} : vector<256x256xbf16>, vector<256x256xbf16>, vector<256x256xf32> -> vector<256x256xf32>
    %37 = arith.addf %32, %36 : vector<256x256xf32>
    %38 = vector.extract_strided_slice %4 {offsets = [0, 4, 0], sizes = [20, 16, 256], strides = [1, 1, 1]} : vector<20x24x256xbf16> to vector<20x16x256xbf16>
    %39 = vector.extract_strided_slice %38 {offsets = [0, 0, 0], sizes = [16, 16, 256], strides = [1, 1, 1]} : vector<20x16x256xbf16> to vector<16x16x256xbf16>
    %40 = vector.shape_cast %39 : vector<16x16x256xbf16> to vector<256x256xbf16>
    %c512 = arith.constant 512 : index
    %c0_15 = arith.constant 0 : index
    %41 = vector.load %arg3[%c512, %c0_15] : memref<2304x256xbf16, #tpu.memory_space<vmem>>, vector<256x256xbf16>
    %cst_16 = arith.constant dense<0.000000e+00> : vector<256x256xf32>
    %42 = tpu.matmul %40, %41, %cst_16 {dimension_numbers = #tpu.dot_dimension_numbers<[1], [0], [0], [1], [0, 0, 1, 1], [], []>} : vector<256x256xbf16>, vector<256x256xbf16>, vector<256x256xf32> -> vector<256x256xf32>
    %43 = arith.addf %37, %42 : vector<256x256xf32>
    %44 = vector.extract_strided_slice %38 {offsets = [2, 0, 0], sizes = [16, 16, 256], strides = [1, 1, 1]} : vector<20x16x256xbf16> to vector<16x16x256xbf16>
    %45 = vector.shape_cast %44 : vector<16x16x256xbf16> to vector<256x256xbf16>
    %c1280 = arith.constant 1280 : index
    %c0_17 = arith.constant 0 : index
    %46 = vector.load %arg3[%c1280, %c0_17] : memref<2304x256xbf16, #tpu.memory_space<vmem>>, vector<256x256xbf16>
    %cst_18 = arith.constant dense<0.000000e+00> : vector<256x256xf32>
    %47 = tpu.matmul %45, %46, %cst_18 {dimension_numbers = #tpu.dot_dimension_numbers<[1], [0], [0], [1], [0, 0, 1, 1], [], []>} : vector<256x256xbf16>, vector<256x256xbf16>, vector<256x256xf32> -> vector<256x256xf32>
    %48 = arith.addf %43, %47 : vector<256x256xf32>
    %49 = vector.extract_strided_slice %38 {offsets = [4, 0, 0], sizes = [16, 16, 256], strides = [1, 1, 1]} : vector<20x16x256xbf16> to vector<16x16x256xbf16>
    %50 = vector.shape_cast %49 : vector<16x16x256xbf16> to vector<256x256xbf16>
    %c2048 = arith.constant 2048 : index
    %c0_19 = arith.constant 0 : index
    %51 = vector.load %arg3[%c2048, %c0_19] : memref<2304x256xbf16, #tpu.memory_space<vmem>>, vector<256x256xbf16>
    %cst_20 = arith.constant dense<0.000000e+00> : vector<256x256xf32>
    %52 = tpu.matmul %50, %51, %cst_20 {dimension_numbers = #tpu.dot_dimension_numbers<[1], [0], [0], [1], [0, 0, 1, 1], [], []>} : vector<256x256xbf16>, vector<256x256xbf16>, vector<256x256xf32> -> vector<256x256xf32>
    %53 = arith.addf %48, %52 : vector<256x256xf32>
    %54 = vector.shape_cast %53 : vector<256x256xf32> to vector<16x16x256xf32>
    %c0_21 = arith.constant 0 : index
    %c0_22 = arith.constant 0 : index
    %c0_23 = arith.constant 0 : index
    %c0_24 = arith.constant 0 : index
    %55 = vector.load %arg4[%c0_21, %c0_22, %c0_23, %c0_24] : memref<1x16x16x256xf32, #tpu.memory_space<vmem>>, vector<1x16x16x256xf32>
    %56 = vector.shape_cast %55 : vector<1x16x16x256xf32> to vector<16x16x256xf32>
    %57 = vector.shape_cast %54 : vector<16x16x256xf32> to vector<1x16x16x256xf32>
    tpu.vector_store %arg4[%c0_21, %c0_22, %c0_23, %c0_24], %57 {strides = array<i32>} : memref<1x16x16x256xf32, #tpu.memory_space<vmem>>, vector<1x16x16x256xf32>,
    return
  }
  func.func @transform_0(%arg0: i32, %arg1: i32) -> (i32, i32, i32, i32) {
    %c0_i32 = arith.constant 0 : i32
    %c0_i32_0 = arith.constant 0 : i32
    %c0_i32_1 = arith.constant 0 : i32
    %c0_i32_2 = arith.constant 0 : i32
    return %arg0, %c0_i32, %c0_i32_0, %c0_i32_1 : i32, i32, i32, i32
  }
  func.func @transform_1(%arg0: i32, %arg1: i32) -> (i32, i32) {
    %c0_i32 = arith.constant 0 : i32
    %c0_i32_0 = arith.constant 0 : i32
    %c0_i32_1 = arith.constant 0 : i32
    return %c0_i32, %c0_i32_0 : i32, i32
  }
  func.func @transform_2(%arg0: i32, %arg1: i32) -> (i32, i32, i32, i32) {
    %c0_i32 = arith.constant 0 : i32
    %c0_i32_0 = arith.constant 0 : i32
    %c0_i32_1 = arith.constant 0 : i32
    return %arg0, %arg1, %c0_i32, %c0_i32_0 : i32, i32, i32, i32
  }
}

</mosaic_0001>

<bundles_post_ra>
// kernel: relu_conv2d.1
= control target key start
LH: loop header
LB: loop body
LE: loop exit
PB: predicated region body
PF: predicated region fallthrough
CT: control target
= control target key end

     0   :  { %7 = vsyncpa [#allocation3], 0  ;;  %s13015_s0 = inlined_call_operand.vmem [shape: bf16[2,20,24,256], index: 0, kind: input, shape index: {}]   ;;  %s13016_s1 = inlined_call_operand.vmem [shape: bf16[2304,256], index: 1, kind: input, shape index: {}]   ;;  %s13017_s2 = inlined_call_operand.hbm [shape: f32[2,16,16,256], index: 2, kind: output, shape index: {}]  }
   0x1   :  { %9 = vsyncpa [#allocation3 + $0x1], 0  ;;  %s8493_s9 = smov 0   ;;  %s8495_s10 = smov 0  }
   0x2   :  { %s8497_s11 = smov 0   ;;  %s8499_s12 = smov 0  }
   0x3   :  { %s8501_s13 = smov 0   ;;  %s8503_s14 = smov 0  }
   0x4 LB: > { %s6585_s15 = sadd.s32 4294967295, %s8474_s14   ;;  %s6586_s16 = sadd.s32 4294967294, %s8474_s14   ;;  %s8474_s14 = sphi %s8503_s14, %s15_s14   ;;  %s8470_s13 = sphi %s8501_s13, %s13660_s13   ;;  %s8466_s12 = sphi %s8499_s12, %s13659_s12   ;;  %s8462_s11 = sphi %s8497_s11, %s13658_s11   ;;  %s8458_s10 = sphi %s8495_s10, %s13657_s10   ;;  %s8454_s9 = sphi %s8493_s9, %s13656_s9  }
   0x5   : > { %s27_s17 = sadd.s32 1, %s8470_s13  ;;  %s83_s18 = sadd.s32 1, %s8462_s11 }
   0x6   : > { %p29_p0 = scmp.ge.s32.totalorder %s27_s17, 2  ;;  %p93_p1 = scmp.ne.s32.totalorder %s8462_s11, %s8458_s10 }
   0x7   : > { %p94_p2 = scmp.eq.s32.totalorder %s6585_s15, 1  ;;  %p99_p3 = scmp.ne.s32.totalorder %s8458_s10, %s8454_s9 }
   0x8   : > { %s13662_s17 = smov (%p29_p0, %s27_s17), 0  ;;  %p100_p5 = scmp.eq.s32.totalorder %s6586_s16, 1 }
   0x9   : > { %p8533_p4 = por %p94_p2, %p93_p1  ;;  %s78_s20 = ssub.s32 %s8470_s13, %s13662_s17 }
   0xa   : > { %p6589_p6 = scmp.ge.s32.totalorder %s8474_s14, 1  ;;  %p81_p7 = scmp.eq.s32.totalorder %s78_s20, 0 }
   0xb   : > { %p8540_p8 = por %p100_p5, %p99_p3  ;;  %p129_p9 = scmp.lt.s32.totalorder %s8474_s14, 3 }
   0xc   : > { %s8546_s22 = scalar_select %p81_p7, %s8462_s11, %s83_s18  }
   0xd   : > { %p130_p10 = pnand %p6589_p6, %p129_p9 }
   0xf   : > { %133 = sbr.rel (%p130_p10) target bundleno = 2492 (0x9bc), region = 28 }
  0x14   : > { %v6778_v0 = vld [vmem:[%s13016_s1 + $0x370] sm:$0xf]  ;;  %v8036_v1 = vld [vmem:[%s13016_s1 + $0x374] sm:$0xf0]  ;;  %v8035_v5 = vld [vmem:[%s13016_s1 + $0x374] sm:$0xf] }
  0x15   : > { %v6842_v2 = vld [vmem:[%s13016_s1 + $0x3f0] sm:$0xf]  ;;  %v6779_v3 = vor.u32 %v8036_v1, %v6778_v0  ;;  %v8052_v4 = vld [vmem:[%s13016_s1 + $0x3f4] sm:$0xf0]  ;;  %v6780_v6 = vld [vmem:[%s13016_s1 + $0x378] sm:$0xf0] }
  0x16   : > { %v6843_v7 = vor.u32 %v8052_v4, %v6842_v2  ;;  %v6783_v8 = vor.u32 %v8035_v5, %v6780_v6  ;;  %v8051_v9 = vld [vmem:[%s13016_s1 + $0x3f4] sm:$0xf]  ;;  %v6844_v10 = vld [vmem:[%s13016_s1 + $0x3f8] sm:$0xf0]  ;;  %v6770_v11 = vld [vmem:[%s13016_s1 + $0x360] sm:$0xf] }
  0x17   : > { %605 = vmatpush.bf16.msra.mxu0 %v6779_v3  ;;  %v6847_v12 = vor.u32 %v8051_v9, %v6844_v10  ;;  %v8034_v13 = vld [vmem:[%s13016_s1 + $0x364] sm:$0xf0]  ;;  %v6834_v14 = vld [vmem:[%s13016_s1 + $0x3e0] sm:$0xf]  ;;  %v8033_v18 = vld [vmem:[%s13016_s1 + $0x364] sm:$0xf] }
  0x18   : > { %v8050_v15 = vld [vmem:[%s13016_s1 + $0x3e4] sm:$0xf0]  ;;  %694 = vmatpush.bf16.msra.mxu1 %v6843_v7  ;;  %783 = vmatpush.bf16.msra.mxu2 %v6783_v8  ;;  %v6771_v16 = vor.u32 %v8034_v13, %v6770_v11  ;;  %v6772_v19 = vld [vmem:[%s13016_s1 + $0x368] sm:$0xf0]  ;;  %v8049_v20 = vld [vmem:[%s13016_s1 + $0x3e4] sm:$0xf] }
  0x19   : > { %v6835_v17 = vor.u32 %v8050_v15, %v6834_v14  ;;  %872 = vmatpush.bf16.msra.mxu3 %v6847_v12  ;;  %v6775_v21 = vor.u32 %v8033_v18, %v6772_v19  ;;  %v6836_v22 = vld [vmem:[%s13016_s1 + $0x3e8] sm:$0xf0]  ;;  %v6762_v23 = vld [vmem:[%s13016_s1 + $0x350] sm:$0xf]  ;;  %v8032_v24 = vld [vmem:[%s13016_s1 + $0x354] sm:$0xf0] }
  0x1a   : > { %v6839_v25 = vor.u32 %v8049_v20, %v6836_v22  ;;  %v6826_v26 = vld [vmem:[%s13016_s1 + $0x3d0] sm:$0xf]  ;;  %v8048_v27 = vld [vmem:[%s13016_s1 + $0x3d4] sm:$0xf0]  ;;  %v8031_v28 = vld [vmem:[%s13016_s1 + $0x354] sm:$0xf]  ;;  %v6763_v29 = vor.u32 %v8032_v24, %v6762_v23 }
  0x1b   : > { %606 = vmatpush.bf16.msra.mxu0 %v6771_v16  ;;  %v6764_v30 = vld [vmem:[%s13016_s1 + $0x358] sm:$0xf0]  ;;  %v8047_v31 = vld [vmem:[%s13016_s1 + $0x3d4] sm:$0xf]  ;;  %v6827_v33 = vor.u32 %v8048_v27, %v6826_v26  ;;  %v6754_v35 = vld [vmem:[%s13016_s1 + $0x340] sm:$0xf] }
  0x1c   : > { %v6828_v32 = vld [vmem:[%s13016_s1 + $0x3d8] sm:$0xf0]  ;;  %695 = vmatpush.bf16.msra.mxu1 %v6835_v17  ;;  %784 = vmatpush.bf16.msra.mxu2 %v6775_v21  ;;  %v6767_v34 = vor.u32 %v8031_v28, %v6764_v30  ;;  %v8030_v36 = vld [vmem:[%s13016_s1 + $0x344] sm:$0xf0]  ;;  %v6818_v37 = vld [vmem:[%s13016_s1 + $0x3c0] sm:$0xf] }
  0x1d   : > { %873 = vmatpush.bf16.msra.mxu3 %v6839_v25  ;;  %v6831_v38 = vor.u32 %v8047_v31, %v6828_v32  ;;  %v8046_v39 = vld [vmem:[%s13016_s1 + $0x3c4] sm:$0xf0]  ;;  %v8029_v40 = vld [vmem:[%s13016_s1 + $0x344] sm:$0xf]  ;;  %v6756_v41 = vld [vmem:[%s13016_s1 + $0x348] sm:$0xf0]  ;;  %v6755_v44 = vor.u32 %v8030_v36, %v6754_v35 }
  0x1e   : > { %v8045_v42 = vld [vmem:[%s13016_s1 + $0x3c4] sm:$0xf]  ;;  %v6820_v43 = vld [vmem:[%s13016_s1 + $0x3c8] sm:$0xf0]  ;;  %v6819_v45 = vor.u32 %v8046_v39, %v6818_v37  ;;  %v6759_v46 = vor.u32 %v8029_v40, %v6756_v41  ;;  %v6746_v47 = vld [vmem:[%s13016_s1 + $0x330] sm:$0xf] }
  0x1f   : > { %607 = vmatpush.bf16.msra.mxu0 %v6763_v29  ;;  %v8028_v48 = vld [vmem:[%s13016_s1 + $0x334] sm:$0xf0]  ;;  %v6810_v49 = vld [vmem:[%s13016_s1 + $0x3b0] sm:$0xf]  ;;  %v6823_v50 = vor.u32 %v8045_v42, %v6820_v43  ;;  %v8027_v52 = vld [vmem:[%s13016_s1 + $0x334] sm:$0xf] }
  0x20   : > { %696 = vmatpush.bf16.msra.mxu1 %v6827_v33  ;;  %785 = vmatpush.bf16.msra.mxu2 %v6767_v34  ;;  %v8044_v51 = vld [vmem:[%s13016_s1 + $0x3b4] sm:$0xf0]  ;;  %v6748_v53 = vld [vmem:[%s13016_s1 + $0x338] sm:$0xf0]  ;;  %v8043_v54 = vld [vmem:[%s13016_s1 + $0x3b4] sm:$0xf]  ;;  %v6747_v56 = vor.u32 %v8028_v48, %v6746_v47 }
  0x21   : > { %874 = vmatpush.bf16.msra.mxu3 %v6831_v38  ;;  %v6812_v55 = vld [vmem:[%s13016_s1 + $0x3b8] sm:$0xf0]  ;;  %v6811_v57 = vor.u32 %v8044_v51, %v6810_v49  ;;  %v6751_v58 = vor.u32 %v8027_v52, %v6748_v53  ;;  %v6738_v59 = vld [vmem:[%s13016_s1 + $0x320] sm:$0xf]  ;;  %v8026_v60 = vld [vmem:[%s13016_s1 + $0x324] sm:$0xf0] }
  0x22   : > { %v6802_v61 = vld [vmem:[%s13016_s1 + $0x3a0] sm:$0xf]  ;;  %v6815_v62 = vor.u32 %v8043_v54, %v6812_v55  ;;  %v8042_v63 = vld [vmem:[%s13016_s1 + $0x3a4] sm:$0xf0]  ;;  %v8025_v0 = vld [vmem:[%s13016_s1 + $0x324] sm:$0xf]  ;;  %v6739_v4 = vor.u32 %v8026_v60, %v6738_v59 }
  0x23   : > { %608 = vmatpush.bf16.msra.mxu0 %v6755_v44  ;;  %v6740_v1 = vld [vmem:[%s13016_s1 + $0x328] sm:$0xf0]  ;;  %v8041_v2 = vld [vmem:[%s13016_s1 + $0x3a4] sm:$0xf]  ;;  %v6730_v5 = vld [vmem:[%s13016_s1 + $0x310] sm:$0xf]  ;;  %v6803_v6 = vor.u32 %v8042_v63, %v6802_v61 }
  0x24   : > { %697 = vmatpush.bf16.msra.mxu1 %v6819_v45  ;;  %786 = vmatpush.bf16.msra.mxu2 %v6759_v46  ;;  %v6804_v3 = vld [vmem:[%s13016_s1 + $0x3a8] sm:$0xf0]  ;;  %v6743_v7 = vor.u32 %v8025_v0, %v6740_v1  ;;  %v8024_v8 = vld [vmem:[%s13016_s1 + $0x314] sm:$0xf0]  ;;  %v6794_v9 = vld [vmem:[%s13016_s1 + $0x390] sm:$0xf] }
  0x25   : > { %875 = vmatpush.bf16.msra.mxu3 %v6823_v50  ;;  %v8040_v10 = vld [vmem:[%s13016_s1 + $0x394] sm:$0xf0]  ;;  %v6807_v11 = vor.u32 %v8041_v2, %v6804_v3  ;;  %v8023_v12 = vld [vmem:[%s13016_s1 + $0x314] sm:$0xf]  ;;  %v6732_v13 = vld [vmem:[%s13016_s1 + $0x318] sm:$0xf0]  ;;  %v6731_v16 = vor.u32 %v8024_v8, %v6730_v5 }
  0x26   : > { %p151_p11 = scmp.lt.s32.totalorder %s8466_s12, 1  ;;  %v8039_v14 = vld [vmem:[%s13016_s1 + $0x394] sm:$0xf]  ;;  %v6796_v15 = vld [vmem:[%s13016_s1 + $0x398] sm:$0xf0]  ;;  %v6795_v19 = vor.u32 %v8040_v10, %v6794_v9  ;;  %v6735_v20 = vor.u32 %v8023_v12, %v6732_v13  ;;  %vm2145_vm0 = vcmask 1042432  }
  0x27   : > { %609 = vmatpush.bf16.msra.mxu0 %v6747_v56  ;;  %v6722_v17 = vld [vmem:[%s13016_s1 + $0x300] sm:$0xf]  ;;  %v8022_v18 = vld [vmem:[%s13016_s1 + $0x304] sm:$0xf0]  ;;  %v8021_v23 = vld [vmem:[%s13016_s1 + $0x304] sm:$0xf]  ;;  %v6799_v24 = vor.u32 %v8039_v14, %v6796_v15 }
  0x28   : > { %698 = vmatpush.bf16.msra.mxu1 %v6811_v57  ;;  %787 = vmatpush.bf16.msra.mxu2 %v6751_v58  ;;  %s152_s3 = scalar_select %p151_p11, %s8466_s12, 1  ;;  %v6786_v21 = vld [vmem:[%s13016_s1 + $0x380] sm:$0xf]  ;;  %v8038_v22 = vld [vmem:[%s13016_s1 + $0x384] sm:$0xf0]  ;;  %v6723_v30 = vor.u32 %v8022_v18, %v6722_v17  ;;  %vm2146_vm1 = vcmask 1046532  }
  0x29   : > { %876 = vmatpush.bf16.msra.mxu3 %v6815_v62  ;;  %v6724_v25 = vld [vmem:[%s13016_s1 + $0x308] sm:$0xf0]  ;;  %v8037_v26 = vld [vmem:[%s13016_s1 + $0x384] sm:$0xf]  ;;  %v8003_v28 = vld [vmem:[%s13016_s1 + $0x74] sm:$0xf]  ;;  %v6787_v33 = vor.u32 %v8038_v22, %v6786_v21 }
  0x2a   : > { %s8278_s24 = smul.u32 480, %s152_s3  ;;  %v6788_v27 = vld [vmem:[%s13016_s1 + $0x388] sm:$0xf0]  ;;  %v6924_v29 = vld [vmem:[%s13016_s1 + $0x78] sm:$0xf0]  ;;  %v6727_v34 = vor.u32 %v8021_v23, %v6724_v25  ;;  %vm10077_vm2 = vmor %vm2145_vm0, %vm2146_vm1  ;;  %vm4288_vm3 = vcmask 1041408  }
  0x2b   : > { %610 = vmatpush.bf16.msra.mxu0 %v6739_v4  ;;  %v8019_v31 = vld [vmem:[%s13016_s1 + $0xf4] sm:$0xf]  ;;  %v6988_v32 = vld [vmem:[%s13016_s1 + $0xf8] sm:$0xf0]  ;;  %v6791_v38 = vor.u32 %v8037_v26, %v6788_v27  ;;  %v6927_v40 = vor.u32 %v8003_v28, %v6924_v29  ;;  %v6922_v41 = vld [vmem:[%s13016_s1 + $0x70] sm:$0xf] }
  0x2c   : > { %699 = vmatpush.bf16.msra.mxu1 %v6803_v6  ;;  %788 = vmatpush.bf16.msra.mxu2 %v6743_v7  ;;  %s8751_s6 = scalar_lea.vmem %s13015_s0, %s8278_s24  ;;  %v8004_v42 = vld [vmem:[%s13016_s1 + $0x74] sm:$0xf0]  ;;  %v6991_v44 = vor.u32 %v8019_v31, %v6988_v32  ;;  %v6986_v45 = vld [vmem:[%s13016_s1 + $0xf0] sm:$0xf]  ;;  %v8001_v50 = vld [vmem:[%s13016_s1 + $0x64] sm:$0xf] }
  0x2d   : > { %877 = vmatpush.bf16.msra.mxu3 %v6807_v11  ;;  %v6594_v35 = vld [vmem:[%s8751_s6 + $0x30] sm:$0xf]  ;;  %v7954_v36 = vld [vmem:[%s8751_s6 + $0x34] sm:$0xf0]  ;;  %v7953_v37 = vld [vmem:[%s8751_s6 + $0x34] sm:$0xf]  ;;  %v6923_v48 = vor.u32 %v8004_v42, %v6922_v41 }
  0x2e   : > { %v6596_v39 = vld [vmem:[%s8751_s6 + $0x38] sm:$0xf0]  ;;  %v8769_v43 = vor.u32 %v7954_v36, %v6594_v35  ;;  %v8020_v46 = vld [vmem:[%s13016_s1 + $0xf4] sm:$0xf0]  ;;  %v6916_v51 = vld [vmem:[%s13016_s1 + $0x68] sm:$0xf0] }
  0x2f   : > { %611 = vmatpush.bf16.msra.mxu0 %v6731_v16  ;;  %v8777_v47 = vor.u32 %v7953_v37, %v6596_v39  ;;  %v6987_v49 = vor.u32 %v8020_v46, %v6986_v45  ;;  %v8017_v52 = vld [vmem:[%s13016_s1 + $0xe4] sm:$0xf]  ;;  %v6919_v53 = vor.u32 %v8001_v50, %v6916_v51  ;;  %v6980_v54 = vld [vmem:[%s13016_s1 + $0xe8] sm:$0xf0]  ;;  %v6914_v55 = vld [vmem:[%s13016_s1 + $0x60] sm:$0xf] }
  0x30   : > { %700 = vmatpush.bf16.msra.mxu1 %v6795_v19  ;;  %789 = vmatpush.bf16.msra.mxu2 %v6735_v20  ;;  %v8002_v56 = vld [vmem:[%s13016_s1 + $0x64] sm:$0xf0]  ;;  %v6983_v57 = vor.u32 %v8017_v52, %v6980_v54  ;;  %v6978_v59 = vld [vmem:[%s13016_s1 + $0xe0] sm:$0xf]  ;;  %v7956_v63 = vld [vmem:[%s8751_s6 + $0x4c] sm:$0xf0] }
  0x31   : > { %878 = vmatpush.bf16.msra.mxu3 %v6799_v24  ;;  %v6915_v58 = vor.u32 %v8002_v56, %v6914_v55  ;;  %v8018_v60 = vld [vmem:[%s13016_s1 + $0xe4] sm:$0xf0]  ;;  %v7955_v0 = vld [vmem:[%s8751_s6 + $0x4c] sm:$0xf]  ;;  %v6604_v1 = vld [vmem:[%s8751_s6 + $0x50] sm:$0xf0] }
  0x32   : > { %v6979_v61 = vor.u32 %v8018_v60, %v6978_v59  ;;  %v6602_v62 = vld [vmem:[%s8751_s6 + $0x48] sm:$0xf]  ;;  %v8813_v3 = vor.u32 %v7955_v0, %v6604_v1  ;;  %v6610_v4 = vld [vmem:[%s8751_s6 + $0x60] sm:$0xf]  ;;  %v7957_v6 = vld [vmem:[%s8751_s6 + $0x64] sm:$0xf] }
  0x33   : > { %612 = vmatpush.bf16.msra.mxu0 %v6723_v30  ;;  %v8811_v2 = vor.u32 %v7956_v63, %v6602_v62  ;;  %v7958_v5 = vld [vmem:[%s8751_s6 + $0x64] sm:$0xf0]  ;;  %v6612_v7 = vld [vmem:[%s8751_s6 + $0x68] sm:$0xf0]  ;;  %v7999_v10 = vld [vmem:[%s13016_s1 + $0x54] sm:$0xf] }
  0x34   : > { %701 = vmatpush.bf16.msra.mxu1 %v6787_v33  ;;  %790 = vmatpush.bf16.msra.mxu2 %v6727_v34  ;;  %v8823_v8 = vor.u32 %v7958_v5, %v6610_v4  ;;  %v8825_v9 = vor.u32 %v7957_v6, %v6612_v7  ;;  %v6908_v11 = vld [vmem:[%s13016_s1 + $0x58] sm:$0xf0]  ;;  %v8015_v12 = vld [vmem:[%s13016_s1 + $0xd4] sm:$0xf]  ;;  %v6906_v15 = vld [vmem:[%s13016_s1 + $0x50] sm:$0xf] }
  0x35   : > { %879 = vmatpush.bf16.msra.mxu3 %v6791_v38  ;;  %v6911_v13 = vor.u32 %v7999_v10, %v6908_v11  ;;  %v6972_v14 = vld [vmem:[%s13016_s1 + $0xd8] sm:$0xf0]  ;;  %v8000_v16 = vld [vmem:[%s13016_s1 + $0x54] sm:$0xf0]  ;;  %v6970_v19 = vld [vmem:[%s13016_s1 + $0xd0] sm:$0xf] }
  0x36   : > { %613 = vmatmul.bf16.vlgmr.msra.gmra.mxu0 %v8769_v43  ;;  %v6975_v17 = vor.u32 %v8015_v12, %v6972_v14  ;;  %v6907_v18 = vor.u32 %v8000_v16, %v6906_v15  ;;  %v8016_v20 = vld [vmem:[%s13016_s1 + $0xd4] sm:$0xf0]  ;;  %v7960_v23 = vld [vmem:[%s8751_s6 + $0x7c] sm:$0xf0]  ;;  %v7959_v24 = vld [vmem:[%s8751_s6 + $0x7c] sm:$0xf] }
  0x37   : > { %702 = vmatmul.bf16.vlgmr.msra.gmra.mxu1 %v8777_v47  ;;  %791 = vmatmul.bf16.vlgmr.msra.gmra.mxu2 %v8769_v43  ;;  %v6971_v21 = vor.u32 %v8016_v20, %v6970_v19  ;;  %v6618_v22 = vld [vmem:[%s8751_s6 + $0x78] sm:$0xf]  ;;  %v6620_v25 = vld [vmem:[%s8751_s6 + $0x80] sm:$0xf0]  ;;  %v6626_v28 = vld [vmem:[%s8751_s6 + $0x90] sm:$0xf] }
  0x38   : > { %1319 = vmatpush.bf16.msrb.mxu2 %v6927_v40  ;;  %880 = vmatmul.bf16.vlgmr.msra.gmra.mxu3 %v8777_v47  ;;  %v8859_v26 = vor.u32 %v7960_v23, %v6618_v22  ;;  %v8861_v27 = vor.u32 %v7959_v24, %v6620_v25  ;;  %v7962_v29 = vld [vmem:[%s8751_s6 + $0x94] sm:$0xf0]  ;;  %v7961_v30 = vld [vmem:[%s8751_s6 + $0x94] sm:$0xf]  ;;  %v6628_v31 = vld [vmem:[%s8751_s6 + $0x98] sm:$0xf0] }
  0x39   : > { %1408 = vmatpush.bf16.msrb.mxu3 %v6991_v44  ;;  %1141 = vmatpush.bf16.msrb.mxu0 %v6923_v48  ;;  %v8871_v32 = vor.u32 %v7962_v29, %v6626_v28  ;;  %v8873_v33 = vor.u32 %v7961_v30, %v6628_v31  ;;  %v7997_v34 = vld [vmem:[%s13016_s1 + $0x44] sm:$0xf]  ;;  %v6900_v35 = vld [vmem:[%s13016_s1 + $0x48] sm:$0xf0]  ;;  %v6898_v39 = vld [vmem:[%s13016_s1 + $0x40] sm:$0xf] }
  0x3a   : > { %1230 = vmatpush.bf16.msrb.mxu1 %v6987_v49  ;;  %v8013_v36 = vld [vmem:[%s13016_s1 + $0xc4] sm:$0xf]  ;;  %v6903_v37 = vor.u32 %v7997_v34, %v6900_v35  ;;  %v6964_v38 = vld [vmem:[%s13016_s1 + $0xc8] sm:$0xf0]  ;;  %v7998_v40 = vld [vmem:[%s13016_s1 + $0x44] sm:$0xf0] }
  0x3b   : > { %v6967_v41 = vor.u32 %v8013_v36, %v6964_v38  ;;  %v6899_v42 = vor.u32 %v7998_v40, %v6898_v39  ;;  %v6962_v44 = vld [vmem:[%s13016_s1 + $0xc0] sm:$0xf]  ;;  %v8014_v45 = vld [vmem:[%s13016_s1 + $0xc4] sm:$0xf0]  ;;  %v7964_v49 = vld [vmem:[%s8751_s6 + $0xac] sm:$0xf0] }
  0x3c   : > { %1320 = vmatpush.bf16.msrb.mxu2 %v6919_v53  ;;  %v6963_v46 = vor.u32 %v8014_v45, %v6962_v44  ;;  %v6634_v48 = vld [vmem:[%s8751_s6 + $0xa8] sm:$0xf]  ;;  %v7963_v50 = vld [vmem:[%s8751_s6 + $0xac] sm:$0xf]  ;;  %v6636_v51 = vld [vmem:[%s8751_s6 + $0xb0] sm:$0xf0] }
  0x3d   : > { %1409 = vmatpush.bf16.msrb.mxu3 %v6983_v57  ;;  %1142 = vmatpush.bf16.msrb.mxu0 %v6915_v58  ;;  %v8907_v52 = vor.u32 %v7964_v49, %v6634_v48  ;;  %v8909_v53 = vor.u32 %v7963_v50, %v6636_v51  ;;  %v6642_v54 = vld [vmem:[%s8751_s6 + $0xc0] sm:$0xf]  ;;  %v7966_v55 = vld [vmem:[%s8751_s6 + $0xc4] sm:$0xf0]  ;;  %v7965_v56 = vld [vmem:[%s8751_s6 + $0xc4] sm:$0xf] }
  0x3e   : > { %1231 = vmatpush.bf16.msrb.mxu1 %v6979_v61  ;;  %v6644_v57 = vld [vmem:[%s8751_s6 + $0xc8] sm:$0xf0]  ;;  %v8919_v58 = vor.u32 %v7966_v55, %v6642_v54  ;;  %v7995_v60 = vld [vmem:[%s13016_s1 + $0x34] sm:$0xf]  ;;  %v6892_v61 = vld [vmem:[%s13016_s1 + $0x38] sm:$0xf0] }
  0x3f   : > { %v8921_v59 = vor.u32 %v7965_v56, %v6644_v57  ;;  %v8011_v62 = vld [vmem:[%s13016_s1 + $0xb4] sm:$0xf]  ;;  %v6895_v63 = vor.u32 %v7995_v60, %v6892_v61  ;;  %v6956_v0 = vld [vmem:[%s13016_s1 + $0xb8] sm:$0xf0]  ;;  %v6890_v4 = vld [vmem:[%s13016_s1 + $0x30] sm:$0xf] }
  0x40   : > { %1321 = vmatpush.bf16.msrb.mxu2 %v6911_v13  ;;  %v6959_v1 = vor.u32 %v8011_v62, %v6956_v0  ;;  %v7996_v5 = vld [vmem:[%s13016_s1 + $0x34] sm:$0xf0]  ;;  %v6954_v6 = vld [vmem:[%s13016_s1 + $0xb0] sm:$0xf]  ;;  %v7968_v12 = vld [vmem:[%s8751_s6 + $0xdc] sm:$0xf0] }
  0x41   : > { %1410 = vmatpush.bf16.msrb.mxu3 %v6975_v17  ;;  %1143 = vmatpush.bf16.msrb.mxu0 %v6907_v18  ;;  %v6891_v7 = vor.u32 %v7996_v5, %v6890_v4  ;;  %v8012_v10 = vld [vmem:[%s13016_s1 + $0xb4] sm:$0xf0]  ;;  %v7967_v14 = vld [vmem:[%s8751_s6 + $0xdc] sm:$0xf]  ;;  %v6652_v15 = vld [vmem:[%s8751_s6 + $0xe0] sm:$0xf0] }
  0x42   : > { %1232 = vmatpush.bf16.msrb.mxu1 %v6971_v21  ;;  %v6650_v11 = vld [vmem:[%s8751_s6 + $0xd8] sm:$0xf]  ;;  %v6955_v13 = vor.u32 %v8012_v10, %v6954_v6  ;;  %v8957_v17 = vor.u32 %v7967_v14, %v6652_v15  ;;  %v6658_v18 = vld [vmem:[%s8751_s6 + $0xf0] sm:$0xf]  ;;  %v7969_v20 = vld [vmem:[%s8751_s6 + $0xf4] sm:$0xf] }
  0x43   : > { %v8955_v16 = vor.u32 %v7968_v12, %v6650_v11  ;;  %v7970_v19 = vld [vmem:[%s8751_s6 + $0xf4] sm:$0xf0]  ;;  %v6660_v21 = vld [vmem:[%s8751_s6 + $0xf8] sm:$0xf0]  ;;  %v7993_v29 = vld [vmem:[%s13016_s1 + $0x24] sm:$0xf] }
  0x44   : > { %1322 = vmatpush.bf16.msrb.mxu2 %v6903_v37  ;;  %v8967_v22 = vor.u32 %v7970_v19, %v6658_v18  ;;  %v8969_v24 = vor.u32 %v7969_v20, %v6660_v21  ;;  %v6884_v30 = vld [vmem:[%s13016_s1 + $0x28] sm:$0xf0]  ;;  %v8009_v31 = vld [vmem:[%s13016_s1 + $0xa4] sm:$0xf]  ;;  %v6882_v44 = vld [vmem:[%s13016_s1 + $0x20] sm:$0xf] }
  0x45   : > { %1411 = vmatpush.bf16.msrb.mxu3 %v6967_v41  ;;  %1144 = vmatpush.bf16.msrb.mxu0 %v6899_v42  ;;  %v6887_v34 = vor.u32 %v7993_v29, %v6884_v30  ;;  %v6948_v35 = vld [vmem:[%s13016_s1 + $0xa8] sm:$0xf0]  ;;  %v7994_v45 = vld [vmem:[%s13016_s1 + $0x24] sm:$0xf0]  ;;  %v7972_v51 = vld [vmem:[%s8751_s6 + $0x10c] sm:$0xf0] }
  0x46   : > { %618 = vmatmul.bf16.gmra.mxu0 %v8811_v2  ;;  %1233 = vmatpush.bf16.msrb.mxu1 %v6963_v46  ;;  %v6951_v37 = vor.u32 %v8009_v31, %v6948_v35  ;;  %v6946_v46 = vld [vmem:[%s13016_s1 + $0xa0] sm:$0xf]  ;;  %v6883_v48 = vor.u32 %v7994_v45, %v6882_v44  ;;  %v8010_v49 = vld [vmem:[%s13016_s1 + $0xa4] sm:$0xf0]  ;;  %v7971_v55 = vld [vmem:[%s8751_s6 + $0x10c] sm:$0xf] }
  0x47   : > { %707 = vmatmul.bf16.gmra.mxu1 %v8813_v3  ;;  %796 = vmatmul.bf16.gmra.mxu2 %v8811_v2  ;;  %v6666_v50 = vld [vmem:[%s8751_s6 + $0x108] sm:$0xf]  ;;  %v6947_v54 = vor.u32 %v8010_v49, %v6946_v46  ;;  %v6668_v56 = vld [vmem:[%s8751_s6 + $0x110] sm:$0xf0]  ;;  %v7973_v15 = vld [vmem:[%s8751_s6 + $0x124] sm:$0xf] }
  0x48   : > { %885 = vmatmul.bf16.gmra.mxu3 %v8813_v3  ;;  %1323 = vmatpush.bf16.msrb.mxu2 %v6895_v63  ;;  %v9009_v60 = vor.u32 %v7972_v51, %v6666_v50  ;;  %v9011_v63 = vor.u32 %v7971_v55, %v6668_v56  ;;  %v7974_v14 = vld [vmem:[%s8751_s6 + $0x124] sm:$0xf0]  ;;  %v6676_v18 = vld [vmem:[%s8751_s6 + $0x128] sm:$0xf0]  ;;  %v6876_v35 = vld [vmem:[%s13016_s1 + $0x18] sm:$0xf0] }
  0x49   : > { %1412 = vmatpush.bf16.msrb.mxu3 %v6959_v1  ;;  %1145 = vmatpush.bf16.msrb.mxu0 %v6891_v7  ;;  %v6874_v50 = vld [vmem:[%s13016_s1 + $0x10] sm:$0xf]  ;;  %v7992_v51 = vld [vmem:[%s13016_s1 + $0x14] sm:$0xf0]  ;;  %vm4289_vm4 = vcmask 1045508   ;;  %s148_s3 = sand.u32 1, %s8458_s10  }
  0x4a   : > { %1234 = vmatpush.bf16.msrb.mxu1 %v6955_v13  ;;  %v6674_v13 = vld [vmem:[%s8751_s6 + $0x120] sm:$0xf]  ;;  %v6875_v55 = vor.u32 %v7992_v51, %v6874_v50  ;;  %v8008_v56 = vld [vmem:[%s13016_s1 + $0x94] sm:$0xf0]  ;;  %vm11613_vm5 = vmor %vm4288_vm3, %vm4289_vm4  ;;  %s6590_s7 = sshll.u32 %s148_s3, 9  ;;  %s8416_s28 = scalar_lea.hbm %s13017_s2, 1024 }
  0x4b   : > { %v9029_v20 = vor.u32 %v7974_v14, %v6674_v13  ;;  %s12813_s8 = scalar_lea.vmem [#allocation2], %s6590_s7 }
  0x4c   : > { %1324 = vmatpush.bf16.msrb.mxu2 %v6887_v34  ;;  %v7991_v34 = vld [vmem:[%s13016_s1 + $0x14] sm:$0xf]  ;;  %s6507_s20 = sshll.u32 %s12813_s8, 4  ;;  %s6508_s20 = int_to_ptr.vmem [resolvable:$true] %s6507_s20 }
  0x4d   : > { %1413 = vmatpush.bf16.msrb.mxu3 %v6951_v37  ;;  %1146 = vmatpush.bf16.msrb.mxu0 %v6883_v48  ;;  %v6879_v37 = vor.u32 %v7991_v34, %v6876_v35 }
  0x4e   : > { %1235 = vmatpush.bf16.msrb.mxu1 %v6947_v54  ;;  %v6938_v54 = vld [vmem:[%s13016_s1 + $0x90] sm:$0xf] }
  0x50   : > { %1325 = vmatpush.bf16.msrb.mxu2 %v6879_v37  ;;  %v6690_v37 = vld [vmem:[%s8751_s6 + $0x150] sm:$0xf] }
  0x51   : > { %1147 = vmatpush.bf16.msrb.mxu0 %v6875_v55 }
  0x56   : > { %623 = vmatmul.bf16.gmra.mxu0 %v8823_v8 }
  0x57   : > { %712 = vmatmul.bf16.gmra.mxu1 %v8825_v9  ;;  %801 = vmatmul.bf16.gmra.mxu2 %v8823_v8 }
  0x58   : > { %890 = vmatmul.bf16.gmra.mxu3 %v8825_v9 }
  0x66   : > { %628 = vmatmul.bf16.gmra.mxu0 %v8859_v26 }
  0x67   : > { %717 = vmatmul.bf16.gmra.mxu1 %v8861_v27  ;;  %806 = vmatmul.bf16.gmra.mxu2 %v8859_v26 }
  0x68   : > { %895 = vmatmul.bf16.gmra.mxu3 %v8861_v27 }
  0x76   : > { %633 = vmatmul.bf16.gmra.mxu0 %v8871_v32 }
  0x77   : > { %722 = vmatmul.bf16.gmra.mxu1 %v8873_v33  ;;  %811 = vmatmul.bf16.gmra.mxu2 %v8871_v32 }
  0x78   : > { %900 = vmatmul.bf16.gmra.mxu3 %v8873_v33 }
  0x86   : > { %638 = vmatmul.bf16.gmra.mxu0 %v8907_v52 }
  0x87   : > { %727 = vmatmul.bf16.gmra.mxu1 %v8909_v53  ;;  %816 = vmatmul.bf16.gmra.mxu2 %v8907_v52 }
  0x88   : > { %905 = vmatmul.bf16.gmra.mxu3 %v8909_v53 }
  0x96   : > { %643 = vmatmul.bf16.gmra.mxu0 %v8919_v58 }
  0x97   : > { %732 = vmatmul.bf16.gmra.mxu1 %v8921_v59  ;;  %821 = vmatmul.bf16.gmra.mxu2 %v8919_v58 }
  0x98   : > { %910 = vmatmul.bf16.gmra.mxu3 %v8921_v59 }
  0xa6   : > { %648 = vmatmul.bf16.gmra.mxu0 %v8955_v16 }
  0xa7   : > { %737 = vmatmul.bf16.gmra.mxu1 %v8957_v17  ;;  %826 = vmatmul.bf16.gmra.mxu2 %v8955_v16 }
  0xa8   : > { %915 = vmatmul.bf16.gmra.mxu3 %v8957_v17 }
  0xb3   : > { %v614_v23 = vpop.f32.mrf.mxu0 }
  0xb4   : > { %v703_v25 = vpop.f32.mrf.mxu1 }
  0xb5   : > { %v8971_v28 = vadd.f32 %v703_v25, %v614_v23  ;;  %v9031_v25 = vor.u32 %v7973_v15, %v6676_v18 }
  0xb6   : > { %653 = vmatmul.bf16.gmra.mxu0 %v8967_v22 }
  0xb7   : > { %742 = vmatmul.bf16.gmra.mxu1 %v8969_v24  ;;  %831 = vmatmul.bf16.gmra.mxu2 %v8967_v22 }
  0xb8   : > { %920 = vmatmul.bf16.gmra.mxu3 %v8969_v24 }
  0xba   : > { %v792_v36 = vpop.f32.mrf.mxu2 }
  0xbb   : > { %v881_v38 = vpop.f32.mrf.mxu3  ;;  %v616_v39 = vpop.f32.mrf.mxu0 }
  0xbc   : > { %v8989_v40 = vadd.f32 %v881_v38, %v792_v36  ;;  %v705_v41 = vpop.f32.mrf.mxu1  ;;  %v8007_v36 = vld [vmem:[%s13016_s1 + $0x94] sm:$0xf]  ;;  %v6940_v38 = vld [vmem:[%s13016_s1 + $0x98] sm:$0xf0] }
  0xbd   : > { %v8991_v42 = vadd.f32 %v705_v41, %v616_v39  ;;  %v6943_v41 = vor.u32 %v8007_v36, %v6940_v38  ;;  %v7978_v38 = vld [vmem:[%s8751_s6 + $0x154] sm:$0xf0] }
  0xbf   : > { %1414 = vmatpush.bf16.msrb.mxu3 %v6943_v41  ;;  %v6692_v41 = vld [vmem:[%s8751_s6 + $0x158] sm:$0xf0] }
  0xc2   : > { %v794_v57 = vpop.f32.mrf.mxu2 }
  0xc3   : > { %v883_v61 = vpop.f32.mrf.mxu3  ;;  %v619_v62 = vpop.f32.mrf.mxu0 }
  0xc4   : > { %v9013_v0 = vadd.f32 %v883_v61, %v794_v57  ;;  %v708_v1 = vpop.f32.mrf.mxu1  ;;  %v6682_v57 = vld [vmem:[%s8751_s6 + $0x138] sm:$0xf]  ;;  %v7976_v61 = vld [vmem:[%s8751_s6 + $0x13c] sm:$0xf0] }
  0xc5   : > { %v9015_v4 = vadd.f32 %v708_v1, %v619_v62  ;;  %v6939_v62 = vor.u32 %v8008_v56, %v6938_v54  ;;  %v7975_v1 = vld [vmem:[%s8751_s6 + $0x13c] sm:$0xf] }
  0xc6   : > { %658 = vmatmul.bf16.gmra.mxu0 %v9009_v60 }
  0xc7   : > { %747 = vmatmul.bf16.gmra.mxu1 %v9011_v63  ;;  %836 = vmatmul.bf16.gmra.mxu2 %v9009_v60 }
  0xc8   : > { %925 = vmatmul.bf16.gmra.mxu3 %v9011_v63  ;;  %1236 = vmatpush.bf16.msrb.mxu1 %v6939_v62  ;;  %v8005_v62 = vld [vmem:[%s13016_s1 + $0x84] sm:$0xf] }
  0xca   : > { %v797_v5 = vpop.f32.mrf.mxu2 }
  0xcb   : > { %v886_v6 = vpop.f32.mrf.mxu3  ;;  %v621_v7 = vpop.f32.mrf.mxu0 }
  0xcc   : > { %v9021_v10 = vadd.f32 %v886_v6, %v797_v5  ;;  %v710_v11 = vpop.f32.mrf.mxu1  ;;  %v6684_v5 = vld [vmem:[%s8751_s6 + $0x140] sm:$0xf0] }
  0xcd   : > { %v9023_v12 = vadd.f32 %v710_v11, %v621_v7  ;;  %v9073_v7 = vor.u32 %v7976_v61, %v6682_v57  ;;  %v9075_v14 = vor.u32 %v7975_v1, %v6684_v5  ;;  %v7989_v57 = vld [vmem:[%s13016_s1 + $0x4] sm:$0xf]  ;;  %v6868_v61 = vld [vmem:[%s13016_s1 + $0x8] sm:$0xf0] }
  0xce   : > { %v6871_v1 = vor.u32 %v7989_v57, %v6868_v61  ;;  %v6932_v5 = vld [vmem:[%s13016_s1 + $0x88] sm:$0xf0]  ;;  %v6700_v57 = vld [vmem:[%s8751_s6 + $0x170] sm:$0xf0] }
  0xd0   : > { %1326 = vmatpush.bf16.msrb.mxu2 %v6871_v1 }
  0xd2   : > { %v799_v19 = vpop.f32.mrf.mxu2 }
  0xd3   : > { %v888_v21 = vpop.f32.mrf.mxu3  ;;  %v624_v23 = vpop.f32.mrf.mxu0 }
  0xd4   : > { %v9033_v29 = vadd.f32 %v888_v21, %v799_v19  ;;  %v713_v30 = vpop.f32.mrf.mxu1 }
  0xd5   : > { %v9035_v31 = vadd.f32 %v713_v30, %v624_v23 }
  0xd6   : > { %663 = vmatmul.bf16.gmra.mxu0 %v9029_v20 }
  0xd7   : > { %752 = vmatmul.bf16.gmra.mxu1 %v9031_v25  ;;  %841 = vmatmul.bf16.gmra.mxu2 %v9029_v20 }
  0xd8   : > { %930 = vmatmul.bf16.gmra.mxu3 %v9031_v25 }
  0xda   : > { %v802_v39 = vpop.f32.mrf.mxu2 }
  0xdb   : > { %v891_v44 = vpop.f32.mrf.mxu3  ;;  %v626_v45 = vpop.f32.mrf.mxu0 }
  0xdc   : > { %v9053_v46 = vadd.f32 %v891_v44, %v802_v39  ;;  %v715_v48 = vpop.f32.mrf.mxu1  ;;  %v7977_v39 = vld [vmem:[%s8751_s6 + $0x154] sm:$0xf] }
  0xdd   : > { %v9055_v49 = vadd.f32 %v715_v48, %v626_v45  ;;  %v9093_v45 = vor.u32 %v7978_v38, %v6690_v37  ;;  %v9095_v51 = vor.u32 %v7977_v39, %v6692_v41  ;;  %v7990_v37 = vld [vmem:[%s13016_s1 + $0x4] sm:$0xf0]  ;;  %v6930_v38 = vld [vmem:[%s13016_s1 + $0x80] sm:$0xf] }
  0xde   : > { %v8006_v41 = vld [vmem:[%s13016_s1 + $0x84] sm:$0xf0] }
  0xdf   : > { %13086 = vst [vmem:[#allocation5_spill] sm:$0xff] %v9093_v45 }
  0xe0   : > { %13087 = vst [vmem:[#allocation6_spill] sm:$0xff] %v9095_v51 }
  0xe2   : > { %v804_v6 = vpop.f32.mrf.mxu2 }
  0xe3   : > { %v893_v11 = vpop.f32.mrf.mxu3  ;;  %v629_v13 = vpop.f32.mrf.mxu0 }
  0xe4   : > { %v9077_v15 = vadd.f32 %v893_v11, %v804_v6  ;;  %v718_v18 = vpop.f32.mrf.mxu1  ;;  %v6935_v11 = vor.u32 %v8005_v62, %v6932_v5 }
  0xe5   : > { %v9079_v19 = vadd.f32 %v718_v18, %v629_v13 }
  0xe6   : > { %668 = vmatmul.bf16.gmra.mxu0 %v9073_v7  ;;  %1415 = vmatpush.bf16.msrb.mxu3 %v6935_v11 }
  0xe7   : > { %757 = vmatmul.bf16.gmra.mxu1 %v9075_v14  ;;  %846 = vmatmul.bf16.gmra.mxu2 %v9073_v7 }
  0xe8   : > { %935 = vmatmul.bf16.gmra.mxu3 %v9075_v14 }
  0xea   : > { %v807_v21 = vpop.f32.mrf.mxu2 }
  0xeb   : > { %v896_v23 = vpop.f32.mrf.mxu3  ;;  %v631_v30 = vpop.f32.mrf.mxu0 }
  0xec   : > { %v9085_v34 = vadd.f32 %v896_v23, %v807_v21  ;;  %v720_v35 = vpop.f32.mrf.mxu1 }
  0xed   : > { %v9087_v36 = vadd.f32 %v720_v35, %v631_v30  ;;  %v6866_v35 = vld [vmem:[%s13016_s1] sm:$0xf] }
  0xee   : > { %v6867_v39 = vor.u32 %v7990_v37, %v6866_v35 }
  0xf0   : > { %1148 = vmatpush.bf16.msrb.mxu0 %v6867_v39 }
  0xf2   : > { %v809_v44 = vpop.f32.mrf.mxu2 }
  0xf3   : > { %v898_v48 = vpop.f32.mrf.mxu3  ;;  %v634_v50 = vpop.f32.mrf.mxu0 }
  0xf4   : > { %v9097_v54 = vadd.f32 %v898_v48, %v809_v44  ;;  %v723_v55 = vpop.f32.mrf.mxu1  ;;  %v6698_v44 = vld [vmem:[%s8751_s6 + $0x168] sm:$0xf]  ;;  %v7980_v48 = vld [vmem:[%s8751_s6 + $0x16c] sm:$0xf0] }
  0xf5   : > { %v9099_v56 = vadd.f32 %v723_v55, %v634_v50  ;;  %v6931_v50 = vor.u32 %v8006_v41, %v6930_v38  ;;  %v7979_v55 = vld [vmem:[%s8751_s6 + $0x16c] sm:$0xf]  ;;  %v9137_v62 = vor.u32 %v7980_v48, %v6698_v44  ;;  %v6706_v44 = vld [vmem:[%s8751_s6 + $0x180] sm:$0xf]  ;;  %v7982_v48 = vld [vmem:[%s8751_s6 + $0x184] sm:$0xf0] }
  0xf6   : > { %673 = vmatmul.bf16.gmra.mxu0 %v9093_v45 }
  0xf7   : > { %762 = vmatmul.bf16.gmra.mxu1 %v9095_v51  ;;  %851 = vmatmul.bf16.gmra.mxu2 %v9093_v45  ;;  %13088 = vst [vmem:[#allocation7_spill] sm:$0xff] %v9137_v62 }
  0xf8   : > { %940 = vmatmul.bf16.gmra.mxu3 %v9095_v51  ;;  %1237 = vmatpush.bf16.msrb.mxu1 %v6931_v50  ;;  %v7981_v50 = vld [vmem:[%s8751_s6 + $0x184] sm:$0xf] }
  0xfa   : > { %v812_v6 = vpop.f32.mrf.mxu2 }
  0xfb   : > { %v901_v13 = vpop.f32.mrf.mxu3  ;;  %v636_v18 = vpop.f32.mrf.mxu0 }
  0xfc   : > { %v9117_v21 = vadd.f32 %v901_v13, %v812_v6  ;;  %v725_v23 = vpop.f32.mrf.mxu1  ;;  %v9139_v6 = vor.u32 %v7979_v55, %v6700_v57  ;;  %v6708_v55 = vld [vmem:[%s8751_s6 + $0x188] sm:$0xf0] }
  0xfd   : > { %v9119_v30 = vadd.f32 %v725_v23, %v636_v18 }
  0xfe   : > { %13089 = vst [vmem:[#allocation8_spill] sm:$0xff] %v9139_v6 }
 0x102   : > { %v814_v61 = vpop.f32.mrf.mxu2 }
 0x103   : > { %v903_v1 = vpop.f32.mrf.mxu3  ;;  %v639_v5 = vpop.f32.mrf.mxu0 }
 0x104   : > { %v9141_v11 = vadd.f32 %v903_v1, %v814_v61  ;;  %v728_v13 = vpop.f32.mrf.mxu1  ;;  %v9157_v61 = vor.u32 %v7982_v48, %v6706_v44 }
 0x105   : > { %v9143_v18 = vadd.f32 %v728_v13, %v639_v5  ;;  %v9159_v13 = vor.u32 %v7981_v50, %v6708_v55 }
 0x106   : > { %678 = vmatmul.bf16.gmra.mxu0 %v9137_v62  ;;  %13091 = vst [vmem:[#allocation10_spill] sm:$0xff] %v9157_v61 }
 0x107   : > { %767 = vmatmul.bf16.gmra.mxu1 %v9139_v6  ;;  %856 = vmatmul.bf16.gmra.mxu2 %v9137_v62  ;;  %13092 = vst [vmem:[#allocation11_spill] sm:$0xff] %v9159_v13 }
 0x108   : > { %945 = vmatmul.bf16.gmra.mxu3 %v9139_v6 }
 0x10a   : > { %v817_v23 = vpop.f32.mrf.mxu2 }
 0x10b   : > { %v906_v35 = vpop.f32.mrf.mxu3  ;;  %v641_v37 = vpop.f32.mrf.mxu0 }
 0x10c   : > { %v9149_v38 = vadd.f32 %v906_v35, %v817_v23  ;;  %v730_v39 = vpop.f32.mrf.mxu1  ;;  %v8067_v23 = vld [vmem:[%s13016_s1 + $0x674] sm:$0xf]  ;;  %v7068_v35 = vld [vmem:[%s13016_s1 + $0x678] sm:$0xf0] }
 0x10d   : > { %v9151_v41 = vadd.f32 %v730_v39, %v641_v37  ;;  %v7071_v37 = vor.u32 %v8067_v23, %v7068_v35  ;;  %v7132_v39 = vld [vmem:[%s13016_s1 + $0x6f8] sm:$0xf0]  ;;  %v7066_v23 = vld [vmem:[%s13016_s1 + $0x670] sm:$0xf]  ;;  %v8068_v35 = vld [vmem:[%s13016_s1 + $0x674] sm:$0xf0] }
 0x10f   : > { %13090 = vst [vmem:[#allocation9_spill] sm:$0xff] %v9151_v41  ;;  %1887 = vmatpush.bf16.msra.mxu2 %v7071_v37  ;;  %v8084_v37 = vld [vmem:[%s13016_s1 + $0x6f4] sm:$0xf0] }
 0x112   : > { %v819_v57 = vpop.f32.mrf.mxu2 }
 0x113   : > { %v908_v1 = vpop.f32.mrf.mxu3  ;;  %v644_v5 = vpop.f32.mrf.mxu0 }
 0x114   : > { %v9161_v6 = vadd.f32 %v908_v1, %v819_v57  ;;  %v733_v62 = vpop.f32.mrf.mxu1 }
 0x115   : > { %v9163_v51 = vadd.f32 %v733_v62, %v644_v5  ;;  %v8083_v62 = vld [vmem:[%s13016_s1 + $0x6f4] sm:$0xf] }
 0x116   : > { %13093 = vst [vmem:[#allocation12_spill] sm:$0xff] %v9161_v6  ;;  %683 = vmatmul.bf16.gmra.mxu0 %v9157_v61  ;;  %v7135_v48 = vor.u32 %v8083_v62, %v7132_v39  ;;  %v7130_v62 = vld [vmem:[%s13016_s1 + $0x6f0] sm:$0xf]  ;;  %v7067_v39 = vor.u32 %v8068_v35, %v7066_v23 }
 0x117   : > { %13094 = vst [vmem:[#allocation13_spill] sm:$0xff] %v9163_v51  ;;  %772 = vmatmul.bf16.gmra.mxu1 %v9159_v13  ;;  %861 = vmatmul.bf16.gmra.mxu2 %v9157_v61 }
 0x118   : > { %950 = vmatmul.bf16.gmra.mxu3 %v9159_v13  ;;  %1709 = vmatpush.bf16.msra.mxu0 %v7067_v39 }
 0x119   : > { %1976 = vmatpush.bf16.msra.mxu3 %v7135_v48  ;;  %v7984_v48 = vld [vmem:[%s8751_s6 + $0x19c] sm:$0xf0] }
 0x11a   : > { %v822_v44 = vpop.f32.mrf.mxu2 }
 0x11b   : > { %v911_v50 = vpop.f32.mrf.mxu3  ;;  %v646_v55 = vpop.f32.mrf.mxu0 }
 0x11c   : > { %v9181_v57 = vadd.f32 %v911_v50, %v822_v44  ;;  %v735_v1 = vpop.f32.mrf.mxu1  ;;  %v6714_v44 = vld [vmem:[%s8751_s6 + $0x198] sm:$0xf]  ;;  %v7131_v50 = vor.u32 %v8084_v37, %v7130_v62 }
 0x11d   : > { %v9183_v5 = vadd.f32 %v735_v1, %v646_v55  ;;  %v7983_v55 = vld [vmem:[%s8751_s6 + $0x19c] sm:$0xf]  ;;  %v6716_v1 = vld [vmem:[%s8751_s6 + $0x1a0] sm:$0xf0]  ;;  %v9201_v61 = vor.u32 %v7984_v48, %v6714_v44 }
 0x11e   : > { %13095 = vst [vmem:[#allocation14_spill] sm:$0xff] %v9181_v57  ;;  %1798 = vmatpush.bf16.msra.mxu1 %v7131_v50  ;;  %v9203_v45 = vor.u32 %v7983_v55, %v6716_v1  ;;  %v7950_v50 = vld [vmem:[%s8751_s6 + $0x4] sm:$0xf0]  ;;  %v6852_v55 = vld [vmem:[%s8751_s6 + $0x8] sm:$0xf0] }
 0x11f   : > { %13096 = vst [vmem:[#allocation15_spill] sm:$0xff] %v9183_v5 }
 0x120   : > { %13097 = vst [vmem:[#allocation16_spill] sm:$0xff] %v9201_v61 }
 0x121   : > { %13098 = vst [vmem:[#allocation17_spill] sm:$0xff] %v9203_v45 }
 0x122   : > { %v824_v13 = vpop.f32.mrf.mxu2 }
 0x123   : > { %v913_v5 = vpop.f32.mrf.mxu3  ;;  %v649_v57 = vpop.f32.mrf.mxu0 }
 0x124   : > { %v9205_v23 = vadd.f32 %v913_v5, %v824_v13  ;;  %v738_v35 = vpop.f32.mrf.mxu1  ;;  %v6850_v5 = vld [vmem:[%s8751_s6] sm:$0xf] }
 0x125   : > { %v9207_v51 = vadd.f32 %v738_v35, %v649_v57  ;;  %v7949_v57 = vld [vmem:[%s8751_s6 + $0x4] sm:$0xf]  ;;  %v6851_v35 = vor.u32 %v7950_v50, %v6850_v5 }
 0x126   : > { %13099 = vst [vmem:[#allocation18_spill] sm:$0xff] %v9205_v23  ;;  %688 = vmatmul.bf16.gmra.mxu0 %v9201_v61  ;;  %v6855_v6 = vor.u32 %v7949_v57, %v6852_v55 }
 0x127   : > { %13100 = vst [vmem:[#allocation19_spill] sm:$0xff] %v9207_v51  ;;  %777 = vmatmul.bf16.gmra.mxu1 %v9203_v45  ;;  %866 = vmatmul.bf16.gmra.mxu2 %v9201_v61 }
 0x128   : > { %955 = vmatmul.bf16.gmra.mxu3 %v9203_v45 }
 0x12a   : > { %v827_v62 = vpop.f32.mrf.mxu2 }
 0x12b   : > { %v916_v39 = vpop.f32.mrf.mxu3  ;;  %v651_v37 = vpop.f32.mrf.mxu0 }
 0x12c   : > { %v9213_v44 = vadd.f32 %v916_v39, %v827_v62  ;;  %v740_v48 = vpop.f32.mrf.mxu1  ;;  %v8065_v62 = vld [vmem:[%s13016_s1 + $0x664] sm:$0xf]  ;;  %v7060_v39 = vld [vmem:[%s13016_s1 + $0x668] sm:$0xf0] }
 0x12d   : > { %v9215_v13 = vadd.f32 %v740_v48, %v651_v37  ;;  %v7063_v37 = vor.u32 %v8065_v62, %v7060_v39  ;;  %v7122_v62 = vld [vmem:[%s13016_s1 + $0x6e0] sm:$0xf] }
 0x12e   : > { %13101 = vst [vmem:[#allocation20_spill] sm:$0xff] %v9213_v44 }
 0x12f   : > { %13102 = vst [vmem:[#allocation21_spill] sm:$0xff] %v9215_v13  ;;  %1888 = vmatpush.bf16.msra.mxu2 %v7063_v37  ;;  %v6858_v37 = vld [vmem:[%s8751_s6 + $0x18] sm:$0xf] }
 0x132   : > { %v829_v1 = vpop.f32.mrf.mxu2 }
 0x133   : > { %v918_v51 = vpop.f32.mrf.mxu3  ;;  %v654_v23 = vpop.f32.mrf.mxu0 }
 0x134   : > { %v9221_v61 = vadd.f32 %v918_v51, %v829_v1  ;;  %v743_v45 = vpop.f32.mrf.mxu1  ;;  %v8081_v51 = vld [vmem:[%s13016_s1 + $0x6e4] sm:$0xf]  ;;  %v7058_v1 = vld [vmem:[%s13016_s1 + $0x660] sm:$0xf] }
 0x135   : > { %v9223_v41 = vadd.f32 %v743_v45, %v654_v23  ;;  %v7124_v45 = vld [vmem:[%s13016_s1 + $0x6e8] sm:$0xf0] }
 0x136   : > { %13103 = vst [vmem:[#allocation22_spill] sm:$0xff] %v9221_v61  ;;  %1149 = vmatmul.bf16.vlgmr.msrb.gmra.mxu0 %v6851_v35  ;;  %v7127_v23 = vor.u32 %v8081_v51, %v7124_v45  ;;  %v8082_v51 = vld [vmem:[%s13016_s1 + $0x6e4] sm:$0xf0]  ;;  %v7952_v45 = vld [vmem:[%s8751_s6 + $0x1c] sm:$0xf0] }
 0x137   : > { %13104 = vst [vmem:[#allocation23_spill] sm:$0xff] %v9223_v41  ;;  %1238 = vmatmul.bf16.vlgmr.msrb.gmra.mxu1 %v6855_v6  ;;  %1327 = vmatmul.bf16.vlgmr.msrb.gmra.mxu2 %v6851_v35  ;;  %v8066_v35 = vld [vmem:[%s13016_s1 + $0x664] sm:$0xf0] }
 0x138   : > { %1416 = vmatmul.bf16.vlgmr.msrb.gmra.mxu3 %v6855_v6  ;;  %v7059_v39 = vor.u32 %v8066_v35, %v7058_v1 }
 0x139   : > { %1977 = vmatpush.bf16.msra.mxu3 %v7127_v23  ;;  %v7951_v23 = vld [vmem:[%s8751_s6 + $0x1c] sm:$0xf] }
 0x13a   : > { %v832_v6 = vpop.f32.mrf.mxu2  ;;  %1710 = vmatpush.bf16.msra.mxu0 %v7059_v39 }
 0x13b   : > { %v921_v48 = vpop.f32.mrf.mxu3  ;;  %v656_v5 = vpop.f32.mrf.mxu0 }
 0x13c   : > { %v9237_v50 = vadd.f32 %v921_v48, %v832_v6  ;;  %v745_v57 = vpop.f32.mrf.mxu1  ;;  %v7123_v6 = vor.u32 %v8082_v51, %v7122_v62  ;;  %v6860_v48 = vld [vmem:[%s8751_s6 + $0x20] sm:$0xf0] }
 0x13d   : > { %v9239_v55 = vadd.f32 %v745_v57, %v656_v5  ;;  %v6859_v57 = vor.u32 %v7952_v45, %v6858_v37  ;;  %v6863_v41 = vor.u32 %v7951_v23, %v6860_v48 }
 0x13e   : > { %13105 = vst [vmem:[#allocation24_spill] sm:$0xff] %v9237_v50  ;;  %1799 = vmatpush.bf16.msra.mxu1 %v7123_v6 }
 0x13f   : > { %13106 = vst [vmem:[#allocation25_spill] sm:$0xff] %v9239_v55 }
 0x142   : > { %v834_v5 = vpop.f32.mrf.mxu2 }
 0x143   : > { %v923_v55 = vpop.f32.mrf.mxu3  ;;  %v659_v50 = vpop.f32.mrf.mxu0 }
 0x144   : > { %v9257_v61 = vadd.f32 %v923_v55, %v834_v5  ;;  %v748_v13 = vpop.f32.mrf.mxu1  ;;  %v8079_v5 = vld [vmem:[%s13016_s1 + $0x6d4] sm:$0xf] }
 0x145   : > { %v9259_v1 = vadd.f32 %v748_v13, %v659_v50  ;;  %v7052_v50 = vld [vmem:[%s13016_s1 + $0x658] sm:$0xf0] }
 0x146   : > { %1154 = vmatmul.bf16.gmra.mxu0 %v6859_v57 }
 0x147   : > { %1243 = vmatmul.bf16.gmra.mxu1 %v6863_v41  ;;  %1332 = vmatmul.bf16.gmra.mxu2 %v6859_v57 }
 0x148   : > { %1421 = vmatmul.bf16.gmra.mxu3 %v6863_v41  ;;  %v8063_v41 = vld [vmem:[%s13016_s1 + $0x654] sm:$0xf] }
 0x149   : > { %v7055_v57 = vor.u32 %v8063_v41, %v7052_v50  ;;  %v7114_v41 = vld [vmem:[%s13016_s1 + $0x6d0] sm:$0xf] }
 0x14a   : > { %v837_v35 = vpop.f32.mrf.mxu2 }
 0x14b   : > { %v926_v62 = vpop.f32.mrf.mxu3  ;;  %v661_v51 = vpop.f32.mrf.mxu0  ;;  %1889 = vmatpush.bf16.msra.mxu2 %v7055_v57 }
 0x14c   : > { %v9261_v44 = vadd.f32 %v926_v62, %v837_v35  ;;  %v750_v39 = vpop.f32.mrf.mxu1  ;;  %v7116_v35 = vld [vmem:[%s13016_s1 + $0x6d8] sm:$0xf0] }
 0x14d   : > { %v9263_v6 = vadd.f32 %v750_v39, %v661_v51  ;;  %v7119_v62 = vor.u32 %v8079_v5, %v7116_v35  ;;  %v8080_v5 = vld [vmem:[%s13016_s1 + $0x6d4] sm:$0xf0] }
 0x14e   : > { %v7115_v57 = vor.u32 %v8080_v5, %v7114_v41 }
 0x14f   : > { %1978 = vmatpush.bf16.msra.mxu3 %v7119_v62 }
 0x150   : > { %1800 = vmatpush.bf16.msra.mxu1 %v7115_v57 }
 0x152   : > { %v839_v37 = vpop.f32.mrf.mxu2 }
 0x153   : > { %v928_v45 = vpop.f32.mrf.mxu3  ;;  %v664_v23 = vpop.f32.mrf.mxu0 }
 0x154   : > { %v9265_v55 = vadd.f32 %v928_v45, %v839_v37  ;;  %v753_v48 = vpop.f32.mrf.mxu1 }
 0x155   : > { %v9267_v13 = vadd.f32 %v753_v48, %v664_v23  ;;  %v7050_v23 = vld [vmem:[%s13016_s1 + $0x650] sm:$0xf]  ;;  %v8064_v48 = vld [vmem:[%s13016_s1 + $0x654] sm:$0xf0] }
 0x156   : > { %1159 = vmatmul.bf16.gmra.mxu0 %v8769_v43  ;;  %v7051_v50 = vor.u32 %v8064_v48, %v7050_v23 }
 0x157   : > { %1248 = vmatmul.bf16.gmra.mxu1 %v8777_v47  ;;  %1337 = vmatmul.bf16.gmra.mxu2 %v8769_v43 }
 0x158   : > { %1426 = vmatmul.bf16.gmra.mxu3 %v8777_v47  ;;  %1711 = vmatpush.bf16.msra.mxu0 %v7051_v50 }
 0x15a   : > { %v842_v43 = vpop.f32.mrf.mxu2 }
 0x15b   : > { %v931_v47 = vpop.f32.mrf.mxu3  ;;  %v666_v51 = vpop.f32.mrf.mxu0 }
 0x15c   : > { %v9285_v39 = vadd.f32 %v931_v47, %v842_v43  ;;  %v755_v37 = vpop.f32.mrf.mxu1 }
 0x15d   : > { %v9287_v45 = vadd.f32 %v755_v37, %v666_v51 }
 0x162   : > { %v844_v35 = vpop.f32.mrf.mxu2 }
 0x163   : > { %v933_v43 = vpop.f32.mrf.mxu3  ;;  %v669_v62 = vpop.f32.mrf.mxu0 }
 0x164   : > { %v9301_v47 = vadd.f32 %v933_v43, %v844_v35  ;;  %v758_v51 = vpop.f32.mrf.mxu1 }
 0x165   : > { %v9303_v37 = vadd.f32 %v758_v51, %v669_v62 }
 0x166   : > { %13107 = vst [vmem:[#allocation26_spill] sm:$0xff] %v9301_v47  ;;  %1164 = vmatmul.bf16.gmra.mxu0 %v8811_v2 }
 0x167   : > { %13108 = vst [vmem:[#allocation27_spill] sm:$0xff] %v9303_v37  ;;  %1253 = vmatmul.bf16.gmra.mxu1 %v8813_v3  ;;  %1342 = vmatmul.bf16.gmra.mxu2 %v8811_v2  ;;  %v8061_v2 = vld [vmem:[%s13016_s1 + $0x644] sm:$0xf] }
 0x168   : > { %1431 = vmatmul.bf16.gmra.mxu3 %v8813_v3  ;;  %v7044_v3 = vld [vmem:[%s13016_s1 + $0x648] sm:$0xf0] }
 0x16a   : > { %v847_v23 = vpop.f32.mrf.mxu2 }
 0x16b   : > { %v936_v48 = vpop.f32.mrf.mxu3  ;;  %v671_v41 = vpop.f32.mrf.mxu0 }
 0x16c   : > { %v9309_v50 = vadd.f32 %v936_v48, %v847_v23  ;;  %v760_v5 = vpop.f32.mrf.mxu1  ;;  %v7047_v23 = vor.u32 %v8061_v2, %v7044_v3  ;;  %v7108_v48 = vld [vmem:[%s13016_s1 + $0x6c8] sm:$0xf0]  ;;  %v8062_v2 = vld [vmem:[%s13016_s1 + $0x644] sm:$0xf0]  ;;  %v7106_v3 = vld [vmem:[%s13016_s1 + $0x6c0] sm:$0xf] }
 0x16d   : > { %v9311_v57 = vadd.f32 %v760_v5, %v671_v41 }
 0x16e   : > { %1890 = vmatpush.bf16.msra.mxu2 %v7047_v23  ;;  %v8078_v23 = vld [vmem:[%s13016_s1 + $0x6c4] sm:$0xf0] }
 0x16f   : > { %13109 = vst [vmem:[#allocation28_spill] sm:$0xff] %v9311_v57  ;;  %v7042_v57 = vld [vmem:[%s13016_s1 + $0x640] sm:$0xf] }
 0x172   : > { %v849_v35 = vpop.f32.mrf.mxu2 }
 0x173   : > { %v938_v43 = vpop.f32.mrf.mxu3  ;;  %v674_v62 = vpop.f32.mrf.mxu0 }
 0x174   : > { %v9313_v51 = vadd.f32 %v938_v43, %v849_v35  ;;  %v763_v37 = vpop.f32.mrf.mxu1 }
 0x175   : > { %v9315_v47 = vadd.f32 %v763_v37, %v674_v62  ;;  %v8077_v37 = vld [vmem:[%s13016_s1 + $0x6c4] sm:$0xf] }
 0x176   : > { %13110 = vst [vmem:[#allocation29_spill] sm:$0xff] %v9313_v51  ;;  %1169 = vmatmul.bf16.gmra.mxu0 %v8823_v8  ;;  %v7111_v5 = vor.u32 %v8077_v37, %v7108_v48  ;;  %v7043_v37 = vor.u32 %v8062_v2, %v7042_v57  ;;  %v7107_v48 = vor.u32 %v8078_v23, %v7106_v3 }
 0x177   : > { %13111 = vst [vmem:[#allocation30_spill] sm:$0xff] %v9315_v47  ;;  %1258 = vmatmul.bf16.gmra.mxu1 %v8825_v9  ;;  %1347 = vmatmul.bf16.gmra.mxu2 %v8823_v8 }
 0x178   : > { %1436 = vmatmul.bf16.gmra.mxu3 %v8825_v9  ;;  %1712 = vmatpush.bf16.msra.mxu0 %v7043_v37 }
 0x179   : > { %1979 = vmatpush.bf16.msra.mxu3 %v7111_v5  ;;  %1801 = vmatpush.bf16.msra.mxu1 %v7107_v48 }
 0x17a   : > { %v852_v41 = vpop.f32.mrf.mxu2 }
 0x17b   : > { %v941_v35 = vpop.f32.mrf.mxu3  ;;  %v676_v43 = vpop.f32.mrf.mxu0 }
 0x17c   : > { %v9333_v62 = vadd.f32 %v941_v35, %v852_v41  ;;  %v765_v47 = vpop.f32.mrf.mxu1 }
 0x17d   : > { %v9335_v51 = vadd.f32 %v765_v47, %v676_v43 }
 0x17e   : > { %13112 = vst [vmem:[#allocation31_spill] sm:$0xff] %v9333_v62  ;;  %v7034_v62 = vld [vmem:[%s13016_s1 + $0x630] sm:$0xf] }
 0x17f   : > { %13113 = vst [vmem:[#allocation32_spill] sm:$0xff] %v9335_v51 }
 0x182   : > { %v854_v47 = vpop.f32.mrf.mxu2 }
 0x183   : > { %v943_v41 = vpop.f32.mrf.mxu3  ;;  %v679_v5 = vpop.f32.mrf.mxu0 }
 0x184   : > { %v9349_v35 = vadd.f32 %v943_v41, %v854_v47  ;;  %v768_v43 = vpop.f32.mrf.mxu1 }
 0x185   : > { %v9351_v51 = vadd.f32 %v768_v43, %v679_v5 }
 0x186   : > { %13114 = vst [vmem:[#allocation33_spill] sm:$0xff] %v9349_v35  ;;  %1174 = vmatmul.bf16.gmra.mxu0 %v8859_v26 }
 0x187   : > { %13115 = vst [vmem:[#allocation34_spill] sm:$0xff] %v9351_v51  ;;  %1263 = vmatmul.bf16.gmra.mxu1 %v8861_v27  ;;  %1352 = vmatmul.bf16.gmra.mxu2 %v8859_v26 }
 0x188   : > { %1441 = vmatmul.bf16.gmra.mxu3 %v8861_v27 }
 0x18a   : > { %v857_v57 = vpop.f32.mrf.mxu2 }
 0x18b   : > { %v946_v2 = vpop.f32.mrf.mxu3  ;;  %v681_v3 = vpop.f32.mrf.mxu0 }
 0x18c   : > { %v9357_v37 = vadd.f32 %v946_v2, %v857_v57  ;;  %v770_v23 = vpop.f32.mrf.mxu1  ;;  %v8059_v57 = vld [vmem:[%s13016_s1 + $0x634] sm:$0xf]  ;;  %v7036_v2 = vld [vmem:[%s13016_s1 + $0x638] sm:$0xf0] }
 0x18d   : > { %v9359_v48 = vadd.f32 %v770_v23, %v681_v3  ;;  %v7039_v3 = vor.u32 %v8059_v57, %v7036_v2  ;;  %v7100_v23 = vld [vmem:[%s13016_s1 + $0x6b8] sm:$0xf0]  ;;  %v8060_v57 = vld [vmem:[%s13016_s1 + $0x634] sm:$0xf0]  ;;  %v7098_v2 = vld [vmem:[%s13016_s1 + $0x6b0] sm:$0xf] }
 0x18e   : > { %13116 = vst [vmem:[#allocation35_spill] sm:$0xff] %v9357_v37 }
 0x18f   : > { %13117 = vst [vmem:[#allocation36_spill] sm:$0xff] %v9359_v48  ;;  %1891 = vmatpush.bf16.msra.mxu2 %v7039_v3  ;;  %v8076_v3 = vld [vmem:[%s13016_s1 + $0x6b4] sm:$0xf0] }
 0x192   : > { %v859_v47 = vpop.f32.mrf.mxu2 }
 0x193   : > { %v948_v41 = vpop.f32.mrf.mxu3  ;;  %v684_v5 = vpop.f32.mrf.mxu0 }
 0x194   : > { %v9361_v43 = vadd.f32 %v948_v41, %v859_v47  ;;  %v773_v51 = vpop.f32.mrf.mxu1 }
 0x195   : > { %v9363_v35 = vadd.f32 %v773_v51, %v684_v5  ;;  %v8075_v51 = vld [vmem:[%s13016_s1 + $0x6b4] sm:$0xf] }
 0x196   : > { %13118 = vst [vmem:[#allocation37_spill] sm:$0xff] %v9361_v43  ;;  %1179 = vmatmul.bf16.gmra.mxu0 %v8871_v32  ;;  %v7103_v41 = vor.u32 %v8075_v51, %v7100_v23  ;;  %v7035_v51 = vor.u32 %v8060_v57, %v7034_v62  ;;  %v7099_v23 = vor.u32 %v8076_v3, %v7098_v2 }
 0x197   : > { %13119 = vst [vmem:[#allocation38_spill] sm:$0xff] %v9363_v35  ;;  %1268 = vmatmul.bf16.gmra.mxu1 %v8873_v33  ;;  %1357 = vmatmul.bf16.gmra.mxu2 %v8871_v32 }
 0x198   : > { %1446 = vmatmul.bf16.gmra.mxu3 %v8873_v33  ;;  %1713 = vmatpush.bf16.msra.mxu0 %v7035_v51 }
 0x199   : > { %1980 = vmatpush.bf16.msra.mxu3 %v7103_v41  ;;  %1802 = vmatpush.bf16.msra.mxu1 %v7099_v23 }
 0x19a   : > { %v862_v47 = vpop.f32.mrf.mxu2 }
 0x19b   : > { %v951_v5 = vpop.f32.mrf.mxu3  ;;  %v686_v35 = vpop.f32.mrf.mxu0 }
 0x19c   : > { %v9381_v43 = vadd.f32 %v951_v5, %v862_v47  ;;  %v775_v48 = vpop.f32.mrf.mxu1 }
 0x19d   : > { %v9383_v37 = vadd.f32 %v775_v48, %v686_v35 }
 0x19e   : > { %13120 = vst [vmem:[#allocation39_spill] sm:$0xff] %v9381_v43 }
 0x19f   : > { %13121 = vst [vmem:[#allocation40_spill] sm:$0xff] %v9383_v37 }
 0x1a2   : > { %v864_v35 = vpop.f32.mrf.mxu2 }
 0x1a3   : > { %v953_v48 = vpop.f32.mrf.mxu3  ;;  %v689_v47 = vpop.f32.mrf.mxu0 }
 0x1a4   : > { %v9397_v41 = vadd.f32 %v953_v48, %v864_v35  ;;  %v778_v5 = vpop.f32.mrf.mxu1 }
 0x1a5   : > { %v9399_v37 = vadd.f32 %v778_v5, %v689_v47 }
 0x1a6   : > { %13122 = vst [vmem:[#allocation41_spill] sm:$0xff] %v9397_v41  ;;  %1184 = vmatmul.bf16.gmra.mxu0 %v8907_v52 }
 0x1a7   : > { %13123 = vst [vmem:[#allocation42_spill] sm:$0xff] %v9399_v37  ;;  %1273 = vmatmul.bf16.gmra.mxu1 %v8909_v53  ;;  %1362 = vmatmul.bf16.gmra.mxu2 %v8907_v52 }
 0x1a8   : > { %1451 = vmatmul.bf16.gmra.mxu3 %v8909_v53 }
 0x1aa   : > { %v867_v62 = vpop.f32.mrf.mxu2 }
 0x1ab   : > { %v956_v57 = vpop.f32.mrf.mxu3  ;;  %v691_v2 = vpop.f32.mrf.mxu0 }
 0x1ac   : > { %v9405_v51 = vadd.f32 %v956_v57, %v867_v62  ;;  %v780_v3 = vpop.f32.mrf.mxu1  ;;  %v8057_v62 = vld [vmem:[%s13016_s1 + $0x624] sm:$0xf]  ;;  %v7028_v57 = vld [vmem:[%s13016_s1 + $0x628] sm:$0xf0] }
 0x1ad   : > { %v9407_v23 = vadd.f32 %v780_v3, %v691_v2 }
 0x1ae   : > { %13124 = vst [vmem:[#allocation43_spill] sm:$0xff] %v9405_v51 }
 0x1af   : > { %13125 = vst [vmem:[#allocation44_spill] sm:$0xff] %v9407_v23 }
 0x1b2   : > { %v869_v35 = vpop.f32.mrf.mxu2 }
 0x1b3   : > { %v958_v48 = vpop.f32.mrf.mxu3  ;;  %v1150_v47 = vpop.f32.mrf.mxu0 }
 0x1b4   : > { %v9409_v5 = vadd.f32 %v958_v48, %v869_v35  ;;  %v1151_v37 = vadd.f32 %v1150_v47, %v8971_v28  ;;  %v1239_v41 = vpop.f32.mrf.mxu1  ;;  %v8073_v28 = vld [vmem:[%s13016_s1 + $0x6a4] sm:$0xf] }
 0x1b6   : > { %13126 = vst [vmem:[#allocation45_spill] sm:$0xff] %v9409_v5  ;;  %v9412_v43 = vadd.f32 %v1239_v41, %v1151_v37  ;;  %1189 = vmatmul.bf16.gmra.mxu0 %v8919_v58  ;;  %v7031_v37 = vor.u32 %v8057_v62, %v7028_v57  ;;  %v7092_v41 = vld [vmem:[%s13016_s1 + $0x6a8] sm:$0xf0]  ;;  %v7026_v62 = vld [vmem:[%s13016_s1 + $0x620] sm:$0xf] }
 0x1b7   : > { %1278 = vmatmul.bf16.gmra.mxu1 %v8921_v59  ;;  %1367 = vmatmul.bf16.gmra.mxu2 %v8919_v58  ;;  %v7095_v3 = vor.u32 %v8073_v28, %v7092_v41  ;;  %v8058_v57 = vld [vmem:[%s13016_s1 + $0x624] sm:$0xf0] }
 0x1b8   : > { %13127 = vst [vmem:[#allocation46_spill] sm:$0xff] %v9412_v43  ;;  %1456 = vmatmul.bf16.gmra.mxu3 %v8921_v59  ;;  %1892 = vmatpush.bf16.msra.mxu2 %v7031_v37  ;;  %v7027_v28 = vor.u32 %v8058_v57, %v7026_v62 }
 0x1b9   : > { %1981 = vmatpush.bf16.msra.mxu3 %v7095_v3 }
 0x1ba   : > { %v1328_v2 = vpop.f32.mrf.mxu2  ;;  %1714 = vmatpush.bf16.msra.mxu0 %v7027_v28 }
 0x1bb   : > { %v1329_v35 = vadd.f32 %v1328_v2, %v8989_v40  ;;  %v1417_v48 = vpop.f32.mrf.mxu3  ;;  %v1152_v47 = vpop.f32.mrf.mxu0  ;;  %v7090_v40 = vld [vmem:[%s13016_s1 + $0x6a0] sm:$0xf] }
 0x1bc   : > { %v1153_v43 = vadd.f32 %v1152_v47, %v8991_v42  ;;  %v1241_v5 = vpop.f32.mrf.mxu1  ;;  %v8074_v42 = vld [vmem:[%s13016_s1 + $0x6a4] sm:$0xf0] }
 0x1bd   : > { %v9432_v23 = vadd.f32 %v1417_v48, %v1329_v35  ;;  %v7091_v37 = vor.u32 %v8074_v42, %v7090_v40 }
 0x1be   : > { %v9434_v51 = vadd.f32 %v1241_v5, %v1153_v43 }
 0x1bf   : > { %1803 = vmatpush.bf16.msra.mxu1 %v7091_v37 }
 0x1c2   : > { %v1330_v43 = vpop.f32.mrf.mxu2 }
 0x1c3   : > { %v1331_v5 = vadd.f32 %v1330_v43, %v9013_v0  ;;  %v1419_v41 = vpop.f32.mrf.mxu3  ;;  %v1155_v2 = vpop.f32.mrf.mxu0 }
 0x1c4   : > { %v1156_v3 = vadd.f32 %v1155_v2, %v9015_v4  ;;  %v1244_v35 = vpop.f32.mrf.mxu1 }
 0x1c5   : > { %v9450_v48 = vadd.f32 %v1419_v41, %v1331_v5 }
 0x1c6   : > { %v9452_v47 = vadd.f32 %v1244_v35, %v1156_v3  ;;  %1194 = vmatmul.bf16.gmra.mxu0 %v8955_v16 }
 0x1c7   : > { %1283 = vmatmul.bf16.gmra.mxu1 %v8957_v17  ;;  %1372 = vmatmul.bf16.gmra.mxu2 %v8955_v16 }
 0x1c8   : > { %13128 = vst [vmem:[#allocation47_spill] sm:$0xff] %v9452_v47  ;;  %1461 = vmatmul.bf16.gmra.mxu3 %v8957_v17 }
 0x1ca   : > { %v1333_v62 = vpop.f32.mrf.mxu2 }
 0x1cb   : > { %v1334_v0 = vadd.f32 %v1333_v62, %v9021_v10  ;;  %v1422_v57 = vpop.f32.mrf.mxu3  ;;  %v1157_v40 = vpop.f32.mrf.mxu0 }
 0x1cc   : > { %v1158_v4 = vadd.f32 %v1157_v40, %v9023_v12  ;;  %v1246_v28 = vpop.f32.mrf.mxu1  ;;  %v8055_v12 = vld [vmem:[%s13016_s1 + $0x614] sm:$0xf] }
 0x1cd   : > { %v9460_v42 = vadd.f32 %v1422_v57, %v1334_v0  ;;  %v7084_v0 = vld [vmem:[%s13016_s1 + $0x698] sm:$0xf0] }
 0x1ce   : > { %v9462_v37 = vadd.f32 %v1246_v28, %v1158_v4 }
 0x1d2   : > { %v1335_v43 = vpop.f32.mrf.mxu2 }
 0x1d3   : > { %v1336_v5 = vadd.f32 %v1335_v43, %v9033_v29  ;;  %v1424_v41 = vpop.f32.mrf.mxu3  ;;  %v1160_v2 = vpop.f32.mrf.mxu0  ;;  %v7020_v29 = vld [vmem:[%s13016_s1 + $0x618] sm:$0xf0] }
 0x1d4   : > { %v1161_v3 = vadd.f32 %v1160_v2, %v9035_v31  ;;  %v1249_v35 = vpop.f32.mrf.mxu1  ;;  %v8071_v31 = vld [vmem:[%s13016_s1 + $0x694] sm:$0xf]  ;;  %v7023_v62 = vor.u32 %v8055_v12, %v7020_v29  ;;  %v8056_v12 = vld [vmem:[%s13016_s1 + $0x614] sm:$0xf0] }
 0x1d5   : > { %v9466_v47 = vadd.f32 %v1424_v41, %v1336_v5  ;;  %v7087_v40 = vor.u32 %v8071_v31, %v7084_v0 }
 0x1d6   : > { %v9468_v10 = vadd.f32 %v1249_v35, %v1161_v3  ;;  %1199 = vmatmul.bf16.gmra.mxu0 %v8967_v22  ;;  %1893 = vmatpush.bf16.msra.mxu2 %v7023_v62  ;;  %v7018_v35 = vld [vmem:[%s13016_s1 + $0x610] sm:$0xf] }
 0x1d7   : > { %1288 = vmatmul.bf16.gmra.mxu1 %v8969_v24  ;;  %1377 = vmatmul.bf16.gmra.mxu2 %v8967_v22  ;;  %v7019_v29 = vor.u32 %v8056_v12, %v7018_v35 }
 0x1d8   : > { %1466 = vmatmul.bf16.gmra.mxu3 %v8969_v24 }
 0x1d9   : > { %1982 = vmatpush.bf16.msra.mxu3 %v7087_v40  ;;  %1715 = vmatpush.bf16.msra.mxu0 %v7019_v29 }
 0x1da   : > { %v1338_v57 = vpop.f32.mrf.mxu2 }
 0x1db   : > { %v1339_v4 = vadd.f32 %v1338_v57, %v9053_v46  ;;  %v1427_v28 = vpop.f32.mrf.mxu3  ;;  %v1162_v43 = vpop.f32.mrf.mxu0  ;;  %v7082_v46 = vld [vmem:[%s13016_s1 + $0x690] sm:$0xf] }
 0x1dc   : > { %v1163_v5 = vadd.f32 %v1162_v43, %v9055_v49  ;;  %v1251_v41 = vpop.f32.mrf.mxu1  ;;  %v8072_v49 = vld [vmem:[%s13016_s1 + $0x694] sm:$0xf0] }
 0x1dd   : > { %v9488_v2 = vadd.f32 %v1427_v28, %v1339_v4  ;;  %v7083_v31 = vor.u32 %v8072_v49, %v7082_v46 }
 0x1de   : > { %v9490_v3 = vadd.f32 %v1251_v41, %v1163_v5 }
 0x1df   : > { %1804 = vmatpush.bf16.msra.mxu1 %v7083_v31 }
 0x1e2   : > { %v1340_v62 = vpop.f32.mrf.mxu2 }
 0x1e3   : > { %v1341_v0 = vadd.f32 %v1340_v62, %v9077_v15  ;;  %v1429_v57 = vpop.f32.mrf.mxu3  ;;  %v1165_v40 = vpop.f32.mrf.mxu0 }
 0x1e4   : > { %v1166_v4 = vadd.f32 %v1165_v40, %v9079_v19  ;;  %v1254_v28 = vpop.f32.mrf.mxu1 }
 0x1e5   : > { %v9506_v43 = vadd.f32 %v1429_v57, %v1341_v0 }
 0x1e6   : > { %v9508_v5 = vadd.f32 %v1254_v28, %v1166_v4  ;;  %1204 = vmatmul.bf16.gmra.mxu0 %v9009_v60 }
 0x1e7   : > { %1293 = vmatmul.bf16.gmra.mxu1 %v9011_v63  ;;  %1382 = vmatmul.bf16.gmra.mxu2 %v9009_v60 }
 0x1e8   : > { %1471 = vmatmul.bf16.gmra.mxu3 %v9011_v63 }
 0x1ea   : > { %v1343_v41 = vpop.f32.mrf.mxu2 }
 0x1eb   : > { %v1344_v15 = vadd.f32 %v1343_v41, %v9085_v34  ;;  %v1432_v35 = vpop.f32.mrf.mxu3  ;;  %v1167_v12 = vpop.f32.mrf.mxu0 }
 0x1ec   : > { %v1168_v19 = vadd.f32 %v1167_v12, %v9087_v36  ;;  %v1256_v46 = vpop.f32.mrf.mxu1  ;;  %v8053_v36 = vld [vmem:[%s13016_s1 + $0x604] sm:$0xf] }
 0x1ed   : > { %v9516_v29 = vadd.f32 %v1432_v35, %v1344_v15  ;;  %v7076_v15 = vld [vmem:[%s13016_s1 + $0x688] sm:$0xf0] }
 0x1ee   : > { %v9518_v49 = vadd.f32 %v1256_v46, %v1168_v19 }
 0x1f0   : > { %13129 = vst [vmem:[#allocation48_spill] sm:$0xff] %v9518_v49 }
 0x1f2   : > { %v1345_v31 = vpop.f32.mrf.mxu2 }
 0x1f3   : > { %v1346_v62 = vadd.f32 %v1345_v31, %v9097_v54  ;;  %v1434_v0 = vpop.f32.mrf.mxu3  ;;  %v1170_v57 = vpop.f32.mrf.mxu0  ;;  %v7012_v54 = vld [vmem:[%s13016_s1 + $0x608] sm:$0xf0] }
 0x1f4   : > { %v1171_v40 = vadd.f32 %v1170_v57, %v9099_v56  ;;  %v1259_v4 = vpop.f32.mrf.mxu1  ;;  %v8069_v56 = vld [vmem:[%s13016_s1 + $0x684] sm:$0xf]  ;;  %v7015_v41 = vor.u32 %v8053_v36, %v7012_v54  ;;  %v8054_v36 = vld [vmem:[%s13016_s1 + $0x604] sm:$0xf0] }
 0x1f5   : > { %v9522_v28 = vadd.f32 %v1434_v0, %v1346_v62  ;;  %v7079_v12 = vor.u32 %v8069_v56, %v7076_v15 }
 0x1f6   : > { %v9524_v34 = vadd.f32 %v1259_v4, %v1171_v40  ;;  %1209 = vmatmul.bf16.gmra.mxu0 %v9029_v20  ;;  %1894 = vmatpush.bf16.msra.mxu2 %v7015_v41  ;;  %v7010_v4 = vld [vmem:[%s13016_s1 + $0x600] sm:$0xf] }
 0x1f7   : > { %13130 = vst [vmem:[#allocation49_spill] sm:$0xff] %v9522_v28  ;;  %1298 = vmatmul.bf16.gmra.mxu1 %v9031_v25  ;;  %1387 = vmatmul.bf16.gmra.mxu2 %v9029_v20  ;;  %v7011_v54 = vor.u32 %v8054_v36, %v7010_v4 }
 0x1f8   : > { %13131 = vst [vmem:[#allocation50_spill] sm:$0xff] %v9524_v34  ;;  %1476 = vmatmul.bf16.gmra.mxu3 %v9031_v25 }
 0x1f9   : > { %1983 = vmatpush.bf16.msra.mxu3 %v7079_v12  ;;  %1716 = vmatpush.bf16.msra.mxu0 %v7011_v54 }
 0x1fa   : > { %v1348_v35 = vpop.f32.mrf.mxu2 }
 0x1fb   : > { %v1349_v19 = vadd.f32 %v1348_v35, %v9117_v21  ;;  %v1437_v46 = vpop.f32.mrf.mxu3  ;;  %v1172_v31 = vpop.f32.mrf.mxu0  ;;  %v7074_v21 = vld [vmem:[%s13016_s1 + $0x680] sm:$0xf] }
 0x1fc   : > { %v1173_v62 = vadd.f32 %v1172_v31, %v9119_v30  ;;  %v1261_v0 = vpop.f32.mrf.mxu1  ;;  %v8070_v30 = vld [vmem:[%s13016_s1 + $0x684] sm:$0xf0] }
 0x1fd   : > { %v9544_v57 = vadd.f32 %v1437_v46, %v1349_v19  ;;  %v7075_v56 = vor.u32 %v8070_v30, %v7074_v21  ;;  %v13136_v21 = vld [vmem:[#allocation9_spill] sm:$0xff] }
 0x1fe   : > { %v9546_v40 = vadd.f32 %v1261_v0, %v1173_v62 }
 0x1ff   : > { %13132 = vst [vmem:[#allocation51_spill] sm:$0xff] %v9544_v57  ;;  %1805 = vmatpush.bf16.msra.mxu1 %v7075_v56  ;;  %v13158_v57 = vld [vmem:[#allocation23_spill] sm:$0xff] }
 0x200   : > { %13133 = vst [vmem:[#allocation52_spill] sm:$0xff] %v9546_v40 }
 0x202   : > { %v1350_v41 = vpop.f32.mrf.mxu2 }
 0x203   : > { %v1351_v15 = vadd.f32 %v1350_v41, %v9141_v11  ;;  %v1439_v35 = vpop.f32.mrf.mxu3  ;;  %v1175_v12 = vpop.f32.mrf.mxu0 }
 0x204   : > { %v1176_v19 = vadd.f32 %v1175_v12, %v9143_v18  ;;  %v1264_v46 = vpop.f32.mrf.mxu1 }
 0x205   : > { %v9562_v31 = vadd.f32 %v1439_v35, %v1351_v15  ;;  %v13139_v15 = vld [vmem:[#allocation12_spill] sm:$0xff] }
 0x206   : > { %v9564_v62 = vadd.f32 %v1264_v46, %v1176_v19  ;;  %1214 = vmatmul.bf16.gmra.mxu0 %v9073_v7  ;;  %v13140_v46 = vld [vmem:[#allocation13_spill] sm:$0xff] }
 0x207   : > { %13134 = vst [vmem:[#allocation53_spill] sm:$0xff] %v9562_v31  ;;  %1303 = vmatmul.bf16.gmra.mxu1 %v9075_v14  ;;  %1392 = vmatmul.bf16.gmra.mxu2 %v9073_v7 }
 0x208   : > { %13135 = vst [vmem:[#allocation54_spill] sm:$0xff] %v9564_v62  ;;  %1481 = vmatmul.bf16.gmra.mxu3 %v9075_v14 }
 0x20a   : > { %v1353_v0 = vpop.f32.mrf.mxu2 }
 0x20b   : > { %v1354_v11 = vadd.f32 %v1353_v0, %v9149_v38  ;;  %v1442_v4 = vpop.f32.mrf.mxu3  ;;  %v1177_v36 = vpop.f32.mrf.mxu0  ;;  %v13143_v0 = vld [vmem:[#allocation5_spill] sm:$0xff] }
 0x20c   : > { %v1178_v18 = vadd.f32 %v1177_v36, %v13136_v21  ;;  %v1266_v54 = vpop.f32.mrf.mxu1  ;;  %v13144_v36 = vld [vmem:[#allocation6_spill] sm:$0xff]  ;;  %v7276_v21 = vld [vmem:[%s13016_s1 + $0x1f8] sm:$0xf0] }
 0x20d   : > { %v9572_v30 = vadd.f32 %v1442_v4, %v1354_v11  ;;  %v8099_v11 = vld [vmem:[%s13016_s1 + $0x174] sm:$0xf]  ;;  %v7212_v4 = vld [vmem:[%s13016_s1 + $0x178] sm:$0xf0] }
 0x20e   : > { %v9574_v56 = vadd.f32 %v1266_v54, %v1178_v18 }
 0x20f   : > { %13137 = vst [vmem:[#allocation9_spill] sm:$0xff] %v9572_v30 }
 0x210   : > { %13138 = vst [vmem:[#allocation55_spill] sm:$0xff] %v9574_v56 }
 0x212   : > { %v1355_v41 = vpop.f32.mrf.mxu2 }
 0x213   : > { %v1356_v35 = vadd.f32 %v1355_v41, %v13139_v15  ;;  %v1444_v12 = vpop.f32.mrf.mxu3  ;;  %v1180_v19 = vpop.f32.mrf.mxu0  ;;  %v13145_v41 = vld [vmem:[#allocation14_spill] sm:$0xff] }
 0x214   : > { %v1181_v62 = vadd.f32 %v1180_v19, %v13140_v46  ;;  %v1269_v31 = vpop.f32.mrf.mxu1  ;;  %v13146_v19 = vld [vmem:[#allocation15_spill] sm:$0xff] }
 0x215   : > { %v9578_v40 = vadd.f32 %v1444_v12, %v1356_v35 }
 0x216   : > { %v9580_v38 = vadd.f32 %v1269_v31, %v1181_v62  ;;  %1219 = vmatmul.bf16.gmra.mxu0 %v13143_v0  ;;  %v8115_v31 = vld [vmem:[%s13016_s1 + $0x1f4] sm:$0xf]  ;;  %v7215_v62 = vor.u32 %v8099_v11, %v7212_v4  ;;  %v7210_v11 = vld [vmem:[%s13016_s1 + $0x170] sm:$0xf]  ;;  %v8100_v4 = vld [vmem:[%s13016_s1 + $0x174] sm:$0xf0] }
 0x217   : > { %13141 = vst [vmem:[#allocation12_spill] sm:$0xff] %v9578_v40  ;;  %1308 = vmatmul.bf16.gmra.mxu1 %v13144_v36  ;;  %1397 = vmatmul.bf16.gmra.mxu2 %v13143_v0  ;;  %v7279_v54 = vor.u32 %v8115_v31, %v7276_v21  ;;  %v7274_v31 = vld [vmem:[%s13016_s1 + $0x1f0] sm:$0xf]  ;;  %v8116_v21 = vld [vmem:[%s13016_s1 + $0x1f4] sm:$0xf0] }
 0x218   : > { %13142 = vst [vmem:[#allocation13_spill] sm:$0xff] %v9580_v38  ;;  %1486 = vmatmul.bf16.gmra.mxu3 %v13144_v36  ;;  %2758 = vmatpush.bf16.msrb.mxu2 %v7215_v62  ;;  %v7211_v62 = vor.u32 %v8100_v4, %v7210_v11  ;;  %v13153_v11 = vld [vmem:[#allocation7_spill] sm:$0xff]  ;;  %v13154_v4 = vld [vmem:[#allocation8_spill] sm:$0xff] }
 0x219   : > { %2847 = vmatpush.bf16.msrb.mxu3 %v7279_v54  ;;  %v13149_v54 = vld [vmem:[#allocation18_spill] sm:$0xff] }
 0x21a   : > { %v1358_v18 = vpop.f32.mrf.mxu2  ;;  %2580 = vmatpush.bf16.msrb.mxu0 %v7211_v62  ;;  %v13155_v62 = vld [vmem:[#allocation20_spill] sm:$0xff] }
 0x21b   : > { %v1359_v15 = vadd.f32 %v1358_v18, %v13145_v41  ;;  %v1447_v35 = vpop.f32.mrf.mxu3  ;;  %v1182_v12 = vpop.f32.mrf.mxu0  ;;  %v7275_v18 = vor.u32 %v8116_v21, %v7274_v31 }
 0x21c   : > { %v1183_v46 = vadd.f32 %v1182_v12, %v13146_v19  ;;  %v1271_v38 = vpop.f32.mrf.mxu1  ;;  %v13150_v12 = vld [vmem:[#allocation19_spill] sm:$0xff] }
 0x21d   : > { %v9600_v40 = vadd.f32 %v1447_v35, %v1359_v15  ;;  %2669 = vmatpush.bf16.msrb.mxu1 %v7275_v18 }
 0x21e   : > { %v9602_v56 = vadd.f32 %v1271_v38, %v1183_v46 }
 0x21f   : > { %13147 = vst [vmem:[#allocation5_spill] sm:$0xff] %v9600_v40 }
 0x220   : > { %13148 = vst [vmem:[#allocation6_spill] sm:$0xff] %v9602_v56 }
 0x222   : > { %v1360_v38 = vpop.f32.mrf.mxu2 }
 0x223   : > { %v1361_v41 = vadd.f32 %v1360_v38, %v13149_v54  ;;  %v1449_v15 = vpop.f32.mrf.mxu3  ;;  %v1185_v35 = vpop.f32.mrf.mxu0  ;;  %v13156_v54 = vld [vmem:[#allocation21_spill] sm:$0xff] }
 0x224   : > { %v1186_v19 = vadd.f32 %v1185_v35, %v13150_v12  ;;  %v1274_v46 = vpop.f32.mrf.mxu1 }
 0x225   : > { %v9618_v56 = vadd.f32 %v1449_v15, %v1361_v41 }
 0x226   : > { %v9620_v40 = vadd.f32 %v1274_v46, %v1186_v19  ;;  %1224 = vmatmul.bf16.gmra.mxu0 %v13153_v11  ;;  %v13157_v46 = vld [vmem:[#allocation22_spill] sm:$0xff] }
 0x227   : > { %13151 = vst [vmem:[#allocation14_spill] sm:$0xff] %v9618_v56  ;;  %1313 = vmatmul.bf16.gmra.mxu1 %v13154_v4  ;;  %1402 = vmatmul.bf16.gmra.mxu2 %v13153_v11 }
 0x228   : > { %13152 = vst [vmem:[#allocation15_spill] sm:$0xff] %v9620_v40  ;;  %1491 = vmatmul.bf16.gmra.mxu3 %v13154_v4 }
 0x22a   : > { %v1363_v31 = vpop.f32.mrf.mxu2 }
 0x22b   : > { %v1364_v21 = vadd.f32 %v1363_v31, %v13155_v62  ;;  %v1452_v18 = vpop.f32.mrf.mxu3  ;;  %v1187_v38 = vpop.f32.mrf.mxu0  ;;  %v8097_v62 = vld [vmem:[%s13016_s1 + $0x164] sm:$0xf] }
 0x22c   : > { %v1188_v35 = vadd.f32 %v1187_v38, %v13156_v54  ;;  %v1276_v12 = vpop.f32.mrf.mxu1  ;;  %v13160_v38 = vld [vmem:[#allocation25_spill] sm:$0xff] }
 0x22d   : > { %v9628_v41 = vadd.f32 %v1452_v18, %v1364_v21 }
 0x22e   : > { %v9630_v15 = vadd.f32 %v1276_v12, %v1188_v35 }
 0x232   : > { %v1365_v19 = vpop.f32.mrf.mxu2 }
 0x233   : > { %v1366_v40 = vadd.f32 %v1365_v19, %v13157_v46  ;;  %v1454_v56 = vpop.f32.mrf.mxu3  ;;  %v1190_v30 = vpop.f32.mrf.mxu0  ;;  %v7202_v46 = vld [vmem:[%s13016_s1 + $0x160] sm:$0xf] }
 0x234   : > { %v1191_v34 = vadd.f32 %v1190_v30, %v13158_v57  ;;  %v1279_v28 = vpop.f32.mrf.mxu1  ;;  %v7204_v57 = vld [vmem:[%s13016_s1 + $0x168] sm:$0xf0] }
 0x235   : > { %v9634_v49 = vadd.f32 %v1454_v56, %v1366_v40  ;;  %v7268_v40 = vld [vmem:[%s13016_s1 + $0x1e8] sm:$0xf0] }
 0x236   : > { %v9636_v31 = vadd.f32 %v1279_v28, %v1191_v34  ;;  %1717 = vmatmul.bf16.vlgmr.msra.gmra.mxu0 %v8823_v8  ;;  %v8113_v28 = vld [vmem:[%s13016_s1 + $0x1e4] sm:$0xf]  ;;  %v7207_v34 = vor.u32 %v8097_v62, %v7204_v57  ;;  %v8098_v62 = vld [vmem:[%s13016_s1 + $0x164] sm:$0xf0]  ;;  %v7266_v57 = vld [vmem:[%s13016_s1 + $0x1e0] sm:$0xf] }
 0x237   : > { %1806 = vmatmul.bf16.vlgmr.msra.gmra.mxu1 %v8825_v9  ;;  %1895 = vmatmul.bf16.vlgmr.msra.gmra.mxu2 %v8823_v8  ;;  %v7271_v30 = vor.u32 %v8113_v28, %v7268_v40  ;;  %v7203_v28 = vor.u32 %v8098_v62, %v7202_v46 }
 0x238   : > { %1984 = vmatmul.bf16.vlgmr.msra.gmra.mxu3 %v8825_v9  ;;  %v13159_v9 = vld [vmem:[#allocation24_spill] sm:$0xff]  ;;  %2759 = vmatpush.bf16.msrb.mxu2 %v7207_v34  ;;  %v8114_v34 = vld [vmem:[%s13016_s1 + $0x1e4] sm:$0xf0] }
 0x239   : > { %2848 = vmatpush.bf16.msrb.mxu3 %v7271_v30  ;;  %v7267_v40 = vor.u32 %v8114_v34, %v7266_v57  ;;  %2581 = vmatpush.bf16.msrb.mxu0 %v7203_v28 }
 0x23a   : > { %v1368_v8 = vpop.f32.mrf.mxu2 }
 0x23b   : > { %v1369_v56 = vadd.f32 %v1368_v8, %v13159_v9  ;;  %v1457_v21 = vpop.f32.mrf.mxu3  ;;  %v1192_v18 = vpop.f32.mrf.mxu0  ;;  %2670 = vmatpush.bf16.msrb.mxu1 %v7267_v40 }
 0x23c   : > { %v1193_v54 = vadd.f32 %v1192_v18, %v13160_v38  ;;  %v1281_v35 = vpop.f32.mrf.mxu1 }
 0x23d   : > { %v9656_v12 = vadd.f32 %v1457_v21, %v1369_v56 }
 0x23e   : > { %v9658_v19 = vadd.f32 %v1281_v35, %v1193_v54 }
 0x242   : > { %v1370_v8 = vpop.f32.mrf.mxu2 }
 0x243   : > { %v1371_v30 = vadd.f32 %v1370_v8, %v9257_v61  ;;  %v1459_v9 = vpop.f32.mrf.mxu3  ;;  %v1195_v56 = vpop.f32.mrf.mxu0 }
 0x244   : > { %v1196_v21 = vadd.f32 %v1195_v56, %v9259_v1  ;;  %v1284_v18 = vpop.f32.mrf.mxu1 }
 0x245   : > { %v9674_v38 = vadd.f32 %v1459_v9, %v1371_v30 }
 0x246   : > { %v9676_v54 = vadd.f32 %v1284_v18, %v1196_v21  ;;  %1722 = vmatmul.bf16.gmra.mxu0 %v8859_v26  ;;  %v7260_v18 = vld [vmem:[%s13016_s1 + $0x1d8] sm:$0xf0] }
 0x247   : > { %1811 = vmatmul.bf16.gmra.mxu1 %v8861_v27  ;;  %1900 = vmatmul.bf16.gmra.mxu2 %v8859_v26 }
 0x248   : > { %1989 = vmatmul.bf16.gmra.mxu3 %v8861_v27 }
 0x24a   : > { %v1373_v35 = vpop.f32.mrf.mxu2 }
 0x24b   : > { %v1374_v61 = vadd.f32 %v1373_v35, %v9261_v44  ;;  %v1462_v46 = vpop.f32.mrf.mxu3  ;;  %v1197_v62 = vpop.f32.mrf.mxu0 }
 0x24c   : > { %v1198_v1 = vadd.f32 %v1197_v62, %v9263_v6  ;;  %v1286_v57 = vpop.f32.mrf.mxu1  ;;  %v8095_v6 = vld [vmem:[%s13016_s1 + $0x154] sm:$0xf] }
 0x24d   : > { %v9684_v28 = vadd.f32 %v1462_v46, %v1374_v61 }
 0x24e   : > { %v9686_v34 = vadd.f32 %v1286_v57, %v1198_v1 }
 0x252   : > { %v1375_v40 = vpop.f32.mrf.mxu2 }
 0x253   : > { %v1376_v8 = vadd.f32 %v1375_v40, %v9265_v55  ;;  %v1464_v30 = vpop.f32.mrf.mxu3  ;;  %v1200_v9 = vpop.f32.mrf.mxu0  ;;  %v7196_v55 = vld [vmem:[%s13016_s1 + $0x158] sm:$0xf0] }
 0x254   : > { %v1201_v26 = vadd.f32 %v1200_v9, %v9267_v13  ;;  %v1289_v27 = vpop.f32.mrf.mxu1  ;;  %v8111_v13 = vld [vmem:[%s13016_s1 + $0x1d4] sm:$0xf]  ;;  %v7199_v21 = vor.u32 %v8095_v6, %v7196_v55  ;;  %v13161_v6 = vld [vmem:[#allocation26_spill] sm:$0xff] }
 0x255   : > { %v9690_v56 = vadd.f32 %v1464_v30, %v1376_v8  ;;  %v7263_v35 = vor.u32 %v8111_v13, %v7260_v18  ;;  %v7194_v8 = vld [vmem:[%s13016_s1 + $0x150] sm:$0xf]  ;;  %v8096_v30 = vld [vmem:[%s13016_s1 + $0x154] sm:$0xf0] }
 0x256   : > { %v9692_v44 = vadd.f32 %v1289_v27, %v1201_v26  ;;  %1727 = vmatmul.bf16.gmra.mxu0 %v8871_v32  ;;  %2760 = vmatpush.bf16.msrb.mxu2 %v7199_v21  ;;  %v7195_v9 = vor.u32 %v8096_v30, %v7194_v8  ;;  %v13162_v18 = vld [vmem:[#allocation27_spill] sm:$0xff]  ;;  %v13163_v30 = vld [vmem:[#allocation28_spill] sm:$0xff] }
 0x257   : > { %1816 = vmatmul.bf16.gmra.mxu1 %v8873_v33  ;;  %1905 = vmatmul.bf16.gmra.mxu2 %v8871_v32 }
 0x258   : > { %1994 = vmatmul.bf16.gmra.mxu3 %v8873_v33  ;;  %2582 = vmatpush.bf16.msrb.mxu0 %v7195_v9 }
 0x259   : > { %2849 = vmatpush.bf16.msrb.mxu3 %v7263_v35 }
 0x25a   : > { %v1378_v32 = vpop.f32.mrf.mxu2 }
 0x25b   : > { %v1379_v33 = vadd.f32 %v1378_v32, %v9285_v39  ;;  %v1467_v61 = vpop.f32.mrf.mxu3  ;;  %v1202_v46 = vpop.f32.mrf.mxu0  ;;  %v7258_v39 = vld [vmem:[%s13016_s1 + $0x1d0] sm:$0xf] }
 0x25c   : > { %v1203_v62 = vadd.f32 %v1202_v46, %v9287_v45  ;;  %v1291_v1 = vpop.f32.mrf.mxu1  ;;  %v8112_v45 = vld [vmem:[%s13016_s1 + $0x1d4] sm:$0xf0] }
 0x25d   : > { %v9712_v57 = vadd.f32 %v1467_v61, %v1379_v33  ;;  %v7259_v26 = vor.u32 %v8112_v45, %v7258_v39 }
 0x25e   : > { %v9714_v40 = vadd.f32 %v1291_v1, %v1203_v62 }
 0x25f   : > { %2671 = vmatpush.bf16.msrb.mxu1 %v7259_v26 }
 0x262   : > { %v1380_v27 = vpop.f32.mrf.mxu2 }
 0x263   : > { %v1381_v55 = vadd.f32 %v1380_v27, %v13161_v6  ;;  %v1469_v13 = vpop.f32.mrf.mxu3  ;;  %v1205_v21 = vpop.f32.mrf.mxu0  ;;  %v13164_v6 = vld [vmem:[#allocation29_spill] sm:$0xff] }
 0x264   : > { %v1206_v32 = vadd.f32 %v1205_v21, %v13162_v18  ;;  %v1294_v35 = vpop.f32.mrf.mxu1 }
 0x265   : > { %v9730_v33 = vadd.f32 %v1469_v13, %v1381_v55 }
 0x266   : > { %v9732_v61 = vadd.f32 %v1294_v35, %v1206_v32  ;;  %1732 = vmatmul.bf16.gmra.mxu0 %v8907_v52  ;;  %v8093_v35 = vld [vmem:[%s13016_s1 + $0x144] sm:$0xf] }
 0x267   : > { %1821 = vmatmul.bf16.gmra.mxu1 %v8909_v53  ;;  %1910 = vmatmul.bf16.gmra.mxu2 %v8907_v52  ;;  %v13165_v52 = vld [vmem:[#allocation30_spill] sm:$0xff] }
 0x268   : > { %1999 = vmatmul.bf16.gmra.mxu3 %v8909_v53 }
 0x26a   : > { %v1383_v46 = vpop.f32.mrf.mxu2 }
 0x26b   : > { %v1384_v62 = vadd.f32 %v1383_v46, %v9309_v50  ;;  %v1472_v1 = vpop.f32.mrf.mxu3  ;;  %v1207_v8 = vpop.f32.mrf.mxu0  ;;  %v7188_v46 = vld [vmem:[%s13016_s1 + $0x148] sm:$0xf0] }
 0x26c   : > { %v1208_v39 = vadd.f32 %v1207_v8, %v13163_v30  ;;  %v1296_v9 = vpop.f32.mrf.mxu1  ;;  %v7252_v8 = vld [vmem:[%s13016_s1 + $0x1c8] sm:$0xf0] }
 0x26d   : > { %v9740_v45 = vadd.f32 %v1472_v1, %v1384_v62  ;;  %v8109_v62 = vld [vmem:[%s13016_s1 + $0x1c4] sm:$0xf]  ;;  %v7191_v1 = vor.u32 %v8093_v35, %v7188_v46  ;;  %v7250_v35 = vld [vmem:[%s13016_s1 + $0x1c0] sm:$0xf] }
 0x26e   : > { %v9742_v26 = vadd.f32 %v1296_v9, %v1208_v39  ;;  %v7255_v30 = vor.u32 %v8109_v62, %v7252_v8  ;;  %v8110_v62 = vld [vmem:[%s13016_s1 + $0x1c4] sm:$0xf0] }
 0x26f   : > { %2761 = vmatpush.bf16.msrb.mxu2 %v7191_v1  ;;  %v7251_v1 = vor.u32 %v8110_v62, %v7250_v35 }
 0x270   : > { %2850 = vmatpush.bf16.msrb.mxu3 %v7255_v30 }
 0x271   : > { %2672 = vmatpush.bf16.msrb.mxu1 %v7251_v1  ;;  %v13174_v1 = vld [vmem:[#allocation36_spill] sm:$0xff] }
 0x272   : > { %v1385_v27 = vpop.f32.mrf.mxu2 }
 0x273   : > { %v1386_v55 = vadd.f32 %v1385_v27, %v13164_v6  ;;  %v1474_v13 = vpop.f32.mrf.mxu3  ;;  %v1210_v21 = vpop.f32.mrf.mxu0  ;;  %v13167_v6 = vld [vmem:[#allocation32_spill] sm:$0xff] }
 0x274   : > { %v1211_v18 = vadd.f32 %v1210_v21, %v13165_v52  ;;  %v1299_v53 = vpop.f32.mrf.mxu1 }
 0x275   : > { %v9746_v32 = vadd.f32 %v1474_v13, %v1386_v55 }
 0x276   : > { %v9748_v50 = vadd.f32 %v1299_v53, %v1211_v18  ;;  %1737 = vmatmul.bf16.gmra.mxu0 %v8919_v58  ;;  %v7186_v18 = vld [vmem:[%s13016_s1 + $0x140] sm:$0xf]  ;;  %v8094_v53 = vld [vmem:[%s13016_s1 + $0x144] sm:$0xf0] }
 0x277   : > { %1826 = vmatmul.bf16.gmra.mxu1 %v8921_v59  ;;  %1915 = vmatmul.bf16.gmra.mxu2 %v8919_v58  ;;  %v7187_v46 = vor.u32 %v8094_v53, %v7186_v18  ;;  %v13173_v53 = vld [vmem:[#allocation35_spill] sm:$0xff] }
 0x278   : > { %2004 = vmatmul.bf16.gmra.mxu3 %v8921_v59  ;;  %v13166_v59 = vld [vmem:[#allocation31_spill] sm:$0xff] }
 0x279   : > { %2583 = vmatpush.bf16.msrb.mxu0 %v7187_v46 }
 0x27a   : > { %v1388_v58 = vpop.f32.mrf.mxu2 }
 0x27b   : > { %v1389_v39 = vadd.f32 %v1388_v58, %v13166_v59  ;;  %v1477_v9 = vpop.f32.mrf.mxu3  ;;  %v1212_v27 = vpop.f32.mrf.mxu0  ;;  %v13169_v58 = vld [vmem:[#allocation33_spill] sm:$0xff] }
 0x27c   : > { %v1213_v55 = vadd.f32 %v1212_v27, %v13167_v6  ;;  %v1301_v13 = vpop.f32.mrf.mxu1 }
 0x27d   : > { %v9768_v21 = vadd.f32 %v1477_v9, %v1389_v39  ;;  %v13170_v9 = vld [vmem:[#allocation34_spill] sm:$0xff] }
 0x27e   : > { %v9770_v52 = vadd.f32 %v1301_v13, %v1213_v55 }
 0x280   : > { %13168 = vst [vmem:[#allocation18_spill] sm:$0xff] %v9770_v52 }
 0x282   : > { %v1390_v8 = vpop.f32.mrf.mxu2 }
 0x283   : > { %v1391_v30 = vadd.f32 %v1390_v8, %v13169_v58  ;;  %v1479_v59 = vpop.f32.mrf.mxu3  ;;  %v1215_v39 = vpop.f32.mrf.mxu0 }
 0x284   : > { %v1216_v27 = vadd.f32 %v1215_v39, %v13170_v9  ;;  %v1304_v6 = vpop.f32.mrf.mxu1  ;;  %v13175_v9 = vld [vmem:[#allocation37_spill] sm:$0xff] }
 0x285   : > { %v9786_v55 = vadd.f32 %v1479_v59, %v1391_v30 }
 0x286   : > { %v9788_v13 = vadd.f32 %v1304_v6, %v1216_v27  ;;  %1742 = vmatmul.bf16.gmra.mxu0 %v8955_v16 }
 0x287   : > { %13171 = vst [vmem:[#allocation19_spill] sm:$0xff] %v9786_v55  ;;  %1831 = vmatmul.bf16.gmra.mxu1 %v8957_v17  ;;  %1920 = vmatmul.bf16.gmra.mxu2 %v8955_v16  ;;  %v13176_v16 = vld [vmem:[#allocation38_spill] sm:$0xff] }
 0x288   : > { %13172 = vst [vmem:[#allocation7_spill] sm:$0xff] %v9788_v13  ;;  %2009 = vmatmul.bf16.gmra.mxu3 %v8957_v17 }
 0x28a   : > { %v1393_v18 = vpop.f32.mrf.mxu2 }
 0x28b   : > { %v1394_v35 = vadd.f32 %v1393_v18, %v13173_v53  ;;  %v1482_v46 = vpop.f32.mrf.mxu3  ;;  %v1217_v62 = vpop.f32.mrf.mxu0  ;;  %v8091_v53 = vld [vmem:[%s13016_s1 + $0x134] sm:$0xf] }
 0x28c   : > { %v1218_v8 = vadd.f32 %v1217_v62, %v13174_v1  ;;  %v1306_v58 = vpop.f32.mrf.mxu1 }
 0x28d   : > { %v9796_v30 = vadd.f32 %v1482_v46, %v1394_v35  ;;  %v7244_v46 = vld [vmem:[%s13016_s1 + $0x1b8] sm:$0xf0] }
 0x28e   : > { %v9798_v59 = vadd.f32 %v1306_v58, %v1218_v8 }
 0x292   : > { %v1395_v39 = vpop.f32.mrf.mxu2 }
 0x293   : > { %v1396_v27 = vadd.f32 %v1395_v39, %v13175_v9  ;;  %v1484_v6 = vpop.f32.mrf.mxu3  ;;  %v1220_v13 = vpop.f32.mrf.mxu0  ;;  %v13178_v39 = vld [vmem:[#allocation40_spill] sm:$0xff] }
 0x294   : > { %v1221_v55 = vadd.f32 %v1220_v13, %v13176_v16  ;;  %v1309_v17 = vpop.f32.mrf.mxu1  ;;  %v7180_v13 = vld [vmem:[%s13016_s1 + $0x138] sm:$0xf0] }
 0x295   : > { %v9802_v52 = vadd.f32 %v1484_v6, %v1396_v27  ;;  %v7183_v35 = vor.u32 %v8091_v53, %v7180_v13  ;;  %v8092_v53 = vld [vmem:[%s13016_s1 + $0x134] sm:$0xf0]  ;;  %v7242_v13 = vld [vmem:[%s13016_s1 + $0x1b0] sm:$0xf] }
 0x296   : > { %v9804_v18 = vadd.f32 %v1309_v17, %v1221_v55  ;;  %1747 = vmatmul.bf16.gmra.mxu0 %v8967_v22  ;;  %v8107_v55 = vld [vmem:[%s13016_s1 + $0x1b4] sm:$0xf]  ;;  %v7178_v17 = vld [vmem:[%s13016_s1 + $0x130] sm:$0xf] }
 0x297   : > { %1836 = vmatmul.bf16.gmra.mxu1 %v8969_v24  ;;  %1925 = vmatmul.bf16.gmra.mxu2 %v8967_v22  ;;  %v7247_v62 = vor.u32 %v8107_v55, %v7244_v46  ;;  %v7179_v55 = vor.u32 %v8092_v53, %v7178_v17  ;;  %v13184_v53 = vld [vmem:[#allocation43_spill] sm:$0xff] }
 0x298   : > { %2014 = vmatmul.bf16.gmra.mxu3 %v8969_v24  ;;  %v13177_v24 = vld [vmem:[#allocation39_spill] sm:$0xff]  ;;  %2762 = vmatpush.bf16.msrb.mxu2 %v7183_v35  ;;  %v8108_v35 = vld [vmem:[%s13016_s1 + $0x1b4] sm:$0xf0] }
 0x299   : > { %2851 = vmatpush.bf16.msrb.mxu3 %v7247_v62  ;;  %v7243_v46 = vor.u32 %v8108_v35, %v7242_v13  ;;  %2584 = vmatpush.bf16.msrb.mxu0 %v7179_v55  ;;  %v13180_v62 = vld [vmem:[#allocation41_spill] sm:$0xff] }
 0x29a   : > { %v1398_v22 = vpop.f32.mrf.mxu2 }
 0x29b   : > { %v1399_v1 = vadd.f32 %v1398_v22, %v13177_v24  ;;  %v1487_v8 = vpop.f32.mrf.mxu3  ;;  %v1222_v58 = vpop.f32.mrf.mxu0  ;;  %2673 = vmatpush.bf16.msrb.mxu1 %v7243_v46  ;;  %v13185_v46 = vld [vmem:[#allocation44_spill] sm:$0xff] }
 0x29c   : > { %v1223_v9 = vadd.f32 %v1222_v58, %v13178_v39  ;;  %v1311_v27 = vpop.f32.mrf.mxu1  ;;  %v13181_v58 = vld [vmem:[#allocation42_spill] sm:$0xff] }
 0x29d   : > { %v9824_v6 = vadd.f32 %v1487_v8, %v1399_v1 }
 0x29e   : > { %v9826_v16 = vadd.f32 %v1311_v27, %v1223_v9 }
 0x2a0   : > { %13179 = vst [vmem:[#allocation8_spill] sm:$0xff] %v9826_v16 }
 0x2a2   : > { %v1400_v22 = vpop.f32.mrf.mxu2 }
 0x2a3   : > { %v1401_v24 = vadd.f32 %v1400_v22, %v13180_v62  ;;  %v1489_v1 = vpop.f32.mrf.mxu3  ;;  %v1225_v8 = vpop.f32.mrf.mxu0 }
 0x2a4   : > { %v1226_v39 = vadd.f32 %v1225_v8, %v13181_v58  ;;  %v1314_v9 = vpop.f32.mrf.mxu1  ;;  %v13186_v58 = vld [vmem:[#allocation45_spill] sm:$0xff] }
 0x2a5   : > { %v9842_v27 = vadd.f32 %v1489_v1, %v1401_v24 }
 0x2a6   : > { %v9844_v16 = vadd.f32 %v1314_v9, %v1226_v39  ;;  %1752 = vmatmul.bf16.gmra.mxu0 %v9009_v60 }
 0x2a7   : > { %13182 = vst [vmem:[#allocation20_spill] sm:$0xff] %v9842_v27  ;;  %1841 = vmatmul.bf16.gmra.mxu1 %v9011_v63  ;;  %1930 = vmatmul.bf16.gmra.mxu2 %v9009_v60 }
 0x2a8   : > { %13183 = vst [vmem:[#allocation21_spill] sm:$0xff] %v9844_v16  ;;  %2019 = vmatmul.bf16.gmra.mxu3 %v9011_v63 }
 0x2aa   : > { %v1403_v17 = vpop.f32.mrf.mxu2 }
 0x2ab   : > { %v1404_v13 = vadd.f32 %v1403_v17, %v13184_v53  ;;  %v1492_v55 = vpop.f32.mrf.mxu3  ;;  %v1227_v35 = vpop.f32.mrf.mxu0  ;;  %v13187_v17 = vld [vmem:[#allocation46_spill] sm:$0xff] }
 0x2ac   : > { %v1228_v22 = vadd.f32 %v1227_v35, %v13185_v46  ;;  %v1316_v62 = vpop.f32.mrf.mxu1  ;;  %v7236_v46 = vld [vmem:[%s13016_s1 + $0x1a8] sm:$0xf0] }
 0x2ad   : > { %v9852_v24 = vadd.f32 %v1492_v55, %v1404_v13  ;;  %v8089_v13 = vld [vmem:[%s13016_s1 + $0x124] sm:$0xf]  ;;  %v7172_v55 = vld [vmem:[%s13016_s1 + $0x128] sm:$0xf0] }
 0x2ae   : > { %v9854_v1 = vadd.f32 %v1316_v62, %v1228_v22  ;;  %v7175_v35 = vor.u32 %v8089_v13, %v7172_v55  ;;  %v7234_v13 = vld [vmem:[%s13016_s1 + $0x1a0] sm:$0xf] }
 0x2b0   : > { %2763 = vmatpush.bf16.msrb.mxu2 %v7175_v35 }
 0x2b2   : > { %v1405_v8 = vpop.f32.mrf.mxu2 }
 0x2b3   : > { %v1406_v39 = vadd.f32 %v1405_v8, %v13186_v58  ;;  %v1494_v9 = vpop.f32.mrf.mxu3  ;;  %v1718_v16 = vpop.f32.mrf.mxu0 }
 0x2b4   : > { %v1807_v60 = vpop.f32.mrf.mxu1 }
 0x2b5   : > { %v9857_v27 = vadd.f32 %v1494_v9, %v1406_v39  ;;  %v1808_v63 = vadd.f32 %v1807_v60, %v1718_v16  ;;  %v8105_v16 = vld [vmem:[%s13016_s1 + $0x1a4] sm:$0xf] }
 0x2b6   : > { %1757 = vmatmul.bf16.gmra.mxu0 %v9029_v20  ;;  %v7239_v22 = vor.u32 %v8105_v16, %v7236_v46 }
 0x2b7   : > { %v9861_v53 = vadd.f32 %v1808_v63, %v13187_v17  ;;  %1846 = vmatmul.bf16.gmra.mxu1 %v9031_v25  ;;  %1935 = vmatmul.bf16.gmra.mxu2 %v9029_v20  ;;  %v7170_v63 = vld [vmem:[%s13016_s1 + $0x120] sm:$0xf]  ;;  %v8090_v17 = vld [vmem:[%s13016_s1 + $0x124] sm:$0xf0] }
 0x2b8   : > { %2024 = vmatmul.bf16.gmra.mxu3 %v9031_v25  ;;  %v7171_v55 = vor.u32 %v8090_v17, %v7170_v63 }
 0x2b9   : > { %2852 = vmatpush.bf16.msrb.mxu3 %v7239_v22 }
 0x2ba   : > { %v1896_v20 = vpop.f32.mrf.mxu2  ;;  %2585 = vmatpush.bf16.msrb.mxu0 %v7171_v55 }
 0x2bb   : > { %v1985_v25 = vpop.f32.mrf.mxu3  ;;  %v1720_v62 = vpop.f32.mrf.mxu0 }
 0x2bc   : > { %v1986_v8 = vadd.f32 %v1985_v25, %v1896_v20  ;;  %v1809_v58 = vpop.f32.mrf.mxu1 }
 0x2bd   : > { %v1810_v39 = vadd.f32 %v1809_v58, %v1720_v62 }
 0x2be   : > { %v9879_v9 = vadd.f32 %v1986_v8, %v9432_v23  ;;  %v8106_v23 = vld [vmem:[%s13016_s1 + $0x1a4] sm:$0xf0]  ;;  %v13188_v8 = vld [vmem:[#allocation47_spill] sm:$0xff] }
 0x2bf   : > { %v9882_v60 = vadd.f32 %v1810_v39, %v9434_v51  ;;  %v7235_v16 = vor.u32 %v8106_v23, %v7234_v13 }
 0x2c1   : > { %2674 = vmatpush.bf16.msrb.mxu1 %v7235_v16 }
 0x2c2   : > { %v1898_v51 = vpop.f32.mrf.mxu2 }
 0x2c3   : > { %v1987_v35 = vpop.f32.mrf.mxu3  ;;  %v1723_v46 = vpop.f32.mrf.mxu0 }
 0x2c4   : > { %v1988_v20 = vadd.f32 %v1987_v35, %v1898_v51  ;;  %v1812_v22 = vpop.f32.mrf.mxu1 }
 0x2c5   : > { %v1813_v25 = vadd.f32 %v1812_v22, %v1723_v46 }
 0x2c6   : > { %v9897_v62 = vadd.f32 %v1988_v20, %v9450_v48  ;;  %1762 = vmatmul.bf16.gmra.mxu0 %v9073_v7 }
 0x2c7   : > { %v9901_v58 = vadd.f32 %v1813_v25, %v13188_v8  ;;  %1851 = vmatmul.bf16.gmra.mxu1 %v9075_v14  ;;  %1940 = vmatmul.bf16.gmra.mxu2 %v9073_v7  ;;  %v7228_v8 = vld [vmem:[%s13016_s1 + $0x198] sm:$0xf0] }
 0x2c8   : > { %2029 = vmatmul.bf16.gmra.mxu3 %v9075_v14 }
 0x2ca   : > { %v1901_v39 = vpop.f32.mrf.mxu2 }
 0x2cb   : > { %v1990_v63 = vpop.f32.mrf.mxu3  ;;  %v1725_v17 = vpop.f32.mrf.mxu0 }
 0x2cc   : > { %v1991_v13 = vadd.f32 %v1990_v63, %v1901_v39  ;;  %v1814_v55 = vpop.f32.mrf.mxu1 }
 0x2cd   : > { %v1815_v23 = vadd.f32 %v1814_v55, %v1725_v17 }
 0x2ce   : > { %v9907_v48 = vadd.f32 %v1991_v13, %v9460_v42  ;;  %v8087_v42 = vld [vmem:[%s13016_s1 + $0x114] sm:$0xf] }
 0x2cf   : > { %v9910_v16 = vadd.f32 %v1815_v23, %v9462_v37  ;;  %v8103_v37 = vld [vmem:[%s13016_s1 + $0x194] sm:$0xf] }
 0x2d0   : > { %v7231_v39 = vor.u32 %v8103_v37, %v7228_v8 }
 0x2d2   : > { %v1903_v51 = vpop.f32.mrf.mxu2  ;;  %2853 = vmatpush.bf16.msrb.mxu3 %v7231_v39 }
 0x2d3   : > { %v1992_v35 = vpop.f32.mrf.mxu3  ;;  %v1728_v46 = vpop.f32.mrf.mxu0 }
 0x2d4   : > { %v1993_v20 = vadd.f32 %v1992_v35, %v1903_v51  ;;  %v1817_v22 = vpop.f32.mrf.mxu1  ;;  %v7162_v35 = vld [vmem:[%s13016_s1 + $0x110] sm:$0xf] }
 0x2d5   : > { %v1818_v7 = vadd.f32 %v1817_v22, %v1728_v46  ;;  %v8088_v46 = vld [vmem:[%s13016_s1 + $0x114] sm:$0xf0] }
 0x2d6   : > { %v9913_v14 = vadd.f32 %v1993_v20, %v9466_v47  ;;  %1767 = vmatmul.bf16.gmra.mxu0 %v13143_v0  ;;  %v7164_v47 = vld [vmem:[%s13016_s1 + $0x118] sm:$0xf0]  ;;  %v7226_v20 = vld [vmem:[%s13016_s1 + $0x190] sm:$0xf]  ;;  %v7163_v22 = vor.u32 %v8088_v46, %v7162_v35 }
 0x2d7   : > { %v9917_v25 = vadd.f32 %v1818_v7, %v9468_v10  ;;  %1856 = vmatmul.bf16.gmra.mxu1 %v13144_v36  ;;  %1945 = vmatmul.bf16.gmra.mxu2 %v13143_v0  ;;  %v7167_v10 = vor.u32 %v8087_v42, %v7164_v47  ;;  %v13190_v46 = vld [vmem:[#allocation48_spill] sm:$0xff] }
 0x2d8   : > { %2034 = vmatmul.bf16.gmra.mxu3 %v13144_v36  ;;  %2586 = vmatpush.bf16.msrb.mxu0 %v7163_v22 }
 0x2d9   : > { %2764 = vmatpush.bf16.msrb.mxu2 %v7167_v10 }
 0x2da   : > { %v1906_v0 = vpop.f32.mrf.mxu2 }
 0x2db   : > { %v1995_v36 = vpop.f32.mrf.mxu3  ;;  %v1730_v63 = vpop.f32.mrf.mxu0 }
 0x2dc   : > { %v1996_v17 = vadd.f32 %v1995_v36, %v1906_v0  ;;  %v1819_v13 = vpop.f32.mrf.mxu1 }
 0x2dd   : > { %v1820_v55 = vadd.f32 %v1819_v13, %v1730_v63 }
 0x2de   : > { %v9935_v23 = vadd.f32 %v1996_v17, %v9488_v2  ;;  %v8104_v2 = vld [vmem:[%s13016_s1 + $0x194] sm:$0xf0] }
 0x2df   : > { %v9938_v51 = vadd.f32 %v1820_v55, %v9490_v3  ;;  %v7227_v7 = vor.u32 %v8104_v2, %v7226_v20 }
 0x2e1   : > { %2675 = vmatpush.bf16.msrb.mxu1 %v7227_v7 }
 0x2e2   : > { %v1908_v3 = vpop.f32.mrf.mxu2 }
 0x2e3   : > { %v1997_v42 = vpop.f32.mrf.mxu3  ;;  %v1733_v47 = vpop.f32.mrf.mxu0 }
 0x2e4   : > { %v1998_v37 = vadd.f32 %v1997_v42, %v1908_v3  ;;  %v1822_v10 = vpop.f32.mrf.mxu1  ;;  %v13192_v42 = vld [vmem:[#allocation49_spill] sm:$0xff] }
 0x2e5   : > { %v1823_v8 = vadd.f32 %v1822_v10, %v1733_v47  ;;  %v13194_v47 = vld [vmem:[#allocation10_spill] sm:$0xff] }
 0x2e6   : > { %v9953_v0 = vadd.f32 %v1998_v37, %v9506_v43  ;;  %1772 = vmatmul.bf16.gmra.mxu0 %v13153_v11  ;;  %v13195_v37 = vld [vmem:[#allocation50_spill] sm:$0xff] }
 0x2e7   : > { %v9957_v39 = vadd.f32 %v1823_v8, %v9508_v5  ;;  %1861 = vmatmul.bf16.gmra.mxu1 %v13154_v4  ;;  %1950 = vmatmul.bf16.gmra.mxu2 %v13153_v11  ;;  %v13197_v8 = vld [vmem:[#allocation11_spill] sm:$0xff] }
 0x2e8   : > { %2039 = vmatmul.bf16.gmra.mxu3 %v13154_v4 }
 0x2ea   : > { %v1911_v36 = vpop.f32.mrf.mxu2 }
 0x2eb   : > { %v2000_v63 = vpop.f32.mrf.mxu3  ;;  %v1735_v17 = vpop.f32.mrf.mxu0 }
 0x2ec   : > { %v2001_v13 = vadd.f32 %v2000_v63, %v1911_v36  ;;  %v1824_v55 = vpop.f32.mrf.mxu1  ;;  %v7156_v36 = vld [vmem:[%s13016_s1 + $0x108] sm:$0xf0]  ;;  %v8101_v63 = vld [vmem:[%s13016_s1 + $0x184] sm:$0xf] }
 0x2ed   : > { %v1825_v35 = vadd.f32 %v1824_v55, %v1735_v17 }
 0x2ee   : > { %v9963_v43 = vadd.f32 %v2001_v13, %v9516_v29  ;;  %v8085_v29 = vld [vmem:[%s13016_s1 + $0x104] sm:$0xf]  ;;  %v7220_v13 = vld [vmem:[%s13016_s1 + $0x188] sm:$0xf0] }
 0x2ef   : > { %v9966_v20 = vadd.f32 %v1825_v35, %v13190_v46  ;;  %v7159_v17 = vor.u32 %v8085_v29, %v7156_v36  ;;  %v7223_v35 = vor.u32 %v8101_v63, %v7220_v13  ;;  %v7218_v29 = vld [vmem:[%s13016_s1 + $0x180] sm:$0xf]  ;;  %v8102_v63 = vld [vmem:[%s13016_s1 + $0x184] sm:$0xf0] }
 0x2f0   : > { %13189 = vst [vmem:[#allocation22_spill] sm:$0xff] %v9963_v43 }
 0x2f1   : > { %13191 = vst [vmem:[#allocation23_spill] sm:$0xff] %v9966_v20  ;;  %2765 = vmatpush.bf16.msrb.mxu2 %v7159_v17  ;;  %2854 = vmatpush.bf16.msrb.mxu3 %v7223_v35  ;;  %v7219_v17 = vor.u32 %v8102_v63, %v7218_v29 }
 0x2f2   : > { %v1913_v5 = vpop.f32.mrf.mxu2 }
 0x2f3   : > { %v2002_v22 = vpop.f32.mrf.mxu3  ;;  %v1738_v2 = vpop.f32.mrf.mxu0  ;;  %2676 = vmatpush.bf16.msrb.mxu1 %v7219_v17 }
 0x2f4   : > { %v2003_v7 = vadd.f32 %v2002_v22, %v1913_v5  ;;  %v1827_v3 = vpop.f32.mrf.mxu1 }
 0x2f5   : > { %v1828_v11 = vadd.f32 %v1827_v3, %v1738_v2  ;;  %v13198_v3 = vld [vmem:[#allocation51_spill] sm:$0xff] }
 0x2f6   : > { %v9969_v4 = vadd.f32 %v2003_v7, %v13192_v42  ;;  %1777 = vmatmul.bf16.gmra.mxu0 %v13194_v47  ;;  %v13200_v42 = vld [vmem:[#allocation52_spill] sm:$0xff] }
 0x2f7   : > { %v9973_v10 = vadd.f32 %v1828_v11, %v13195_v37  ;;  %1866 = vmatmul.bf16.gmra.mxu1 %v13197_v8  ;;  %1955 = vmatmul.bf16.gmra.mxu2 %v13194_v47  ;;  %v7154_v37 = vld [vmem:[%s13016_s1 + $0x100] sm:$0xf] }
 0x2f8   : > { %13193 = vst [vmem:[#allocation24_spill] sm:$0xff] %v9969_v4  ;;  %2044 = vmatmul.bf16.gmra.mxu3 %v13197_v8  ;;  %v8086_v8 = vld [vmem:[%s13016_s1 + $0x104] sm:$0xf0] }
 0x2f9   : > { %13196 = vst [vmem:[#allocation25_spill] sm:$0xff] %v9973_v10  ;;  %v7155_v36 = vor.u32 %v8086_v8, %v7154_v37  ;;  %v13207_v8 = vld [vmem:[#allocation17_spill] sm:$0xff] }
 0x2fa   : > { %v1916_v55 = vpop.f32.mrf.mxu2 }
 0x2fb   : > { %v2005_v46 = vpop.f32.mrf.mxu3  ;;  %v1740_v5 = vpop.f32.mrf.mxu0  ;;  %2587 = vmatpush.bf16.msrb.mxu0 %v7155_v36 }
 0x2fc   : > { %v2006_v22 = vadd.f32 %v2005_v46, %v1916_v55  ;;  %v1829_v2 = vpop.f32.mrf.mxu1 }
 0x2fd   : > { %v1830_v7 = vadd.f32 %v1829_v2, %v1740_v5  ;;  %v13202_v2 = vld [vmem:[#allocation53_spill] sm:$0xff] }
 0x2fe   : > { %v9991_v11 = vadd.f32 %v2006_v22, %v13198_v3  ;;  %v13204_v3 = vld [vmem:[#allocation16_spill] sm:$0xff] }
 0x2ff   : > { %v9994_v47 = vadd.f32 %v1830_v7, %v13200_v42  ;;  %v13205_v42 = vld [vmem:[#allocation54_spill] sm:$0xff] }
 0x300   : > { %13199 = vst [vmem:[#allocation26_spill] sm:$0xff] %v9991_v11 }
 0x301   : > { %13201 = vst [vmem:[#allocation27_spill] sm:$0xff] %v9994_v47 }
 0x302   : > { %v1918_v13 = vpop.f32.mrf.mxu2 }
 0x303   : > { %v2007_v55 = vpop.f32.mrf.mxu3  ;;  %v1743_v35 = vpop.f32.mrf.mxu0 }
 0x304   : > { %v2008_v46 = vadd.f32 %v2007_v55, %v1918_v13  ;;  %v1832_v5 = vpop.f32.mrf.mxu1 }
 0x305   : > { %v1833_v22 = vadd.f32 %v1832_v5, %v1743_v35  ;;  %v13208_v35 = vld [vmem:[#allocation9_spill] sm:$0xff]  ;;  %v13210_v5 = vld [vmem:[#allocation55_spill] sm:$0xff] }
 0x306   : > { %v10009_v7 = vadd.f32 %v2008_v46, %v13202_v2  ;;  %1782 = vmatmul.bf16.gmra.mxu0 %v13204_v3 }
 0x307   : > { %v10013_v37 = vadd.f32 %v1833_v22, %v13205_v42  ;;  %1871 = vmatmul.bf16.gmra.mxu1 %v13207_v8  ;;  %1960 = vmatmul.bf16.gmra.mxu2 %v13204_v3  ;;  %v6994_v22 = vld [vmem:[%s8751_s6 + $0x1b0] sm:$0xf]  ;;  %v7986_v42 = vld [vmem:[%s8751_s6 + $0x1b4] sm:$0xf0] }
 0x308   : > { %13203 = vst [vmem:[#allocation28_spill] sm:$0xff] %v10009_v7  ;;  %2049 = vmatmul.bf16.gmra.mxu3 %v13207_v8  ;;  %v6996_v7 = vld [vmem:[%s8751_s6 + $0x1b8] sm:$0xf0]  ;;  %v6995_v3 = vor.u32 %v7986_v42, %v6994_v22 }
 0x309   : > { %13206 = vst [vmem:[#allocation29_spill] sm:$0xff] %v10013_v37  ;;  %v7985_v37 = vld [vmem:[%s8751_s6 + $0x1b4] sm:$0xf] }
 0x30a   : > { %v1921_v29 = vpop.f32.mrf.mxu2  ;;  %v6999_v10 = vor.u32 %v7985_v37, %v6996_v7 }
 0x30b   : > { %v2010_v36 = vpop.f32.mrf.mxu3  ;;  %v1745_v63 = vpop.f32.mrf.mxu0 }
 0x30c   : > { %v2011_v17 = vadd.f32 %v2010_v36, %v1921_v29  ;;  %v1834_v13 = vpop.f32.mrf.mxu1  ;;  %v13212_v36 = vld [vmem:[#allocation12_spill] sm:$0xff] }
 0x30d   : > { %v1835_v55 = vadd.f32 %v1834_v13, %v1745_v63 }
 0x30e   : > { %v10019_v46 = vadd.f32 %v2011_v17, %v13208_v35  ;;  %v13214_v17 = vld [vmem:[#allocation13_spill] sm:$0xff] }
 0x30f   : > { %v10022_v2 = vadd.f32 %v1835_v55, %v13210_v5  ;;  %v8131_v55 = vld [vmem:[%s13016_s1 + $0x474] sm:$0xf] }
 0x310   : > { %13209 = vst [vmem:[#allocation30_spill] sm:$0xff] %v10019_v46  ;;  %v163_v46 = vld [vmem:[%s8751_s6 + $0x10] sm:$0xff] }
 0x311   : > { %13211 = vst [vmem:[#allocation31_spill] sm:$0xff] %v10022_v2  ;;  %v161_v2 = vld [vmem:[%s8751_s6] sm:$0xff] }
 0x312   : > { %v1923_v47 = vpop.f32.mrf.mxu2 }
 0x313   : > { %v2012_v11 = vpop.f32.mrf.mxu3  ;;  %v1748_v8 = vpop.f32.mrf.mxu0 }
 0x314   : > { %v2013_v4 = vadd.f32 %v2012_v11, %v1923_v47  ;;  %v1837_v20 = vpop.f32.mrf.mxu1 }
 0x315   : > { %v1838_v29 = vadd.f32 %v1837_v20, %v1748_v8  ;;  %v7342_v20 = vld [vmem:[%s13016_s1 + $0x478] sm:$0xf0] }
 0x316   : > { %v10029_v63 = vadd.f32 %v2013_v4, %v13212_v36  ;;  %1787 = vmatmul.bf16.gmra.mxu0 %v6995_v3  ;;  %v8147_v4 = vld [vmem:[%s13016_s1 + $0x4f4] sm:$0xf]  ;;  %v7345_v11 = vor.u32 %v8131_v55, %v7342_v20  ;;  %v7988_v36 = vld [vmem:[%s8751_s6 + $0x1cc] sm:$0xf0]  ;;  %v13218_v55 = vld [vmem:[#allocation6_spill] sm:$0xff] }
 0x317   : > { %v10032_v13 = vadd.f32 %v1838_v29, %v13214_v17  ;;  %1876 = vmatmul.bf16.gmra.mxu1 %v6999_v10  ;;  %1965 = vmatmul.bf16.gmra.mxu2 %v6995_v3  ;;  %v13216_v3 = vld [vmem:[#allocation5_spill] sm:$0xff]  ;;  %v7002_v29 = vld [vmem:[%s8751_s6 + $0x1c8] sm:$0xf]  ;;  %v7987_v17 = vld [vmem:[%s8751_s6 + $0x1cc] sm:$0xf] }
 0x318   : > { %13213 = vst [vmem:[#allocation32_spill] sm:$0xff] %v10029_v63  ;;  %2054 = vmatmul.bf16.gmra.mxu3 %v6999_v10  ;;  %v7406_v10 = vld [vmem:[%s13016_s1 + $0x4f8] sm:$0xf0]  ;;  %3402 = vmatpush.bf16.msra.mxu2 %v7345_v11  ;;  %v8132_v11 = vld [vmem:[%s13016_s1 + $0x474] sm:$0xf0] }
 0x319   : > { %13215 = vst [vmem:[#allocation33_spill] sm:$0xff] %v10032_v13  ;;  %v7409_v7 = vor.u32 %v8147_v4, %v7406_v10  ;;  %v7340_v4 = vld [vmem:[%s13016_s1 + $0x470] sm:$0xf] }
 0x31a   : > { %v1926_v47 = vpop.f32.mrf.mxu2  ;;  %v7404_v10 = vld [vmem:[%s13016_s1 + $0x4f0] sm:$0xf] }
 0x31b   : > { %v2015_v37 = vpop.f32.mrf.mxu3  ;;  %v1750_v35 = vpop.f32.mrf.mxu0  ;;  %3491 = vmatpush.bf16.msra.mxu3 %v7409_v7  ;;  %v162_v7 = vld [vmem:[%s8751_s6 + $0x8] sm:$0xff] }
 0x31c   : > { %v2016_v5 = vadd.f32 %v2015_v37, %v1926_v47  ;;  %v1839_v22 = vpop.f32.mrf.mxu1  ;;  %v7004_v47 = vld [vmem:[%s8751_s6 + $0x1d0] sm:$0xf0]  ;;  %v7341_v37 = vor.u32 %v8132_v11, %v7340_v4  ;;  %v13220_v4 = vld [vmem:[#allocation14_spill] sm:$0xff] }
 0x31d   : > { %v1840_v42 = vadd.f32 %v1839_v22, %v1750_v35  ;;  %v8148_v35 = vld [vmem:[%s13016_s1 + $0x4f4] sm:$0xf0] }
 0x31e   : > { %v10047_v8 = vadd.f32 %v2016_v5, %v13216_v3  ;;  %v7405_v5 = vor.u32 %v8148_v35, %v7404_v10  ;;  %3224 = vmatpush.bf16.msra.mxu0 %v7341_v37  ;;  %v13221_v10 = vld [vmem:[#allocation15_spill] sm:$0xff] }
 0x31f   : > { %v10053_v20 = vadd.f32 %v1840_v42, %v13218_v55  ;;  %v7003_v42 = vor.u32 %v7988_v36, %v7002_v29  ;;  %v7136_v29 = vrot.slane %v161_v2, 9 }
 0x320   : > { %13217 = vst [vmem:[#allocation34_spill] sm:$0xff] %v10047_v8  ;;  %v2150_v8 = vrot.slane %v162_v7, 5  ;;  %3313 = vmatpush.bf16.msra.mxu1 %v7405_v5 }
 0x321   : > { %13219 = vst [vmem:[#allocation35_spill] sm:$0xff] %v10053_v20  ;;  %v7007_v20 = vor.u32 %v7987_v17, %v7004_v47  ;;  %v2153_v17 = vrot.slane %v163_v46, 5  ;;  %v7744_v47 = vld [vmem:[%s13016_s1 + $0x570] sm:$0xf] }
 0x322   : > { %v1928_v22 = vpop.f32.mrf.mxu2  ;;  %v2152_v36 = vrot.slane %v2150_v8, 4 }
 0x323   : > { %v2017_v3 = vpop.f32.mrf.mxu3  ;;  %v1753_v55 = vpop.f32.mrf.mxu0 }
 0x324   : > { %v2018_v13 = vadd.f32 %v2017_v3, %v1928_v22  ;;  %v1842_v63 = vpop.f32.mrf.mxu1 }
 0x325   : > { %v1843_v43 = vadd.f32 %v1842_v63, %v1753_v55 }
 0x326   : > { %v10072_v11 = vadd.f32 %v2018_v13, %v13220_v4  ;;  %1792 = vmatmul.bf16.gmra.mxu0 %v7003_v42  ;;  %v2151_v13 = vsel %vm10077_vm2, %v7136_v29, %v2150_v8 }
 0x327   : > { %v10075_v35 = vadd.f32 %v1843_v43, %v13221_v10  ;;  %1881 = vmatmul.bf16.gmra.mxu1 %v7007_v20  ;;  %1970 = vmatmul.bf16.gmra.mxu2 %v7003_v42  ;;  %v2154_v43 = vsel %vm10077_vm2, %v2152_v36, %v2153_v17  ;;  %v2293_v55 = vunpack.c.h.b16 %v2151_v13  ;;  %v165_v10 = vld [vmem:[%s8751_s6 + $0x20] sm:$0xff] }
 0x328   : > { %2059 = vmatmul.bf16.gmra.mxu3 %v7007_v20  ;;  %v2292_v20 = vunpack.c.l.b16 %v2151_v13  ;;  %v2294_v42 = vunpack.c.l.b16 %v2154_v43  ;;  %v2295_v4 = vunpack.c.h.b16 %v2154_v43 }
 0x329   : > { %13222 = vst [vmem:[#allocation36_spill] sm:$0xff] %v10075_v35 }
 0x32a   : > { %v1931_v63 = vpop.f32.mrf.mxu2  ;;  %v2356_v29 = vpack.c.b16 %v2294_v42, %v2292_v20  ;;  %v2357_v17 = vpack.c.b16 %v2295_v4, %v2293_v55  ;;  %v7334_v20 = vld [vmem:[%s13016_s1 + $0x468] sm:$0xf0] }
 0x32b   : > { %v2020_v7 = vpop.f32.mrf.mxu3  ;;  %v1755_v37 = vpop.f32.mrf.mxu0  ;;  %v7398_v42 = vld [vmem:[%s13016_s1 + $0x4e8] sm:$0xf0] }
 0x32c   : > { %v2021_v5 = vadd.f32 %v2020_v7, %v1931_v63  ;;  %v1844_v22 = vpop.f32.mrf.mxu1  ;;  %v2157_v63 = vrot.slane %v165_v10, 5 }
 0x32d   : > { %v1845_v2 = vadd.f32 %v1844_v22, %v1755_v37  ;;  %v164_v22 = vld [vmem:[%s8751_s6 + $0x18] sm:$0xff] }
 0x32e   : > { %v10086_v46 = vadd.f32 %v2021_v5, %v9628_v41  ;;  %v166_v41 = vld [vmem:[%s8751_s6 + $0x28] sm:$0xff]  ;;  %v7137_v13 = vrot.slane %v164_v22, 9  ;;  %v2159_v43 = vrot.slane %v2157_v63, 4 }
 0x32f   : > { %v10089_v3 = vadd.f32 %v1845_v2, %v9630_v15  ;;  %v2160_v2 = vrot.slane %v166_v41, 5 }
 0x330   : > { %13225 = vst [vmem:[#allocation37_spill] sm:$0xff] %v10086_v46 }
 0x332   : > { %v1933_v8 = vpop.f32.mrf.mxu2 }
 0x333   : > { %v2022_v35 = vpop.f32.mrf.mxu3  ;;  %v1758_v36 = vpop.f32.mrf.mxu0 }
 0x334   : > { %v2023_v7 = vadd.f32 %v2022_v35, %v1933_v8  ;;  %v1847_v37 = vpop.f32.mrf.mxu1  ;;  %v8129_v35 = vld [vmem:[%s13016_s1 + $0x464] sm:$0xf] }
 0x335   : > { %v1848_v5 = vadd.f32 %v1847_v37, %v1758_v36  ;;  %v2161_v36 = vsel %vm10077_vm2, %v2159_v43, %v2160_v2  ;;  %v168_v43 = vld [vmem:[%s8751_s6 + $0x38] sm:$0xff] }
 0x336   : > { %v10095_v46 = vadd.f32 %v2023_v7, %v9634_v49  ;;  %2588 = vmatmul.bf16.vlgmr.msrb.gmra.mxu0 %v2356_v29  ;;  %v8145_v49 = vld [vmem:[%s13016_s1 + $0x4e4] sm:$0xf] }
 0x337   : > { %v10098_v15 = vadd.f32 %v1848_v5, %v9636_v31  ;;  %2677 = vmatmul.bf16.vlgmr.msrb.gmra.mxu1 %v2357_v17  ;;  %2766 = vmatmul.bf16.vlgmr.msrb.gmra.mxu2 %v2356_v29  ;;  %v7337_v31 = vor.u32 %v8129_v35, %v7334_v20  ;;  %v7401_v4 = vor.u32 %v8145_v49, %v7398_v42  ;;  %v2298_v5 = vunpack.c.l.b16 %v2161_v36 }
 0x338   : > { %2855 = vmatmul.bf16.vlgmr.msrb.gmra.mxu3 %v2357_v17  ;;  %v2158_v29 = vsel %vm10077_vm2, %v7137_v13, %v2157_v63  ;;  %v2299_v49 = vunpack.c.h.b16 %v2161_v36  ;;  %v7332_v63 = vld [vmem:[%s13016_s1 + $0x460] sm:$0xf]  ;;  %v8130_v13 = vld [vmem:[%s13016_s1 + $0x464] sm:$0xf0] }
 0x339   : > { %3403 = vmatpush.bf16.msra.mxu2 %v7337_v31  ;;  %3492 = vmatpush.bf16.msra.mxu3 %v7401_v4  ;;  %v2296_v41 = vunpack.c.l.b16 %v2158_v29  ;;  %v2297_v20 = vunpack.c.h.b16 %v2158_v29  ;;  %v7333_v2 = vor.u32 %v8130_v13, %v7332_v63  ;;  %v2164_v29 = vrot.slane %v168_v43, 5 }
 0x33a   : > { %v1936_v55 = vpop.f32.mrf.mxu2 }
 0x33b   : > { %v2025_v10 = vpop.f32.mrf.mxu3  ;;  %v1760_v8 = vpop.f32.mrf.mxu0  ;;  %3225 = vmatpush.bf16.msra.mxu0 %v7333_v2 }
 0x33c   : > { %v2026_v17 = vadd.f32 %v2025_v10, %v1936_v55  ;;  %v1849_v7 = vpop.f32.mrf.mxu1  ;;  %v2358_v55 = vpack.c.b16 %v2298_v5, %v2296_v41  ;;  %v2166_v5 = vrot.slane %v2164_v29, 4 }
 0x33d   : > { %v1850_v37 = vadd.f32 %v1849_v7, %v1760_v8  ;;  %v2359_v8 = vpack.c.b16 %v2299_v49, %v2297_v20  ;;  %v167_v7 = vld [vmem:[%s8751_s6 + $0x30] sm:$0xff] }
 0x33e   : > { %v10117_v22 = vadd.f32 %v2026_v17, %v9656_v12  ;;  %v7396_v12 = vld [vmem:[%s13016_s1 + $0x4e0] sm:$0xf]  ;;  %v7138_v41 = vrot.slane %v167_v7, 9 }
 0x33f   : > { %v10120_v35 = vadd.f32 %v1850_v37, %v9658_v19  ;;  %v8146_v19 = vld [vmem:[%s13016_s1 + $0x4e4] sm:$0xf0]  ;;  %v169_v37 = vld [vmem:[%s8751_s6 + $0x40] sm:$0xff] }
 0x340   : > { %v7397_v31 = vor.u32 %v8146_v19, %v7396_v12  ;;  %v2167_v12 = vrot.slane %v169_v37, 5  ;;  %v2165_v2 = vsel %vm10077_vm2, %v7138_v41, %v2164_v29 }
 0x341   : > { %13226 = vst [vmem:[#allocation38_spill] sm:$0xff] %v10120_v35 }
 0x342   : > { %v1938_v42 = vpop.f32.mrf.mxu2  ;;  %3314 = vmatpush.bf16.msra.mxu1 %v7397_v31 }
 0x343   : > { %v2027_v4 = vpop.f32.mrf.mxu3  ;;  %v1763_v10 = vpop.f32.mrf.mxu0 }
 0x344   : > { %v2028_v36 = vadd.f32 %v2027_v4, %v1938_v42  ;;  %v1852_v17 = vpop.f32.mrf.mxu1  ;;  %v2300_v42 = vunpack.c.l.b16 %v2165_v2 }
 0x345   : > { %v1853_v35 = vadd.f32 %v1852_v17, %v1763_v10  ;;  %v2301_v10 = vunpack.c.h.b16 %v2165_v2 }
 0x346   : > { %v10138_v63 = vadd.f32 %v2028_v36, %v9674_v38  ;;  %2593 = vmatmul.bf16.gmra.mxu0 %v2358_v55  ;;  %v2168_v38 = vsel %vm10077_vm2, %v2166_v5, %v2167_v12  ;;  %v171_v36 = vld [vmem:[%s8751_s6 + $0x50] sm:$0xff] }
 0x347   : > { %v10141_v13 = vadd.f32 %v1853_v35, %v9676_v54  ;;  %2682 = vmatmul.bf16.gmra.mxu1 %v2359_v8  ;;  %2771 = vmatmul.bf16.gmra.mxu2 %v2358_v55  ;;  %v2302_v55 = vunpack.c.l.b16 %v2168_v38  ;;  %v2171_v5 = vrot.slane %v171_v36, 5 }
 0x348   : > { %2860 = vmatmul.bf16.gmra.mxu3 %v2359_v8  ;;  %v2303_v8 = vunpack.c.h.b16 %v2168_v38 }
 0x349   : > { %v10154_v17 = vpack.c.b16 %v2302_v55, %v2300_v42  ;;  %v2173_v38 = vrot.slane %v2171_v5, 4  ;;  %v7390_v55 = vld [vmem:[%s13016_s1 + $0x4d8] sm:$0xf0] }
 0x34a   : > { %v1941_v20 = vpop.f32.mrf.mxu2  ;;  %v10156_v41 = vpack.c.b16 %v2303_v8, %v2301_v10 }
 0x34b   : > { %v2030_v49 = vpop.f32.mrf.mxu3  ;;  %v1765_v43 = vpop.f32.mrf.mxu0 }
 0x34c   : > { %v2031_v19 = vadd.f32 %v2030_v49, %v1941_v20  ;;  %v1854_v31 = vpop.f32.mrf.mxu1  ;;  %v170_v20 = vld [vmem:[%s8751_s6 + $0x48] sm:$0xff]  ;;  %v172_v49 = vld [vmem:[%s8751_s6 + $0x58] sm:$0xff] }
 0x34d   : > { %v1855_v54 = vadd.f32 %v1854_v31, %v1765_v43  ;;  %v7139_v2 = vrot.slane %v170_v20, 9  ;;  %v2174_v31 = vrot.slane %v172_v49, 5 }
 0x34e   : > { %v10148_v35 = vadd.f32 %v2031_v19, %v9684_v28 }
 0x34f   : > { %v10151_v4 = vadd.f32 %v1855_v54, %v9686_v34  ;;  %v8127_v54 = vld [vmem:[%s13016_s1 + $0x454] sm:$0xf] }
 0x352   : > { %v1943_v29 = vpop.f32.mrf.mxu2 }
 0x353   : > { %v2032_v7 = vpop.f32.mrf.mxu3  ;;  %v1768_v37 = vpop.f32.mrf.mxu0 }
 0x354   : > { %v2033_v12 = vadd.f32 %v2032_v7, %v1943_v29  ;;  %v1857_v28 = vpop.f32.mrf.mxu1  ;;  %v2172_v7 = vsel %vm10077_vm2, %v7139_v2, %v2171_v5  ;;  %v7324_v5 = vld [vmem:[%s13016_s1 + $0x450] sm:$0xf]  ;;  %v8128_v2 = vld [vmem:[%s13016_s1 + $0x454] sm:$0xf0] }
 0x355   : > { %v1858_v43 = vadd.f32 %v1857_v28, %v1768_v37  ;;  %v2175_v37 = vsel %vm10077_vm2, %v2173_v38, %v2174_v31  ;;  %v174_v38 = vld [vmem:[%s8751_s6 + $0x68] sm:$0xff]  ;;  %v7325_v31 = vor.u32 %v8128_v2, %v7324_v5 }
 0x356   : > { %v10161_v19 = vadd.f32 %v2033_v12, %v9690_v56  ;;  %2598 = vmatmul.bf16.gmra.mxu0 %v10154_v17  ;;  %v7326_v56 = vld [vmem:[%s13016_s1 + $0x458] sm:$0xf0] }
 0x357   : > { %v10165_v34 = vadd.f32 %v1858_v43, %v9692_v44  ;;  %2687 = vmatmul.bf16.gmra.mxu1 %v10156_v41  ;;  %2776 = vmatmul.bf16.gmra.mxu2 %v10154_v17  ;;  %v8143_v44 = vld [vmem:[%s13016_s1 + $0x4d4] sm:$0xf]  ;;  %v7329_v42 = vor.u32 %v8127_v54, %v7326_v56  ;;  %v2304_v43 = vunpack.c.l.b16 %v2172_v7  ;;  %v2306_v54 = vunpack.c.l.b16 %v2175_v37 }
 0x358   : > { %2865 = vmatmul.bf16.gmra.mxu3 %v10156_v41  ;;  %v7393_v8 = vor.u32 %v8143_v44, %v7390_v55  ;;  %v2305_v44 = vunpack.c.h.b16 %v2172_v7  ;;  %v2307_v55 = vunpack.c.h.b16 %v2175_v37  ;;  %3226 = vmatpush.bf16.msra.mxu0 %v7325_v31  ;;  %v2178_v37 = vrot.slane %v174_v38, 5 }
 0x359   : > { %3404 = vmatpush.bf16.msra.mxu2 %v7329_v42 }
 0x35a   : > { %v1946_v10 = vpop.f32.mrf.mxu2  ;;  %3493 = vmatpush.bf16.msra.mxu3 %v7393_v8  ;;  %v10205_v8 = vpack.c.b16 %v2306_v54, %v2304_v43  ;;  %v10207_v7 = vpack.c.b16 %v2307_v55, %v2305_v44  ;;  %v2180_v44 = vrot.slane %v2178_v37, 4 }
 0x35b   : > { %v2035_v36 = vpop.f32.mrf.mxu3  ;;  %v1770_v29 = vpop.f32.mrf.mxu0 }
 0x35c   : > { %v2036_v12 = vadd.f32 %v2035_v36, %v1946_v10  ;;  %v1859_v28 = vpop.f32.mrf.mxu1 }
 0x35d   : > { %v1860_v20 = vadd.f32 %v1859_v28, %v1770_v29 }
 0x35e   : > { %v10187_v49 = vadd.f32 %v2036_v12, %v9712_v57  ;;  %v7388_v57 = vld [vmem:[%s13016_s1 + $0x4d0] sm:$0xf] }
 0x35f   : > { %v10190_v56 = vadd.f32 %v1860_v20, %v9714_v40  ;;  %v8144_v40 = vld [vmem:[%s13016_s1 + $0x4d4] sm:$0xf0]  ;;  %v173_v20 = vld [vmem:[%s8751_s6 + $0x60] sm:$0xff] }
 0x360   : > { %v7389_v42 = vor.u32 %v8144_v40, %v7388_v57  ;;  %v7140_v54 = vrot.slane %v173_v20, 9 }
 0x361   : > { %13227 = vst [vmem:[#allocation39_spill] sm:$0xff] %v10190_v56  ;;  %v175_v56 = vld [vmem:[%s8751_s6 + $0x70] sm:$0xff] }
 0x362   : > { %v1948_v10 = vpop.f32.mrf.mxu2  ;;  %3315 = vmatpush.bf16.msra.mxu1 %v7389_v42  ;;  %v2181_v55 = vrot.slane %v175_v56, 5 }
 0x363   : > { %v2037_v36 = vpop.f32.mrf.mxu3  ;;  %v1773_v29 = vpop.f32.mrf.mxu0 }
 0x364   : > { %v2038_v12 = vadd.f32 %v2037_v36, %v1948_v10  ;;  %v1862_v28 = vpop.f32.mrf.mxu1 }
 0x365   : > { %v1863_v5 = vadd.f32 %v1862_v28, %v1773_v29 }
 0x366   : > { %v10212_v2 = vadd.f32 %v2038_v12, %v9730_v33  ;;  %2603 = vmatmul.bf16.gmra.mxu0 %v10205_v8  ;;  %v2179_v33 = vsel %vm10077_vm2, %v7140_v54, %v2178_v37 }
 0x367   : > { %v10216_v43 = vadd.f32 %v1863_v5, %v9732_v61  ;;  %2692 = vmatmul.bf16.gmra.mxu1 %v10207_v7  ;;  %2781 = vmatmul.bf16.gmra.mxu2 %v10205_v8  ;;  %v2182_v61 = vsel %vm10077_vm2, %v2180_v44, %v2181_v55  ;;  %v2308_v56 = vunpack.c.l.b16 %v2179_v33  ;;  %v2309_v28 = vunpack.c.h.b16 %v2179_v33  ;;  %v177_v5 = vld [vmem:[%s8751_s6 + $0x80] sm:$0xff] }
 0x368   : > { %2870 = vmatmul.bf16.gmra.mxu3 %v10207_v7  ;;  %v2310_v29 = vunpack.c.l.b16 %v2182_v61  ;;  %v2311_v20 = vunpack.c.h.b16 %v2182_v61 }
 0x369   : > { %13228 = vst [vmem:[#allocation40_spill] sm:$0xff] %v10216_v43 }
 0x36a   : > { %v1951_v57 = vpop.f32.mrf.mxu2  ;;  %v10232_v54 = vpack.c.b16 %v2310_v29, %v2308_v56  ;;  %v8125_v56 = vld [vmem:[%s13016_s1 + $0x444] sm:$0xf]  ;;  %v7382_v29 = vld [vmem:[%s13016_s1 + $0x4c8] sm:$0xf0] }
 0x36b   : > { %v2040_v38 = vpop.f32.mrf.mxu3  ;;  %v1775_v31 = vpop.f32.mrf.mxu0 }
 0x36c   : > { %v2041_v40 = vadd.f32 %v2040_v38, %v1951_v57  ;;  %v1864_v42 = vpop.f32.mrf.mxu1  ;;  %v10234_v57 = vpack.c.b16 %v2311_v20, %v2309_v28  ;;  %v2185_v38 = vrot.slane %v177_v5, 5 }
 0x36d   : > { %v1865_v10 = vadd.f32 %v1864_v42, %v1775_v31  ;;  %v178_v42 = vld [vmem:[%s8751_s6 + $0x88] sm:$0xff] }
 0x36e   : > { %v10226_v36 = vadd.f32 %v2041_v40, %v9740_v45  ;;  %v176_v40 = vld [vmem:[%s8751_s6 + $0x78] sm:$0xff]  ;;  %v2187_v61 = vrot.slane %v2185_v38, 4 }
 0x36f   : > { %v10229_v12 = vadd.f32 %v1865_v10, %v9742_v26  ;;  %v7141_v33 = vrot.slane %v176_v40, 9  ;;  %v2188_v10 = vrot.slane %v178_v42, 5 }
 0x370   : > { %13229 = vst [vmem:[#allocation41_spill] sm:$0xff] %v10226_v36 }
 0x372   : > { %v1953_v37 = vpop.f32.mrf.mxu2 }
 0x373   : > { %v2042_v44 = vpop.f32.mrf.mxu3  ;;  %v1778_v55 = vpop.f32.mrf.mxu0 }
 0x374   : > { %v2043_v31 = vadd.f32 %v2042_v44, %v1953_v37  ;;  %v1867_v45 = vpop.f32.mrf.mxu1  ;;  %v2186_v44 = vsel %vm10077_vm2, %v7141_v33, %v2185_v38  ;;  %v7316_v38 = vld [vmem:[%s13016_s1 + $0x440] sm:$0xf]  ;;  %v8126_v33 = vld [vmem:[%s13016_s1 + $0x444] sm:$0xf0] }
 0x375   : > { %v1868_v36 = vadd.f32 %v1867_v45, %v1778_v55  ;;  %v2189_v55 = vsel %vm10077_vm2, %v2187_v61, %v2188_v10  ;;  %v180_v61 = vld [vmem:[%s8751_s6 + $0x98] sm:$0xff]  ;;  %v7317_v10 = vor.u32 %v8126_v33, %v7316_v38  ;;  %v13235_v33 = vld [vmem:[#allocation19_spill] sm:$0xff] }
 0x376   : > { %v10239_v43 = vadd.f32 %v2043_v31, %v9746_v32  ;;  %2608 = vmatmul.bf16.gmra.mxu0 %v10232_v54  ;;  %v7318_v32 = vld [vmem:[%s13016_s1 + $0x448] sm:$0xf0] }
 0x377   : > { %v10243_v26 = vadd.f32 %v1868_v36, %v9748_v50  ;;  %2697 = vmatmul.bf16.gmra.mxu1 %v10234_v57  ;;  %2786 = vmatmul.bf16.gmra.mxu2 %v10232_v54  ;;  %v8141_v50 = vld [vmem:[%s13016_s1 + $0x4c4] sm:$0xf]  ;;  %v7321_v36 = vor.u32 %v8125_v56, %v7318_v32  ;;  %v2312_v56 = vunpack.c.l.b16 %v2186_v44  ;;  %v2314_v32 = vunpack.c.l.b16 %v2189_v55 }
 0x378   : > { %13230 = vst [vmem:[#allocation42_spill] sm:$0xff] %v10239_v43  ;;  %2875 = vmatmul.bf16.gmra.mxu3 %v10234_v57  ;;  %v7385_v20 = vor.u32 %v8141_v50, %v7382_v29  ;;  %v13233_v50 = vld [vmem:[#allocation18_spill] sm:$0xff]  ;;  %v2315_v43 = vunpack.c.h.b16 %v2189_v55  ;;  %3227 = vmatpush.bf16.msra.mxu0 %v7317_v10 }
 0x379   : > { %13231 = vst [vmem:[#allocation43_spill] sm:$0xff] %v10243_v26  ;;  %3405 = vmatpush.bf16.msra.mxu2 %v7321_v36  ;;  %v2313_v26 = vunpack.c.h.b16 %v2186_v44  ;;  %v8142_v36 = vld [vmem:[%s13016_s1 + $0x4c4] sm:$0xf0] }
 0x37a   : > { %v1956_v28 = vpop.f32.mrf.mxu2  ;;  %3494 = vmatpush.bf16.msra.mxu3 %v7385_v20 }
 0x37b   : > { %v2045_v5 = vpop.f32.mrf.mxu3  ;;  %v1780_v37 = vpop.f32.mrf.mxu0  ;;  %v10285_v55 = vpack.c.b16 %v2315_v43, %v2313_v26 }
 0x37c   : > { %v2046_v31 = vadd.f32 %v2045_v5, %v1956_v28  ;;  %v1869_v45 = vpop.f32.mrf.mxu1  ;;  %v10283_v5 = vpack.c.b16 %v2314_v32, %v2312_v56 }
 0x37d   : > { %v1870_v40 = vadd.f32 %v1869_v45, %v1780_v37 }
 0x37e   : > { %v10265_v42 = vadd.f32 %v2046_v31, %v9768_v21  ;;  %v7380_v21 = vld [vmem:[%s13016_s1 + $0x4c0] sm:$0xf]  ;;  %v2192_v31 = vrot.slane %v180_v61, 5 }
 0x37f   : > { %v10268_v29 = vadd.f32 %v1870_v40, %v13233_v50  ;;  %v7381_v28 = vor.u32 %v8142_v36, %v7380_v21  ;;  %v179_v50 = vld [vmem:[%s8751_s6 + $0x90] sm:$0xff] }
 0x380   : > { %13232 = vst [vmem:[#allocation44_spill] sm:$0xff] %v10265_v42  ;;  %v13237_v21 = vld [vmem:[#allocation7_spill] sm:$0xff]  ;;  %v7142_v43 = vrot.slane %v179_v50, 9  ;;  %v2194_v26 = vrot.slane %v2192_v31, 4 }
 0x381   : > { %13234 = vst [vmem:[#allocation45_spill] sm:$0xff] %v10268_v29  ;;  %3316 = vmatpush.bf16.msra.mxu1 %v7381_v28  ;;  %v181_v29 = vld [vmem:[%s8751_s6 + $0xa0] sm:$0xff] }
 0x382   : > { %v1958_v20 = vpop.f32.mrf.mxu2  ;;  %v2195_v32 = vrot.slane %v181_v29, 5  ;;  %v2193_v28 = vsel %vm10077_vm2, %v7142_v43, %v2192_v31 }
 0x383   : > { %v2047_v37 = vpop.f32.mrf.mxu3  ;;  %v1783_v44 = vpop.f32.mrf.mxu0  ;;  %v2316_v29 = vunpack.c.l.b16 %v2193_v28 }
 0x384   : > { %v2048_v45 = vadd.f32 %v2047_v37, %v1958_v20  ;;  %v1872_v40 = vpop.f32.mrf.mxu1  ;;  %v2196_v20 = vsel %vm10077_vm2, %v2194_v26, %v2195_v32 }
 0x385   : > { %v1873_v38 = vadd.f32 %v1872_v40, %v1783_v44  ;;  %v2318_v50 = vunpack.c.l.b16 %v2196_v20 }
 0x386   : > { %v10290_v42 = vadd.f32 %v2048_v45, %v13235_v33  ;;  %2613 = vmatmul.bf16.gmra.mxu0 %v10283_v5  ;;  %v2317_v33 = vunpack.c.h.b16 %v2193_v28 }
 0x387   : > { %v10294_v56 = vadd.f32 %v1873_v38, %v13237_v21  ;;  %2702 = vmatmul.bf16.gmra.mxu1 %v10285_v55  ;;  %2791 = vmatmul.bf16.gmra.mxu2 %v10283_v5  ;;  %v2319_v21 = vunpack.c.h.b16 %v2196_v20  ;;  %v10310_v43 = vpack.c.b16 %v2318_v50, %v2316_v29  ;;  %v7374_v29 = vld [vmem:[%s13016_s1 + $0x4b8] sm:$0xf0] }
 0x388   : > { %13236 = vst [vmem:[#allocation46_spill] sm:$0xff] %v10290_v42  ;;  %2880 = vmatmul.bf16.gmra.mxu3 %v10285_v55 }
 0x389   : > { %13238 = vst [vmem:[#allocation47_spill] sm:$0xff] %v10294_v56  ;;  %v183_v56 = vld [vmem:[%s8751_s6 + $0xb0] sm:$0xff] }
 0x38a   : > { %v1961_v61 = vpop.f32.mrf.mxu2 }
 0x38b   : > { %v2050_v10 = vpop.f32.mrf.mxu3  ;;  %v1785_v36 = vpop.f32.mrf.mxu0 }
 0x38c   : > { %v2051_v37 = vadd.f32 %v2050_v10, %v1961_v61  ;;  %v1874_v44 = vpop.f32.mrf.mxu1  ;;  %v10312_v61 = vpack.c.b16 %v2319_v21, %v2317_v33  ;;  %v2199_v10 = vrot.slane %v183_v56, 5 }
 0x38d   : > { %v1875_v45 = vadd.f32 %v1874_v44, %v1785_v36  ;;  %v184_v44 = vld [vmem:[%s8751_s6 + $0xb8] sm:$0xff] }
 0x38e   : > { %v10304_v40 = vadd.f32 %v2051_v37, %v9796_v30  ;;  %v182_v37 = vld [vmem:[%s8751_s6 + $0xa8] sm:$0xff]  ;;  %v2201_v20 = vrot.slane %v2199_v10, 4  ;;  %v2202_v56 = vrot.slane %v184_v44, 5 }
 0x38f   : > { %v10307_v38 = vadd.f32 %v1875_v45, %v9798_v59  ;;  %v7143_v28 = vrot.slane %v182_v37, 9  ;;  %v8123_v45 = vld [vmem:[%s13016_s1 + $0x434] sm:$0xf] }
 0x390   : > { %13239 = vst [vmem:[#allocation48_spill] sm:$0xff] %v10304_v40 }
 0x392   : > { %v1963_v31 = vpop.f32.mrf.mxu2 }
 0x393   : > { %v2052_v26 = vpop.f32.mrf.mxu3  ;;  %v1788_v32 = vpop.f32.mrf.mxu0 }
 0x394   : > { %v2053_v36 = vadd.f32 %v2052_v26, %v1963_v31  ;;  %v1877_v30 = vpop.f32.mrf.mxu1  ;;  %v2200_v26 = vsel %vm10077_vm2, %v7143_v28, %v2199_v10  ;;  %v7308_v10 = vld [vmem:[%s13016_s1 + $0x430] sm:$0xf]  ;;  %v8124_v28 = vld [vmem:[%s13016_s1 + $0x434] sm:$0xf0] }
 0x395   : > { %v1878_v40 = vadd.f32 %v1877_v30, %v1788_v32  ;;  %v2203_v32 = vsel %vm10077_vm2, %v2201_v20, %v2202_v56  ;;  %v186_v20 = vld [vmem:[%s8751_s6 + $0xc8] sm:$0xff]  ;;  %v7309_v56 = vor.u32 %v8124_v28, %v7308_v10  ;;  %v13245_v28 = vld [vmem:[#allocation20_spill] sm:$0xff] }
 0x396   : > { %v10317_v42 = vadd.f32 %v2053_v36, %v9802_v52  ;;  %2618 = vmatmul.bf16.gmra.mxu0 %v10310_v43  ;;  %v7310_v52 = vld [vmem:[%s13016_s1 + $0x438] sm:$0xf0] }
 0x397   : > { %v10321_v59 = vadd.f32 %v1878_v40, %v9804_v18  ;;  %2707 = vmatmul.bf16.gmra.mxu1 %v10312_v61  ;;  %2796 = vmatmul.bf16.gmra.mxu2 %v10310_v43  ;;  %v8139_v18 = vld [vmem:[%s13016_s1 + $0x4b4] sm:$0xf]  ;;  %v7313_v40 = vor.u32 %v8123_v45, %v7310_v52  ;;  %v2320_v45 = vunpack.c.l.b16 %v2200_v26  ;;  %v2322_v52 = vunpack.c.l.b16 %v2203_v32 }
 0x398   : > { %13240 = vst [vmem:[#allocation49_spill] sm:$0xff] %v10317_v42  ;;  %2885 = vmatmul.bf16.gmra.mxu3 %v10312_v61  ;;  %v7377_v33 = vor.u32 %v8139_v18, %v7374_v29  ;;  %v13243_v18 = vld [vmem:[#allocation8_spill] sm:$0xff]  ;;  %v2323_v42 = vunpack.c.h.b16 %v2203_v32  ;;  %3228 = vmatpush.bf16.msra.mxu0 %v7309_v56 }
 0x399   : > { %13241 = vst [vmem:[#allocation10_spill] sm:$0xff] %v10321_v59  ;;  %3406 = vmatpush.bf16.msra.mxu2 %v7313_v40  ;;  %v2321_v59 = vunpack.c.h.b16 %v2200_v26  ;;  %v8140_v40 = vld [vmem:[%s13016_s1 + $0x4b4] sm:$0xf0] }
 0x39a   : > { %v1966_v50 = vpop.f32.mrf.mxu2  ;;  %3495 = vmatpush.bf16.msra.mxu3 %v7377_v33 }
 0x39b   : > { %v2055_v21 = vpop.f32.mrf.mxu3  ;;  %v1790_v31 = vpop.f32.mrf.mxu0  ;;  %v10363_v32 = vpack.c.b16 %v2323_v42, %v2321_v59 }
 0x39c   : > { %v2056_v36 = vadd.f32 %v2055_v21, %v1966_v50  ;;  %v1879_v30 = vpop.f32.mrf.mxu1  ;;  %v10361_v21 = vpack.c.b16 %v2322_v52, %v2320_v45 }
 0x39d   : > { %v1880_v37 = vadd.f32 %v1879_v30, %v1790_v31 }
 0x39e   : > { %v10343_v44 = vadd.f32 %v2056_v36, %v9824_v6  ;;  %v7372_v6 = vld [vmem:[%s13016_s1 + $0x4b0] sm:$0xf]  ;;  %v2206_v36 = vrot.slane %v186_v20, 5 }
 0x39f   : > { %v10346_v29 = vadd.f32 %v1880_v37, %v13243_v18  ;;  %v7373_v50 = vor.u32 %v8140_v40, %v7372_v6  ;;  %v185_v18 = vld [vmem:[%s8751_s6 + $0xc0] sm:$0xff] }
 0x3a0   : > { %13242 = vst [vmem:[#allocation50_spill] sm:$0xff] %v10343_v44  ;;  %v13247_v6 = vld [vmem:[#allocation21_spill] sm:$0xff]  ;;  %v7144_v42 = vrot.slane %v185_v18, 9  ;;  %v2208_v59 = vrot.slane %v2206_v36, 4 }
 0x3a1   : > { %13244 = vst [vmem:[#allocation11_spill] sm:$0xff] %v10346_v29  ;;  %3317 = vmatpush.bf16.msra.mxu1 %v7373_v50  ;;  %v187_v29 = vld [vmem:[%s8751_s6 + $0xd0] sm:$0xff] }
 0x3a2   : > { %v1968_v33 = vpop.f32.mrf.mxu2  ;;  %v2209_v52 = vrot.slane %v187_v29, 5  ;;  %v2207_v50 = vsel %vm10077_vm2, %v7144_v42, %v2206_v36 }
 0x3a3   : > { %v2057_v31 = vpop.f32.mrf.mxu3  ;;  %v1793_v26 = vpop.f32.mrf.mxu0  ;;  %v2324_v29 = vunpack.c.l.b16 %v2207_v50 }
 0x3a4   : > { %v2058_v30 = vadd.f32 %v2057_v31, %v1968_v33  ;;  %v1882_v37 = vpop.f32.mrf.mxu1  ;;  %v2210_v33 = vsel %vm10077_vm2, %v2208_v59, %v2209_v52 }
 0x3a5   : > { %v1883_v10 = vadd.f32 %v1882_v37, %v1793_v26  ;;  %v2326_v18 = vunpack.c.l.b16 %v2210_v33 }
 0x3a6   : > { %v10368_v44 = vadd.f32 %v2058_v30, %v13245_v28  ;;  %2623 = vmatmul.bf16.gmra.mxu0 %v10361_v21  ;;  %v2325_v28 = vunpack.c.h.b16 %v2207_v50 }
 0x3a7   : > { %v10372_v45 = vadd.f32 %v1883_v10, %v13247_v6  ;;  %2712 = vmatmul.bf16.gmra.mxu1 %v10363_v32  ;;  %2801 = vmatmul.bf16.gmra.mxu2 %v10361_v21  ;;  %v2327_v6 = vunpack.c.h.b16 %v2210_v33  ;;  %v10388_v42 = vpack.c.b16 %v2326_v18, %v2324_v29  ;;  %v7366_v29 = vld [vmem:[%s13016_s1 + $0x4a8] sm:$0xf0] }
 0x3a8   : > { %13246 = vst [vmem:[#allocation51_spill] sm:$0xff] %v10368_v44  ;;  %2890 = vmatmul.bf16.gmra.mxu3 %v10363_v32 }
 0x3a9   : > { %13248 = vst [vmem:[#allocation52_spill] sm:$0xff] %v10372_v45  ;;  %v189_v45 = vld [vmem:[%s8751_s6 + $0xe0] sm:$0xff] }
 0x3aa   : > { %v1971_v20 = vpop.f32.mrf.mxu2 }
 0x3ab   : > { %v2060_v56 = vpop.f32.mrf.mxu3  ;;  %v1795_v40 = vpop.f32.mrf.mxu0 }
 0x3ac   : > { %v2061_v31 = vadd.f32 %v2060_v56, %v1971_v20  ;;  %v1884_v26 = vpop.f32.mrf.mxu1  ;;  %v10390_v20 = vpack.c.b16 %v2327_v6, %v2325_v28  ;;  %v2213_v56 = vrot.slane %v189_v45, 5 }
 0x3ad   : > { %v1885_v30 = vadd.f32 %v1884_v26, %v1795_v40  ;;  %v190_v26 = vld [vmem:[%s8751_s6 + $0xe8] sm:$0xff] }
 0x3ae   : > { %v10382_v37 = vadd.f32 %v2061_v31, %v9852_v24  ;;  %v188_v31 = vld [vmem:[%s8751_s6 + $0xd8] sm:$0xff]  ;;  %v2215_v33 = vrot.slane %v2213_v56, 4  ;;  %v2216_v45 = vrot.slane %v190_v26, 5 }
 0x3af   : > { %v10385_v10 = vadd.f32 %v1885_v30, %v9854_v1  ;;  %v7145_v50 = vrot.slane %v188_v31, 9  ;;  %v8121_v30 = vld [vmem:[%s13016_s1 + $0x424] sm:$0xf] }
 0x3b0   : > { %13249 = vst [vmem:[#allocation53_spill] sm:$0xff] %v10382_v37 }
 0x3b2   : > { %v1973_v36 = vpop.f32.mrf.mxu2 }
 0x3b3   : > { %v2062_v59 = vpop.f32.mrf.mxu3  ;;  %v2589_v52 = vpop.f32.mrf.mxu0 }
 0x3b4   : > { %v2063_v40 = vadd.f32 %v2062_v59, %v1973_v36  ;;  %v2678_v24 = vpop.f32.mrf.mxu1  ;;  %v2214_v59 = vsel %vm10077_vm2, %v7145_v50, %v2213_v56  ;;  %v7300_v56 = vld [vmem:[%s13016_s1 + $0x420] sm:$0xf]  ;;  %v8122_v50 = vld [vmem:[%s13016_s1 + $0x424] sm:$0xf0] }
 0x3b5   : > { %v2679_v37 = vadd.f32 %v2678_v24, %v2589_v52  ;;  %v2217_v52 = vsel %vm10077_vm2, %v2215_v33, %v2216_v45  ;;  %v192_v33 = vld [vmem:[%s8751_s6 + $0xf8] sm:$0xff]  ;;  %v7301_v45 = vor.u32 %v8122_v50, %v7300_v56 }
 0x3b6   : > { %v10395_v44 = vadd.f32 %v2063_v40, %v9857_v27  ;;  %2628 = vmatmul.bf16.gmra.mxu0 %v10388_v42  ;;  %v7302_v27 = vld [vmem:[%s13016_s1 + $0x428] sm:$0xf0] }
 0x3b7   : > { %v10399_v1 = vadd.f32 %v2679_v37, %v9861_v53  ;;  %2717 = vmatmul.bf16.gmra.mxu1 %v10390_v20  ;;  %2806 = vmatmul.bf16.gmra.mxu2 %v10388_v42  ;;  %v8137_v53 = vld [vmem:[%s13016_s1 + $0x4a4] sm:$0xf]  ;;  %v7305_v37 = vor.u32 %v8121_v30, %v7302_v27  ;;  %v2328_v30 = vunpack.c.l.b16 %v2214_v59  ;;  %v2330_v27 = vunpack.c.l.b16 %v2217_v52 }
 0x3b8   : > { %2895 = vmatmul.bf16.gmra.mxu3 %v10390_v20  ;;  %v7369_v28 = vor.u32 %v8137_v53, %v7366_v29  ;;  %v2329_v29 = vunpack.c.h.b16 %v2214_v59  ;;  %3229 = vmatpush.bf16.msra.mxu0 %v7301_v45 }
 0x3b9   : > { %13250 = vst [vmem:[#allocation16_spill] sm:$0xff] %v10399_v1  ;;  %3407 = vmatpush.bf16.msra.mxu2 %v7305_v37  ;;  %v2331_v1 = vunpack.c.h.b16 %v2217_v52  ;;  %v2220_v52 = vrot.slane %v192_v33, 5 }
 0x3ba   : > { %v2767_v18 = vpop.f32.mrf.mxu2  ;;  %3496 = vmatpush.bf16.msra.mxu3 %v7369_v28  ;;  %v10439_v28 = vpack.c.b16 %v2330_v27, %v2328_v30 }
 0x3bb   : > { %v2856_v6 = vpop.f32.mrf.mxu3  ;;  %v2591_v36 = vpop.f32.mrf.mxu0  ;;  %v10441_v59 = vpack.c.b16 %v2331_v1, %v2329_v29  ;;  %v2222_v27 = vrot.slane %v2220_v52, 4 }
 0x3bc   : > { %v2857_v40 = vadd.f32 %v2856_v6, %v2767_v18  ;;  %v2680_v24 = vpop.f32.mrf.mxu1 }
 0x3bd   : > { %v2681_v31 = vadd.f32 %v2680_v24, %v2591_v36 }
 0x3be   : > { %v10421_v26 = vadd.f32 %v2857_v40, %v9879_v9  ;;  %v7364_v9 = vld [vmem:[%s13016_s1 + $0x4a0] sm:$0xf] }
 0x3bf   : > { %v10424_v53 = vadd.f32 %v2681_v31, %v9882_v60  ;;  %v8138_v60 = vld [vmem:[%s13016_s1 + $0x4a4] sm:$0xf0]  ;;  %v191_v31 = vld [vmem:[%s8751_s6 + $0xf0] sm:$0xff] }
 0x3c0   : > { %v7365_v37 = vor.u32 %v8138_v60, %v7364_v9  ;;  %v7146_v1 = vrot.slane %v191_v31, 9 }
 0x3c1   : > { %13251 = vst [vmem:[#allocation54_spill] sm:$0xff] %v10424_v53  ;;  %v193_v53 = vld [vmem:[%s8751_s6 + $0x100] sm:$0xff] }
 0x3c2   : > { %v2769_v18 = vpop.f32.mrf.mxu2  ;;  %3318 = vmatpush.bf16.msra.mxu1 %v7365_v37  ;;  %v2223_v29 = vrot.slane %v193_v53, 5 }
 0x3c3   : > { %v2858_v6 = vpop.f32.mrf.mxu3  ;;  %v2594_v36 = vpop.f32.mrf.mxu0 }
 0x3c4   : > { %v2859_v40 = vadd.f32 %v2858_v6, %v2769_v18  ;;  %v2683_v24 = vpop.f32.mrf.mxu1 }
 0x3c5   : > { %v2684_v56 = vadd.f32 %v2683_v24, %v2594_v36 }
 0x3c6   : > { %v10446_v50 = vadd.f32 %v2859_v40, %v9897_v62  ;;  %2633 = vmatmul.bf16.gmra.mxu0 %v10439_v28  ;;  %v2221_v62 = vsel %vm10077_vm2, %v7146_v1, %v2220_v52 }
 0x3c7   : > { %v10450_v30 = vadd.f32 %v2684_v56, %v9901_v58  ;;  %2722 = vmatmul.bf16.gmra.mxu1 %v10441_v59  ;;  %2811 = vmatmul.bf16.gmra.mxu2 %v10439_v28  ;;  %v2224_v58 = vsel %vm10077_vm2, %v2222_v27, %v2223_v29  ;;  %v2332_v53 = vunpack.c.l.b16 %v2221_v62  ;;  %v2333_v24 = vunpack.c.h.b16 %v2221_v62  ;;  %v195_v56 = vld [vmem:[%s8751_s6 + $0x110] sm:$0xff] }
 0x3c8   : > { %2900 = vmatmul.bf16.gmra.mxu3 %v10441_v59  ;;  %v2334_v36 = vunpack.c.l.b16 %v2224_v58  ;;  %v2335_v31 = vunpack.c.h.b16 %v2224_v58 }
 0x3c9   : > { %13252 = vst [vmem:[#allocation17_spill] sm:$0xff] %v10450_v30 }
 0x3ca   : > { %v2772_v9 = vpop.f32.mrf.mxu2  ;;  %v10466_v1 = vpack.c.b16 %v2334_v36, %v2332_v53  ;;  %v8119_v53 = vld [vmem:[%s13016_s1 + $0x414] sm:$0xf]  ;;  %v7358_v36 = vld [vmem:[%s13016_s1 + $0x498] sm:$0xf0] }
 0x3cb   : > { %v2861_v33 = vpop.f32.mrf.mxu3  ;;  %v2596_v45 = vpop.f32.mrf.mxu0 }
 0x3cc   : > { %v2862_v60 = vadd.f32 %v2861_v33, %v2772_v9  ;;  %v2685_v37 = vpop.f32.mrf.mxu1  ;;  %v10468_v9 = vpack.c.b16 %v2335_v31, %v2333_v24  ;;  %v2227_v33 = vrot.slane %v195_v56, 5 }
 0x3cd   : > { %v2686_v18 = vadd.f32 %v2685_v37, %v2596_v45  ;;  %v196_v37 = vld [vmem:[%s8751_s6 + $0x118] sm:$0xff] }
 0x3ce   : > { %v10460_v6 = vadd.f32 %v2862_v60, %v9907_v48  ;;  %v194_v60 = vld [vmem:[%s8751_s6 + $0x108] sm:$0xff]  ;;  %v2229_v58 = vrot.slane %v2227_v33, 4 }
 0x3cf   : > { %v10463_v40 = vadd.f32 %v2686_v18, %v9910_v16  ;;  %v7147_v62 = vrot.slane %v194_v60, 9  ;;  %v2230_v18 = vrot.slane %v196_v37, 5 }
 0x3d0   : > { %13253 = vst [vmem:[#allocation9_spill] sm:$0xff] %v10460_v6 }
 0x3d2   : > { %v2774_v52 = vpop.f32.mrf.mxu2 }
 0x3d3   : > { %v2863_v27 = vpop.f32.mrf.mxu3  ;;  %v2599_v29 = vpop.f32.mrf.mxu0 }
 0x3d4   : > { %v2864_v45 = vadd.f32 %v2863_v27, %v2774_v52  ;;  %v2688_v48 = vpop.f32.mrf.mxu1  ;;  %v2228_v27 = vsel %vm10077_vm2, %v7147_v62, %v2227_v33  ;;  %v7292_v33 = vld [vmem:[%s13016_s1 + $0x410] sm:$0xf]  ;;  %v8120_v62 = vld [vmem:[%s13016_s1 + $0x414] sm:$0xf0] }
 0x3d5   : > { %v2689_v6 = vadd.f32 %v2688_v48, %v2599_v29  ;;  %v2231_v29 = vsel %vm10077_vm2, %v2229_v58, %v2230_v18  ;;  %v198_v58 = vld [vmem:[%s8751_s6 + $0x128] sm:$0xff]  ;;  %v7293_v18 = vor.u32 %v8120_v62, %v7292_v33 }
 0x3d6   : > { %v10473_v30 = vadd.f32 %v2864_v45, %v9913_v14  ;;  %2638 = vmatmul.bf16.gmra.mxu0 %v10466_v1  ;;  %v7294_v14 = vld [vmem:[%s13016_s1 + $0x418] sm:$0xf0] }
 0x3d7   : > { %v10477_v16 = vadd.f32 %v2689_v6, %v9917_v25  ;;  %2727 = vmatmul.bf16.gmra.mxu1 %v10468_v9  ;;  %2816 = vmatmul.bf16.gmra.mxu2 %v10466_v1  ;;  %v8135_v25 = vld [vmem:[%s13016_s1 + $0x494] sm:$0xf]  ;;  %v7297_v6 = vor.u32 %v8119_v53, %v7294_v14  ;;  %v2336_v53 = vunpack.c.l.b16 %v2228_v27  ;;  %v2338_v14 = vunpack.c.l.b16 %v2231_v29 }
 0x3d8   : > { %13254 = vst [vmem:[#allocation55_spill] sm:$0xff] %v10473_v30  ;;  %2905 = vmatmul.bf16.gmra.mxu3 %v10468_v9  ;;  %v7361_v31 = vor.u32 %v8135_v25, %v7358_v36  ;;  %v2337_v36 = vunpack.c.h.b16 %v2228_v27  ;;  %3230 = vmatpush.bf16.msra.mxu0 %v7293_v18 }
 0x3d9   : > { %13255 = vst [vmem:[#allocation12_spill] sm:$0xff] %v10477_v16  ;;  %3408 = vmatpush.bf16.msra.mxu2 %v7297_v6  ;;  %v2339_v16 = vunpack.c.h.b16 %v2231_v29  ;;  %v2234_v29 = vrot.slane %v198_v58, 5 }
 0x3da   : > { %v2777_v24 = vpop.f32.mrf.mxu2  ;;  %3497 = vmatpush.bf16.msra.mxu3 %v7361_v31  ;;  %v10517_v31 = vpack.c.b16 %v2338_v14, %v2336_v53 }
 0x3db   : > { %v2866_v56 = vpop.f32.mrf.mxu3  ;;  %v2601_v52 = vpop.f32.mrf.mxu0  ;;  %v10519_v27 = vpack.c.b16 %v2339_v16, %v2337_v36  ;;  %v2236_v14 = vrot.slane %v2234_v29, 4 }
 0x3dc   : > { %v2867_v45 = vadd.f32 %v2866_v56, %v2777_v24  ;;  %v2690_v48 = vpop.f32.mrf.mxu1 }
 0x3dd   : > { %v2691_v60 = vadd.f32 %v2690_v48, %v2601_v52 }
 0x3de   : > { %v10499_v37 = vadd.f32 %v2867_v45, %v9935_v23  ;;  %v7356_v23 = vld [vmem:[%s13016_s1 + $0x490] sm:$0xf] }
 0x3df   : > { %v10502_v25 = vadd.f32 %v2691_v60, %v9938_v51  ;;  %v8136_v51 = vld [vmem:[%s13016_s1 + $0x494] sm:$0xf0]  ;;  %v197_v60 = vld [vmem:[%s8751_s6 + $0x120] sm:$0xff] }
 0x3e0   : > { %13256 = vst [vmem:[#allocation13_spill] sm:$0xff] %v10499_v37  ;;  %v7357_v6 = vor.u32 %v8136_v51, %v7356_v23  ;;  %v7148_v16 = vrot.slane %v197_v60, 9  ;;  %v13266_v37 = vld [vmem:[#allocation24_spill] sm:$0xff] }
 0x3e1   : > { %13257 = vst [vmem:[#allocation5_spill] sm:$0xff] %v10502_v25  ;;  %v199_v25 = vld [vmem:[%s8751_s6 + $0x130] sm:$0xff] }
 0x3e2   : > { %v2779_v24 = vpop.f32.mrf.mxu2  ;;  %3319 = vmatpush.bf16.msra.mxu1 %v7357_v6  ;;  %v2237_v36 = vrot.slane %v199_v25, 5 }
 0x3e3   : > { %v2868_v56 = vpop.f32.mrf.mxu3  ;;  %v2604_v52 = vpop.f32.mrf.mxu0 }
 0x3e4   : > { %v2869_v45 = vadd.f32 %v2868_v56, %v2779_v24  ;;  %v2693_v48 = vpop.f32.mrf.mxu1  ;;  %v13260_v56 = vld [vmem:[#allocation22_spill] sm:$0xff] }
 0x3e5   : > { %v2694_v33 = vadd.f32 %v2693_v48, %v2604_v52  ;;  %v13262_v48 = vld [vmem:[#allocation23_spill] sm:$0xff] }
 0x3e6   : > { %v10524_v62 = vadd.f32 %v2869_v45, %v9953_v0  ;;  %2643 = vmatmul.bf16.gmra.mxu0 %v10517_v31  ;;  %v2235_v0 = vsel %vm10077_vm2, %v7148_v16, %v2234_v29 }
 0x3e7   : > { %v10528_v53 = vadd.f32 %v2694_v33, %v9957_v39  ;;  %2732 = vmatmul.bf16.gmra.mxu1 %v10519_v27  ;;  %2821 = vmatmul.bf16.gmra.mxu2 %v10517_v31  ;;  %v2238_v39 = vsel %vm10077_vm2, %v2236_v14, %v2237_v36  ;;  %v2340_v25 = vunpack.c.l.b16 %v2235_v0  ;;  %v2341_v33 = vunpack.c.h.b16 %v2235_v0  ;;  %v13268_v0 = vld [vmem:[#allocation25_spill] sm:$0xff] }
 0x3e8   : > { %13258 = vst [vmem:[#allocation6_spill] sm:$0xff] %v10524_v62  ;;  %2910 = vmatmul.bf16.gmra.mxu3 %v10519_v27  ;;  %v2342_v45 = vunpack.c.l.b16 %v2238_v39  ;;  %v201_v62 = vld [vmem:[%s8751_s6 + $0x140] sm:$0xff] }
 0x3e9   : > { %13259 = vst [vmem:[#allocation14_spill] sm:$0xff] %v10528_v53  ;;  %v2343_v53 = vunpack.c.h.b16 %v2238_v39 }
 0x3ea   : > { %v2782_v23 = vpop.f32.mrf.mxu2  ;;  %v10544_v16 = vpack.c.b16 %v2342_v45, %v2340_v25  ;;  %v8117_v25 = vld [vmem:[%s13016_s1 + $0x404] sm:$0xf] }
 0x3eb   : > { %v2871_v58 = vpop.f32.mrf.mxu3  ;;  %v2606_v18 = vpop.f32.mrf.mxu0 }
 0x3ec   : > { %v2872_v51 = vadd.f32 %v2871_v58, %v2782_v23  ;;  %v2695_v6 = vpop.f32.mrf.mxu1  ;;  %13264 = vst [vmem:[#allocation19_spill] sm:$0xff] %v10544_v16  ;;  %v10546_v23 = vpack.c.b16 %v2343_v53, %v2341_v33  ;;  %v2241_v58 = vrot.slane %v201_v62, 5 }
 0x3ed   : > { %v2696_v24 = vadd.f32 %v2695_v6, %v2606_v18  ;;  %v200_v6 = vld [vmem:[%s8751_s6 + $0x138] sm:$0xff] }
 0x3ee   : > { %v10538_v52 = vadd.f32 %v2872_v51, %v13260_v56  ;;  %13265 = vst [vmem:[#allocation7_spill] sm:$0xff] %v10546_v23  ;;  %v202_v56 = vld [vmem:[%s8751_s6 + $0x148] sm:$0xff]  ;;  %v7149_v53 = vrot.slane %v200_v6, 9 }
 0x3ef   : > { %v10541_v60 = vadd.f32 %v2696_v24, %v13262_v48  ;;  %v2243_v24 = vrot.slane %v2241_v58, 4  ;;  %v2244_v62 = vrot.slane %v202_v56, 5  ;;  %v7350_v48 = vld [vmem:[%s13016_s1 + $0x488] sm:$0xf0] }
 0x3f0   : > { %13261 = vst [vmem:[#allocation15_spill] sm:$0xff] %v10538_v52 }
 0x3f1   : > { %13263 = vst [vmem:[#allocation18_spill] sm:$0xff] %v10541_v60 }
 0x3f2   : > { %v2784_v29 = vpop.f32.mrf.mxu2 }
 0x3f3   : > { %v2873_v14 = vpop.f32.mrf.mxu3  ;;  %v2609_v36 = vpop.f32.mrf.mxu0 }
 0x3f4   : > { %v2874_v18 = vadd.f32 %v2873_v14, %v2784_v29  ;;  %v2698_v51 = vpop.f32.mrf.mxu1 }
 0x3f5   : > { %v2699_v52 = vadd.f32 %v2698_v51, %v2609_v36  ;;  %v2245_v51 = vsel %vm10077_vm2, %v2243_v24, %v2244_v62  ;;  %v7348_v24 = vld [vmem:[%s13016_s1 + $0x480] sm:$0xf]  ;;  %v204_v62 = vld [vmem:[%s8751_s6 + $0x158] sm:$0xff] }
 0x3f6   : > { %v10551_v30 = vadd.f32 %v2874_v18, %v13266_v37  ;;  %2648 = vmatmul.bf16.gmra.mxu0 %v10544_v16  ;;  %v7286_v37 = vld [vmem:[%s13016_s1 + $0x408] sm:$0xf0]  ;;  %v2242_v18 = vsel %vm10077_vm2, %v7149_v53, %v2241_v58  ;;  %v7284_v58 = vld [vmem:[%s13016_s1 + $0x400] sm:$0xf]  ;;  %v8118_v53 = vld [vmem:[%s13016_s1 + $0x404] sm:$0xf0] }
 0x3f7   : > { %v10555_v39 = vadd.f32 %v2699_v52, %v13268_v0  ;;  %2737 = vmatmul.bf16.gmra.mxu1 %v10546_v23  ;;  %2826 = vmatmul.bf16.gmra.mxu2 %v10544_v16  ;;  %v8133_v52 = vld [vmem:[%s13016_s1 + $0x484] sm:$0xf]  ;;  %v7289_v45 = vor.u32 %v8117_v25, %v7286_v37  ;;  %v13270_v25 = vld [vmem:[#allocation26_spill] sm:$0xff]  ;;  %v2345_v60 = vunpack.c.h.b16 %v2242_v18 }
 0x3f8   : > { %13267 = vst [vmem:[#allocation8_spill] sm:$0xff] %v10551_v30  ;;  %2915 = vmatmul.bf16.gmra.mxu3 %v10546_v23  ;;  %v7353_v29 = vor.u32 %v8133_v52, %v7350_v48  ;;  %v2346_v30 = vunpack.c.l.b16 %v2245_v51  ;;  %v13272_v52 = vld [vmem:[#allocation27_spill] sm:$0xff]  ;;  %v2347_v23 = vunpack.c.h.b16 %v2245_v51 }
 0x3f9   : > { %13269 = vst [vmem:[#allocation20_spill] sm:$0xff] %v10555_v39  ;;  %3409 = vmatpush.bf16.msra.mxu2 %v7289_v45  ;;  %v2344_v39 = vunpack.c.l.b16 %v2242_v18  ;;  %v7285_v45 = vor.u32 %v8118_v53, %v7284_v58  ;;  %v13276_v53 = vld [vmem:[#allocation28_spill] sm:$0xff] }
 0x3fa   : > { %v2787_v33 = vpop.f32.mrf.mxu2  ;;  %3498 = vmatpush.bf16.msra.mxu3 %v7353_v29 }
 0x3fb   : > { %v2876_v14 = vpop.f32.mrf.mxu3  ;;  %v2611_v36 = vpop.f32.mrf.mxu0  ;;  %3231 = vmatpush.bf16.msra.mxu0 %v7285_v45 }
 0x3fc   : > { %v2877_v6 = vadd.f32 %v2876_v14, %v2787_v33  ;;  %v2700_v56 = vpop.f32.mrf.mxu1  ;;  %v8134_v33 = vld [vmem:[%s13016_s1 + $0x484] sm:$0xf0] }
 0x3fd   : > { %v2701_v0 = vadd.f32 %v2700_v56, %v2611_v36  ;;  %v7349_v29 = vor.u32 %v8134_v33, %v7348_v24  ;;  %v10595_v36 = vpack.c.b16 %v2346_v30, %v2344_v39  ;;  %v2248_v56 = vrot.slane %v204_v62, 5  ;;  %v13278_v24 = vld [vmem:[#allocation29_spill] sm:$0xff] }
 0x3fe   : > { %v10577_v37 = vadd.f32 %v2877_v6, %v13270_v25  ;;  %v10597_v6 = vpack.c.b16 %v2347_v23, %v2345_v60 }
 0x3ff   : > { %v10580_v48 = vadd.f32 %v2701_v0, %v13272_v52  ;;  %13274 = vst [vmem:[#allocation23_spill] sm:$0xff] %v10595_v36  ;;  %3320 = vmatpush.bf16.msra.mxu1 %v7349_v29  ;;  %v203_v52 = vld [vmem:[%s8751_s6 + $0x150] sm:$0xff]  ;;  %v2250_v23 = vrot.slane %v2248_v56, 4 }
 0x400   : > { %13271 = vst [vmem:[#allocation21_spill] sm:$0xff] %v10577_v37  ;;  %v7150_v60 = vrot.slane %v203_v52, 9 }
 0x401   : > { %13273 = vst [vmem:[#allocation22_spill] sm:$0xff] %v10580_v48  ;;  %v205_v48 = vld [vmem:[%s8751_s6 + $0x160] sm:$0xff] }
 0x402   : > { %v2789_v14 = vpop.f32.mrf.mxu2  ;;  %13275 = vst [vmem:[#allocation24_spill] sm:$0xff] %v10597_v6  ;;  %v2251_v39 = vrot.slane %v205_v48, 5  ;;  %v2249_v29 = vsel %vm10077_vm2, %v7150_v60, %v2248_v56 }
 0x403   : > { %v2878_v18 = vpop.f32.mrf.mxu3  ;;  %v2614_v51 = vpop.f32.mrf.mxu0  ;;  %v2348_v48 = vunpack.c.l.b16 %v2249_v29 }
 0x404   : > { %v2879_v0 = vadd.f32 %v2878_v18, %v2789_v14  ;;  %v2703_v25 = vpop.f32.mrf.mxu1  ;;  %v2252_v14 = vsel %vm10077_vm2, %v2250_v23, %v2251_v39 }
 0x405   : > { %v2704_v58 = vadd.f32 %v2703_v25, %v2614_v51  ;;  %v13280_v25 = vld [vmem:[#allocation30_spill] sm:$0xff] }
 0x406   : > { %v10602_v37 = vadd.f32 %v2879_v0, %v13276_v53  ;;  %2653 = vmatmul.bf16.gmra.mxu0 %v10595_v36  ;;  %v13282_v53 = vld [vmem:[#allocation31_spill] sm:$0xff] }
 0x407   : > { %v10606_v30 = vadd.f32 %v2704_v58, %v13278_v24  ;;  %2742 = vmatmul.bf16.gmra.mxu1 %v10597_v6  ;;  %2831 = vmatmul.bf16.gmra.mxu2 %v10595_v36  ;;  %v2350_v58 = vunpack.c.l.b16 %v2252_v14  ;;  %v13286_v36 = vld [vmem:[#allocation32_spill] sm:$0xff] }
 0x408   : > { %13277 = vst [vmem:[#allocation25_spill] sm:$0xff] %v10602_v37  ;;  %2920 = vmatmul.bf16.gmra.mxu3 %v10597_v6  ;;  %v2351_v37 = vunpack.c.h.b16 %v2252_v14  ;;  %v207_v6 = vld [vmem:[%s8751_s6 + $0x170] sm:$0xff] }
 0x409   : > { %13279 = vst [vmem:[#allocation26_spill] sm:$0xff] %v10606_v30  ;;  %v2349_v30 = vunpack.c.h.b16 %v2249_v29  ;;  %v10622_v60 = vpack.c.b16 %v2350_v58, %v2348_v48  ;;  %v13288_v29 = vld [vmem:[#allocation33_spill] sm:$0xff]  ;;  %v7536_v58 = vld [vmem:[%s13016_s1 + $0x7f8] sm:$0xf0] }
 0x40a   : > { %v2792_v62 = vpop.f32.mrf.mxu2 }
 0x40b   : > { %v2881_v45 = vpop.f32.mrf.mxu3  ;;  %v2616_v33 = vpop.f32.mrf.mxu0  ;;  %13284 = vst [vmem:[#allocation29_spill] sm:$0xff] %v10622_v60 }
 0x40c   : > { %v2882_v18 = vadd.f32 %v2881_v45, %v2792_v62  ;;  %v2705_v51 = vpop.f32.mrf.mxu1  ;;  %v10624_v62 = vpack.c.b16 %v2351_v37, %v2349_v30  ;;  %v2255_v45 = vrot.slane %v207_v6, 5 }
 0x40d   : > { %v2706_v0 = vadd.f32 %v2705_v51, %v2616_v33  ;;  %v206_v51 = vld [vmem:[%s8751_s6 + $0x168] sm:$0xff] }
 0x40e   : > { %v10616_v52 = vadd.f32 %v2882_v18, %v13280_v25  ;;  %13285 = vst [vmem:[#allocation30_spill] sm:$0xff] %v10624_v62  ;;  %v208_v25 = vld [vmem:[%s8751_s6 + $0x178] sm:$0xff]  ;;  %v7151_v37 = vrot.slane %v206_v51, 9  ;;  %v2257_v30 = vrot.slane %v2255_v45, 4 }
 0x40f   : > { %v10619_v24 = vadd.f32 %v2706_v0, %v13282_v53  ;;  %v2258_v6 = vrot.slane %v208_v25, 5  ;;  %v8163_v0 = vld [vmem:[%s13016_s1 + $0x774] sm:$0xf] }
 0x410   : > { %13281 = vst [vmem:[#allocation27_spill] sm:$0xff] %v10616_v52 }
 0x411   : > { %13283 = vst [vmem:[#allocation28_spill] sm:$0xff] %v10619_v24  ;;  %v13291_v24 = vld [vmem:[#allocation35_spill] sm:$0xff] }
 0x412   : > { %v2794_v56 = vpop.f32.mrf.mxu2 }
 0x413   : > { %v2883_v23 = vpop.f32.mrf.mxu3  ;;  %v2619_v39 = vpop.f32.mrf.mxu0 }
 0x414   : > { %v2884_v33 = vadd.f32 %v2883_v23, %v2794_v56  ;;  %v2708_v18 = vpop.f32.mrf.mxu1 }
 0x415   : > { %v2709_v52 = vadd.f32 %v2708_v18, %v2619_v39  ;;  %v2259_v18 = vsel %vm10077_vm2, %v2257_v30, %v2258_v6  ;;  %v7534_v30 = vld [vmem:[%s13016_s1 + $0x7f0] sm:$0xf] }
 0x416   : > { %v10629_v16 = vadd.f32 %v2884_v33, %v13286_v36  ;;  %2658 = vmatmul.bf16.gmra.mxu0 %v10622_v60  ;;  %v7472_v36 = vld [vmem:[%s13016_s1 + $0x778] sm:$0xf0]  ;;  %v2256_v33 = vsel %vm10077_vm2, %v7151_v37, %v2255_v45  ;;  %v7470_v45 = vld [vmem:[%s13016_s1 + $0x770] sm:$0xf]  ;;  %v8164_v37 = vld [vmem:[%s13016_s1 + $0x774] sm:$0xf0] }
 0x417   : > { %v10633_v14 = vadd.f32 %v2709_v52, %v13288_v29  ;;  %2747 = vmatmul.bf16.gmra.mxu1 %v10624_v62  ;;  %2836 = vmatmul.bf16.gmra.mxu2 %v10622_v60  ;;  %v8179_v52 = vld [vmem:[%s13016_s1 + $0x7f4] sm:$0xf]  ;;  %v7475_v48 = vor.u32 %v8163_v0, %v7472_v36  ;;  %v13290_v0 = vld [vmem:[#allocation34_spill] sm:$0xff]  ;;  %v7471_v6 = vor.u32 %v8164_v37, %v7470_v45 }
 0x418   : > { %13287 = vst [vmem:[#allocation31_spill] sm:$0xff] %v10629_v16  ;;  %2925 = vmatmul.bf16.gmra.mxu3 %v10624_v62  ;;  %v7539_v56 = vor.u32 %v8179_v52, %v7536_v58  ;;  %v2354_v16 = vunpack.c.l.b16 %v2259_v18  ;;  %v2353_v58 = vunpack.c.h.b16 %v2256_v33  ;;  %v2355_v62 = vunpack.c.h.b16 %v2259_v18 }
 0x419   : > { %13289 = vst [vmem:[#allocation32_spill] sm:$0xff] %v10633_v14  ;;  %4046 = vmatpush.bf16.msrb.mxu2 %v7475_v48  ;;  %v2352_v14 = vunpack.c.l.b16 %v2256_v33  ;;  %3868 = vmatpush.bf16.msrb.mxu0 %v7471_v6  ;;  %v13295_v6 = vld [vmem:[#allocation37_spill] sm:$0xff] }
 0x41a   : > { %v2797_v53 = vpop.f32.mrf.mxu2  ;;  %4135 = vmatpush.bf16.msrb.mxu3 %v7539_v56  ;;  %v10674_v33 = vpack.c.b16 %v2355_v62, %v2353_v58 }
 0x41b   : > { %v2886_v23 = vpop.f32.mrf.mxu3  ;;  %v2621_v39 = vpop.f32.mrf.mxu0  ;;  %v10672_v56 = vpack.c.b16 %v2354_v16, %v2352_v14 }
 0x41c   : > { %v2887_v51 = vadd.f32 %v2886_v23, %v2797_v53  ;;  %v2710_v25 = vpop.f32.mrf.mxu1  ;;  %13293 = vst [vmem:[#allocation34_spill] sm:$0xff] %v10674_v33 }
 0x41d   : > { %v2711_v29 = vadd.f32 %v2710_v25, %v2621_v39  ;;  %13292 = vst [vmem:[#allocation33_spill] sm:$0xff] %v10672_v56 }
 0x41e   : > { %v10655_v36 = vadd.f32 %v2887_v51, %v13290_v0  ;;  %v13294_v0 = vld [vmem:[#allocation36_spill] sm:$0xff] }
 0x41f   : > { %v10658_v52 = vadd.f32 %v2711_v29, %v13291_v24  ;;  %v8180_v24 = vld [vmem:[%s13016_s1 + $0x7f4] sm:$0xf0] }
 0x420   : > { %v7535_v48 = vor.u32 %v8180_v24, %v7534_v30 }
 0x422   : > { %v2799_v53 = vpop.f32.mrf.mxu2  ;;  %3957 = vmatpush.bf16.msrb.mxu1 %v7535_v48 }
 0x423   : > { %v2888_v23 = vpop.f32.mrf.mxu3  ;;  %v2624_v39 = vpop.f32.mrf.mxu0 }
 0x424   : > { %v2889_v18 = vadd.f32 %v2888_v23, %v2799_v53  ;;  %v2713_v51 = vpop.f32.mrf.mxu1 }
 0x425   : > { %v2714_v25 = vadd.f32 %v2713_v51, %v2624_v39 }
 0x426   : > { %v10677_v29 = vadd.f32 %v2889_v18, %v10072_v11  ;;  %2663 = vmatmul.bf16.gmra.mxu0 %v10672_v56 }
 0x427   : > { %v10681_v45 = vadd.f32 %v2714_v25, %v13294_v0  ;;  %2752 = vmatmul.bf16.gmra.mxu1 %v10674_v33  ;;  %2841 = vmatmul.bf16.gmra.mxu2 %v10672_v56 }
 0x428   : > { %2930 = vmatmul.bf16.gmra.mxu3 %v10674_v33 }
 0x42a   : > { %v2802_v16 = vpop.f32.mrf.mxu2 }
 0x42b   : > { %v2891_v62 = vpop.f32.mrf.mxu3  ;;  %v2626_v14 = vpop.f32.mrf.mxu0 }
 0x42c   : > { %v2892_v58 = vadd.f32 %v2891_v62, %v2802_v16  ;;  %v2715_v37 = vpop.f32.mrf.mxu1  ;;  %v8177_v16 = vld [vmem:[%s13016_s1 + $0x7e4] sm:$0xf]  ;;  %v7528_v62 = vld [vmem:[%s13016_s1 + $0x7e8] sm:$0xf0] }
 0x42d   : > { %v2716_v30 = vadd.f32 %v2715_v37, %v2626_v14  ;;  %v7531_v14 = vor.u32 %v8177_v16, %v7528_v62 }
 0x42e   : > { %v10687_v11 = vadd.f32 %v2892_v58, %v13295_v6 }
 0x42f   : > { %v10690_v24 = vadd.f32 %v2716_v30, %v10089_v3  ;;  %v8161_v3 = vld [vmem:[%s13016_s1 + $0x764] sm:$0xf]  ;;  %4136 = vmatpush.bf16.msrb.mxu3 %v7531_v14 }
 0x432   : > { %v2804_v48 = vpop.f32.mrf.mxu2 }
 0x433   : > { %v2893_v53 = vpop.f32.mrf.mxu3  ;;  %v2629_v23 = vpop.f32.mrf.mxu0 }
 0x434   : > { %v2894_v39 = vadd.f32 %v2893_v53, %v2804_v48  ;;  %v2718_v18 = vpop.f32.mrf.mxu1  ;;  %v13296_v53 = vld [vmem:[#allocation38_spill] sm:$0xff] }
 0x435   : > { %v2719_v51 = vadd.f32 %v2718_v18, %v2629_v23  ;;  %v8162_v18 = vld [vmem:[%s13016_s1 + $0x764] sm:$0xf0] }
 0x436   : > { %v10693_v25 = vadd.f32 %v2894_v39, %v10095_v46  ;;  %3232 = vmatmul.bf16.vlgmr.msra.gmra.mxu0 %v10154_v17  ;;  %v7464_v46 = vld [vmem:[%s13016_s1 + $0x768] sm:$0xf0]  ;;  %v7462_v39 = vld [vmem:[%s13016_s1 + $0x760] sm:$0xf] }
 0x437   : > { %v10697_v0 = vadd.f32 %v2719_v51, %v10098_v15  ;;  %3321 = vmatmul.bf16.vlgmr.msra.gmra.mxu1 %v10156_v41  ;;  %3410 = vmatmul.bf16.vlgmr.msra.gmra.mxu2 %v10154_v17  ;;  %v7467_v15 = vor.u32 %v8161_v3, %v7464_v46  ;;  %v7526_v51 = vld [vmem:[%s13016_s1 + $0x7e0] sm:$0xf]  ;;  %v7463_v3 = vor.u32 %v8162_v18, %v7462_v39 }
 0x438   : > { %3499 = vmatmul.bf16.vlgmr.msra.gmra.mxu3 %v10156_v41 }
 0x439   : > { %4047 = vmatpush.bf16.msrb.mxu2 %v7467_v15  ;;  %3869 = vmatpush.bf16.msrb.mxu0 %v7463_v3 }
 0x43a   : > { %v2807_v17 = vpop.f32.mrf.mxu2 }
 0x43b   : > { %v2896_v41 = vpop.f32.mrf.mxu3  ;;  %v2631_v58 = vpop.f32.mrf.mxu0 }
 0x43c   : > { %v2897_v37 = vadd.f32 %v2896_v41, %v2807_v17  ;;  %v2720_v30 = vpop.f32.mrf.mxu1 }
 0x43d   : > { %v2721_v6 = vadd.f32 %v2720_v30, %v2631_v58 }
 0x43e   : > { %v10715_v48 = vadd.f32 %v2897_v37, %v10117_v22  ;;  %v8178_v22 = vld [vmem:[%s13016_s1 + $0x7e4] sm:$0xf0] }
 0x43f   : > { %v10718_v23 = vadd.f32 %v2721_v6, %v13296_v53  ;;  %v7527_v46 = vor.u32 %v8178_v22, %v7526_v51 }
 0x441   : > { %3958 = vmatpush.bf16.msrb.mxu1 %v7527_v46 }
 0x442   : > { %v2809_v16 = vpop.f32.mrf.mxu2 }
 0x443   : > { %v2898_v15 = vpop.f32.mrf.mxu3  ;;  %v2634_v62 = vpop.f32.mrf.mxu0 }
 0x444   : > { %v2899_v17 = vadd.f32 %v2898_v15, %v2809_v16  ;;  %v2723_v14 = vpop.f32.mrf.mxu1 }
 0x445   : > { %v2724_v41 = vadd.f32 %v2723_v14, %v2634_v62 }
 0x446   : > { %v10733_v58 = vadd.f32 %v2899_v17, %v10138_v63  ;;  %3237 = vmatmul.bf16.gmra.mxu0 %v10205_v8  ;;  %v7520_v17 = vld [vmem:[%s13016_s1 + $0x7d8] sm:$0xf0] }
 0x447   : > { %v10737_v37 = vadd.f32 %v2724_v41, %v10141_v13  ;;  %3326 = vmatmul.bf16.gmra.mxu1 %v10207_v7  ;;  %3415 = vmatmul.bf16.gmra.mxu2 %v10205_v8 }
 0x448   : > { %3504 = vmatmul.bf16.gmra.mxu3 %v10207_v7 }
 0x44a   : > { %v2812_v30 = vpop.f32.mrf.mxu2 }
 0x44b   : > { %v2901_v6 = vpop.f32.mrf.mxu3  ;;  %v2636_v53 = vpop.f32.mrf.mxu0 }
 0x44c   : > { %v2902_v39 = vadd.f32 %v2901_v6, %v2812_v30  ;;  %v2725_v18 = vpop.f32.mrf.mxu1 }
 0x44d   : > { %v2726_v51 = vadd.f32 %v2725_v18, %v2636_v53 }
 0x44e   : > { %v10743_v63 = vadd.f32 %v2902_v39, %v10148_v35  ;;  %v8159_v35 = vld [vmem:[%s13016_s1 + $0x754] sm:$0xf] }
 0x44f   : > { %v10746_v3 = vadd.f32 %v2726_v51, %v10151_v4  ;;  %v7456_v4 = vld [vmem:[%s13016_s1 + $0x758] sm:$0xf0] }
 0x452   : > { %v2814_v13 = vpop.f32.mrf.mxu2 }
 0x453   : > { %v2903_v22 = vpop.f32.mrf.mxu3  ;;  %v2639_v46 = vpop.f32.mrf.mxu0 }
 0x454   : > { %v2904_v16 = vadd.f32 %v2903_v22, %v2814_v13  ;;  %v2728_v15 = vpop.f32.mrf.mxu1  ;;  %v13297_v13 = vld [vmem:[#allocation39_spill] sm:$0xff] }
 0x455   : > { %v2729_v8 = vadd.f32 %v2728_v15, %v2639_v46  ;;  %v7454_v46 = vld [vmem:[%s13016_s1 + $0x750] sm:$0xf] }
 0x456   : > { %v10749_v7 = vadd.f32 %v2904_v16, %v10161_v19  ;;  %3242 = vmatmul.bf16.gmra.mxu0 %v10232_v54  ;;  %v8175_v19 = vld [vmem:[%s13016_s1 + $0x7d4] sm:$0xf]  ;;  %v8160_v16 = vld [vmem:[%s13016_s1 + $0x754] sm:$0xf0]  ;;  %v7518_v15 = vld [vmem:[%s13016_s1 + $0x7d0] sm:$0xf] }
 0x457   : > { %v10753_v62 = vadd.f32 %v2729_v8, %v10165_v34  ;;  %3331 = vmatmul.bf16.gmra.mxu1 %v10234_v57  ;;  %3420 = vmatmul.bf16.gmra.mxu2 %v10232_v54  ;;  %v7459_v34 = vor.u32 %v8159_v35, %v7456_v4  ;;  %v7523_v41 = vor.u32 %v8175_v19, %v7520_v17 }
 0x458   : > { %3509 = vmatmul.bf16.gmra.mxu3 %v10234_v57  ;;  %v7455_v8 = vor.u32 %v8160_v16, %v7454_v46 }
 0x459   : > { %4048 = vmatpush.bf16.msrb.mxu2 %v7459_v34  ;;  %4137 = vmatpush.bf16.msrb.mxu3 %v7523_v41 }
 0x45a   : > { %v2817_v14 = vpop.f32.mrf.mxu2  ;;  %3870 = vmatpush.bf16.msrb.mxu0 %v7455_v8  ;;  %v13299_v8 = vld [vmem:[#allocation41_spill] sm:$0xff] }
 0x45b   : > { %v2906_v30 = vpop.f32.mrf.mxu3  ;;  %v2641_v6 = vpop.f32.mrf.mxu0 }
 0x45c   : > { %v2907_v53 = vadd.f32 %v2906_v30, %v2817_v14  ;;  %v2730_v39 = vpop.f32.mrf.mxu1 }
 0x45d   : > { %v2731_v18 = vadd.f32 %v2730_v39, %v2641_v6  ;;  %v13298_v6 = vld [vmem:[#allocation40_spill] sm:$0xff] }
 0x45e   : > { %v10771_v51 = vadd.f32 %v2907_v53, %v10187_v49  ;;  %v8176_v49 = vld [vmem:[%s13016_s1 + $0x7d4] sm:$0xf0] }
 0x45f   : > { %v10774_v22 = vadd.f32 %v2731_v18, %v13297_v13  ;;  %v7519_v35 = vor.u32 %v8176_v49, %v7518_v15 }
 0x461   : > { %3959 = vmatpush.bf16.msrb.mxu1 %v7519_v35 }
 0x462   : > { %v2819_v4 = vpop.f32.mrf.mxu2 }
 0x463   : > { %v2908_v19 = vpop.f32.mrf.mxu3  ;;  %v2644_v34 = vpop.f32.mrf.mxu0 }
 0x464   : > { %v2909_v17 = vadd.f32 %v2908_v19, %v2819_v4  ;;  %v2733_v14 = vpop.f32.mrf.mxu1 }
 0x465   : > { %v2734_v41 = vadd.f32 %v2733_v14, %v2644_v34 }
 0x466   : > { %v10789_v30 = vadd.f32 %v2909_v17, %v10212_v2  ;;  %3247 = vmatmul.bf16.gmra.mxu0 %v10283_v5 }
 0x467   : > { %v10793_v53 = vadd.f32 %v2734_v41, %v13298_v6  ;;  %3336 = vmatmul.bf16.gmra.mxu1 %v10285_v55  ;;  %3425 = vmatmul.bf16.gmra.mxu2 %v10283_v5  ;;  %v13301_v41 = vld [vmem:[#allocation42_spill] sm:$0xff] }
 0x468   : > { %3514 = vmatmul.bf16.gmra.mxu3 %v10285_v55 }
 0x46a   : > { %v2822_v39 = vpop.f32.mrf.mxu2 }
 0x46b   : > { %v2911_v18 = vpop.f32.mrf.mxu3  ;;  %v2646_v13 = vpop.f32.mrf.mxu0 }
 0x46c   : > { %v2912_v46 = vadd.f32 %v2911_v18, %v2822_v39  ;;  %v2735_v16 = vpop.f32.mrf.mxu1  ;;  %v13303_v39 = vld [vmem:[#allocation43_spill] sm:$0xff] }
 0x46d   : > { %v2736_v15 = vadd.f32 %v2735_v16, %v2646_v13  ;;  %v7448_v13 = vld [vmem:[%s13016_s1 + $0x748] sm:$0xf0] }
 0x46e   : > { %v10799_v2 = vadd.f32 %v2912_v46, %v13299_v8  ;;  %v8173_v46 = vld [vmem:[%s13016_s1 + $0x7c4] sm:$0xf] }
 0x46f   : > { %v10802_v49 = vadd.f32 %v2736_v15, %v10229_v12  ;;  %v8157_v12 = vld [vmem:[%s13016_s1 + $0x744] sm:$0xf]  ;;  %v7512_v15 = vld [vmem:[%s13016_s1 + $0x7c8] sm:$0xf0] }
 0x470   : > { %v7451_v16 = vor.u32 %v8157_v12, %v7448_v13  ;;  %v7446_v12 = vld [vmem:[%s13016_s1 + $0x740] sm:$0xf]  ;;  %v8158_v13 = vld [vmem:[%s13016_s1 + $0x744] sm:$0xf0] }
 0x471   : > { %13300 = vst [vmem:[#allocation35_spill] sm:$0xff] %v10802_v49 }
 0x472   : > { %v2824_v35 = vpop.f32.mrf.mxu2  ;;  %4049 = vmatpush.bf16.msrb.mxu2 %v7451_v16  ;;  %v7447_v16 = vor.u32 %v8158_v13, %v7446_v12 }
 0x473   : > { %v2913_v4 = vpop.f32.mrf.mxu3  ;;  %v2649_v19 = vpop.f32.mrf.mxu0 }
 0x474   : > { %v2914_v34 = vadd.f32 %v2913_v4, %v2824_v35  ;;  %v2738_v17 = vpop.f32.mrf.mxu1  ;;  %v7515_v35 = vor.u32 %v8173_v46, %v7512_v15  ;;  %v7510_v46 = vld [vmem:[%s13016_s1 + $0x7c0] sm:$0xf]  ;;  %v8174_v15 = vld [vmem:[%s13016_s1 + $0x7c4] sm:$0xf0]  ;;  %3871 = vmatpush.bf16.msrb.mxu0 %v7447_v16 }
 0x475   : > { %v2739_v14 = vadd.f32 %v2738_v17, %v2649_v19 }
 0x476   : > { %v10805_v6 = vadd.f32 %v2914_v34, %v13301_v41  ;;  %3252 = vmatmul.bf16.gmra.mxu0 %v10310_v43  ;;  %4138 = vmatpush.bf16.msrb.mxu3 %v7515_v35  ;;  %v13305_v41 = vld [vmem:[#allocation44_spill] sm:$0xff] }
 0x477   : > { %v10809_v18 = vadd.f32 %v2739_v14, %v13303_v39  ;;  %3341 = vmatmul.bf16.gmra.mxu1 %v10312_v61  ;;  %3430 = vmatmul.bf16.gmra.mxu2 %v10310_v43 }
 0x478   : > { %13302 = vst [vmem:[#allocation36_spill] sm:$0xff] %v10805_v6  ;;  %3519 = vmatmul.bf16.gmra.mxu3 %v10312_v61 }
 0x479   : > { %13304 = vst [vmem:[#allocation37_spill] sm:$0xff] %v10809_v18  ;;  %v13307_v18 = vld [vmem:[#allocation45_spill] sm:$0xff] }
 0x47a   : > { %v2827_v8 = vpop.f32.mrf.mxu2 }
 0x47b   : > { %v2916_v4 = vpop.f32.mrf.mxu3  ;;  %v2651_v19 = vpop.f32.mrf.mxu0 }
 0x47c   : > { %v2917_v34 = vadd.f32 %v2916_v4, %v2827_v8  ;;  %v2740_v17 = vpop.f32.mrf.mxu1  ;;  %v7511_v8 = vor.u32 %v8174_v15, %v7510_v46 }
 0x47d   : > { %v2741_v14 = vadd.f32 %v2740_v17, %v2651_v19 }
 0x47e   : > { %v10827_v39 = vadd.f32 %v2917_v34, %v13305_v41  ;;  %3960 = vmatpush.bf16.msrb.mxu1 %v7511_v8 }
 0x47f   : > { %v10830_v6 = vadd.f32 %v2741_v14, %v13307_v18  ;;  %v13309_v14 = vld [vmem:[#allocation46_spill] sm:$0xff] }
 0x480   : > { %13306 = vst [vmem:[#allocation38_spill] sm:$0xff] %v10827_v39  ;;  %v13314_v39 = vld [vmem:[#allocation49_spill] sm:$0xff] }
 0x481   : > { %13308 = vst [vmem:[#allocation39_spill] sm:$0xff] %v10830_v6  ;;  %v13311_v6 = vld [vmem:[#allocation47_spill] sm:$0xff] }
 0x482   : > { %v2829_v18 = vpop.f32.mrf.mxu2 }
 0x483   : > { %v2918_v35 = vpop.f32.mrf.mxu3  ;;  %v2654_v4 = vpop.f32.mrf.mxu0 }
 0x484   : > { %v2919_v19 = vadd.f32 %v2918_v35, %v2829_v18  ;;  %v2743_v34 = vpop.f32.mrf.mxu1  ;;  %v13313_v35 = vld [vmem:[#allocation48_spill] sm:$0xff] }
 0x485   : > { %v2744_v17 = vadd.f32 %v2743_v34, %v2654_v4 }
 0x486   : > { %v10845_v41 = vadd.f32 %v2919_v19, %v13309_v14  ;;  %3257 = vmatmul.bf16.gmra.mxu0 %v10361_v21 }
 0x487   : > { %v10849_v12 = vadd.f32 %v2744_v17, %v13311_v6  ;;  %3346 = vmatmul.bf16.gmra.mxu1 %v10363_v32  ;;  %3435 = vmatmul.bf16.gmra.mxu2 %v10361_v21 }
 0x488   : > { %13310 = vst [vmem:[#allocation40_spill] sm:$0xff] %v10845_v41  ;;  %3524 = vmatmul.bf16.gmra.mxu3 %v10363_v32 }
 0x489   : > { %13312 = vst [vmem:[#allocation41_spill] sm:$0xff] %v10849_v12 }
 0x48a   : > { %v2832_v13 = vpop.f32.mrf.mxu2 }
 0x48b   : > { %v2921_v46 = vpop.f32.mrf.mxu3  ;;  %v2656_v16 = vpop.f32.mrf.mxu0 }
 0x48c   : > { %v2922_v15 = vadd.f32 %v2921_v46, %v2832_v13  ;;  %v2745_v8 = vpop.f32.mrf.mxu1  ;;  %v13316_v13 = vld [vmem:[#allocation10_spill] sm:$0xff] }
 0x48d   : > { %v2746_v18 = vadd.f32 %v2745_v8, %v2656_v16  ;;  %v7504_v16 = vld [vmem:[%s13016_s1 + $0x7b8] sm:$0xf0] }
 0x48e   : > { %v10855_v4 = vadd.f32 %v2922_v15, %v13313_v35 }
 0x48f   : > { %v10858_v19 = vadd.f32 %v2746_v18, %v10307_v38  ;;  %v8155_v38 = vld [vmem:[%s13016_s1 + $0x734] sm:$0xf] }
 0x492   : > { %v2834_v6 = vpop.f32.mrf.mxu2 }
 0x493   : > { %v2923_v34 = vpop.f32.mrf.mxu3  ;;  %v2659_v17 = vpop.f32.mrf.mxu0 }
 0x494   : > { %v2924_v14 = vadd.f32 %v2923_v34, %v2834_v6  ;;  %v2748_v12 = vpop.f32.mrf.mxu1 }
 0x495   : > { %v2749_v41 = vadd.f32 %v2748_v12, %v2659_v17  ;;  %v8171_v12 = vld [vmem:[%s13016_s1 + $0x7b4] sm:$0xf] }
 0x496   : > { %v10861_v49 = vadd.f32 %v2924_v14, %v13314_v39  ;;  %3262 = vmatmul.bf16.gmra.mxu0 %v10388_v42  ;;  %v7440_v39 = vld [vmem:[%s13016_s1 + $0x738] sm:$0xf0]  ;;  %v7507_v8 = vor.u32 %v8171_v12, %v7504_v16  ;;  %v13318_v14 = vld [vmem:[#allocation50_spill] sm:$0xff]  ;;  %v7502_v12 = vld [vmem:[%s13016_s1 + $0x7b0] sm:$0xf] }
 0x497   : > { %v10865_v46 = vadd.f32 %v2749_v41, %v13316_v13  ;;  %3351 = vmatmul.bf16.gmra.mxu1 %v10390_v20  ;;  %3440 = vmatmul.bf16.gmra.mxu2 %v10388_v42  ;;  %v7443_v41 = vor.u32 %v8155_v38, %v7440_v39  ;;  %v7438_v38 = vld [vmem:[%s13016_s1 + $0x730] sm:$0xf]  ;;  %v8156_v39 = vld [vmem:[%s13016_s1 + $0x734] sm:$0xf0] }
 0x498   : > { %13315 = vst [vmem:[#allocation42_spill] sm:$0xff] %v10861_v49  ;;  %3529 = vmatmul.bf16.gmra.mxu3 %v10390_v20  ;;  %v8172_v16 = vld [vmem:[%s13016_s1 + $0x7b4] sm:$0xf0] }
 0x499   : > { %13317 = vst [vmem:[#allocation43_spill] sm:$0xff] %v10865_v46  ;;  %4050 = vmatpush.bf16.msrb.mxu2 %v7443_v41  ;;  %4139 = vmatpush.bf16.msrb.mxu3 %v7507_v8  ;;  %v13320_v46 = vld [vmem:[#allocation11_spill] sm:$0xff]  ;;  %v7439_v41 = vor.u32 %v8156_v39, %v7438_v38 }
 0x49a   : > { %v2837_v15 = vpop.f32.mrf.mxu2 }
 0x49b   : > { %v2926_v18 = vpop.f32.mrf.mxu3  ;;  %v2661_v35 = vpop.f32.mrf.mxu0  ;;  %3872 = vmatpush.bf16.msrb.mxu0 %v7439_v41 }
 0x49c   : > { %v2927_v6 = vadd.f32 %v2926_v18, %v2837_v15  ;;  %v2750_v34 = vpop.f32.mrf.mxu1  ;;  %v7503_v15 = vor.u32 %v8172_v16, %v7502_v12 }
 0x49d   : > { %v2751_v17 = vadd.f32 %v2750_v34, %v2661_v35 }
 0x49e   : > { %v10883_v13 = vadd.f32 %v2927_v6, %v13318_v14  ;;  %3961 = vmatpush.bf16.msrb.mxu1 %v7503_v15 }
 0x49f   : > { %v10886_v49 = vadd.f32 %v2751_v17, %v13320_v46  ;;  %v13322_v17 = vld [vmem:[#allocation51_spill] sm:$0xff] }
 0x4a0   : > { %13319 = vst [vmem:[#allocation44_spill] sm:$0xff] %v10883_v13 }
 0x4a1   : > { %13321 = vst [vmem:[#allocation45_spill] sm:$0xff] %v10886_v49  ;;  %v13324_v49 = vld [vmem:[#allocation52_spill] sm:$0xff] }
 0x4a2   : > { %v2839_v46 = vpop.f32.mrf.mxu2 }
 0x4a3   : > { %v2928_v8 = vpop.f32.mrf.mxu3  ;;  %v2664_v18 = vpop.f32.mrf.mxu0 }
 0x4a4   : > { %v2929_v35 = vadd.f32 %v2928_v8, %v2839_v46  ;;  %v2753_v6 = vpop.f32.mrf.mxu1  ;;  %v13326_v8 = vld [vmem:[#allocation53_spill] sm:$0xff] }
 0x4a5   : > { %v2754_v34 = vadd.f32 %v2753_v6, %v2664_v18 }
 0x4a6   : > { %v10901_v14 = vadd.f32 %v2929_v35, %v13322_v17  ;;  %3267 = vmatmul.bf16.gmra.mxu0 %v10439_v28 }
 0x4a7   : > { %v10905_v38 = vadd.f32 %v2754_v34, %v13324_v49  ;;  %3356 = vmatmul.bf16.gmra.mxu1 %v10441_v59  ;;  %3445 = vmatmul.bf16.gmra.mxu2 %v10439_v28 }
 0x4a8   : > { %13323 = vst [vmem:[#allocation46_spill] sm:$0xff] %v10901_v14  ;;  %3534 = vmatmul.bf16.gmra.mxu3 %v10441_v59 }
 0x4a9   : > { %13325 = vst [vmem:[#allocation47_spill] sm:$0xff] %v10905_v38 }
 0x4aa   : > { %v2842_v39 = vpop.f32.mrf.mxu2 }
 0x4ab   : > { %v2931_v12 = vpop.f32.mrf.mxu3  ;;  %v2666_v41 = vpop.f32.mrf.mxu0 }
 0x4ac   : > { %v2932_v16 = vadd.f32 %v2931_v12, %v2842_v39  ;;  %v2755_v15 = vpop.f32.mrf.mxu1  ;;  %v13329_v39 = vld [vmem:[#allocation16_spill] sm:$0xff] }
 0x4ad   : > { %v2756_v46 = vadd.f32 %v2755_v15, %v2666_v41  ;;  %v7496_v41 = vld [vmem:[%s13016_s1 + $0x7a8] sm:$0xf0] }
 0x4ae   : > { %v10911_v18 = vadd.f32 %v2932_v16, %v13326_v8 }
 0x4af   : > { %v10914_v35 = vadd.f32 %v2756_v46, %v10385_v10  ;;  %v8153_v10 = vld [vmem:[%s13016_s1 + $0x724] sm:$0xf] }
 0x4b1   : > { %13327 = vst [vmem:[#allocation48_spill] sm:$0xff] %v10914_v35 }
 0x4b2   : > { %v2844_v49 = vpop.f32.mrf.mxu2 }
 0x4b3   : > { %v2933_v6 = vpop.f32.mrf.mxu3  ;;  %v3233_v34 = vpop.f32.mrf.mxu0 }
 0x4b4   : > { %v2934_v17 = vadd.f32 %v2933_v6, %v2844_v49  ;;  %v3322_v38 = vpop.f32.mrf.mxu1 }
 0x4b5   : > { %v3323_v14 = vadd.f32 %v3322_v38, %v3233_v34  ;;  %v8169_v38 = vld [vmem:[%s13016_s1 + $0x7a4] sm:$0xf] }
 0x4b6   : > { %v10917_v13 = vadd.f32 %v2934_v17, %v10395_v44  ;;  %3272 = vmatmul.bf16.gmra.mxu0 %v10466_v1  ;;  %v7432_v44 = vld [vmem:[%s13016_s1 + $0x728] sm:$0xf0]  ;;  %v7499_v15 = vor.u32 %v8169_v38, %v7496_v41  ;;  %v7494_v38 = vld [vmem:[%s13016_s1 + $0x7a0] sm:$0xf] }
 0x4b7   : > { %v10921_v12 = vadd.f32 %v3323_v14, %v13329_v39  ;;  %3361 = vmatmul.bf16.gmra.mxu1 %v10468_v9  ;;  %3450 = vmatmul.bf16.gmra.mxu2 %v10466_v1  ;;  %v7435_v14 = vor.u32 %v8153_v10, %v7432_v44  ;;  %v13332_v39 = vld [vmem:[#allocation54_spill] sm:$0xff]  ;;  %v7430_v10 = vld [vmem:[%s13016_s1 + $0x720] sm:$0xf] }
 0x4b8   : > { %13328 = vst [vmem:[#allocation49_spill] sm:$0xff] %v10917_v13  ;;  %3539 = vmatmul.bf16.gmra.mxu3 %v10468_v9  ;;  %v8154_v44 = vld [vmem:[%s13016_s1 + $0x724] sm:$0xf0]  ;;  %v13342_v13 = vld [vmem:[#allocation19_spill] sm:$0xff] }
 0x4b9   : > { %13330 = vst [vmem:[#allocation10_spill] sm:$0xff] %v10921_v12  ;;  %4051 = vmatpush.bf16.msrb.mxu2 %v7435_v14  ;;  %4140 = vmatpush.bf16.msrb.mxu3 %v7499_v15  ;;  %v7431_v14 = vor.u32 %v8154_v44, %v7430_v10 }
 0x4ba   : > { %v3411_v16 = vpop.f32.mrf.mxu2 }
 0x4bb   : > { %v3500_v46 = vpop.f32.mrf.mxu3  ;;  %v3235_v8 = vpop.f32.mrf.mxu0  ;;  %3873 = vmatpush.bf16.msrb.mxu0 %v7431_v14 }
 0x4bc   : > { %v3501_v49 = vadd.f32 %v3500_v46, %v3411_v16  ;;  %v3324_v6 = vpop.f32.mrf.mxu1 }
 0x4bd   : > { %v3325_v34 = vadd.f32 %v3324_v6, %v3235_v8 }
 0x4be   : > { %v10939_v17 = vadd.f32 %v3501_v49, %v10421_v26  ;;  %v8170_v26 = vld [vmem:[%s13016_s1 + $0x7a4] sm:$0xf0] }
 0x4bf   : > { %v10942_v12 = vadd.f32 %v3325_v34, %v13332_v39  ;;  %v7495_v41 = vor.u32 %v8170_v26, %v7494_v38  ;;  %v13335_v39 = vld [vmem:[#allocation17_spill] sm:$0xff] }
 0x4c0   : > { %13331 = vst [vmem:[#allocation50_spill] sm:$0xff] %v10939_v17 }
 0x4c1   : > { %13333 = vst [vmem:[#allocation11_spill] sm:$0xff] %v10942_v12  ;;  %3962 = vmatpush.bf16.msrb.mxu1 %v7495_v41  ;;  %v13340_v12 = vld [vmem:[#allocation55_spill] sm:$0xff] }
 0x4c2   : > { %v3413_v16 = vpop.f32.mrf.mxu2 }
 0x4c3   : > { %v3502_v15 = vpop.f32.mrf.mxu3  ;;  %v3238_v46 = vpop.f32.mrf.mxu0 }
 0x4c4   : > { %v3503_v8 = vadd.f32 %v3502_v15, %v3413_v16  ;;  %v3327_v49 = vpop.f32.mrf.mxu1  ;;  %v13337_v15 = vld [vmem:[#allocation9_spill] sm:$0xff] }
 0x4c5   : > { %v3328_v6 = vadd.f32 %v3327_v49, %v3238_v46 }
 0x4c6   : > { %v10957_v34 = vadd.f32 %v3503_v8, %v10446_v50  ;;  %3277 = vmatmul.bf16.gmra.mxu0 %v10517_v31 }
 0x4c7   : > { %v10961_v10 = vadd.f32 %v3328_v6, %v13335_v39  ;;  %3366 = vmatmul.bf16.gmra.mxu1 %v10519_v27  ;;  %3455 = vmatmul.bf16.gmra.mxu2 %v10517_v31 }
 0x4c8   : > { %13334 = vst [vmem:[#allocation51_spill] sm:$0xff] %v10957_v34  ;;  %3544 = vmatmul.bf16.gmra.mxu3 %v10519_v27 }
 0x4c9   : > { %13336 = vst [vmem:[#allocation52_spill] sm:$0xff] %v10961_v10 }
 0x4ca   : > { %v3416_v44 = vpop.f32.mrf.mxu2 }
 0x4cb   : > { %v3505_v38 = vpop.f32.mrf.mxu3  ;;  %v3240_v14 = vpop.f32.mrf.mxu0 }
 0x4cc   : > { %v3506_v26 = vadd.f32 %v3505_v38, %v3416_v44  ;;  %v3329_v41 = vpop.f32.mrf.mxu1  ;;  %v13343_v44 = vld [vmem:[#allocation12_spill] sm:$0xff] }
 0x4cd   : > { %v3330_v16 = vadd.f32 %v3329_v41, %v3240_v14  ;;  %v13345_v14 = vld [vmem:[#allocation7_spill] sm:$0xff] }
 0x4ce   : > { %v10967_v50 = vadd.f32 %v3506_v26, %v13337_v15  ;;  %v7488_v26 = vld [vmem:[%s13016_s1 + $0x798] sm:$0xf0] }
 0x4cf   : > { %v10970_v46 = vadd.f32 %v3330_v16, %v10463_v40  ;;  %v8151_v40 = vld [vmem:[%s13016_s1 + $0x714] sm:$0xf] }
 0x4d0   : > { %13338 = vst [vmem:[#allocation53_spill] sm:$0xff] %v10967_v50 }
 0x4d1   : > { %13339 = vst [vmem:[#allocation16_spill] sm:$0xff] %v10970_v46 }
 0x4d2   : > { %v3418_v8 = vpop.f32.mrf.mxu2 }
 0x4d3   : > { %v3507_v49 = vpop.f32.mrf.mxu3  ;;  %v3243_v6 = vpop.f32.mrf.mxu0 }
 0x4d4   : > { %v3508_v39 = vadd.f32 %v3507_v49, %v3418_v8  ;;  %v3332_v10 = vpop.f32.mrf.mxu1 }
 0x4d5   : > { %v3333_v34 = vadd.f32 %v3332_v10, %v3243_v6  ;;  %v8167_v10 = vld [vmem:[%s13016_s1 + $0x794] sm:$0xf] }
 0x4d6   : > { %v10973_v17 = vadd.f32 %v3508_v39, %v13340_v12  ;;  %3282 = vmatmul.bf16.gmra.mxu0 %v13342_v13  ;;  %v7424_v12 = vld [vmem:[%s13016_s1 + $0x718] sm:$0xf0]  ;;  %v7491_v16 = vor.u32 %v8167_v10, %v7488_v26  ;;  %v7486_v10 = vld [vmem:[%s13016_s1 + $0x790] sm:$0xf]  ;;  %v8168_v26 = vld [vmem:[%s13016_s1 + $0x794] sm:$0xf0] }
 0x4d7   : > { %v10977_v38 = vadd.f32 %v3333_v34, %v13343_v44  ;;  %3371 = vmatmul.bf16.gmra.mxu1 %v13345_v14  ;;  %3460 = vmatmul.bf16.gmra.mxu2 %v13342_v13  ;;  %v7427_v34 = vor.u32 %v8151_v40, %v7424_v12  ;;  %v13346_v44 = vld [vmem:[#allocation13_spill] sm:$0xff]  ;;  %v7422_v40 = vld [vmem:[%s13016_s1 + $0x710] sm:$0xf]  ;;  %v8152_v12 = vld [vmem:[%s13016_s1 + $0x714] sm:$0xf0] }
 0x4d8   : > { %13341 = vst [vmem:[#allocation54_spill] sm:$0xff] %v10973_v17  ;;  %3549 = vmatmul.bf16.gmra.mxu3 %v13345_v14  ;;  %v13348_v17 = vld [vmem:[#allocation5_spill] sm:$0xff]  ;;  %v13360_v14 = vld [vmem:[#allocation8_spill] sm:$0xff]  ;;  %v13376_v13 = vld [vmem:[#allocation31_spill] sm:$0xff] }
 0x4d9   : > { %13344 = vst [vmem:[#allocation17_spill] sm:$0xff] %v10977_v38  ;;  %4052 = vmatpush.bf16.msrb.mxu2 %v7427_v34  ;;  %4141 = vmatpush.bf16.msrb.mxu3 %v7491_v16  ;;  %v7423_v34 = vor.u32 %v8152_v12, %v7422_v40  ;;  %v13355_v12 = vld [vmem:[#allocation24_spill] sm:$0xff] }
 0x4da   : > { %v3421_v41 = vpop.f32.mrf.mxu2 }
 0x4db   : > { %v3510_v15 = vpop.f32.mrf.mxu3  ;;  %v3245_v8 = vpop.f32.mrf.mxu0  ;;  %3874 = vmatpush.bf16.msrb.mxu0 %v7423_v34 }
 0x4dc   : > { %v3511_v49 = vadd.f32 %v3510_v15, %v3421_v41  ;;  %v3334_v6 = vpop.f32.mrf.mxu1  ;;  %v7487_v41 = vor.u32 %v8168_v26, %v7486_v10 }
 0x4dd   : > { %v3335_v39 = vadd.f32 %v3334_v6, %v3245_v8 }
 0x4de   : > { %v10995_v38 = vadd.f32 %v3511_v49, %v13346_v44  ;;  %3963 = vmatpush.bf16.msrb.mxu1 %v7487_v41 }
 0x4df   : > { %v10998_v46 = vadd.f32 %v3335_v39, %v13348_v17  ;;  %v13350_v39 = vld [vmem:[#allocation6_spill] sm:$0xff] }
 0x4e0   : > { %13347 = vst [vmem:[#allocation9_spill] sm:$0xff] %v10995_v38  ;;  %v13353_v38 = vld [vmem:[#allocation14_spill] sm:$0xff] }
 0x4e1   : > { %13349 = vst [vmem:[#allocation55_spill] sm:$0xff] %v10998_v46  ;;  %v13352_v46 = vld [vmem:[#allocation23_spill] sm:$0xff] }
 0x4e2   : > { %v3423_v17 = vpop.f32.mrf.mxu2 }
 0x4e3   : > { %v3512_v16 = vpop.f32.mrf.mxu3  ;;  %v3248_v15 = vpop.f32.mrf.mxu0 }
 0x4e4   : > { %v3513_v8 = vadd.f32 %v3512_v16, %v3423_v17  ;;  %v3337_v49 = vpop.f32.mrf.mxu1 }
 0x4e5   : > { %v3338_v6 = vadd.f32 %v3337_v49, %v3248_v15  ;;  %v13356_v15 = vld [vmem:[#allocation15_spill] sm:$0xff]  ;;  %v13358_v49 = vld [vmem:[#allocation18_spill] sm:$0xff] }
 0x4e6   : > { %v11013_v44 = vadd.f32 %v3513_v8, %v13350_v39  ;;  %3287 = vmatmul.bf16.gmra.mxu0 %v13352_v46 }
 0x4e7   : > { %v11017_v40 = vadd.f32 %v3338_v6, %v13353_v38  ;;  %3376 = vmatmul.bf16.gmra.mxu1 %v13355_v12  ;;  %3465 = vmatmul.bf16.gmra.mxu2 %v13352_v46 }
 0x4e8   : > { %13351 = vst [vmem:[#allocation12_spill] sm:$0xff] %v11013_v44  ;;  %3554 = vmatmul.bf16.gmra.mxu3 %v13355_v12 }
 0x4e9   : > { %13354 = vst [vmem:[#allocation13_spill] sm:$0xff] %v11017_v40 }
 0x4ea   : > { %v3426_v10 = vpop.f32.mrf.mxu2 }
 0x4eb   : > { %v3515_v34 = vpop.f32.mrf.mxu3  ;;  %v3250_v26 = vpop.f32.mrf.mxu0 }
 0x4ec   : > { %v3516_v41 = vadd.f32 %v3515_v34, %v3426_v10  ;;  %v3339_v17 = vpop.f32.mrf.mxu1  ;;  %v13362_v10 = vld [vmem:[#allocation20_spill] sm:$0xff] }
 0x4ed   : > { %v3340_v16 = vadd.f32 %v3339_v17, %v3250_v26  ;;  %v13364_v26 = vld [vmem:[#allocation30_spill] sm:$0xff] }
 0x4ee   : > { %v11023_v8 = vadd.f32 %v3516_v41, %v13356_v15  ;;  %v8149_v41 = vld [vmem:[%s13016_s1 + $0x704] sm:$0xf] }
 0x4ef   : > { %v11026_v39 = vadd.f32 %v3340_v16, %v13358_v49 }
 0x4f0   : > { %13357 = vst [vmem:[#allocation5_spill] sm:$0xff] %v11023_v8  ;;  %v13369_v8 = vld [vmem:[#allocation25_spill] sm:$0xff] }
 0x4f1   : > { %13359 = vst [vmem:[#allocation6_spill] sm:$0xff] %v11026_v39 }
 0x4f2   : > { %v3428_v38 = vpop.f32.mrf.mxu2 }
 0x4f3   : > { %v3517_v6 = vpop.f32.mrf.mxu3  ;;  %v3253_v40 = vpop.f32.mrf.mxu0 }
 0x4f4   : > { %v3518_v44 = vadd.f32 %v3517_v6, %v3428_v38  ;;  %v3342_v50 = vpop.f32.mrf.mxu1 }
 0x4f5   : > { %v3343_v46 = vadd.f32 %v3342_v50, %v3253_v40  ;;  %v7416_v50 = vld [vmem:[%s13016_s1 + $0x708] sm:$0xf0] }
 0x4f6   : > { %v11029_v12 = vadd.f32 %v3518_v44, %v13360_v14  ;;  %3292 = vmatmul.bf16.gmra.mxu0 %v10622_v60  ;;  %v8165_v14 = vld [vmem:[%s13016_s1 + $0x784] sm:$0xf]  ;;  %v7480_v44 = vld [vmem:[%s13016_s1 + $0x788] sm:$0xf0] }
 0x4f7   : > { %v11033_v34 = vadd.f32 %v3343_v46, %v13362_v10  ;;  %3381 = vmatmul.bf16.gmra.mxu1 %v13364_v26  ;;  %3470 = vmatmul.bf16.gmra.mxu2 %v10622_v60  ;;  %v7419_v46 = vor.u32 %v8149_v41, %v7416_v50  ;;  %v7483_v17 = vor.u32 %v8165_v14, %v7480_v44  ;;  %v13365_v10 = vld [vmem:[#allocation21_spill] sm:$0xff]  ;;  %v8150_v50 = vld [vmem:[%s13016_s1 + $0x704] sm:$0xf0] }
 0x4f8   : > { %13361 = vst [vmem:[#allocation14_spill] sm:$0xff] %v11029_v12  ;;  %3559 = vmatmul.bf16.gmra.mxu3 %v13364_v26  ;;  %v13367_v12 = vld [vmem:[#allocation22_spill] sm:$0xff]  ;;  %v7414_v41 = vld [vmem:[%s13016_s1 + $0x700] sm:$0xf] }
 0x4f9   : > { %13363 = vst [vmem:[#allocation15_spill] sm:$0xff] %v11033_v34  ;;  %4053 = vmatpush.bf16.msrb.mxu2 %v7419_v46  ;;  %4142 = vmatpush.bf16.msrb.mxu3 %v7483_v17  ;;  %v7478_v14 = vld [vmem:[%s13016_s1 + $0x780] sm:$0xf]  ;;  %v210_v46 = vld [vmem:[%s8751_s6 + $0x188] sm:$0xff]  ;;  %v7415_v44 = vor.u32 %v8150_v50, %v7414_v41 }
 0x4fa   : > { %v3431_v40 = vpop.f32.mrf.mxu2  ;;  %v13371_v41 = vld [vmem:[#allocation26_spill] sm:$0xff]  ;;  %v213_v60 = vld [vmem:[%s8751_s6 + $0x1a0] sm:$0xff] }
 0x4fb   : > { %v3520_v16 = vpop.f32.mrf.mxu3  ;;  %v3255_v15 = vpop.f32.mrf.mxu0  ;;  %3875 = vmatpush.bf16.msrb.mxu0 %v7415_v44 }
 0x4fc   : > { %v3521_v49 = vadd.f32 %v3520_v16, %v3431_v40  ;;  %v3344_v38 = vpop.f32.mrf.mxu1 }
 0x4fd   : > { %v3345_v6 = vadd.f32 %v3344_v38, %v3255_v15 }
 0x4fe   : > { %v11051_v34 = vadd.f32 %v3521_v49, %v13365_v10  ;;  %v3004_v49 = vrot.slane %v210_v46, 5  ;;  %v209_v10 = vld [vmem:[%s8751_s6 + $0x180] sm:$0xff] }
 0x4ff   : > { %v11054_v39 = vadd.f32 %v3345_v6, %v13367_v12  ;;  %v8166_v12 = vld [vmem:[%s13016_s1 + $0x784] sm:$0xf0] }
 0x500   : > { %13366 = vst [vmem:[#allocation18_spill] sm:$0xff] %v11051_v34  ;;  %v7479_v40 = vor.u32 %v8166_v12, %v7478_v14  ;;  %v7280_v14 = vrot.slane %v209_v10, 9  ;;  %v3006_v46 = vrot.slane %v3004_v49, 4 }
 0x501   : > { %13368 = vst [vmem:[#allocation8_spill] sm:$0xff] %v11054_v39  ;;  %v211_v39 = vld [vmem:[%s8751_s6 + $0x190] sm:$0xff] }
 0x502   : > { %v3433_v17 = vpop.f32.mrf.mxu2  ;;  %3964 = vmatpush.bf16.msrb.mxu1 %v7479_v40  ;;  %v3007_v44 = vrot.slane %v211_v39, 5 }
 0x503   : > { %v3522_v16 = vpop.f32.mrf.mxu3  ;;  %v3258_v15 = vpop.f32.mrf.mxu0 }
 0x504   : > { %v3523_v38 = vadd.f32 %v3522_v16, %v3433_v17  ;;  %v3347_v6 = vpop.f32.mrf.mxu1 }
 0x505   : > { %v3348_v34 = vadd.f32 %v3347_v6, %v3258_v15  ;;  %v13373_v6 = vld [vmem:[#allocation27_spill] sm:$0xff] }
 0x506   : > { %v11072_v26 = vadd.f32 %v3523_v38, %v13369_v8  ;;  %3297 = vmatmul.bf16.gmra.mxu0 %v10672_v56  ;;  %v3005_v8 = vsel %vm10077_vm2, %v7280_v14, %v3004_v49 }
 0x507   : > { %v11076_v50 = vadd.f32 %v3348_v34, %v13371_v41  ;;  %3386 = vmatmul.bf16.gmra.mxu1 %v10674_v33  ;;  %3475 = vmatmul.bf16.gmra.mxu2 %v10672_v56  ;;  %v3008_v34 = vsel %vm10077_vm2, %v3006_v46, %v3007_v44  ;;  %v3048_v39 = vunpack.c.l.b16 %v3005_v8 }
 0x508   : > { %13370 = vst [vmem:[#allocation20_spill] sm:$0xff] %v11072_v26  ;;  %3564 = vmatmul.bf16.gmra.mxu3 %v10674_v33  ;;  %v3050_v41 = vunpack.c.l.b16 %v3008_v34  ;;  %v3049_v33 = vunpack.c.h.b16 %v3005_v8  ;;  %v3051_v56 = vunpack.c.h.b16 %v3008_v34  ;;  %v8195_v34 = vld [vmem:[%s13016_s1 + $0x274] sm:$0xf] }
 0x509   : > { %13372 = vst [vmem:[#allocation21_spill] sm:$0xff] %v11076_v50  ;;  %v13375_v50 = vld [vmem:[#allocation28_spill] sm:$0xff] }
 0x50a   : > { %v3436_v12 = vpop.f32.mrf.mxu2  ;;  %v11092_v14 = vpack.c.b16 %v3050_v41, %v3048_v39  ;;  %v7680_v39 = vld [vmem:[%s13016_s1 + $0x2f8] sm:$0xf0] }
 0x50b   : > { %v3525_v40 = vpop.f32.mrf.mxu3  ;;  %v3260_v17 = vpop.f32.mrf.mxu0 }
 0x50c   : > { %v3526_v16 = vadd.f32 %v3525_v40, %v3436_v12  ;;  %v3349_v15 = vpop.f32.mrf.mxu1  ;;  %v11094_v12 = vpack.c.b16 %v3051_v56, %v3049_v33  ;;  %v3011_v40 = vrot.slane %v213_v60, 5 }
 0x50d   : > { %v3350_v38 = vadd.f32 %v3349_v15, %v3260_v17  ;;  %v212_v15 = vld [vmem:[%s8751_s6 + $0x198] sm:$0xff] }
 0x50e   : > { %v11086_v10 = vadd.f32 %v3526_v16, %v13373_v6  ;;  %v214_v6 = vld [vmem:[%s8751_s6 + $0x1a8] sm:$0xff]  ;;  %v7281_v56 = vrot.slane %v212_v15, 9  ;;  %v3013_v33 = vrot.slane %v3011_v40, 4 }
 0x50f   : > { %v11089_v26 = vadd.f32 %v3350_v38, %v13375_v50  ;;  %v13378_v50 = vld [vmem:[#allocation32_spill] sm:$0xff]  ;;  %v3014_v60 = vrot.slane %v214_v6, 5  ;;  %v8211_v38 = vld [vmem:[%s13016_s1 + $0x2f4] sm:$0xf] }
 0x510   : > { %13374 = vst [vmem:[#allocation22_spill] sm:$0xff] %v11086_v10 }
 0x512   : > { %v3438_v49 = vpop.f32.mrf.mxu2 }
 0x513   : > { %v3527_v46 = vpop.f32.mrf.mxu3  ;;  %v3263_v44 = vpop.f32.mrf.mxu0 }
 0x514   : > { %v3528_v17 = vadd.f32 %v3527_v46, %v3438_v49  ;;  %v3352_v16 = vpop.f32.mrf.mxu1  ;;  %v7683_v49 = vor.u32 %v8211_v38, %v7680_v39 }
 0x515   : > { %v3353_v10 = vadd.f32 %v3352_v16, %v3263_v44  ;;  %v3015_v16 = vsel %vm10077_vm2, %v3013_v33, %v3014_v60 }
 0x516   : > { %v11099_v35 = vadd.f32 %v3528_v17, %v13376_v13  ;;  %3302 = vmatmul.bf16.gmra.mxu0 %v11092_v14  ;;  %v7616_v13 = vld [vmem:[%s13016_s1 + $0x278] sm:$0xf0]  ;;  %v3012_v17 = vsel %vm10077_vm2, %v7281_v56, %v3011_v40  ;;  %4990 = vmatpush.bf16.msra.mxu3 %v7683_v49  ;;  %v7614_v40 = vld [vmem:[%s13016_s1 + $0x270] sm:$0xf]  ;;  %v8196_v56 = vld [vmem:[%s13016_s1 + $0x274] sm:$0xf0] }
 0x517   : > { %v11103_v8 = vadd.f32 %v3353_v10, %v13378_v50  ;;  %3391 = vmatmul.bf16.gmra.mxu1 %v11094_v12  ;;  %3480 = vmatmul.bf16.gmra.mxu2 %v11092_v14  ;;  %v7619_v10 = vor.u32 %v8195_v34, %v7616_v13  ;;  %v3052_v13 = vunpack.c.l.b16 %v3012_v17  ;;  %v3053_v39 = vunpack.c.h.b16 %v3012_v17 }
 0x518   : > { %13377 = vst [vmem:[#allocation25_spill] sm:$0xff] %v11099_v35  ;;  %3569 = vmatmul.bf16.gmra.mxu3 %v11094_v12  ;;  %v3055_v35 = vunpack.c.h.b16 %v3015_v16  ;;  %v7615_v33 = vor.u32 %v8196_v56, %v7614_v40 }
 0x519   : > { %13379 = vst [vmem:[#allocation26_spill] sm:$0xff] %v11103_v8  ;;  %4901 = vmatpush.bf16.msra.mxu2 %v7619_v10  ;;  %v3054_v8 = vunpack.c.l.b16 %v3015_v16 }
 0x51a   : > { %v3441_v41 = vpop.f32.mrf.mxu2  ;;  %4723 = vmatpush.bf16.msra.mxu0 %v7615_v33 }
 0x51b   : > { %v3530_v46 = vpop.f32.mrf.mxu3  ;;  %v3265_v44 = vpop.f32.mrf.mxu0 }
 0x51c   : > { %v3531_v15 = vadd.f32 %v3530_v46, %v3441_v41  ;;  %v3354_v6 = vpop.f32.mrf.mxu1  ;;  %v11142_v41 = vpack.c.b16 %v3054_v8, %v3052_v13 }
 0x51d   : > { %v3355_v50 = vadd.f32 %v3354_v6, %v3265_v44  ;;  %v11144_v44 = vpack.c.b16 %v3055_v35, %v3053_v39 }
 0x51e   : > { %v11125_v34 = vadd.f32 %v3531_v15, %v10655_v36  ;;  %v7678_v36 = vld [vmem:[%s13016_s1 + $0x2f0] sm:$0xf] }
 0x51f   : > { %v11128_v38 = vadd.f32 %v3355_v50, %v10658_v52  ;;  %v8212_v52 = vld [vmem:[%s13016_s1 + $0x2f4] sm:$0xf0] }
 0x520   : > { %v7679_v60 = vor.u32 %v8212_v52, %v7678_v36 }
 0x522   : > { %v3443_v10 = vpop.f32.mrf.mxu2  ;;  %4812 = vmatpush.bf16.msra.mxu1 %v7679_v60 }
 0x523   : > { %v3532_v49 = vpop.f32.mrf.mxu3  ;;  %v3268_v46 = vpop.f32.mrf.mxu0 }
 0x524   : > { %v3533_v17 = vadd.f32 %v3532_v49, %v3443_v10  ;;  %v3357_v16 = vpop.f32.mrf.mxu1 }
 0x525   : > { %v3358_v15 = vadd.f32 %v3357_v16, %v3268_v46  ;;  %v7672_v16 = vld [vmem:[%s13016_s1 + $0x2e8] sm:$0xf0] }
 0x526   : > { %v11147_v6 = vadd.f32 %v3533_v17, %v10677_v29  ;;  %3307 = vmatmul.bf16.gmra.mxu0 %v11142_v41 }
 0x527   : > { %v11151_v50 = vadd.f32 %v3358_v15, %v10681_v45  ;;  %3396 = vmatmul.bf16.gmra.mxu1 %v11144_v44  ;;  %3485 = vmatmul.bf16.gmra.mxu2 %v11142_v41 }
 0x528   : > { %3574 = vmatmul.bf16.gmra.mxu3 %v11144_v44 }
 0x52a   : > { %v3446_v35 = vpop.f32.mrf.mxu2 }
 0x52b   : > { %v3535_v8 = vpop.f32.mrf.mxu3  ;;  %v3270_v13 = vpop.f32.mrf.mxu0 }
 0x52c   : > { %v3536_v39 = vadd.f32 %v3535_v8, %v3446_v35  ;;  %v3359_v40 = vpop.f32.mrf.mxu1 }
 0x52d   : > { %v3360_v56 = vadd.f32 %v3359_v40, %v3270_v13 }
 0x52e   : > { %v11157_v29 = vadd.f32 %v3536_v39, %v10687_v11  ;;  %v8193_v11 = vld [vmem:[%s13016_s1 + $0x264] sm:$0xf] }
 0x52f   : > { %v11160_v36 = vadd.f32 %v3360_v56, %v10690_v24  ;;  %v7608_v24 = vld [vmem:[%s13016_s1 + $0x268] sm:$0xf0] }
 0x532   : > { %v3448_v45 = vpop.f32.mrf.mxu2 }
 0x533   : > { %v3537_v33 = vpop.f32.mrf.mxu3  ;;  %v3273_v52 = vpop.f32.mrf.mxu0 }
 0x534   : > { %v3538_v60 = vadd.f32 %v3537_v33, %v3448_v45  ;;  %v3362_v10 = vpop.f32.mrf.mxu1  ;;  %v7606_v45 = vld [vmem:[%s13016_s1 + $0x260] sm:$0xf]  ;;  %v8194_v33 = vld [vmem:[%s13016_s1 + $0x264] sm:$0xf0] }
 0x535   : > { %v3363_v49 = vadd.f32 %v3362_v10, %v3273_v52  ;;  %v7670_v52 = vld [vmem:[%s13016_s1 + $0x2e0] sm:$0xf] }
 0x536   : > { %v11163_v46 = vadd.f32 %v3538_v60, %v10693_v25  ;;  %3876 = vmatmul.bf16.vlgmr.msrb.gmra.mxu0 %v10232_v54  ;;  %v8209_v25 = vld [vmem:[%s13016_s1 + $0x2e4] sm:$0xf]  ;;  %v7607_v60 = vor.u32 %v8194_v33, %v7606_v45 }
 0x537   : > { %v11167_v17 = vadd.f32 %v3363_v49, %v10697_v0  ;;  %3965 = vmatmul.bf16.vlgmr.msrb.gmra.mxu1 %v10234_v57  ;;  %4054 = vmatmul.bf16.vlgmr.msrb.gmra.mxu2 %v10232_v54  ;;  %v7611_v0 = vor.u32 %v8193_v11, %v7608_v24  ;;  %v7675_v15 = vor.u32 %v8209_v25, %v7672_v16 }
 0x538   : > { %4143 = vmatmul.bf16.vlgmr.msrb.gmra.mxu3 %v10234_v57  ;;  %4724 = vmatpush.bf16.msra.mxu0 %v7607_v60 }
 0x539   : > { %4902 = vmatpush.bf16.msra.mxu2 %v7611_v0  ;;  %4991 = vmatpush.bf16.msra.mxu3 %v7675_v15 }
 0x53a   : > { %v3451_v54 = vpop.f32.mrf.mxu2 }
 0x53b   : > { %v3540_v57 = vpop.f32.mrf.mxu3  ;;  %v3275_v35 = vpop.f32.mrf.mxu0 }
 0x53c   : > { %v3541_v8 = vadd.f32 %v3540_v57, %v3451_v54  ;;  %v3364_v13 = vpop.f32.mrf.mxu1 }
 0x53d   : > { %v3365_v39 = vadd.f32 %v3364_v13, %v3275_v35 }
 0x53e   : > { %v11185_v40 = vadd.f32 %v3541_v8, %v10715_v48  ;;  %v8210_v48 = vld [vmem:[%s13016_s1 + $0x2e4] sm:$0xf0] }
 0x53f   : > { %v11188_v56 = vadd.f32 %v3365_v39, %v10718_v23  ;;  %v7671_v10 = vor.u32 %v8210_v48, %v7670_v52 }
 0x541   : > { %4813 = vmatpush.bf16.msra.mxu1 %v7671_v10 }
 0x542   : > { %v3453_v23 = vpop.f32.mrf.mxu2 }
 0x543   : > { %v3542_v49 = vpop.f32.mrf.mxu3  ;;  %v3278_v11 = vpop.f32.mrf.mxu0 }
 0x544   : > { %v3543_v24 = vadd.f32 %v3542_v49, %v3453_v23  ;;  %v3367_v25 = vpop.f32.mrf.mxu1  ;;  %v7664_v23 = vld [vmem:[%s13016_s1 + $0x2d8] sm:$0xf0] }
 0x545   : > { %v3368_v0 = vadd.f32 %v3367_v25, %v3278_v11 }
 0x546   : > { %v11203_v16 = vadd.f32 %v3543_v24, %v10733_v58  ;;  %3881 = vmatmul.bf16.gmra.mxu0 %v10283_v5 }
 0x547   : > { %v11207_v54 = vadd.f32 %v3368_v0, %v10737_v37  ;;  %3970 = vmatmul.bf16.gmra.mxu1 %v10285_v55  ;;  %4059 = vmatmul.bf16.gmra.mxu2 %v10283_v5 }
 0x548   : > { %4148 = vmatmul.bf16.gmra.mxu3 %v10285_v55 }
 0x54a   : > { %v3456_v15 = vpop.f32.mrf.mxu2 }
 0x54b   : > { %v3545_v57 = vpop.f32.mrf.mxu3  ;;  %v3280_v35 = vpop.f32.mrf.mxu0 }
 0x54c   : > { %v3546_v8 = vadd.f32 %v3545_v57, %v3456_v15  ;;  %v3369_v13 = vpop.f32.mrf.mxu1 }
 0x54d   : > { %v3370_v39 = vadd.f32 %v3369_v13, %v3280_v35  ;;  %v7598_v35 = vld [vmem:[%s13016_s1 + $0x250] sm:$0xf] }
 0x54e   : > { %v11213_v58 = vadd.f32 %v3546_v8, %v10743_v63  ;;  %v8191_v63 = vld [vmem:[%s13016_s1 + $0x254] sm:$0xf]  ;;  %v8192_v8 = vld [vmem:[%s13016_s1 + $0x254] sm:$0xf0]  ;;  %v7662_v13 = vld [vmem:[%s13016_s1 + $0x2d0] sm:$0xf] }
 0x54f   : > { %v11216_v45 = vadd.f32 %v3370_v39, %v10746_v3  ;;  %v7600_v3 = vld [vmem:[%s13016_s1 + $0x258] sm:$0xf0]  ;;  %v7599_v39 = vor.u32 %v8192_v8, %v7598_v35 }
 0x551   : > { %4725 = vmatpush.bf16.msra.mxu0 %v7599_v39  ;;  %v13382_v39 = vld [vmem:[#allocation37_spill] sm:$0xff] }
 0x552   : > { %v3458_v37 = vpop.f32.mrf.mxu2 }
 0x553   : > { %v3547_v33 = vpop.f32.mrf.mxu3  ;;  %v3283_v52 = vpop.f32.mrf.mxu0 }
 0x554   : > { %v3548_v60 = vadd.f32 %v3547_v33, %v3458_v37  ;;  %v3372_v48 = vpop.f32.mrf.mxu1 }
 0x555   : > { %v3373_v5 = vadd.f32 %v3372_v48, %v3283_v52 }
 0x556   : > { %v11219_v55 = vadd.f32 %v3548_v60, %v10749_v7  ;;  %3886 = vmatmul.bf16.gmra.mxu0 %v10310_v43  ;;  %v8207_v7 = vld [vmem:[%s13016_s1 + $0x2d4] sm:$0xf] }
 0x557   : > { %v11223_v10 = vadd.f32 %v3373_v5, %v10753_v62  ;;  %3975 = vmatmul.bf16.gmra.mxu1 %v10312_v61  ;;  %4064 = vmatmul.bf16.gmra.mxu2 %v10310_v43  ;;  %v7603_v62 = vor.u32 %v8191_v63, %v7600_v3  ;;  %v7667_v49 = vor.u32 %v8207_v7, %v7664_v23 }
 0x558   : > { %4153 = vmatmul.bf16.gmra.mxu3 %v10312_v61 }
 0x559   : > { %4903 = vmatpush.bf16.msra.mxu2 %v7603_v62  ;;  %4992 = vmatpush.bf16.msra.mxu3 %v7667_v49 }
 0x55a   : > { %v3461_v43 = vpop.f32.mrf.mxu2 }
 0x55b   : > { %v3550_v61 = vpop.f32.mrf.mxu3  ;;  %v3285_v11 = vpop.f32.mrf.mxu0 }
 0x55c   : > { %v3551_v24 = vadd.f32 %v3550_v61, %v3461_v43  ;;  %v3374_v25 = vpop.f32.mrf.mxu1 }
 0x55d   : > { %v3375_v0 = vadd.f32 %v3374_v25, %v3285_v11  ;;  %v13380_v11 = vld [vmem:[#allocation35_spill] sm:$0xff] }
 0x55e   : > { %v11241_v15 = vadd.f32 %v3551_v24, %v10771_v51  ;;  %v8208_v51 = vld [vmem:[%s13016_s1 + $0x2d4] sm:$0xf0] }
 0x55f   : > { %v11244_v57 = vadd.f32 %v3375_v0, %v10774_v22  ;;  %v7663_v37 = vor.u32 %v8208_v51, %v7662_v13  ;;  %v13381_v13 = vld [vmem:[#allocation36_spill] sm:$0xff] }
 0x561   : > { %4814 = vmatpush.bf16.msra.mxu1 %v7663_v37  ;;  %v7592_v37 = vld [vmem:[%s13016_s1 + $0x248] sm:$0xf0] }
 0x562   : > { %v3463_v22 = vpop.f32.mrf.mxu2 }
 0x563   : > { %v3552_v33 = vpop.f32.mrf.mxu3  ;;  %v3288_v52 = vpop.f32.mrf.mxu0 }
 0x564   : > { %v3553_v60 = vadd.f32 %v3552_v33, %v3463_v22  ;;  %v3377_v48 = vpop.f32.mrf.mxu1  ;;  %v8205_v22 = vld [vmem:[%s13016_s1 + $0x2c4] sm:$0xf] }
 0x565   : > { %v3378_v5 = vadd.f32 %v3377_v48, %v3288_v52  ;;  %v7656_v52 = vld [vmem:[%s13016_s1 + $0x2c8] sm:$0xf0] }
 0x566   : > { %v11259_v63 = vadd.f32 %v3553_v60, %v10789_v30  ;;  %3891 = vmatmul.bf16.gmra.mxu0 %v10361_v21  ;;  %v7659_v60 = vor.u32 %v8205_v22, %v7656_v52 }
 0x567   : > { %v11263_v3 = vadd.f32 %v3378_v5, %v10793_v53  ;;  %3980 = vmatmul.bf16.gmra.mxu1 %v10363_v32  ;;  %4069 = vmatmul.bf16.gmra.mxu2 %v10361_v21 }
 0x568   : > { %4158 = vmatmul.bf16.gmra.mxu3 %v10363_v32 }
 0x569   : > { %4993 = vmatpush.bf16.msra.mxu3 %v7659_v60 }
 0x56a   : > { %v3466_v7 = vpop.f32.mrf.mxu2 }
 0x56b   : > { %v3555_v62 = vpop.f32.mrf.mxu3  ;;  %v3290_v23 = vpop.f32.mrf.mxu0 }
 0x56c   : > { %v3556_v43 = vadd.f32 %v3555_v62, %v3466_v7  ;;  %v3379_v49 = vpop.f32.mrf.mxu1 }
 0x56d   : > { %v3380_v61 = vadd.f32 %v3379_v49, %v3290_v23  ;;  %v13383_v23 = vld [vmem:[#allocation38_spill] sm:$0xff]  ;;  %v13384_v49 = vld [vmem:[#allocation39_spill] sm:$0xff] }
 0x56e   : > { %v11269_v30 = vadd.f32 %v3556_v43, %v10799_v2  ;;  %v8189_v2 = vld [vmem:[%s13016_s1 + $0x244] sm:$0xf] }
 0x56f   : > { %v11272_v24 = vadd.f32 %v3380_v61, %v13380_v11  ;;  %v7595_v33 = vor.u32 %v8189_v2, %v7592_v37  ;;  %v7590_v11 = vld [vmem:[%s13016_s1 + $0x240] sm:$0xf] }
 0x571   : > { %4904 = vmatpush.bf16.msra.mxu2 %v7595_v33  ;;  %v13385_v33 = vld [vmem:[#allocation40_spill] sm:$0xff] }
 0x572   : > { %v3468_v53 = vpop.f32.mrf.mxu2 }
 0x573   : > { %v3557_v25 = vpop.f32.mrf.mxu3  ;;  %v3293_v0 = vpop.f32.mrf.mxu0 }
 0x574   : > { %v3558_v35 = vadd.f32 %v3557_v25, %v3468_v53  ;;  %v3382_v8 = vpop.f32.mrf.mxu1  ;;  %v8190_v53 = vld [vmem:[%s13016_s1 + $0x244] sm:$0xf0]  ;;  %v7654_v25 = vld [vmem:[%s13016_s1 + $0x2c0] sm:$0xf] }
 0x575   : > { %v3383_v21 = vadd.f32 %v3382_v8, %v3293_v0  ;;  %v7591_v0 = vor.u32 %v8190_v53, %v7590_v11 }
 0x576   : > { %v11275_v32 = vadd.f32 %v3558_v35, %v13381_v13  ;;  %3896 = vmatmul.bf16.gmra.mxu0 %v10388_v42  ;;  %v8206_v35 = vld [vmem:[%s13016_s1 + $0x2c4] sm:$0xf0] }
 0x577   : > { %v11279_v51 = vadd.f32 %v3383_v21, %v13382_v39  ;;  %3985 = vmatmul.bf16.gmra.mxu1 %v10390_v20  ;;  %4074 = vmatmul.bf16.gmra.mxu2 %v10388_v42  ;;  %v7655_v8 = vor.u32 %v8206_v35, %v7654_v25 }
 0x578   : > { %4163 = vmatmul.bf16.gmra.mxu3 %v10390_v20  ;;  %4726 = vmatpush.bf16.msra.mxu0 %v7591_v0 }
 0x579   : > { %4815 = vmatpush.bf16.msra.mxu1 %v7655_v8 }
 0x57a   : > { %v3471_v42 = vpop.f32.mrf.mxu2 }
 0x57b   : > { %v3560_v20 = vpop.f32.mrf.mxu3  ;;  %v3295_v48 = vpop.f32.mrf.mxu0 }
 0x57c   : > { %v3561_v5 = vadd.f32 %v3560_v20, %v3471_v42  ;;  %v3384_v7 = vpop.f32.mrf.mxu1  ;;  %v13386_v42 = vld [vmem:[#allocation41_spill] sm:$0xff] }
 0x57d   : > { %v3385_v62 = vadd.f32 %v3384_v7, %v3295_v48 }
 0x57e   : > { %v11297_v43 = vadd.f32 %v3561_v5, %v13383_v23 }
 0x57f   : > { %v11300_v61 = vadd.f32 %v3385_v62, %v13384_v49 }
 0x582   : > { %v3473_v21 = vpop.f32.mrf.mxu2 }
 0x583   : > { %v3562_v13 = vpop.f32.mrf.mxu3  ;;  %v3298_v39 = vpop.f32.mrf.mxu0 }
 0x584   : > { %v3563_v2 = vadd.f32 %v3562_v13, %v3473_v21  ;;  %v3387_v37 = vpop.f32.mrf.mxu1  ;;  %v13387_v21 = vld [vmem:[#allocation42_spill] sm:$0xff]  ;;  %v13388_v13 = vld [vmem:[#allocation43_spill] sm:$0xff] }
 0x585   : > { %v3388_v22 = vadd.f32 %v3387_v37, %v3298_v39 }
 0x586   : > { %v11315_v52 = vadd.f32 %v3563_v2, %v13385_v33  ;;  %3901 = vmatmul.bf16.gmra.mxu0 %v10439_v28  ;;  %v8203_v2 = vld [vmem:[%s13016_s1 + $0x2b4] sm:$0xf] }
 0x587   : > { %v11319_v60 = vadd.f32 %v3388_v22, %v13386_v42  ;;  %3990 = vmatmul.bf16.gmra.mxu1 %v10441_v59  ;;  %4079 = vmatmul.bf16.gmra.mxu2 %v10439_v28  ;;  %v7648_v22 = vld [vmem:[%s13016_s1 + $0x2b8] sm:$0xf0] }
 0x588   : > { %4168 = vmatmul.bf16.gmra.mxu3 %v10441_v59  ;;  %v7651_v33 = vor.u32 %v8203_v2, %v7648_v22 }
 0x58a   : > { %v3476_v20 = vpop.f32.mrf.mxu2  ;;  %4994 = vmatpush.bf16.msra.mxu3 %v7651_v33 }
 0x58b   : > { %v3565_v48 = vpop.f32.mrf.mxu3  ;;  %v3300_v5 = vpop.f32.mrf.mxu0 }
 0x58c   : > { %v3566_v7 = vadd.f32 %v3565_v48, %v3476_v20  ;;  %v3389_v62 = vpop.f32.mrf.mxu1 }
 0x58d   : > { %v3390_v23 = vadd.f32 %v3389_v62, %v3300_v5 }
 0x58e   : > { %v11325_v49 = vadd.f32 %v3566_v7, %v10855_v4  ;;  %v8187_v4 = vld [vmem:[%s13016_s1 + $0x234] sm:$0xf]  ;;  %v13389_v7 = vld [vmem:[#allocation44_spill] sm:$0xff] }
 0x58f   : > { %v11328_v11 = vadd.f32 %v3390_v23, %v10858_v19  ;;  %v7584_v19 = vld [vmem:[%s13016_s1 + $0x238] sm:$0xf0]  ;;  %v13390_v23 = vld [vmem:[#allocation45_spill] sm:$0xff] }
 0x590   : > { %v7587_v37 = vor.u32 %v8187_v4, %v7584_v19 }
 0x592   : > { %v3478_v53 = vpop.f32.mrf.mxu2  ;;  %4905 = vmatpush.bf16.msra.mxu2 %v7587_v37 }
 0x593   : > { %v3567_v25 = vpop.f32.mrf.mxu3  ;;  %v3303_v0 = vpop.f32.mrf.mxu0 }
 0x594   : > { %v3568_v35 = vadd.f32 %v3567_v25, %v3478_v53  ;;  %v3392_v8 = vpop.f32.mrf.mxu1  ;;  %v7582_v25 = vld [vmem:[%s13016_s1 + $0x230] sm:$0xf] }
 0x595   : > { %v3393_v28 = vadd.f32 %v3392_v8, %v3303_v0  ;;  %v8188_v0 = vld [vmem:[%s13016_s1 + $0x234] sm:$0xf0] }
 0x596   : > { %v11331_v59 = vadd.f32 %v3568_v35, %v13387_v21  ;;  %3906 = vmatmul.bf16.gmra.mxu0 %v10466_v1  ;;  %v7646_v35 = vld [vmem:[%s13016_s1 + $0x2b0] sm:$0xf]  ;;  %v7583_v8 = vor.u32 %v8188_v0, %v7582_v25 }
 0x597   : > { %v11335_v39 = vadd.f32 %v3393_v28, %v13388_v13  ;;  %3995 = vmatmul.bf16.gmra.mxu1 %v10468_v9  ;;  %4084 = vmatmul.bf16.gmra.mxu2 %v10466_v1  ;;  %v8204_v28 = vld [vmem:[%s13016_s1 + $0x2b4] sm:$0xf0] }
 0x598   : > { %4173 = vmatmul.bf16.gmra.mxu3 %v10468_v9  ;;  %v7647_v21 = vor.u32 %v8204_v28, %v7646_v35  ;;  %4727 = vmatpush.bf16.msra.mxu0 %v7583_v8  ;;  %v13393_v35 = vld [vmem:[#allocation48_spill] sm:$0xff] }
 0x59a   : > { %v3481_v1 = vpop.f32.mrf.mxu2  ;;  %4816 = vmatpush.bf16.msra.mxu1 %v7647_v21 }
 0x59b   : > { %v3570_v9 = vpop.f32.mrf.mxu3  ;;  %v3305_v42 = vpop.f32.mrf.mxu0 }
 0x59c   : > { %v3571_v20 = vadd.f32 %v3570_v9, %v3481_v1  ;;  %v3394_v48 = vpop.f32.mrf.mxu1  ;;  %v13391_v1 = vld [vmem:[#allocation46_spill] sm:$0xff]  ;;  %v13392_v9 = vld [vmem:[#allocation47_spill] sm:$0xff] }
 0x59d   : > { %v3395_v5 = vadd.f32 %v3394_v48, %v3305_v42 }
 0x59e   : > { %v11353_v62 = vadd.f32 %v3571_v20, %v13389_v7 }
 0x59f   : > { %v11356_v53 = vadd.f32 %v3395_v5, %v13390_v23 }
 0x5a2   : > { %v3483_v13 = vpop.f32.mrf.mxu2 }
 0x5a3   : > { %v3572_v4 = vpop.f32.mrf.mxu3  ;;  %v3308_v19 = vpop.f32.mrf.mxu0 }
 0x5a4   : > { %v3573_v2 = vadd.f32 %v3572_v4, %v3483_v13  ;;  %v3397_v37 = vpop.f32.mrf.mxu1 }
 0x5a5   : > { %v3398_v22 = vadd.f32 %v3397_v37, %v3308_v19  ;;  %v13395_v37 = vld [vmem:[#allocation19_spill] sm:$0xff] }
 0x5a6   : > { %v11371_v33 = vadd.f32 %v3573_v2, %v13391_v1  ;;  %3911 = vmatmul.bf16.gmra.mxu0 %v10517_v31  ;;  %v13394_v2 = vld [vmem:[#allocation49_spill] sm:$0xff] }
 0x5a7   : > { %v11375_v42 = vadd.f32 %v3398_v22, %v13392_v9  ;;  %4000 = vmatmul.bf16.gmra.mxu1 %v10519_v27  ;;  %4089 = vmatmul.bf16.gmra.mxu2 %v10517_v31  ;;  %v13396_v22 = vld [vmem:[#allocation10_spill] sm:$0xff]  ;;  %v13398_v9 = vld [vmem:[#allocation7_spill] sm:$0xff] }
 0x5a8   : > { %4178 = vmatmul.bf16.gmra.mxu3 %v10519_v27 }
 0x5aa   : > { %v3486_v20 = vpop.f32.mrf.mxu2 }
 0x5ab   : > { %v3575_v48 = vpop.f32.mrf.mxu3  ;;  %v3310_v5 = vpop.f32.mrf.mxu0 }
 0x5ac   : > { %v3576_v7 = vadd.f32 %v3575_v48, %v3486_v20  ;;  %v3399_v23 = vpop.f32.mrf.mxu1  ;;  %v7576_v20 = vld [vmem:[%s13016_s1 + $0x228] sm:$0xf0]  ;;  %v8201_v48 = vld [vmem:[%s13016_s1 + $0x2a4] sm:$0xf] }
 0x5ad   : > { %v3400_v25 = vadd.f32 %v3399_v23, %v3310_v5 }
 0x5ae   : > { %v11381_v0 = vadd.f32 %v3576_v7, %v10911_v18  ;;  %v8185_v18 = vld [vmem:[%s13016_s1 + $0x224] sm:$0xf]  ;;  %v7640_v7 = vld [vmem:[%s13016_s1 + $0x2a8] sm:$0xf0] }
 0x5af   : > { %v11384_v8 = vadd.f32 %v3400_v25, %v13393_v35  ;;  %v7579_v5 = vor.u32 %v8185_v18, %v7576_v20  ;;  %v7643_v25 = vor.u32 %v8201_v48, %v7640_v7  ;;  %v7638_v18 = vld [vmem:[%s13016_s1 + $0x2a0] sm:$0xf]  ;;  %v8202_v48 = vld [vmem:[%s13016_s1 + $0x2a4] sm:$0xf0] }
 0x5b1   : > { %4906 = vmatpush.bf16.msra.mxu2 %v7579_v5  ;;  %4995 = vmatpush.bf16.msra.mxu3 %v7643_v25  ;;  %v7639_v5 = vor.u32 %v8202_v48, %v7638_v18 }
 0x5b2   : > { %v3488_v28 = vpop.f32.mrf.mxu2 }
 0x5b3   : > { %v3577_v21 = vpop.f32.mrf.mxu3  ;;  %v3877_v13 = vpop.f32.mrf.mxu0  ;;  %4817 = vmatpush.bf16.msra.mxu1 %v7639_v5 }
 0x5b4   : > { %v3578_v4 = vadd.f32 %v3577_v21, %v3488_v28  ;;  %v3966_v19 = vpop.f32.mrf.mxu1 }
 0x5b5   : > { %v3967_v31 = vadd.f32 %v3966_v19, %v3877_v13  ;;  %v13399_v19 = vld [vmem:[#allocation50_spill] sm:$0xff] }
 0x5b6   : > { %v11387_v27 = vadd.f32 %v3578_v4, %v13394_v2  ;;  %3916 = vmatmul.bf16.gmra.mxu0 %v13395_v37  ;;  %v13401_v2 = vld [vmem:[#allocation11_spill] sm:$0xff] }
 0x5b7   : > { %v11391_v1 = vadd.f32 %v3967_v31, %v13396_v22  ;;  %4005 = vmatmul.bf16.gmra.mxu1 %v13398_v9  ;;  %4094 = vmatmul.bf16.gmra.mxu2 %v13395_v37  ;;  %v7574_v22 = vld [vmem:[%s13016_s1 + $0x220] sm:$0xf] }
 0x5b8   : > { %4183 = vmatmul.bf16.gmra.mxu3 %v13398_v9  ;;  %v8186_v9 = vld [vmem:[%s13016_s1 + $0x224] sm:$0xf0] }
 0x5b9   : > { %13397 = vst [vmem:[#allocation27_spill] sm:$0xff] %v11391_v1  ;;  %v7575_v20 = vor.u32 %v8186_v9, %v7574_v22  ;;  %v13408_v9 = vld [vmem:[#allocation24_spill] sm:$0xff]  ;;  %v13414_v1 = vld [vmem:[#allocation29_spill] sm:$0xff] }
 0x5ba   : > { %v4055_v23 = vpop.f32.mrf.mxu2 }
 0x5bb   : > { %v4144_v35 = vpop.f32.mrf.mxu3  ;;  %v3879_v28 = vpop.f32.mrf.mxu0  ;;  %4728 = vmatpush.bf16.msra.mxu0 %v7575_v20 }
 0x5bc   : > { %v4145_v21 = vadd.f32 %v4144_v35, %v4055_v23  ;;  %v3968_v13 = vpop.f32.mrf.mxu1 }
 0x5bd   : > { %v3969_v4 = vadd.f32 %v3968_v13, %v3879_v28  ;;  %v13403_v13 = vld [vmem:[#allocation51_spill] sm:$0xff] }
 0x5be   : > { %v11409_v31 = vadd.f32 %v4145_v21, %v13399_v19  ;;  %v13405_v19 = vld [vmem:[#allocation23_spill] sm:$0xff] }
 0x5bf   : > { %v11412_v37 = vadd.f32 %v3969_v4, %v13401_v2  ;;  %v13406_v2 = vld [vmem:[#allocation52_spill] sm:$0xff] }
 0x5c0   : > { %13400 = vst [vmem:[#allocation28_spill] sm:$0xff] %v11409_v31  ;;  %v13412_v31 = vld [vmem:[#allocation54_spill] sm:$0xff] }
 0x5c1   : > { %13402 = vst [vmem:[#allocation31_spill] sm:$0xff] %v11412_v37 }
 0x5c2   : > { %v4057_v7 = vpop.f32.mrf.mxu2 }
 0x5c3   : > { %v4146_v23 = vpop.f32.mrf.mxu3  ;;  %v3882_v25 = vpop.f32.mrf.mxu0 }
 0x5c4   : > { %v4147_v35 = vadd.f32 %v4146_v23, %v4057_v7  ;;  %v3971_v28 = vpop.f32.mrf.mxu1 }
 0x5c5   : > { %v3972_v21 = vadd.f32 %v3971_v28, %v3882_v25  ;;  %v13409_v25 = vld [vmem:[#allocation53_spill] sm:$0xff]  ;;  %v13410_v28 = vld [vmem:[#allocation16_spill] sm:$0xff] }
 0x5c6   : > { %v11427_v4 = vadd.f32 %v4147_v35, %v13403_v13  ;;  %3921 = vmatmul.bf16.gmra.mxu0 %v13405_v19 }
 0x5c7   : > { %v11431_v22 = vadd.f32 %v3972_v21, %v13406_v2  ;;  %4010 = vmatmul.bf16.gmra.mxu1 %v13408_v9  ;;  %4099 = vmatmul.bf16.gmra.mxu2 %v13405_v19 }
 0x5c8   : > { %13404 = vst [vmem:[#allocation32_spill] sm:$0xff] %v11427_v4  ;;  %4188 = vmatmul.bf16.gmra.mxu3 %v13408_v9 }
 0x5c9   : > { %13407 = vst [vmem:[#allocation35_spill] sm:$0xff] %v11431_v22 }
 0x5ca   : > { %v4060_v18 = vpop.f32.mrf.mxu2 }
 0x5cb   : > { %v4149_v20 = vpop.f32.mrf.mxu3  ;;  %v3884_v48 = vpop.f32.mrf.mxu0 }
 0x5cc   : > { %v4150_v5 = vadd.f32 %v4149_v20, %v4060_v18  ;;  %v3973_v7 = vpop.f32.mrf.mxu1  ;;  %v13415_v18 = vld [vmem:[#allocation17_spill] sm:$0xff] }
 0x5cd   : > { %v3974_v23 = vadd.f32 %v3973_v7, %v3884_v48  ;;  %v13417_v48 = vld [vmem:[#allocation30_spill] sm:$0xff] }
 0x5ce   : > { %v11437_v35 = vadd.f32 %v4150_v5, %v13409_v25  ;;  %v8183_v5 = vld [vmem:[%s13016_s1 + $0x214] sm:$0xf] }
 0x5cf   : > { %v11440_v13 = vadd.f32 %v3974_v23, %v13410_v28 }
 0x5d1   : > { %13411 = vst [vmem:[#allocation36_spill] sm:$0xff] %v11440_v13  ;;  %v13432_v13 = vld [vmem:[#allocation14_spill] sm:$0xff] }
 0x5d2   : > { %v4062_v21 = vpop.f32.mrf.mxu2 }
 0x5d3   : > { %v4151_v2 = vpop.f32.mrf.mxu3  ;;  %v3887_v22 = vpop.f32.mrf.mxu0 }
 0x5d4   : > { %v4152_v4 = vadd.f32 %v4151_v2, %v4062_v21  ;;  %v3976_v37 = vpop.f32.mrf.mxu1 }
 0x5d5   : > { %v3977_v19 = vadd.f32 %v3976_v37, %v3887_v22  ;;  %v8199_v37 = vld [vmem:[%s13016_s1 + $0x294] sm:$0xf]  ;;  %v7632_v22 = vld [vmem:[%s13016_s1 + $0x298] sm:$0xf0] }
 0x5d6   : > { %v11443_v9 = vadd.f32 %v4152_v4, %v13412_v31  ;;  %3926 = vmatmul.bf16.gmra.mxu0 %v13414_v1  ;;  %v7568_v31 = vld [vmem:[%s13016_s1 + $0x218] sm:$0xf0]  ;;  %v7635_v7 = vor.u32 %v8199_v37, %v7632_v22  ;;  %v7630_v37 = vld [vmem:[%s13016_s1 + $0x290] sm:$0xf]  ;;  %v8200_v22 = vld [vmem:[%s13016_s1 + $0x294] sm:$0xf0] }
 0x5d7   : > { %v11447_v20 = vadd.f32 %v3977_v19, %v13415_v18  ;;  %4015 = vmatmul.bf16.gmra.mxu1 %v13417_v48  ;;  %4104 = vmatmul.bf16.gmra.mxu2 %v13414_v1  ;;  %v7571_v4 = vor.u32 %v8183_v5, %v7568_v31  ;;  %v13418_v19 = vld [vmem:[#allocation9_spill] sm:$0xff]  ;;  %v7566_v5 = vld [vmem:[%s13016_s1 + $0x210] sm:$0xf]  ;;  %v8184_v31 = vld [vmem:[%s13016_s1 + $0x214] sm:$0xf0] }
 0x5d8   : > { %13413 = vst [vmem:[#allocation37_spill] sm:$0xff] %v11443_v9  ;;  %4193 = vmatmul.bf16.gmra.mxu3 %v13417_v48  ;;  %v13420_v48 = vld [vmem:[#allocation55_spill] sm:$0xff] }
 0x5d9   : > { %13416 = vst [vmem:[#allocation38_spill] sm:$0xff] %v11447_v20  ;;  %4907 = vmatpush.bf16.msra.mxu2 %v7571_v4  ;;  %4996 = vmatpush.bf16.msra.mxu3 %v7635_v7  ;;  %v7567_v4 = vor.u32 %v8184_v31, %v7566_v5  ;;  %v13427_v31 = vld [vmem:[#allocation34_spill] sm:$0xff] }
 0x5da   : > { %v4065_v1 = vpop.f32.mrf.mxu2 }
 0x5db   : > { %v4154_v23 = vpop.f32.mrf.mxu3  ;;  %v3889_v25 = vpop.f32.mrf.mxu0  ;;  %4729 = vmatpush.bf16.msra.mxu0 %v7567_v4 }
 0x5dc   : > { %v4155_v28 = vadd.f32 %v4154_v23, %v4065_v1  ;;  %v3978_v21 = vpop.f32.mrf.mxu1  ;;  %v7631_v1 = vor.u32 %v8200_v22, %v7630_v37 }
 0x5dd   : > { %v3979_v2 = vadd.f32 %v3978_v21, %v3889_v25 }
 0x5de   : > { %v11465_v18 = vadd.f32 %v4155_v28, %v13418_v19  ;;  %4818 = vmatpush.bf16.msra.mxu1 %v7631_v1  ;;  %v13422_v19 = vld [vmem:[#allocation12_spill] sm:$0xff] }
 0x5df   : > { %v11468_v20 = vadd.f32 %v3979_v2, %v13420_v48 }
 0x5e0   : > { %13419 = vst [vmem:[#allocation39_spill] sm:$0xff] %v11465_v18  ;;  %v13425_v18 = vld [vmem:[#allocation13_spill] sm:$0xff] }
 0x5e1   : > { %13421 = vst [vmem:[#allocation40_spill] sm:$0xff] %v11468_v20  ;;  %v13424_v20 = vld [vmem:[#allocation33_spill] sm:$0xff] }
 0x5e2   : > { %v4067_v7 = vpop.f32.mrf.mxu2 }
 0x5e3   : > { %v4156_v23 = vpop.f32.mrf.mxu3  ;;  %v3892_v25 = vpop.f32.mrf.mxu0 }
 0x5e4   : > { %v4157_v28 = vadd.f32 %v4156_v23, %v4067_v7  ;;  %v3981_v21 = vpop.f32.mrf.mxu1 }
 0x5e5   : > { %v3982_v2 = vadd.f32 %v3981_v21, %v3892_v25  ;;  %v13428_v25 = vld [vmem:[#allocation5_spill] sm:$0xff]  ;;  %v13430_v21 = vld [vmem:[#allocation6_spill] sm:$0xff] }
 0x5e6   : > { %v11483_v48 = vadd.f32 %v4157_v28, %v13422_v19  ;;  %3931 = vmatmul.bf16.gmra.mxu0 %v13424_v20 }
 0x5e7   : > { %v11487_v5 = vadd.f32 %v3982_v2, %v13425_v18  ;;  %4020 = vmatmul.bf16.gmra.mxu1 %v13427_v31  ;;  %4109 = vmatmul.bf16.gmra.mxu2 %v13424_v20 }
 0x5e8   : > { %13423 = vst [vmem:[#allocation41_spill] sm:$0xff] %v11483_v48  ;;  %4198 = vmatmul.bf16.gmra.mxu3 %v13427_v31 }
 0x5e9   : > { %13426 = vst [vmem:[#allocation42_spill] sm:$0xff] %v11487_v5 }
 0x5ea   : > { %v4070_v37 = vpop.f32.mrf.mxu2 }
 0x5eb   : > { %v4159_v4 = vpop.f32.mrf.mxu3  ;;  %v3894_v22 = vpop.f32.mrf.mxu0 }
 0x5ec   : > { %v4160_v1 = vadd.f32 %v4159_v4, %v4070_v37  ;;  %v3983_v7 = vpop.f32.mrf.mxu1  ;;  %v13434_v37 = vld [vmem:[#allocation15_spill] sm:$0xff] }
 0x5ed   : > { %v3984_v23 = vadd.f32 %v3983_v7, %v3894_v22  ;;  %v8181_v22 = vld [vmem:[%s13016_s1 + $0x204] sm:$0xf] }
 0x5ee   : > { %v11493_v28 = vadd.f32 %v4160_v1, %v13428_v25 }
 0x5ef   : > { %v11496_v19 = vadd.f32 %v3984_v23, %v13430_v21 }
 0x5f0   : > { %13429 = vst [vmem:[#allocation43_spill] sm:$0xff] %v11493_v28 }
 0x5f1   : > { %13431 = vst [vmem:[#allocation44_spill] sm:$0xff] %v11496_v19 }
 0x5f2   : > { %v4072_v18 = vpop.f32.mrf.mxu2 }
 0x5f3   : > { %v4161_v2 = vpop.f32.mrf.mxu3  ;;  %v3897_v5 = vpop.f32.mrf.mxu0 }
 0x5f4   : > { %v4162_v48 = vadd.f32 %v4161_v2, %v4072_v18  ;;  %v3986_v9 = vpop.f32.mrf.mxu1  ;;  %v13436_v18 = vld [vmem:[#allocation18_spill] sm:$0xff] }
 0x5f5   : > { %v3987_v20 = vadd.f32 %v3986_v9, %v3897_v5  ;;  %v8197_v9 = vld [vmem:[%s13016_s1 + $0x284] sm:$0xf] }
 0x5f6   : > { %v11499_v31 = vadd.f32 %v4162_v48, %v13432_v13  ;;  %3936 = vmatmul.bf16.gmra.mxu0 %v11092_v14  ;;  %v7560_v13 = vld [vmem:[%s13016_s1 + $0x208] sm:$0xf0] }
 0x5f7   : > { %v11503_v4 = vadd.f32 %v3987_v20, %v13434_v37  ;;  %4025 = vmatmul.bf16.gmra.mxu1 %v11094_v12  ;;  %4114 = vmatmul.bf16.gmra.mxu2 %v11092_v14  ;;  %v7563_v48 = vor.u32 %v8181_v22, %v7560_v13  ;;  %v7624_v14 = vld [vmem:[%s13016_s1 + $0x288] sm:$0xf0]  ;;  %v13438_v20 = vld [vmem:[#allocation8_spill] sm:$0xff]  ;;  %v7558_v22 = vld [vmem:[%s13016_s1 + $0x200] sm:$0xf] }
 0x5f8   : > { %13433 = vst [vmem:[#allocation45_spill] sm:$0xff] %v11499_v31  ;;  %4203 = vmatmul.bf16.gmra.mxu3 %v11094_v12  ;;  %v7627_v12 = vor.u32 %v8197_v9, %v7624_v14  ;;  %v8182_v13 = vld [vmem:[%s13016_s1 + $0x204] sm:$0xf0]  ;;  %v7622_v9 = vld [vmem:[%s13016_s1 + $0x280] sm:$0xf] }
 0x5f9   : > { %13435 = vst [vmem:[#allocation46_spill] sm:$0xff] %v11503_v4  ;;  %4908 = vmatpush.bf16.msra.mxu2 %v7563_v48  ;;  %v216_v48 = vld [vmem:[%s8751_s6 + $0x1b8] sm:$0xff]  ;;  %v7559_v14 = vor.u32 %v8182_v13, %v7558_v22  ;;  %v13442_v22 = vld [vmem:[#allocation21_spill] sm:$0xff] }
 0x5fa   : > { %v4075_v5 = vpop.f32.mrf.mxu2  ;;  %4997 = vmatpush.bf16.msra.mxu3 %v7627_v12  ;;  %v13440_v4 = vld [vmem:[#allocation20_spill] sm:$0xff] }
 0x5fb   : > { %v4164_v1 = vpop.f32.mrf.mxu3  ;;  %v3899_v7 = vpop.f32.mrf.mxu0  ;;  %4730 = vmatpush.bf16.msra.mxu0 %v7559_v14 }
 0x5fc   : > { %v4165_v23 = vadd.f32 %v4164_v1, %v4075_v5  ;;  %v3988_v25 = vpop.f32.mrf.mxu1  ;;  %v8198_v5 = vld [vmem:[%s13016_s1 + $0x284] sm:$0xf0] }
 0x5fd   : > { %v3989_v21 = vadd.f32 %v3988_v25, %v3899_v7  ;;  %v7623_v12 = vor.u32 %v8198_v5, %v7622_v9  ;;  %v3648_v25 = vrot.slane %v216_v48, 5 }
 0x5fe   : > { %v11521_v2 = vadd.f32 %v4165_v23, %v13436_v18 }
 0x5ff   : > { %v11524_v37 = vadd.f32 %v3989_v21, %v13438_v20  ;;  %4819 = vmatpush.bf16.msra.mxu1 %v7623_v12  ;;  %v215_v20 = vld [vmem:[%s8751_s6 + $0x1b0] sm:$0xff]  ;;  %v3650_v48 = vrot.slane %v3648_v25, 4 }
 0x600   : > { %13437 = vst [vmem:[#allocation47_spill] sm:$0xff] %v11521_v2  ;;  %v7410_v9 = vrot.slane %v215_v20, 9 }
 0x601   : > { %13439 = vst [vmem:[#allocation48_spill] sm:$0xff] %v11524_v37  ;;  %v217_v37 = vld [vmem:[%s8751_s6 + $0x1c0] sm:$0xff] }
 0x602   : > { %v4077_v1 = vpop.f32.mrf.mxu2  ;;  %v3651_v14 = vrot.slane %v217_v37, 5 }
 0x603   : > { %v4166_v7 = vpop.f32.mrf.mxu3  ;;  %v3902_v23 = vpop.f32.mrf.mxu0 }
 0x604   : > { %v4167_v21 = vadd.f32 %v4166_v7, %v4077_v1  ;;  %v3991_v18 = vpop.f32.mrf.mxu1 }
 0x605   : > { %v3992_v2 = vadd.f32 %v3991_v18, %v3902_v23  ;;  %v13444_v18 = vld [vmem:[#allocation22_spill] sm:$0xff] }
 0x606   : > { %v11542_v31 = vadd.f32 %v4167_v21, %v13440_v4  ;;  %3941 = vmatmul.bf16.gmra.mxu0 %v11142_v41  ;;  %v3649_v4 = vsel %vm10077_vm2, %v7410_v9, %v3648_v25 }
 0x607   : > { %v11546_v13 = vadd.f32 %v3992_v2, %v13442_v22  ;;  %4030 = vmatmul.bf16.gmra.mxu1 %v11144_v44  ;;  %4119 = vmatmul.bf16.gmra.mxu2 %v11142_v41  ;;  %v3652_v2 = vsel %vm10077_vm2, %v3650_v48, %v3651_v14  ;;  %v3692_v37 = vunpack.c.l.b16 %v3649_v4  ;;  %v3693_v22 = vunpack.c.h.b16 %v3649_v4 }
 0x608   : > { %13441 = vst [vmem:[#allocation49_spill] sm:$0xff] %v11542_v31  ;;  %4208 = vmatmul.bf16.gmra.mxu3 %v11144_v44  ;;  %v3694_v20 = vunpack.c.l.b16 %v3652_v2  ;;  %v219_v31 = vld [vmem:[%s8751_s6 + $0x1d0] sm:$0xff] }
 0x609   : > { %13443 = vst [vmem:[#allocation19_spill] sm:$0xff] %v11546_v13  ;;  %v3695_v13 = vunpack.c.h.b16 %v3652_v2 }
 0x60a   : > { %v4080_v5 = vpop.f32.mrf.mxu2  ;;  %v3700_v9 = vpack.c.b16 %v3694_v20, %v3692_v37  ;;  %v7810_v20 = vld [vmem:[%s13016_s1 + $0x5f8] sm:$0xf0] }
 0x60b   : > { %v4169_v12 = vpop.f32.mrf.mxu3  ;;  %v3904_v1 = vpop.f32.mrf.mxu0  ;;  %v3701_v14 = vpack.c.b16 %v3695_v13, %v3693_v22  ;;  %v8243_v13 = vld [vmem:[%s13016_s1 + $0x5f4] sm:$0xf] }
 0x60c   : > { %v4170_v7 = vadd.f32 %v4169_v12, %v4080_v5  ;;  %v3993_v23 = vpop.f32.mrf.mxu1  ;;  %v3655_v5 = vrot.slane %v219_v31, 5  ;;  %v7746_v31 = vld [vmem:[%s13016_s1 + $0x578] sm:$0xf0] }
 0x60d   : > { %v3994_v21 = vadd.f32 %v3993_v23, %v3904_v1  ;;  %v218_v23 = vld [vmem:[%s8751_s6 + $0x1c8] sm:$0xff] }
 0x60e   : > { %v11556_v41 = vadd.f32 %v4170_v7, %v13444_v18  ;;  %v220_v7 = vld [vmem:[%s8751_s6 + $0x1d8] sm:$0xff]  ;;  %v7411_v4 = vrot.slane %v218_v23, 9  ;;  %v3657_v2 = vrot.slane %v3655_v5, 4 }
 0x60f   : > { %v11559_v44 = vadd.f32 %v3994_v21, %v11089_v26  ;;  %v13447_v26 = vld [vmem:[#allocation26_spill] sm:$0xff]  ;;  %v3658_v37 = vrot.slane %v220_v7, 5 }
 0x610   : > { %13445 = vst [vmem:[#allocation10_spill] sm:$0xff] %v11556_v41  ;;  %v13446_v41 = vld [vmem:[#allocation25_spill] sm:$0xff] }
 0x612   : > { %v4082_v25 = vpop.f32.mrf.mxu2 }
 0x613   : > { %v4171_v19 = vpop.f32.mrf.mxu3  ;;  %v3907_v48 = vpop.f32.mrf.mxu0 }
 0x614   : > { %v4172_v12 = vadd.f32 %v4171_v19, %v4082_v25  ;;  %v3996_v1 = vpop.f32.mrf.mxu1  ;;  %v8227_v19 = vld [vmem:[%s13016_s1 + $0x574] sm:$0xf]  ;;  %v7813_v25 = vor.u32 %v8243_v13, %v7810_v20 }
 0x615   : > { %v3997_v18 = vadd.f32 %v3996_v1, %v3907_v48 }
 0x616   : > { %v11565_v28 = vadd.f32 %v4172_v12, %v13446_v41  ;;  %3946 = vmatmul.bf16.gmra.mxu0 %v3700_v9  ;;  %v7749_v41 = vor.u32 %v8227_v19, %v7746_v31  ;;  %v3659_v12 = vsel %vm10077_vm2, %v3657_v2, %v3658_v37  ;;  %5632 = vmatpush.bf16.msrb.mxu3 %v7813_v25 }
 0x617   : > { %v11568_v21 = vadd.f32 %v3997_v18, %v13447_v26  ;;  %4035 = vmatmul.bf16.gmra.mxu1 %v3701_v14  ;;  %4124 = vmatmul.bf16.gmra.mxu2 %v3700_v9  ;;  %v3698_v19 = vunpack.c.l.b16 %v3659_v12  ;;  %v3699_v20 = vunpack.c.h.b16 %v3659_v12 }
 0x618   : > { %4213 = vmatmul.bf16.gmra.mxu3 %v3701_v14  ;;  %v3656_v14 = vsel %vm10077_vm2, %v7411_v4, %v3655_v5  ;;  %5543 = vmatpush.bf16.msrb.mxu2 %v7749_v41  ;;  %v8228_v5 = vld [vmem:[%s13016_s1 + $0x574] sm:$0xf0] }
 0x619   : > { %v3696_v26 = vunpack.c.l.b16 %v3656_v14  ;;  %v3697_v13 = vunpack.c.h.b16 %v3656_v14  ;;  %v7745_v4 = vor.u32 %v8228_v5, %v7744_v47  ;;  %v8338_v47 = vld [vmem:[%s8751_s6 + $0x10] sm:$0xff] }
 0x61a   : > { %v4085_v22 = vpop.f32.mrf.mxu2  ;;  %v4296_v5 = vrot.slane %v8338_v47, 6 }
 0x61b   : > { %v4174_v9 = vpop.f32.mrf.mxu3  ;;  %v3909_v48 = vpop.f32.mrf.mxu0  ;;  %v3702_v41 = vpack.c.b16 %v3698_v19, %v3696_v26  ;;  %5365 = vmatpush.bf16.msrb.mxu0 %v7745_v4  ;;  %v8337_v19 = vld [vmem:[%s8751_s6] sm:$0xff] }
 0x61c   : > { %v4175_v1 = vadd.f32 %v4174_v9, %v4085_v22  ;;  %v3998_v23 = vpop.f32.mrf.mxu1  ;;  %v3703_v9 = vpack.c.b16 %v3699_v20, %v3697_v13  ;;  %v7540_v13 = vrot.slane %v8337_v19, 10 }
 0x61d   : > { %v3999_v7 = vadd.f32 %v3998_v23, %v3909_v48  ;;  %v8336_v48 = vld [vmem:[%s8751_s6 + $0x8] sm:$0xff] }
 0x61e   : > { %v11587_v18 = vadd.f32 %v4175_v1, %v11125_v34  ;;  %v7808_v34 = vld [vmem:[%s13016_s1 + $0x5f0] sm:$0xf]  ;;  %v4293_v14 = vrot.slane %v8336_v48, 6 }
 0x61f   : > { %v11590_v31 = vadd.f32 %v3999_v7, %v11128_v38  ;;  %v8244_v38 = vld [vmem:[%s13016_s1 + $0x5f4] sm:$0xf0] }
 0x620   : > { %v7809_v2 = vor.u32 %v8244_v38, %v7808_v34  ;;  %v4295_v20 = vrot.slane %v4293_v14, 4  ;;  %v13448_v34 = vmov 0 }
 0x621   : > { %v13449_v34 = vsel %vm11613_vm5, 4294967295, %v13448_v34 }
 0x622   : > { %v4087_v37 = vpop.f32.mrf.mxu2  ;;  %5454 = vmatpush.bf16.msrb.mxu1 %v7809_v2  ;;  %13450 = vst [vmem:[#allocation7_spill] sm:$0xff] %v13449_v34  ;;  %v4294_v2 = vsel %vm11613_vm5, %v7540_v13, %v4293_v14 }
 0x623   : > { %v4176_v22 = vpop.f32.mrf.mxu3  ;;  %v3912_v25 = vpop.f32.mrf.mxu0 }
 0x624   : > { %v4177_v12 = vadd.f32 %v4176_v22, %v4087_v37  ;;  %v4001_v1 = vpop.f32.mrf.mxu1 }
 0x625   : > { %v4002_v23 = vadd.f32 %v4001_v1, %v3912_v25  ;;  %v4436_v1 = vunpack.c.h.b16 %v4294_v2 }
 0x626   : > { %v11606_v7 = vadd.f32 %v4177_v12, %v11147_v6  ;;  %3951 = vmatmul.bf16.gmra.mxu0 %v3702_v41 }
 0x627   : > { %v11609_v26 = vadd.f32 %v4002_v23, %v11151_v50  ;;  %4040 = vmatmul.bf16.gmra.mxu1 %v3703_v9  ;;  %4129 = vmatmul.bf16.gmra.mxu2 %v3702_v41  ;;  %v4297_v50 = vsel %vm11613_vm5, %v4295_v20, %v4296_v5  ;;  %v8339_v5 = vld [vmem:[%s8751_s6 + $0x20] sm:$0xff] }
 0x628   : > { %4218 = vmatmul.bf16.gmra.mxu3 %v3703_v9  ;;  %v4435_v9 = vunpack.c.l.b16 %v4294_v2  ;;  %v4437_v48 = vunpack.c.l.b16 %v4297_v50  ;;  %v4438_v23 = vunpack.c.h.b16 %v4297_v50  ;;  %v8340_v2 = vld [vmem:[%s8751_s6 + $0x18] sm:$0xff] }
 0x629   : > { %v7541_v50 = vrot.slane %v8340_v2, 10 }
 0x62a   : > { %v4090_v4 = vpop.f32.mrf.mxu2  ;;  %v4499_v14 = vpack.c.b16 %v4437_v48, %v4435_v9  ;;  %v4500_v20 = vpack.c.b16 %v4438_v23, %v4436_v1  ;;  %v8225_v48 = vld [vmem:[%s13016_s1 + $0x564] sm:$0xf]  ;;  %v7802_v23 = vld [vmem:[%s13016_s1 + $0x5e8] sm:$0xf0] }
 0x62b   : > { %v4179_v38 = vpop.f32.mrf.mxu3  ;;  %v3914_v6 = vpop.f32.mrf.mxu0 }
 0x62c   : > { %v4180_v37 = vadd.f32 %v4179_v38, %v4090_v4  ;;  %v4003_v41 = vpop.f32.mrf.mxu1  ;;  %v4300_v4 = vrot.slane %v8339_v5, 6 }
 0x62d   : > { %v4004_v22 = vadd.f32 %v4003_v41, %v3914_v6 }
 0x62e   : > { %v11622_v25 = vadd.f32 %v4180_v37, %v11157_v29  ;;  %v4302_v41 = vrot.slane %v4300_v4, 4 }
 0x62f   : > { %v11625_v12 = vadd.f32 %v4004_v22, %v11160_v36  ;;  %v8341_v22 = vld [vmem:[%s8751_s6 + $0x28] sm:$0xff] }
 0x630   : > { %v4303_v9 = vrot.slane %v8341_v22, 6 }
 0x632   : > { %v4092_v19 = vpop.f32.mrf.mxu2  ;;  %v4304_v5 = vsel %vm11613_vm5, %v4302_v41, %v4303_v9 }
 0x633   : > { %v4181_v13 = vpop.f32.mrf.mxu3  ;;  %v3917_v47 = vpop.f32.mrf.mxu0 }
 0x634   : > { %v4182_v38 = vadd.f32 %v4181_v13, %v4092_v19  ;;  %v4006_v6 = vpop.f32.mrf.mxu1 }
 0x635   : > { %v4007_v29 = vadd.f32 %v4006_v6, %v3917_v47 }
 0x636   : > { %v11629_v37 = vadd.f32 %v4182_v38, %v11163_v46  ;;  %4731 = vmatmul.bf16.vlgmr.msra.gmra.mxu0 %v4499_v14  ;;  %v7738_v46 = vld [vmem:[%s13016_s1 + $0x568] sm:$0xf0] }
 0x637   : > { %v11632_v36 = vadd.f32 %v4007_v29, %v11167_v17  ;;  %4820 = vmatmul.bf16.vlgmr.msra.gmra.mxu1 %v4500_v20  ;;  %4909 = vmatmul.bf16.vlgmr.msra.gmra.mxu2 %v4499_v14  ;;  %v8241_v17 = vld [vmem:[%s13016_s1 + $0x5e4] sm:$0xf]  ;;  %v7741_v1 = vor.u32 %v8225_v48, %v7738_v46  ;;  %v4441_v48 = vunpack.c.l.b16 %v4304_v5 }
 0x638   : > { %4998 = vmatmul.bf16.vlgmr.msra.gmra.mxu3 %v4500_v20  ;;  %v7805_v14 = vor.u32 %v8241_v17, %v7802_v23  ;;  %v4301_v20 = vsel %vm11613_vm5, %v7541_v50, %v4300_v4  ;;  %v4442_v23 = vunpack.c.h.b16 %v4304_v5  ;;  %v7736_v4 = vld [vmem:[%s13016_s1 + $0x560] sm:$0xf]  ;;  %v8226_v50 = vld [vmem:[%s13016_s1 + $0x564] sm:$0xf0] }
 0x639   : > { %5544 = vmatpush.bf16.msrb.mxu2 %v7741_v1  ;;  %v4439_v22 = vunpack.c.l.b16 %v4301_v20  ;;  %v4440_v17 = vunpack.c.h.b16 %v4301_v20  ;;  %v7737_v41 = vor.u32 %v8226_v50, %v7736_v4  ;;  %v8342_v20 = vld [vmem:[%s8751_s6 + $0x38] sm:$0xff] }
 0x63a   : > { %v4095_v19 = vpop.f32.mrf.mxu2  ;;  %5633 = vmatpush.bf16.msrb.mxu3 %v7805_v14  ;;  %v4307_v5 = vrot.slane %v8342_v20, 6 }
 0x63b   : > { %v4184_v13 = vpop.f32.mrf.mxu3  ;;  %v3919_v47 = vpop.f32.mrf.mxu0  ;;  %5366 = vmatpush.bf16.msrb.mxu0 %v7737_v41  ;;  %v8344_v41 = vld [vmem:[%s8751_s6 + $0x40] sm:$0xff] }
 0x63c   : > { %v4185_v38 = vadd.f32 %v4184_v13, %v4095_v19  ;;  %v4008_v6 = vpop.f32.mrf.mxu1  ;;  %v4501_v19 = vpack.c.b16 %v4441_v48, %v4439_v22  ;;  %v8343_v22 = vld [vmem:[%s8751_s6 + $0x30] sm:$0xff] }
 0x63d   : > { %v4009_v29 = vadd.f32 %v4008_v6, %v3919_v47  ;;  %v4502_v47 = vpack.c.b16 %v4442_v23, %v4440_v17  ;;  %v7542_v48 = vrot.slane %v8343_v22, 10  ;;  %v4310_v17 = vrot.slane %v8344_v41, 6 }
 0x63e   : > { %v11653_v2 = vadd.f32 %v4185_v38, %v11185_v40  ;;  %v7800_v40 = vld [vmem:[%s13016_s1 + $0x5e0] sm:$0xf] }
 0x63f   : > { %v11656_v46 = vadd.f32 %v4009_v29, %v11188_v56  ;;  %v8242_v56 = vld [vmem:[%s13016_s1 + $0x5e4] sm:$0xf0] }
 0x640   : > { %v7801_v9 = vor.u32 %v8242_v56, %v7800_v40  ;;  %v4309_v40 = vrot.slane %v4307_v5, 4 }
 0x642   : > { %v4097_v1 = vpop.f32.mrf.mxu2  ;;  %5455 = vmatpush.bf16.msrb.mxu1 %v7801_v9 }
 0x643   : > { %v4186_v14 = vpop.f32.mrf.mxu3  ;;  %v3922_v13 = vpop.f32.mrf.mxu0 }
 0x644   : > { %v4187_v38 = vadd.f32 %v4186_v14, %v4097_v1  ;;  %v4011_v6 = vpop.f32.mrf.mxu1  ;;  %v4308_v1 = vsel %vm11613_vm5, %v7542_v48, %v4307_v5 }
 0x645   : > { %v4012_v29 = vadd.f32 %v4011_v6, %v3922_v13  ;;  %v4443_v20 = vunpack.c.l.b16 %v4308_v1  ;;  %v4444_v6 = vunpack.c.h.b16 %v4308_v1  ;;  %v8346_v1 = vld [vmem:[%s8751_s6 + $0x48] sm:$0xff] }
 0x646   : > { %v11672_v4 = vadd.f32 %v4187_v38, %v11203_v16  ;;  %4736 = vmatmul.bf16.gmra.mxu0 %v4501_v19  ;;  %v4311_v16 = vsel %vm11613_vm5, %v4309_v40, %v4310_v17  ;;  %v8345_v17 = vld [vmem:[%s8751_s6 + $0x50] sm:$0xff] }
 0x647   : > { %v11675_v50 = vadd.f32 %v4012_v29, %v11207_v54  ;;  %4825 = vmatmul.bf16.gmra.mxu1 %v4502_v47  ;;  %4914 = vmatmul.bf16.gmra.mxu2 %v4501_v19  ;;  %v4445_v38 = vunpack.c.l.b16 %v4311_v16  ;;  %v4446_v29 = vunpack.c.h.b16 %v4311_v16  ;;  %v7543_v16 = vrot.slane %v8346_v1, 10 }
 0x648   : > { %5003 = vmatmul.bf16.gmra.mxu3 %v4502_v47 }
 0x649   : > { %v11689_v5 = vpack.c.b16 %v4445_v38, %v4443_v20  ;;  %v11691_v41 = vpack.c.b16 %v4446_v29, %v4444_v6  ;;  %v8239_v38 = vld [vmem:[%s13016_s1 + $0x5d4] sm:$0xf]  ;;  %v7794_v29 = vld [vmem:[%s13016_s1 + $0x5d8] sm:$0xf0] }
 0x64a   : > { %v4100_v23 = vpop.f32.mrf.mxu2 }
 0x64b   : > { %v4189_v56 = vpop.f32.mrf.mxu3  ;;  %v3924_v9 = vpop.f32.mrf.mxu0 }
 0x64c   : > { %v4190_v54 = vadd.f32 %v4189_v56, %v4100_v23  ;;  %v4013_v14 = vpop.f32.mrf.mxu1  ;;  %v4314_v23 = vrot.slane %v8345_v17, 6 }
 0x64d   : > { %v4014_v13 = vadd.f32 %v4013_v14, %v3924_v9 }
 0x64e   : > { %v11684_v19 = vadd.f32 %v4190_v54, %v11213_v58  ;;  %v4316_v14 = vrot.slane %v4314_v23, 4 }
 0x64f   : > { %v11687_v47 = vadd.f32 %v4014_v13, %v11216_v45  ;;  %v8347_v13 = vld [vmem:[%s8751_s6 + $0x58] sm:$0xff] }
 0x650   : > { %v4317_v20 = vrot.slane %v8347_v13, 6 }
 0x652   : > { %v4102_v22 = vpop.f32.mrf.mxu2 }
 0x653   : > { %v4191_v48 = vpop.f32.mrf.mxu3  ;;  %v3927_v40 = vpop.f32.mrf.mxu0 }
 0x654   : > { %v4192_v58 = vadd.f32 %v4191_v48, %v4102_v22  ;;  %v4016_v56 = vpop.f32.mrf.mxu1  ;;  %v7797_v48 = vor.u32 %v8239_v38, %v7794_v29 }
 0x655   : > { %v4017_v9 = vadd.f32 %v4016_v56, %v3927_v40  ;;  %v4318_v56 = vsel %vm11613_vm5, %v4316_v14, %v4317_v20 }
 0x656   : > { %v11695_v54 = vadd.f32 %v4192_v58, %v11219_v55  ;;  %4741 = vmatmul.bf16.gmra.mxu0 %v11689_v5  ;;  %v8223_v55 = vld [vmem:[%s13016_s1 + $0x554] sm:$0xf]  ;;  %v4315_v58 = vsel %vm11613_vm5, %v7543_v16, %v4314_v23  ;;  %5634 = vmatpush.bf16.msrb.mxu3 %v7797_v48  ;;  %v7728_v23 = vld [vmem:[%s13016_s1 + $0x550] sm:$0xf]  ;;  %v8224_v16 = vld [vmem:[%s13016_s1 + $0x554] sm:$0xf0] }
 0x657   : > { %v11699_v45 = vadd.f32 %v4017_v9, %v11223_v10  ;;  %4830 = vmatmul.bf16.gmra.mxu1 %v11691_v41  ;;  %4919 = vmatmul.bf16.gmra.mxu2 %v11689_v5  ;;  %v7730_v10 = vld [vmem:[%s13016_s1 + $0x558] sm:$0xf0]  ;;  %v4448_v29 = vunpack.c.h.b16 %v4315_v58  ;;  %v7729_v14 = vor.u32 %v8224_v16, %v7728_v23  ;;  %v8350_v16 = vld [vmem:[%s8751_s6 + $0x70] sm:$0xff] }
 0x658   : > { %13451 = vst [vmem:[#allocation50_spill] sm:$0xff] %v11695_v54  ;;  %5008 = vmatmul.bf16.gmra.mxu3 %v11691_v41  ;;  %v7733_v6 = vor.u32 %v8223_v55, %v7730_v10  ;;  %v4447_v10 = vunpack.c.l.b16 %v4315_v58  ;;  %v4450_v54 = vunpack.c.h.b16 %v4318_v56  ;;  %v8348_v58 = vld [vmem:[%s8751_s6 + $0x68] sm:$0xff] }
 0x659   : > { %13452 = vst [vmem:[#allocation11_spill] sm:$0xff] %v11699_v45  ;;  %v4449_v45 = vunpack.c.l.b16 %v4318_v56  ;;  %5367 = vmatpush.bf16.msrb.mxu0 %v7729_v14  ;;  %v4321_v56 = vrot.slane %v8348_v58, 6 }
 0x65a   : > { %v4105_v22 = vpop.f32.mrf.mxu2  ;;  %5545 = vmatpush.bf16.msrb.mxu2 %v7733_v6 }
 0x65b   : > { %v4194_v40 = vpop.f32.mrf.mxu3  ;;  %v3929_v17 = vpop.f32.mrf.mxu0 }
 0x65c   : > { %v4195_v9 = vadd.f32 %v4194_v40, %v4105_v22  ;;  %v4018_v1 = vpop.f32.mrf.mxu1  ;;  %v11740_v22 = vpack.c.b16 %v4449_v45, %v4447_v10 }
 0x65d   : > { %v4019_v13 = vadd.f32 %v4018_v1, %v3929_v17  ;;  %v11742_v17 = vpack.c.b16 %v4450_v54, %v4448_v29  ;;  %v8349_v54 = vld [vmem:[%s8751_s6 + $0x60] sm:$0xff]  ;;  %v4323_v29 = vrot.slane %v4321_v56, 4 }
 0x65e   : > { %v11723_v55 = vadd.f32 %v4195_v9, %v11241_v15  ;;  %v7792_v15 = vld [vmem:[%s13016_s1 + $0x5d0] sm:$0xf]  ;;  %v7544_v10 = vrot.slane %v8349_v54, 10 }
 0x65f   : > { %v11726_v38 = vadd.f32 %v4019_v13, %v11244_v57  ;;  %v8240_v57 = vld [vmem:[%s13016_s1 + $0x5d4] sm:$0xf0] }
 0x660   : > { %v7793_v20 = vor.u32 %v8240_v57, %v7792_v15  ;;  %v4324_v15 = vrot.slane %v8350_v16, 6 }
 0x662   : > { %v4107_v6 = vpop.f32.mrf.mxu2  ;;  %5456 = vmatpush.bf16.msrb.mxu1 %v7793_v20  ;;  %v4322_v20 = vsel %vm11613_vm5, %v7544_v10, %v4321_v56 }
 0x663   : > { %v4196_v48 = vpop.f32.mrf.mxu3  ;;  %v3932_v40 = vpop.f32.mrf.mxu0  ;;  %v4452_v54 = vunpack.c.h.b16 %v4322_v20 }
 0x664   : > { %v4197_v9 = vadd.f32 %v4196_v48, %v4107_v6  ;;  %v4021_v1 = vpop.f32.mrf.mxu1 }
 0x665   : > { %v4022_v13 = vadd.f32 %v4021_v1, %v3932_v40 }
 0x666   : > { %v11746_v23 = vadd.f32 %v4197_v9, %v11259_v63  ;;  %4746 = vmatmul.bf16.gmra.mxu0 %v11740_v22  ;;  %v4451_v9 = vunpack.c.l.b16 %v4322_v20  ;;  %v8352_v20 = vld [vmem:[%s8751_s6 + $0x78] sm:$0xff] }
 0x667   : > { %v11750_v45 = vadd.f32 %v4022_v13, %v11263_v3  ;;  %4835 = vmatmul.bf16.gmra.mxu1 %v11742_v17  ;;  %4924 = vmatmul.bf16.gmra.mxu2 %v11740_v22  ;;  %v4325_v3 = vsel %vm11613_vm5, %v4323_v29, %v4324_v15 }
 0x668   : > { %5013 = vmatmul.bf16.gmra.mxu3 %v11742_v17  ;;  %v4453_v1 = vunpack.c.l.b16 %v4325_v3  ;;  %v4454_v16 = vunpack.c.h.b16 %v4325_v3  ;;  %v7545_v3 = vrot.slane %v8352_v20, 10 }
 0x669   : > { %13453 = vst [vmem:[#allocation51_spill] sm:$0xff] %v11750_v45 }
 0x66a   : > { %v4110_v14 = vpop.f32.mrf.mxu2  ;;  %v11767_v56 = vpack.c.b16 %v4453_v1, %v4451_v9  ;;  %v11769_v15 = vpack.c.b16 %v4454_v16, %v4452_v54  ;;  %v8353_v9 = vld [vmem:[%s8751_s6 + $0x88] sm:$0xff] }
 0x66b   : > { %v4199_v57 = vpop.f32.mrf.mxu3  ;;  %v3934_v63 = vpop.f32.mrf.mxu0  ;;  %v4331_v1 = vrot.slane %v8353_v9, 6  ;;  %v7786_v16 = vld [vmem:[%s13016_s1 + $0x5c8] sm:$0xf0] }
 0x66c   : > { %v4200_v6 = vadd.f32 %v4199_v57, %v4110_v14  ;;  %v4023_v48 = vpop.f32.mrf.mxu1  ;;  %v8351_v14 = vld [vmem:[%s8751_s6 + $0x80] sm:$0xff] }
 0x66d   : > { %v4024_v40 = vadd.f32 %v4023_v48, %v3934_v63  ;;  %v4328_v57 = vrot.slane %v8351_v14, 6 }
 0x66e   : > { %v11762_v58 = vadd.f32 %v4200_v6, %v11269_v30 }
 0x66f   : > { %v11765_v13 = vadd.f32 %v4024_v40, %v11272_v24  ;;  %v4330_v40 = vrot.slane %v4328_v57, 4 }
 0x671   : > { %13454 = vst [vmem:[#allocation23_spill] sm:$0xff] %v11765_v13 }
 0x672   : > { %v4112_v45 = vpop.f32.mrf.mxu2 }
 0x673   : > { %v4201_v10 = vpop.f32.mrf.mxu3  ;;  %v3937_v29 = vpop.f32.mrf.mxu0 }
 0x674   : > { %v4202_v30 = vadd.f32 %v4201_v10, %v4112_v45  ;;  %v4026_v63 = vpop.f32.mrf.mxu1  ;;  %v8237_v45 = vld [vmem:[%s13016_s1 + $0x5c4] sm:$0xf] }
 0x675   : > { %v4027_v6 = vadd.f32 %v4026_v63, %v3937_v29  ;;  %v7789_v29 = vor.u32 %v8237_v45, %v7786_v16  ;;  %v4329_v63 = vsel %vm11613_vm5, %v7545_v3, %v4328_v57  ;;  %v7720_v57 = vld [vmem:[%s13016_s1 + $0x540] sm:$0xf]  ;;  %v8222_v3 = vld [vmem:[%s13016_s1 + $0x544] sm:$0xf0] }
 0x676   : > { %v11773_v48 = vadd.f32 %v4202_v30, %v11275_v32  ;;  %4751 = vmatmul.bf16.gmra.mxu0 %v11767_v56  ;;  %v8221_v32 = vld [vmem:[%s13016_s1 + $0x544] sm:$0xf]  ;;  %v4456_v16 = vunpack.c.h.b16 %v4329_v63 }
 0x677   : > { %v11777_v24 = vadd.f32 %v4027_v6, %v11279_v51  ;;  %4840 = vmatmul.bf16.gmra.mxu1 %v11769_v15  ;;  %4929 = vmatmul.bf16.gmra.mxu2 %v11767_v56  ;;  %v7722_v51 = vld [vmem:[%s13016_s1 + $0x548] sm:$0xf0]  ;;  %v4332_v6 = vsel %vm11613_vm5, %v4330_v40, %v4331_v1  ;;  %v7721_v40 = vor.u32 %v8222_v3, %v7720_v57  ;;  %v8356_v3 = vld [vmem:[%s8751_s6 + $0xa0] sm:$0xff] }
 0x678   : > { %13455 = vst [vmem:[#allocation52_spill] sm:$0xff] %v11773_v48  ;;  %5018 = vmatmul.bf16.gmra.mxu3 %v11769_v15  ;;  %v7725_v54 = vor.u32 %v8221_v32, %v7722_v51  ;;  %v4455_v51 = vunpack.c.l.b16 %v4329_v63  ;;  %v4457_v48 = vunpack.c.l.b16 %v4332_v6  ;;  %v4458_v13 = vunpack.c.h.b16 %v4332_v6 }
 0x679   : > { %13456 = vst [vmem:[#allocation24_spill] sm:$0xff] %v11777_v24  ;;  %5635 = vmatpush.bf16.msrb.mxu3 %v7789_v29  ;;  %5368 = vmatpush.bf16.msrb.mxu0 %v7721_v40 }
 0x67a   : > { %v4115_v10 = vpop.f32.mrf.mxu2  ;;  %5546 = vmatpush.bf16.msrb.mxu2 %v7725_v54  ;;  %v11818_v54 = vpack.c.b16 %v4457_v48, %v4455_v51 }
 0x67b   : > { %v4204_v14 = vpop.f32.mrf.mxu3  ;;  %v3939_v30 = vpop.f32.mrf.mxu0 }
 0x67c   : > { %v4205_v20 = vadd.f32 %v4204_v14, %v4115_v10  ;;  %v4028_v9 = vpop.f32.mrf.mxu1  ;;  %v11820_v14 = vpack.c.b16 %v4458_v13, %v4456_v16  ;;  %v8355_v13 = vld [vmem:[%s8751_s6 + $0x90] sm:$0xff] }
 0x67d   : > { %v4029_v24 = vadd.f32 %v4028_v9, %v3939_v30  ;;  %v8354_v30 = vld [vmem:[%s8751_s6 + $0x98] sm:$0xff]  ;;  %v7546_v51 = vrot.slane %v8355_v13, 10 }
 0x67e   : > { %v11801_v32 = vadd.f32 %v4205_v20, %v11297_v43  ;;  %v7784_v43 = vld [vmem:[%s13016_s1 + $0x5c0] sm:$0xf]  ;;  %v4335_v63 = vrot.slane %v8354_v30, 6 }
 0x67f   : > { %v11804_v45 = vadd.f32 %v4029_v24, %v11300_v61  ;;  %v8238_v61 = vld [vmem:[%s13016_s1 + $0x5c4] sm:$0xf0] }
 0x680   : > { %v7785_v24 = vor.u32 %v8238_v61, %v7784_v43  ;;  %v4337_v16 = vrot.slane %v4335_v63, 4  ;;  %v4338_v43 = vrot.slane %v8356_v3, 6 }
 0x682   : > { %v4117_v1 = vpop.f32.mrf.mxu2  ;;  %5457 = vmatpush.bf16.msrb.mxu1 %v7785_v24  ;;  %v4336_v24 = vsel %vm11613_vm5, %v7546_v51, %v4335_v63 }
 0x683   : > { %v4206_v10 = vpop.f32.mrf.mxu3  ;;  %v3942_v29 = vpop.f32.mrf.mxu0  ;;  %v4460_v13 = vunpack.c.h.b16 %v4336_v24 }
 0x684   : > { %v4207_v6 = vadd.f32 %v4206_v10, %v4117_v1  ;;  %v4031_v20 = vpop.f32.mrf.mxu1 }
 0x685   : > { %v4032_v9 = vadd.f32 %v4031_v20, %v3942_v29 }
 0x686   : > { %v11824_v57 = vadd.f32 %v4207_v6, %v11315_v52  ;;  %4756 = vmatmul.bf16.gmra.mxu0 %v11818_v54  ;;  %v4459_v6 = vunpack.c.l.b16 %v4336_v24  ;;  %v8358_v24 = vld [vmem:[%s8751_s6 + $0xa8] sm:$0xff] }
 0x687   : > { %v11828_v48 = vadd.f32 %v4032_v9, %v11319_v60  ;;  %4845 = vmatmul.bf16.gmra.mxu1 %v11820_v14  ;;  %4934 = vmatmul.bf16.gmra.mxu2 %v11818_v54  ;;  %v4339_v60 = vsel %vm11613_vm5, %v4337_v16, %v4338_v43 }
 0x688   : > { %5023 = vmatmul.bf16.gmra.mxu3 %v11820_v14  ;;  %v4461_v20 = vunpack.c.l.b16 %v4339_v60  ;;  %v4462_v3 = vunpack.c.h.b16 %v4339_v60  ;;  %v7547_v60 = vrot.slane %v8358_v24, 10 }
 0x689   : > { %13457 = vst [vmem:[#allocation53_spill] sm:$0xff] %v11828_v48 }
 0x68a   : > { %v4120_v40 = vpop.f32.mrf.mxu2  ;;  %v11845_v63 = vpack.c.b16 %v4461_v20, %v4459_v6  ;;  %v11847_v43 = vpack.c.b16 %v4462_v3, %v4460_v13  ;;  %v8359_v6 = vld [vmem:[%s8751_s6 + $0xb8] sm:$0xff] }
 0x68b   : > { %v4209_v61 = vpop.f32.mrf.mxu3  ;;  %v3944_v52 = vpop.f32.mrf.mxu0  ;;  %v4345_v20 = vrot.slane %v8359_v6, 6  ;;  %v7778_v3 = vld [vmem:[%s13016_s1 + $0x5b8] sm:$0xf0] }
 0x68c   : > { %v4210_v1 = vadd.f32 %v4209_v61, %v4120_v40  ;;  %v4033_v10 = vpop.f32.mrf.mxu1  ;;  %v8357_v40 = vld [vmem:[%s8751_s6 + $0xb0] sm:$0xff] }
 0x68d   : > { %v4034_v29 = vadd.f32 %v4033_v10, %v3944_v52  ;;  %v4342_v61 = vrot.slane %v8357_v40, 6 }
 0x68e   : > { %v11840_v30 = vadd.f32 %v4210_v1, %v11325_v49 }
 0x68f   : > { %v11843_v9 = vadd.f32 %v4034_v29, %v11328_v11  ;;  %v4344_v29 = vrot.slane %v4342_v61, 4 }
 0x691   : > { %13458 = vst [vmem:[#allocation16_spill] sm:$0xff] %v11843_v9 }
 0x692   : > { %v4122_v48 = vpop.f32.mrf.mxu2 }
 0x693   : > { %v4211_v51 = vpop.f32.mrf.mxu3  ;;  %v3947_v16 = vpop.f32.mrf.mxu0 }
 0x694   : > { %v4212_v49 = vadd.f32 %v4211_v51, %v4122_v48  ;;  %v4036_v52 = vpop.f32.mrf.mxu1  ;;  %v8235_v48 = vld [vmem:[%s13016_s1 + $0x5b4] sm:$0xf] }
 0x695   : > { %v4037_v1 = vadd.f32 %v4036_v52, %v3947_v16  ;;  %v7781_v16 = vor.u32 %v8235_v48, %v7778_v3  ;;  %v4343_v52 = vsel %vm11613_vm5, %v7547_v60, %v4342_v61  ;;  %v7712_v61 = vld [vmem:[%s13016_s1 + $0x530] sm:$0xf]  ;;  %v8220_v60 = vld [vmem:[%s13016_s1 + $0x534] sm:$0xf0] }
 0x696   : > { %v11851_v10 = vadd.f32 %v4212_v49, %v11331_v59  ;;  %4761 = vmatmul.bf16.gmra.mxu0 %v11845_v63  ;;  %v8219_v59 = vld [vmem:[%s13016_s1 + $0x534] sm:$0xf]  ;;  %v4464_v3 = vunpack.c.h.b16 %v4343_v52 }
 0x697   : > { %v11855_v11 = vadd.f32 %v4037_v1, %v11335_v39  ;;  %4850 = vmatmul.bf16.gmra.mxu1 %v11847_v43  ;;  %4939 = vmatmul.bf16.gmra.mxu2 %v11845_v63  ;;  %v7714_v39 = vld [vmem:[%s13016_s1 + $0x538] sm:$0xf0]  ;;  %v4346_v1 = vsel %vm11613_vm5, %v4344_v29, %v4345_v20  ;;  %v7713_v29 = vor.u32 %v8220_v60, %v7712_v61  ;;  %v8362_v60 = vld [vmem:[%s8751_s6 + $0xd0] sm:$0xff] }
 0x698   : > { %13459 = vst [vmem:[#allocation54_spill] sm:$0xff] %v11851_v10  ;;  %5028 = vmatmul.bf16.gmra.mxu3 %v11847_v43  ;;  %v7717_v13 = vor.u32 %v8219_v59, %v7714_v39  ;;  %v4463_v39 = vunpack.c.l.b16 %v4343_v52  ;;  %v4465_v10 = vunpack.c.l.b16 %v4346_v1  ;;  %v4466_v9 = vunpack.c.h.b16 %v4346_v1 }
 0x699   : > { %13460 = vst [vmem:[#allocation29_spill] sm:$0xff] %v11855_v11  ;;  %5636 = vmatpush.bf16.msrb.mxu3 %v7781_v16  ;;  %5369 = vmatpush.bf16.msrb.mxu0 %v7713_v29 }
 0x69a   : > { %v4125_v51 = vpop.f32.mrf.mxu2  ;;  %5547 = vmatpush.bf16.msrb.mxu2 %v7717_v13  ;;  %v11896_v13 = vpack.c.b16 %v4465_v10, %v4463_v39 }
 0x69b   : > { %v4214_v40 = vpop.f32.mrf.mxu3  ;;  %v3949_v49 = vpop.f32.mrf.mxu0 }
 0x69c   : > { %v4215_v24 = vadd.f32 %v4214_v40, %v4125_v51  ;;  %v4038_v6 = vpop.f32.mrf.mxu1  ;;  %v11898_v40 = vpack.c.b16 %v4466_v9, %v4464_v3  ;;  %v8361_v9 = vld [vmem:[%s8751_s6 + $0xc0] sm:$0xff] }
 0x69d   : > { %v4039_v11 = vadd.f32 %v4038_v6, %v3949_v49  ;;  %v8360_v49 = vld [vmem:[%s8751_s6 + $0xc8] sm:$0xff]  ;;  %v7548_v39 = vrot.slane %v8361_v9, 10 }
 0x69e   : > { %v11879_v59 = vadd.f32 %v4215_v24, %v11353_v62  ;;  %v7776_v62 = vld [vmem:[%s13016_s1 + $0x5b0] sm:$0xf]  ;;  %v4349_v52 = vrot.slane %v8360_v49, 6 }
 0x69f   : > { %v11882_v48 = vadd.f32 %v4039_v11, %v11356_v53  ;;  %v8236_v53 = vld [vmem:[%s13016_s1 + $0x5b4] sm:$0xf0] }
 0x6a0   : > { %v7777_v11 = vor.u32 %v8236_v53, %v7776_v62  ;;  %v4351_v3 = vrot.slane %v4349_v52, 4  ;;  %v4352_v62 = vrot.slane %v8362_v60, 6 }
 0x6a1   : > { %13461 = vst [vmem:[#allocation17_spill] sm:$0xff] %v11882_v48 }
 0x6a2   : > { %v4127_v20 = vpop.f32.mrf.mxu2  ;;  %5458 = vmatpush.bf16.msrb.mxu1 %v7777_v11  ;;  %v4350_v11 = vsel %vm11613_vm5, %v7548_v39, %v4349_v52 }
 0x6a3   : > { %v4216_v51 = vpop.f32.mrf.mxu3  ;;  %v3952_v16 = vpop.f32.mrf.mxu0  ;;  %v4468_v9 = vunpack.c.h.b16 %v4350_v11 }
 0x6a4   : > { %v4217_v1 = vadd.f32 %v4216_v51, %v4127_v20  ;;  %v4041_v24 = vpop.f32.mrf.mxu1 }
 0x6a5   : > { %v4042_v6 = vadd.f32 %v4041_v24, %v3952_v16 }
 0x6a6   : > { %v11902_v61 = vadd.f32 %v4217_v1, %v11371_v33  ;;  %4766 = vmatmul.bf16.gmra.mxu0 %v11896_v13  ;;  %v4467_v1 = vunpack.c.l.b16 %v4350_v11 }
 0x6a7   : > { %v11906_v10 = vadd.f32 %v4042_v6, %v11375_v42  ;;  %4855 = vmatmul.bf16.gmra.mxu1 %v11898_v40  ;;  %4944 = vmatmul.bf16.gmra.mxu2 %v11896_v13  ;;  %v4353_v42 = vsel %vm11613_vm5, %v4351_v3, %v4352_v62 }
 0x6a8   : > { %13462 = vst [vmem:[#allocation30_spill] sm:$0xff] %v11902_v61  ;;  %5033 = vmatmul.bf16.gmra.mxu3 %v11898_v40  ;;  %v4469_v24 = vunpack.c.l.b16 %v4353_v42  ;;  %v4470_v60 = vunpack.c.h.b16 %v4353_v42  ;;  %v8364_v42 = vld [vmem:[%s8751_s6 + $0xd8] sm:$0xff]  ;;  %v13471_v61 = vld [vmem:[#allocation31_spill] sm:$0xff] }
 0x6a9   : > { %13463 = vst [vmem:[#allocation9_spill] sm:$0xff] %v11906_v10 }
 0x6aa   : > { %v4130_v29 = vpop.f32.mrf.mxu2  ;;  %v11923_v52 = vpack.c.b16 %v4469_v24, %v4467_v1  ;;  %v11925_v62 = vpack.c.b16 %v4470_v60, %v4468_v9  ;;  %v8365_v24 = vld [vmem:[%s8751_s6 + $0xe8] sm:$0xff]  ;;  %v8233_v60 = vld [vmem:[%s13016_s1 + $0x5a4] sm:$0xf] }
 0x6ab   : > { %v4219_v53 = vpop.f32.mrf.mxu3  ;;  %v3954_v33 = vpop.f32.mrf.mxu0  ;;  %v4359_v9 = vrot.slane %v8365_v24, 6 }
 0x6ac   : > { %v4220_v20 = vadd.f32 %v4219_v53, %v4130_v29  ;;  %v4043_v51 = vpop.f32.mrf.mxu1  ;;  %v8363_v29 = vld [vmem:[%s8751_s6 + $0xe0] sm:$0xff] }
 0x6ad   : > { %v4044_v16 = vadd.f32 %v4043_v51, %v3954_v33  ;;  %v4356_v53 = vrot.slane %v8363_v29, 6 }
 0x6ae   : > { %v11918_v49 = vadd.f32 %v4220_v20, %v11381_v0 }
 0x6af   : > { %v11921_v6 = vadd.f32 %v4044_v16, %v11384_v8  ;;  %v13467_v8 = vld [vmem:[#allocation27_spill] sm:$0xff]  ;;  %v7549_v16 = vrot.slane %v8364_v42, 10  ;;  %v4358_v1 = vrot.slane %v4356_v53, 4 }
 0x6b0   : > { %13464 = vst [vmem:[#allocation55_spill] sm:$0xff] %v11918_v49 }
 0x6b1   : > { %13465 = vst [vmem:[#allocation12_spill] sm:$0xff] %v11921_v6  ;;  %v4360_v42 = vsel %vm11613_vm5, %v4358_v1, %v4359_v9 }
 0x6b2   : > { %v4132_v10 = vpop.f32.mrf.mxu2  ;;  %v4473_v49 = vunpack.c.l.b16 %v4360_v42  ;;  %v4474_v48 = vunpack.c.h.b16 %v4360_v42 }
 0x6b3   : > { %v4221_v39 = vpop.f32.mrf.mxu3  ;;  %v4732_v3 = vpop.f32.mrf.mxu0 }
 0x6b4   : > { %v4222_v0 = vadd.f32 %v4221_v39, %v4132_v10  ;;  %v4821_v33 = vpop.f32.mrf.mxu1  ;;  %v7706_v10 = vld [vmem:[%s13016_s1 + $0x528] sm:$0xf0] }
 0x6b5   : > { %v4822_v20 = vadd.f32 %v4821_v33, %v4732_v3  ;;  %v7770_v3 = vld [vmem:[%s13016_s1 + $0x5a8] sm:$0xf0] }
 0x6b6   : > { %v11929_v51 = vadd.f32 %v4222_v0, %v11387_v27  ;;  %4771 = vmatmul.bf16.gmra.mxu0 %v11923_v52  ;;  %v8217_v27 = vld [vmem:[%s13016_s1 + $0x524] sm:$0xf]  ;;  %v7773_v0 = vor.u32 %v8233_v60, %v7770_v3 }
 0x6b7   : > { %v11933_v11 = vadd.f32 %v4822_v20, %v13467_v8  ;;  %4860 = vmatmul.bf16.gmra.mxu1 %v11925_v62  ;;  %4949 = vmatmul.bf16.gmra.mxu2 %v11923_v52  ;;  %v7709_v39 = vor.u32 %v8217_v27, %v7706_v10  ;;  %v4357_v8 = vsel %vm11613_vm5, %v7549_v16, %v4356_v53  ;;  %v13469_v27 = vld [vmem:[#allocation28_spill] sm:$0xff]  ;;  %v7704_v53 = vld [vmem:[%s13016_s1 + $0x520] sm:$0xf]  ;;  %v8218_v16 = vld [vmem:[%s13016_s1 + $0x524] sm:$0xf0] }
 0x6b8   : > { %13466 = vst [vmem:[#allocation33_spill] sm:$0xff] %v11929_v51  ;;  %5038 = vmatmul.bf16.gmra.mxu3 %v11925_v62  ;;  %v4471_v6 = vunpack.c.l.b16 %v4357_v8  ;;  %v4472_v3 = vunpack.c.h.b16 %v4357_v8  ;;  %v7705_v1 = vor.u32 %v8218_v16, %v7704_v53  ;;  %v13474_v53 = vld [vmem:[#allocation32_spill] sm:$0xff] }
 0x6b9   : > { %13468 = vst [vmem:[#allocation13_spill] sm:$0xff] %v11933_v11  ;;  %5548 = vmatpush.bf16.msrb.mxu2 %v7709_v39  ;;  %5637 = vmatpush.bf16.msrb.mxu3 %v7773_v0 }
 0x6ba   : > { %v4910_v29 = vpop.f32.mrf.mxu2  ;;  %v11974_v39 = vpack.c.b16 %v4473_v49, %v4471_v6  ;;  %5370 = vmatpush.bf16.msrb.mxu0 %v7705_v1  ;;  %v13476_v49 = vld [vmem:[#allocation35_spill] sm:$0xff]  ;;  %v8368_v1 = vld [vmem:[%s8751_s6 + $0x100] sm:$0xff] }
 0x6bb   : > { %v4999_v33 = vpop.f32.mrf.mxu3  ;;  %v4734_v20 = vpop.f32.mrf.mxu0 }
 0x6bc   : > { %v5000_v24 = vadd.f32 %v4999_v33, %v4910_v29  ;;  %v4823_v11 = vpop.f32.mrf.mxu1  ;;  %v11976_v33 = vpack.c.b16 %v4474_v48, %v4472_v3  ;;  %v8367_v48 = vld [vmem:[%s8751_s6 + $0xf0] sm:$0xff] }
 0x6bd   : > { %v4824_v51 = vadd.f32 %v4823_v11, %v4734_v20  ;;  %v7768_v11 = vld [vmem:[%s13016_s1 + $0x5a0] sm:$0xf]  ;;  %v8366_v20 = vld [vmem:[%s8751_s6 + $0xf8] sm:$0xff]  ;;  %v7550_v3 = vrot.slane %v8367_v48, 10 }
 0x6be   : > { %v11957_v10 = vadd.f32 %v5000_v24, %v13469_v27  ;;  %13473 = vst [vmem:[#allocation6_spill] sm:$0xff] %v11976_v33  ;;  %v4363_v8 = vrot.slane %v8366_v20, 6 }
 0x6bf   : > { %v11960_v60 = vadd.f32 %v4824_v51, %v13471_v61  ;;  %v8234_v61 = vld [vmem:[%s13016_s1 + $0x5a4] sm:$0xf0] }
 0x6c0   : > { %13470 = vst [vmem:[#allocation34_spill] sm:$0xff] %v11957_v10  ;;  %v7769_v51 = vor.u32 %v8234_v61, %v7768_v11  ;;  %v4365_v11 = vrot.slane %v4363_v8, 4  ;;  %v4366_v61 = vrot.slane %v8368_v1, 6  ;;  %v13479_v1 = vld [vmem:[#allocation36_spill] sm:$0xff] }
 0x6c1   : > { %13472 = vst [vmem:[#allocation5_spill] sm:$0xff] %v11960_v60 }
 0x6c2   : > { %v4912_v9 = vpop.f32.mrf.mxu2  ;;  %5459 = vmatpush.bf16.msrb.mxu1 %v7769_v51  ;;  %v4367_v20 = vsel %vm11613_vm5, %v4365_v11, %v4366_v61 }
 0x6c3   : > { %v5001_v29 = vpop.f32.mrf.mxu3  ;;  %v4737_v0 = vpop.f32.mrf.mxu0  ;;  %v4477_v48 = vunpack.c.l.b16 %v4367_v20  ;;  %v4478_v60 = vunpack.c.h.b16 %v4367_v20 }
 0x6c4   : > { %v5002_v42 = vadd.f32 %v5001_v29, %v4912_v9  ;;  %v4826_v24 = vpop.f32.mrf.mxu1 }
 0x6c5   : > { %v4827_v27 = vadd.f32 %v4826_v24, %v4737_v0  ;;  %v4364_v0 = vsel %vm11613_vm5, %v7550_v3, %v4363_v8 }
 0x6c6   : > { %v11980_v16 = vadd.f32 %v5002_v42, %v13474_v53  ;;  %4776 = vmatmul.bf16.gmra.mxu0 %v11974_v39 }
 0x6c7   : > { %v11984_v6 = vadd.f32 %v4827_v27, %v13476_v49  ;;  %4865 = vmatmul.bf16.gmra.mxu1 %v11976_v33  ;;  %4954 = vmatmul.bf16.gmra.mxu2 %v11974_v39  ;;  %v4475_v49 = vunpack.c.l.b16 %v4364_v0 }
 0x6c8   : > { %13475 = vst [vmem:[#allocation14_spill] sm:$0xff] %v11980_v16  ;;  %5043 = vmatmul.bf16.gmra.mxu3 %v11976_v33  ;;  %v4476_v16 = vunpack.c.h.b16 %v4364_v0  ;;  %v13485_v0 = vld [vmem:[#allocation38_spill] sm:$0xff] }
 0x6c9   : > { %13477 = vst [vmem:[#allocation15_spill] sm:$0xff] %v11984_v6  ;;  %v12001_v8 = vpack.c.b16 %v4477_v48, %v4475_v49  ;;  %v8371_v49 = vld [vmem:[%s8751_s6 + $0x118] sm:$0xff] }
 0x6ca   : > { %v4915_v51 = vpop.f32.mrf.mxu2  ;;  %v12003_v61 = vpack.c.b16 %v4478_v60, %v4476_v16  ;;  %v4373_v48 = vrot.slane %v8371_v49, 6 }
 0x6cb   : > { %v5004_v9 = vpop.f32.mrf.mxu3  ;;  %v4739_v29 = vpop.f32.mrf.mxu0  ;;  %13481 = vst [vmem:[#allocation20_spill] sm:$0xff] %v12001_v8 }
 0x6cc   : > { %v5005_v42 = vadd.f32 %v5004_v9, %v4915_v51  ;;  %v4828_v24 = vpop.f32.mrf.mxu1  ;;  %13482 = vst [vmem:[#allocation21_spill] sm:$0xff] %v12003_v61  ;;  %v8369_v51 = vld [vmem:[%s8751_s6 + $0x110] sm:$0xff] }
 0x6cd   : > { %v4829_v27 = vadd.f32 %v4828_v24, %v4739_v29  ;;  %v4370_v9 = vrot.slane %v8369_v51, 6  ;;  %v13483_v24 = vld [vmem:[#allocation37_spill] sm:$0xff]  ;;  %v7762_v51 = vld [vmem:[%s13016_s1 + $0x598] sm:$0xf0] }
 0x6ce   : > { %v11996_v53 = vadd.f32 %v5005_v42, %v11437_v35 }
 0x6cf   : > { %v11999_v6 = vadd.f32 %v4829_v27, %v13479_v1  ;;  %v8370_v27 = vld [vmem:[%s8751_s6 + $0x108] sm:$0xff]  ;;  %v4372_v16 = vrot.slane %v4370_v9, 4  ;;  %v7698_v1 = vld [vmem:[%s13016_s1 + $0x518] sm:$0xf0] }
 0x6d0   : > { %13478 = vst [vmem:[#allocation18_spill] sm:$0xff] %v11996_v53  ;;  %v7551_v60 = vrot.slane %v8370_v27, 10 }
 0x6d1   : > { %13480 = vst [vmem:[#allocation8_spill] sm:$0xff] %v11999_v6  ;;  %v4374_v27 = vsel %vm11613_vm5, %v4372_v16, %v4373_v48 }
 0x6d2   : > { %v4917_v10 = vpop.f32.mrf.mxu2  ;;  %v4482_v33 = vunpack.c.h.b16 %v4374_v27 }
 0x6d3   : > { %v5006_v3 = vpop.f32.mrf.mxu3  ;;  %v4742_v11 = vpop.f32.mrf.mxu0 }
 0x6d4   : > { %v5007_v35 = vadd.f32 %v5006_v3, %v4917_v10  ;;  %v4831_v29 = vpop.f32.mrf.mxu1  ;;  %v8215_v10 = vld [vmem:[%s13016_s1 + $0x514] sm:$0xf] }
 0x6d5   : > { %v4832_v42 = vadd.f32 %v4831_v29, %v4742_v11  ;;  %v8231_v3 = vld [vmem:[%s13016_s1 + $0x594] sm:$0xf]  ;;  %v7701_v11 = vor.u32 %v8215_v10, %v7698_v1 }
 0x6d6   : > { %v12007_v53 = vadd.f32 %v5007_v35, %v13483_v24  ;;  %4781 = vmatmul.bf16.gmra.mxu0 %v12001_v8  ;;  %v7765_v29 = vor.u32 %v8231_v3, %v7762_v51  ;;  %v13487_v10 = vld [vmem:[#allocation39_spill] sm:$0xff] }
 0x6d7   : > { %v12011_v20 = vadd.f32 %v4832_v42, %v13485_v0  ;;  %4870 = vmatmul.bf16.gmra.mxu1 %v12003_v61  ;;  %4959 = vmatmul.bf16.gmra.mxu2 %v12001_v8  ;;  %v4371_v0 = vsel %vm11613_vm5, %v7551_v60, %v4370_v9  ;;  %v13489_v8 = vld [vmem:[#allocation40_spill] sm:$0xff]  ;;  %v7696_v9 = vld [vmem:[%s13016_s1 + $0x510] sm:$0xf] }
 0x6d8   : > { %13484 = vst [vmem:[#allocation22_spill] sm:$0xff] %v12007_v53  ;;  %5048 = vmatmul.bf16.gmra.mxu3 %v12003_v61  ;;  %5549 = vmatpush.bf16.msrb.mxu2 %v7701_v11  ;;  %v4479_v6 = vunpack.c.l.b16 %v4371_v0  ;;  %v4481_v61 = vunpack.c.l.b16 %v4374_v27  ;;  %v4480_v51 = vunpack.c.h.b16 %v4371_v0  ;;  %v8216_v60 = vld [vmem:[%s13016_s1 + $0x514] sm:$0xf0] }
 0x6d9   : > { %13486 = vst [vmem:[#allocation25_spill] sm:$0xff] %v12011_v20  ;;  %5638 = vmatpush.bf16.msrb.mxu3 %v7765_v29  ;;  %v7697_v16 = vor.u32 %v8216_v60, %v7696_v9  ;;  %v13493_v9 = vld [vmem:[#allocation41_spill] sm:$0xff] }
 0x6da   : > { %v4920_v35 = vpop.f32.mrf.mxu2  ;;  %v12052_v11 = vpack.c.b16 %v4481_v61, %v4479_v6  ;;  %v13495_v6 = vld [vmem:[#allocation42_spill] sm:$0xff] }
 0x6db   : > { %v5009_v42 = vpop.f32.mrf.mxu3  ;;  %v4744_v24 = vpop.f32.mrf.mxu0  ;;  %5371 = vmatpush.bf16.msrb.mxu0 %v7697_v16  ;;  %v8374_v16 = vld [vmem:[%s8751_s6 + $0x130] sm:$0xff] }
 0x6dc   : > { %v5010_v49 = vadd.f32 %v5009_v42, %v4920_v35  ;;  %v4833_v20 = vpop.f32.mrf.mxu1  ;;  %13491 = vst [vmem:[#allocation28_spill] sm:$0xff] %v12052_v11  ;;  %v12054_v42 = vpack.c.b16 %v4482_v33, %v4480_v51  ;;  %v8373_v33 = vld [vmem:[%s8751_s6 + $0x120] sm:$0xff] }
 0x6dd   : > { %v4834_v53 = vadd.f32 %v4833_v20, %v4744_v24  ;;  %v7760_v20 = vld [vmem:[%s13016_s1 + $0x590] sm:$0xf]  ;;  %v8372_v24 = vld [vmem:[%s8751_s6 + $0x128] sm:$0xff]  ;;  %v7552_v51 = vrot.slane %v8373_v33, 10 }
 0x6de   : > { %v12035_v1 = vadd.f32 %v5010_v49, %v13487_v10  ;;  %13492 = vst [vmem:[#allocation31_spill] sm:$0xff] %v12054_v42  ;;  %v4377_v0 = vrot.slane %v8372_v24, 6 }
 0x6df   : > { %v12038_v3 = vadd.f32 %v4834_v53, %v13489_v8  ;;  %v8232_v53 = vld [vmem:[%s13016_s1 + $0x594] sm:$0xf0] }
 0x6e0   : > { %13488 = vst [vmem:[#allocation26_spill] sm:$0xff] %v12035_v1  ;;  %v7761_v8 = vor.u32 %v8232_v53, %v7760_v20  ;;  %v4379_v20 = vrot.slane %v4377_v0, 4  ;;  %v4380_v53 = vrot.slane %v8374_v16, 6 }
 0x6e1   : > { %13490 = vst [vmem:[#allocation27_spill] sm:$0xff] %v12038_v3 }
 0x6e2   : > { %v4922_v48 = vpop.f32.mrf.mxu2  ;;  %5460 = vmatpush.bf16.msrb.mxu1 %v7761_v8  ;;  %v4381_v24 = vsel %vm11613_vm5, %v4379_v20, %v4380_v53 }
 0x6e3   : > { %v5011_v35 = vpop.f32.mrf.mxu3  ;;  %v4747_v29 = vpop.f32.mrf.mxu0  ;;  %v4485_v16 = vunpack.c.l.b16 %v4381_v24  ;;  %v4486_v1 = vunpack.c.h.b16 %v4381_v24  ;;  %v8376_v24 = vld [vmem:[%s8751_s6 + $0x138] sm:$0xff] }
 0x6e4   : > { %v5012_v27 = vadd.f32 %v5011_v35, %v4922_v48  ;;  %v4836_v49 = vpop.f32.mrf.mxu1 }
 0x6e5   : > { %v4837_v10 = vadd.f32 %v4836_v49, %v4747_v29  ;;  %v4378_v29 = vsel %vm11613_vm5, %v7552_v51, %v4377_v0 }
 0x6e6   : > { %v12058_v60 = vadd.f32 %v5012_v27, %v13493_v9  ;;  %4786 = vmatmul.bf16.gmra.mxu0 %v12052_v11  ;;  %v13497_v9 = vld [vmem:[#allocation43_spill] sm:$0xff]  ;;  %v4483_v33 = vunpack.c.l.b16 %v4378_v29  ;;  %v4484_v3 = vunpack.c.h.b16 %v4378_v29 }
 0x6e7   : > { %v12062_v61 = vadd.f32 %v4837_v10, %v13495_v6  ;;  %4875 = vmatmul.bf16.gmra.mxu1 %v12054_v42  ;;  %4964 = vmatmul.bf16.gmra.mxu2 %v12052_v11 }
 0x6e8   : > { %13494 = vst [vmem:[#allocation32_spill] sm:$0xff] %v12058_v60  ;;  %5053 = vmatmul.bf16.gmra.mxu3 %v12054_v42  ;;  %v12079_v0 = vpack.c.b16 %v4485_v16, %v4483_v33  ;;  %v12081_v53 = vpack.c.b16 %v4486_v1, %v4484_v3  ;;  %v7553_v1 = vrot.slane %v8376_v24, 10  ;;  %v7690_v16 = vld [vmem:[%s13016_s1 + $0x508] sm:$0xf0] }
 0x6e9   : > { %13496 = vst [vmem:[#allocation35_spill] sm:$0xff] %v12062_v61  ;;  %v13499_v61 = vld [vmem:[#allocation44_spill] sm:$0xff] }
 0x6ea   : > { %v4925_v8 = vpop.f32.mrf.mxu2  ;;  %13501 = vst [vmem:[#allocation38_spill] sm:$0xff] %v12079_v0 }
 0x6eb   : > { %v5014_v48 = vpop.f32.mrf.mxu3  ;;  %v4749_v35 = vpop.f32.mrf.mxu0  ;;  %13502 = vst [vmem:[#allocation39_spill] sm:$0xff] %v12081_v53 }
 0x6ec   : > { %v5015_v27 = vadd.f32 %v5014_v48, %v4925_v8  ;;  %v4838_v49 = vpop.f32.mrf.mxu1  ;;  %v8375_v8 = vld [vmem:[%s8751_s6 + $0x140] sm:$0xff] }
 0x6ed   : > { %v4839_v10 = vadd.f32 %v4838_v49, %v4749_v35  ;;  %v4384_v48 = vrot.slane %v8375_v8, 6  ;;  %v7754_v8 = vld [vmem:[%s13016_s1 + $0x588] sm:$0xf0] }
 0x6ee   : > { %v12074_v6 = vadd.f32 %v5015_v27, %v13497_v9  ;;  %v13503_v9 = vld [vmem:[#allocation45_spill] sm:$0xff] }
 0x6ef   : > { %v12077_v60 = vadd.f32 %v4839_v10, %v13499_v61  ;;  %v13505_v61 = vld [vmem:[#allocation46_spill] sm:$0xff]  ;;  %v4386_v3 = vrot.slane %v4384_v48, 4 }
 0x6f0   : > { %13498 = vst [vmem:[#allocation36_spill] sm:$0xff] %v12074_v6  ;;  %v8377_v10 = vld [vmem:[%s8751_s6 + $0x148] sm:$0xff] }
 0x6f1   : > { %13500 = vst [vmem:[#allocation37_spill] sm:$0xff] %v12077_v60  ;;  %v4387_v33 = vrot.slane %v8377_v10, 6 }
 0x6f2   : > { %v4927_v42 = vpop.f32.mrf.mxu2 }
 0x6f3   : > { %v5016_v51 = vpop.f32.mrf.mxu3  ;;  %v4752_v20 = vpop.f32.mrf.mxu0  ;;  %v4388_v24 = vsel %vm11613_vm5, %v4386_v3, %v4387_v33 }
 0x6f4   : > { %v5017_v35 = vadd.f32 %v5016_v51, %v4927_v42  ;;  %v4841_v27 = vpop.f32.mrf.mxu1  ;;  %v8213_v42 = vld [vmem:[%s13016_s1 + $0x504] sm:$0xf]  ;;  %v4490_v11 = vunpack.c.h.b16 %v4388_v24 }
 0x6f5   : > { %v4842_v49 = vadd.f32 %v4841_v27, %v4752_v20  ;;  %v8229_v51 = vld [vmem:[%s13016_s1 + $0x584] sm:$0xf]  ;;  %v7693_v20 = vor.u32 %v8213_v42, %v7690_v16  ;;  %v13507_v42 = vld [vmem:[#allocation47_spill] sm:$0xff] }
 0x6f6   : > { %v12085_v6 = vadd.f32 %v5017_v35, %v13503_v9  ;;  %4791 = vmatmul.bf16.gmra.mxu0 %v12079_v0  ;;  %v7757_v27 = vor.u32 %v8229_v51, %v7754_v8 }
 0x6f7   : > { %v12089_v29 = vadd.f32 %v4842_v49, %v13505_v61  ;;  %4880 = vmatmul.bf16.gmra.mxu1 %v12081_v53  ;;  %4969 = vmatmul.bf16.gmra.mxu2 %v12079_v0  ;;  %v4385_v61 = vsel %vm11613_vm5, %v7553_v1, %v4384_v48  ;;  %v13509_v0 = vld [vmem:[#allocation48_spill] sm:$0xff]  ;;  %v7688_v48 = vld [vmem:[%s13016_s1 + $0x500] sm:$0xf]  ;;  %v8214_v1 = vld [vmem:[%s13016_s1 + $0x504] sm:$0xf0] }
 0x6f8   : > { %13504 = vst [vmem:[#allocation40_spill] sm:$0xff] %v12085_v6  ;;  %5058 = vmatmul.bf16.gmra.mxu3 %v12081_v53  ;;  %5550 = vmatpush.bf16.msrb.mxu2 %v7693_v20  ;;  %v4487_v60 = vunpack.c.l.b16 %v4385_v61  ;;  %v4489_v53 = vunpack.c.l.b16 %v4388_v24  ;;  %v4488_v8 = vunpack.c.h.b16 %v4385_v61  ;;  %v7689_v3 = vor.u32 %v8214_v1, %v7688_v48  ;;  %v13512_v48 = vld [vmem:[#allocation49_spill] sm:$0xff] }
 0x6f9   : > { %13506 = vst [vmem:[#allocation41_spill] sm:$0xff] %v12089_v29  ;;  %5639 = vmatpush.bf16.msrb.mxu3 %v7757_v27 }
 0x6fa   : > { %v4930_v35 = vpop.f32.mrf.mxu2  ;;  %v12130_v20 = vpack.c.b16 %v4489_v53, %v4487_v60  ;;  %5372 = vmatpush.bf16.msrb.mxu0 %v7689_v3  ;;  %v13514_v60 = vld [vmem:[#allocation19_spill] sm:$0xff]  ;;  %v8380_v3 = vld [vmem:[%s8751_s6 + $0x160] sm:$0xff] }
 0x6fb   : > { %v5019_v49 = vpop.f32.mrf.mxu3  ;;  %v4754_v9 = vpop.f32.mrf.mxu0 }
 0x6fc   : > { %v5020_v10 = vadd.f32 %v5019_v49, %v4930_v35  ;;  %v4843_v29 = vpop.f32.mrf.mxu1  ;;  %v12132_v49 = vpack.c.b16 %v4490_v11, %v4488_v8  ;;  %v8379_v11 = vld [vmem:[%s8751_s6 + $0x150] sm:$0xff] }
 0x6fd   : > { %v4844_v6 = vadd.f32 %v4843_v29, %v4754_v9  ;;  %v7752_v29 = vld [vmem:[%s13016_s1 + $0x580] sm:$0xf]  ;;  %v8378_v9 = vld [vmem:[%s8751_s6 + $0x158] sm:$0xff]  ;;  %v7554_v8 = vrot.slane %v8379_v11, 10 }
 0x6fe   : > { %v12113_v16 = vadd.f32 %v5020_v10, %v13507_v42  ;;  %13511 = vst [vmem:[#allocation44_spill] sm:$0xff] %v12132_v49  ;;  %v4391_v61 = vrot.slane %v8378_v9, 6 }
 0x6ff   : > { %v12116_v51 = vadd.f32 %v4844_v6, %v13509_v0  ;;  %v8230_v6 = vld [vmem:[%s13016_s1 + $0x584] sm:$0xf0] }
 0x700   : > { %13508 = vst [vmem:[#allocation42_spill] sm:$0xff] %v12113_v16  ;;  %v7753_v0 = vor.u32 %v8230_v6, %v7752_v29  ;;  %v4393_v29 = vrot.slane %v4391_v61, 4  ;;  %v4394_v6 = vrot.slane %v8380_v3, 6 }
 0x701   : > { %13510 = vst [vmem:[#allocation43_spill] sm:$0xff] %v12116_v51 }
 0x702   : > { %v4932_v33 = vpop.f32.mrf.mxu2  ;;  %5461 = vmatpush.bf16.msrb.mxu1 %v7753_v0  ;;  %v4395_v9 = vsel %vm11613_vm5, %v4393_v29, %v4394_v6 }
 0x703   : > { %v5021_v35 = vpop.f32.mrf.mxu3  ;;  %v4757_v27 = vpop.f32.mrf.mxu0  ;;  %v4493_v3 = vunpack.c.l.b16 %v4395_v9  ;;  %v4494_v51 = vunpack.c.h.b16 %v4395_v9  ;;  %v8383_v9 = vld [vmem:[%s8751_s6 + $0x178] sm:$0xff] }
 0x704   : > { %v5022_v24 = vadd.f32 %v5021_v35, %v4932_v33  ;;  %v4846_v10 = vpop.f32.mrf.mxu1 }
 0x705   : > { %v4847_v42 = vadd.f32 %v4846_v10, %v4757_v27  ;;  %v4392_v27 = vsel %vm11613_vm5, %v7554_v8, %v4391_v61 }
 0x706   : > { %v12136_v1 = vadd.f32 %v5022_v24, %v13512_v48  ;;  %4796 = vmatmul.bf16.gmra.mxu0 %v12130_v20  ;;  %v13516_v48 = vld [vmem:[#allocation10_spill] sm:$0xff]  ;;  %v4491_v11 = vunpack.c.l.b16 %v4392_v27 }
 0x707   : > { %v12140_v53 = vadd.f32 %v4847_v42, %v13514_v60  ;;  %4885 = vmatmul.bf16.gmra.mxu1 %v12132_v49  ;;  %4974 = vmatmul.bf16.gmra.mxu2 %v12130_v20 }
 0x708   : > { %13513 = vst [vmem:[#allocation45_spill] sm:$0xff] %v12136_v1  ;;  %5063 = vmatmul.bf16.gmra.mxu3 %v12132_v49  ;;  %v4492_v1 = vunpack.c.h.b16 %v4392_v27  ;;  %v12157_v61 = vpack.c.b16 %v4493_v3, %v4491_v11  ;;  %v8382_v27 = vld [vmem:[%s8751_s6 + $0x168] sm:$0xff]  ;;  %v7940_v3 = vld [vmem:[%s13016_s1 + $0x8f8] sm:$0xf0] }
 0x709   : > { %13515 = vst [vmem:[#allocation46_spill] sm:$0xff] %v12140_v53 }
 0x70a   : > { %v4935_v0 = vpop.f32.mrf.mxu2  ;;  %v12159_v6 = vpack.c.b16 %v4494_v51, %v4492_v1  ;;  %v7555_v51 = vrot.slane %v8382_v27, 10 }
 0x70b   : > { %v5024_v33 = vpop.f32.mrf.mxu3  ;;  %v4759_v35 = vpop.f32.mrf.mxu0 }
 0x70c   : > { %v5025_v24 = vadd.f32 %v5024_v33, %v4935_v0  ;;  %v4848_v10 = vpop.f32.mrf.mxu1  ;;  %v8381_v0 = vld [vmem:[%s8751_s6 + $0x170] sm:$0xff] }
 0x70d   : > { %v4849_v42 = vadd.f32 %v4848_v10, %v4759_v35  ;;  %v4398_v33 = vrot.slane %v8381_v0, 6 }
 0x70e   : > { %v12152_v60 = vadd.f32 %v5025_v24, %v13516_v48 }
 0x70f   : > { %v12155_v53 = vadd.f32 %v4849_v42, %v11559_v44  ;;  %v4400_v1 = vrot.slane %v4398_v33, 4  ;;  %v4401_v42 = vrot.slane %v8383_v9, 6 }
 0x711   : > { %13517 = vst [vmem:[#allocation47_spill] sm:$0xff] %v12155_v53 }
 0x712   : > { %v4937_v16 = vpop.f32.mrf.mxu2 }
 0x713   : > { %v5026_v8 = vpop.f32.mrf.mxu3  ;;  %v4762_v29 = vpop.f32.mrf.mxu0 }
 0x714   : > { %v5027_v35 = vadd.f32 %v5026_v8, %v4937_v16  ;;  %v4851_v24 = vpop.f32.mrf.mxu1  ;;  %v8275_v16 = vld [vmem:[%s13016_s1 + $0x8f4] sm:$0xf] }
 0x715   : > { %v4852_v10 = vadd.f32 %v4851_v24, %v4762_v29  ;;  %v7943_v29 = vor.u32 %v8275_v16, %v7940_v3  ;;  %v4399_v24 = vsel %vm11613_vm5, %v7555_v51, %v4398_v33  ;;  %v7874_v33 = vld [vmem:[%s13016_s1 + $0x870] sm:$0xf]  ;;  %v8260_v51 = vld [vmem:[%s13016_s1 + $0x874] sm:$0xf0] }
 0x716   : > { %v12163_v48 = vadd.f32 %v5027_v35, %v11565_v28  ;;  %4801 = vmatmul.bf16.gmra.mxu0 %v12157_v61  ;;  %v8259_v28 = vld [vmem:[%s13016_s1 + $0x874] sm:$0xf]  ;;  %v4496_v3 = vunpack.c.h.b16 %v4399_v24 }
 0x717   : > { %v12167_v44 = vadd.f32 %v4852_v10, %v11568_v21  ;;  %4890 = vmatmul.bf16.gmra.mxu1 %v12159_v6  ;;  %4979 = vmatmul.bf16.gmra.mxu2 %v12157_v61  ;;  %v7876_v21 = vld [vmem:[%s13016_s1 + $0x878] sm:$0xf0]  ;;  %v4402_v10 = vsel %vm11613_vm5, %v4400_v1, %v4401_v42  ;;  %v7875_v1 = vor.u32 %v8260_v51, %v7874_v33 }
 0x718   : > { %13518 = vst [vmem:[#allocation48_spill] sm:$0xff] %v12163_v48  ;;  %5068 = vmatmul.bf16.gmra.mxu3 %v12159_v6  ;;  %v7879_v11 = vor.u32 %v8259_v28, %v7876_v21  ;;  %v4495_v21 = vunpack.c.l.b16 %v4399_v24  ;;  %v4497_v48 = vunpack.c.l.b16 %v4402_v10  ;;  %v4498_v53 = vunpack.c.h.b16 %v4402_v10 }
 0x719   : > { %13519 = vst [vmem:[#allocation49_spill] sm:$0xff] %v12167_v44  ;;  %6274 = vmatpush.bf16.msra.mxu3 %v7943_v29  ;;  %6007 = vmatpush.bf16.msra.mxu0 %v7875_v1 }
 0x71a   : > { %v4940_v8 = vpop.f32.mrf.mxu2  ;;  %6185 = vmatpush.bf16.msra.mxu2 %v7879_v11  ;;  %v12208_v11 = vpack.c.b16 %v4497_v48, %v4495_v21 }
 0x71b   : > { %v5029_v0 = vpop.f32.mrf.mxu3  ;;  %v4764_v35 = vpop.f32.mrf.mxu0 }
 0x71c   : > { %v5030_v27 = vadd.f32 %v5029_v0, %v4940_v8  ;;  %v4853_v9 = vpop.f32.mrf.mxu1  ;;  %13520 = vst [vmem:[#allocation19_spill] sm:$0xff] %v12208_v11  ;;  %v12210_v0 = vpack.c.b16 %v4498_v53, %v4496_v3 }
 0x71d   : > { %v4854_v44 = vadd.f32 %v4853_v9, %v4764_v35 }
 0x71e   : > { %v12191_v28 = vadd.f32 %v5030_v27, %v11587_v18  ;;  %v7938_v18 = vld [vmem:[%s13016_s1 + $0x8f0] sm:$0xf]  ;;  %13521 = vst [vmem:[#allocation10_spill] sm:$0xff] %v12210_v0 }
 0x71f   : > { %v12194_v16 = vadd.f32 %v4854_v44, %v11590_v31  ;;  %v8276_v31 = vld [vmem:[%s13016_s1 + $0x8f4] sm:$0xf0] }
 0x720   : > { %v7939_v44 = vor.u32 %v8276_v31, %v7938_v18 }
 0x722   : > { %v4942_v42 = vpop.f32.mrf.mxu2  ;;  %6096 = vmatpush.bf16.msra.mxu1 %v7939_v44 }
 0x723   : > { %v5031_v8 = vpop.f32.mrf.mxu3  ;;  %v4767_v29 = vpop.f32.mrf.mxu0 }
 0x724   : > { %v5032_v35 = vadd.f32 %v5031_v8, %v4942_v42  ;;  %v4856_v24 = vpop.f32.mrf.mxu1 }
 0x725   : > { %v4857_v10 = vadd.f32 %v4856_v24, %v4767_v29  ;;  %v7932_v24 = vld [vmem:[%s13016_s1 + $0x8e8] sm:$0xf0] }
 0x726   : > { %v12213_v27 = vadd.f32 %v5032_v35, %v11606_v7  ;;  %4806 = vmatmul.bf16.gmra.mxu0 %v12208_v11 }
 0x727   : > { %v12217_v9 = vadd.f32 %v4857_v10, %v11609_v26  ;;  %4895 = vmatmul.bf16.gmra.mxu1 %v12210_v0  ;;  %4984 = vmatmul.bf16.gmra.mxu2 %v12208_v11 }
 0x728   : > { %5073 = vmatmul.bf16.gmra.mxu3 %v12210_v0 }
 0x72a   : > { %v4945_v53 = vpop.f32.mrf.mxu2 }
 0x72b   : > { %v5034_v48 = vpop.f32.mrf.mxu3  ;;  %v4769_v21 = vpop.f32.mrf.mxu0 }
 0x72c   : > { %v5035_v3 = vadd.f32 %v5034_v48, %v4945_v53  ;;  %v4858_v33 = vpop.f32.mrf.mxu1 }
 0x72d   : > { %v4859_v51 = vadd.f32 %v4858_v33, %v4769_v21 }
 0x72e   : > { %v12223_v7 = vadd.f32 %v5035_v3, %v11622_v25  ;;  %v8257_v25 = vld [vmem:[%s13016_s1 + $0x864] sm:$0xf] }
 0x72f   : > { %v12226_v18 = vadd.f32 %v4859_v51, %v11625_v12  ;;  %v7868_v12 = vld [vmem:[%s13016_s1 + $0x868] sm:$0xf0] }
 0x732   : > { %v4947_v26 = vpop.f32.mrf.mxu2 }
 0x733   : > { %v5036_v1 = vpop.f32.mrf.mxu3  ;;  %v4772_v31 = vpop.f32.mrf.mxu0 }
 0x734   : > { %v5037_v44 = vadd.f32 %v5036_v1, %v4947_v26  ;;  %v4861_v42 = vpop.f32.mrf.mxu1  ;;  %v7866_v26 = vld [vmem:[%s13016_s1 + $0x860] sm:$0xf]  ;;  %v8258_v1 = vld [vmem:[%s13016_s1 + $0x864] sm:$0xf0] }
 0x735   : > { %v4862_v8 = vadd.f32 %v4861_v42, %v4772_v31  ;;  %v7930_v31 = vld [vmem:[%s13016_s1 + $0x8e0] sm:$0xf] }
 0x736   : > { %v12229_v29 = vadd.f32 %v5037_v44, %v11629_v37  ;;  %5373 = vmatmul.bf16.vlgmr.msrb.gmra.mxu0 %v11689_v5  ;;  %v8273_v37 = vld [vmem:[%s13016_s1 + $0x8e4] sm:$0xf]  ;;  %v7867_v44 = vor.u32 %v8258_v1, %v7866_v26 }
 0x737   : > { %v12233_v35 = vadd.f32 %v4862_v8, %v11632_v36  ;;  %5462 = vmatmul.bf16.vlgmr.msrb.gmra.mxu1 %v11691_v41  ;;  %5551 = vmatmul.bf16.vlgmr.msrb.gmra.mxu2 %v11689_v5  ;;  %v7871_v36 = vor.u32 %v8257_v25, %v7868_v12  ;;  %v7935_v10 = vor.u32 %v8273_v37, %v7932_v24 }
 0x738   : > { %5640 = vmatmul.bf16.vlgmr.msrb.gmra.mxu3 %v11691_v41  ;;  %6008 = vmatpush.bf16.msra.mxu0 %v7867_v44 }
 0x739   : > { %6186 = vmatpush.bf16.msra.mxu2 %v7871_v36  ;;  %6275 = vmatpush.bf16.msra.mxu3 %v7935_v10 }
 0x73a   : > { %v4950_v5 = vpop.f32.mrf.mxu2 }
 0x73b   : > { %v5039_v41 = vpop.f32.mrf.mxu3  ;;  %v4774_v53 = vpop.f32.mrf.mxu0 }
 0x73c   : > { %v5040_v48 = vadd.f32 %v5039_v41, %v4950_v5  ;;  %v4863_v21 = vpop.f32.mrf.mxu1 }
 0x73d   : > { %v4864_v3 = vadd.f32 %v4863_v21, %v4774_v53 }
 0x73e   : > { %v12251_v33 = vadd.f32 %v5040_v48, %v11653_v2  ;;  %v8274_v2 = vld [vmem:[%s13016_s1 + $0x8e4] sm:$0xf0] }
 0x73f   : > { %v12254_v51 = vadd.f32 %v4864_v3, %v11656_v46  ;;  %v7931_v42 = vor.u32 %v8274_v2, %v7930_v31 }
 0x741   : > { %6097 = vmatpush.bf16.msra.mxu1 %v7931_v42  ;;  %v13522_v42 = vld [vmem:[#allocation50_spill] sm:$0xff] }
 0x742   : > { %v4952_v46 = vpop.f32.mrf.mxu2 }
 0x743   : > { %v5041_v8 = vpop.f32.mrf.mxu3  ;;  %v4777_v25 = vpop.f32.mrf.mxu0 }
 0x744   : > { %v5042_v12 = vadd.f32 %v5041_v8, %v4952_v46  ;;  %v4866_v37 = vpop.f32.mrf.mxu1  ;;  %v13523_v46 = vld [vmem:[#allocation11_spill] sm:$0xff] }
 0x745   : > { %v4867_v36 = vadd.f32 %v4866_v37, %v4777_v25  ;;  %v8271_v25 = vld [vmem:[%s13016_s1 + $0x8d4] sm:$0xf]  ;;  %v7924_v37 = vld [vmem:[%s13016_s1 + $0x8d8] sm:$0xf0] }
 0x746   : > { %v12269_v24 = vadd.f32 %v5042_v12, %v11672_v4  ;;  %5378 = vmatmul.bf16.gmra.mxu0 %v11740_v22 }
 0x747   : > { %v12273_v5 = vadd.f32 %v4867_v36, %v11675_v50  ;;  %5467 = vmatmul.bf16.gmra.mxu1 %v11742_v17  ;;  %5556 = vmatmul.bf16.gmra.mxu2 %v11740_v22 }
 0x748   : > { %5645 = vmatmul.bf16.gmra.mxu3 %v11742_v17 }
 0x74a   : > { %v4955_v10 = vpop.f32.mrf.mxu2 }
 0x74b   : > { %v5044_v41 = vpop.f32.mrf.mxu3  ;;  %v4779_v53 = vpop.f32.mrf.mxu0 }
 0x74c   : > { %v5045_v48 = vadd.f32 %v5044_v41, %v4955_v10  ;;  %v4868_v21 = vpop.f32.mrf.mxu1  ;;  %v7927_v10 = vor.u32 %v8271_v25, %v7924_v37 }
 0x74d   : > { %v4869_v3 = vadd.f32 %v4868_v21, %v4779_v53 }
 0x74e   : > { %v12279_v4 = vadd.f32 %v5045_v48, %v11684_v19  ;;  %v8255_v19 = vld [vmem:[%s13016_s1 + $0x854] sm:$0xf]  ;;  %6276 = vmatpush.bf16.msra.mxu3 %v7927_v10 }
 0x74f   : > { %v12282_v26 = vadd.f32 %v4869_v3, %v11687_v47  ;;  %v7860_v47 = vld [vmem:[%s13016_s1 + $0x858] sm:$0xf0] }
 0x750   : > { %v7863_v12 = vor.u32 %v8255_v19, %v7860_v47 }
 0x752   : > { %v4957_v50 = vpop.f32.mrf.mxu2  ;;  %6187 = vmatpush.bf16.msra.mxu2 %v7863_v12 }
 0x753   : > { %v5046_v1 = vpop.f32.mrf.mxu3  ;;  %v4782_v31 = vpop.f32.mrf.mxu0 }
 0x754   : > { %v5047_v44 = vadd.f32 %v5046_v1, %v4957_v50  ;;  %v4871_v2 = vpop.f32.mrf.mxu1 }
 0x755   : > { %v4872_v22 = vadd.f32 %v4871_v2, %v4782_v31  ;;  %v7858_v31 = vld [vmem:[%s13016_s1 + $0x850] sm:$0xf] }
 0x756   : > { %v12285_v17 = vadd.f32 %v5047_v44, %v13522_v42  ;;  %5383 = vmatmul.bf16.gmra.mxu0 %v11767_v56  ;;  %v8256_v44 = vld [vmem:[%s13016_s1 + $0x854] sm:$0xf0]  ;;  %v7922_v2 = vld [vmem:[%s13016_s1 + $0x8d0] sm:$0xf] }
 0x757   : > { %v12289_v8 = vadd.f32 %v4872_v22, %v13523_v46  ;;  %5472 = vmatmul.bf16.gmra.mxu1 %v11769_v15  ;;  %5561 = vmatmul.bf16.gmra.mxu2 %v11767_v56  ;;  %v7859_v22 = vor.u32 %v8256_v44, %v7858_v31  ;;  %v13525_v44 = vld [vmem:[#allocation23_spill] sm:$0xff] }
 0x758   : > { %5650 = vmatmul.bf16.gmra.mxu3 %v11769_v15 }
 0x759   : > { %6009 = vmatpush.bf16.msra.mxu0 %v7859_v22 }
 0x75a   : > { %v4960_v36 = vpop.f32.mrf.mxu2 }
 0x75b   : > { %v5049_v41 = vpop.f32.mrf.mxu3  ;;  %v4784_v53 = vpop.f32.mrf.mxu0 }
 0x75c   : > { %v5050_v48 = vadd.f32 %v5049_v41, %v4960_v36  ;;  %v4873_v21 = vpop.f32.mrf.mxu1  ;;  %v13524_v36 = vld [vmem:[#allocation51_spill] sm:$0xff] }
 0x75d   : > { %v4874_v3 = vadd.f32 %v4873_v21, %v4784_v53 }
 0x75e   : > { %v12307_v50 = vadd.f32 %v5050_v48, %v11723_v55  ;;  %v8272_v55 = vld [vmem:[%s13016_s1 + $0x8d4] sm:$0xf0] }
 0x75f   : > { %v12310_v1 = vadd.f32 %v4874_v3, %v11726_v38  ;;  %v7923_v42 = vor.u32 %v8272_v55, %v7922_v2 }
 0x761   : > { %6098 = vmatpush.bf16.msra.mxu1 %v7923_v42 }
 0x762   : > { %v4962_v38 = vpop.f32.mrf.mxu2 }
 0x763   : > { %v5051_v46 = vpop.f32.mrf.mxu3  ;;  %v4787_v19 = vpop.f32.mrf.mxu0 }
 0x764   : > { %v5052_v47 = vadd.f32 %v5051_v46, %v4962_v38  ;;  %v4876_v25 = vpop.f32.mrf.mxu1 }
 0x765   : > { %v4877_v12 = vadd.f32 %v4876_v25, %v4787_v19 }
 0x766   : > { %v12325_v37 = vadd.f32 %v5052_v47, %v11746_v23  ;;  %5388 = vmatmul.bf16.gmra.mxu0 %v11818_v54  ;;  %v13526_v47 = vld [vmem:[#allocation52_spill] sm:$0xff] }
 0x767   : > { %v12329_v10 = vadd.f32 %v4877_v12, %v13524_v36  ;;  %5477 = vmatmul.bf16.gmra.mxu1 %v11820_v14  ;;  %5566 = vmatmul.bf16.gmra.mxu2 %v11818_v54  ;;  %v13527_v12 = vld [vmem:[#allocation24_spill] sm:$0xff] }
 0x768   : > { %5655 = vmatmul.bf16.gmra.mxu3 %v11820_v14 }
 0x76a   : > { %v4965_v41 = vpop.f32.mrf.mxu2 }
 0x76b   : > { %v5054_v53 = vpop.f32.mrf.mxu3  ;;  %v4789_v48 = vpop.f32.mrf.mxu0 }
 0x76c   : > { %v5055_v21 = vadd.f32 %v5054_v53, %v4965_v41  ;;  %v4878_v3 = vpop.f32.mrf.mxu1  ;;  %v7852_v41 = vld [vmem:[%s13016_s1 + $0x848] sm:$0xf0]  ;;  %v8269_v53 = vld [vmem:[%s13016_s1 + $0x8c4] sm:$0xf] }
 0x76d   : > { %v4879_v31 = vadd.f32 %v4878_v3, %v4789_v48 }
 0x76e   : > { %v12335_v23 = vadd.f32 %v5055_v21, %v11762_v58  ;;  %v8253_v58 = vld [vmem:[%s13016_s1 + $0x844] sm:$0xf]  ;;  %v7916_v21 = vld [vmem:[%s13016_s1 + $0x8c8] sm:$0xf0] }
 0x76f   : > { %v12338_v2 = vadd.f32 %v4879_v31, %v13525_v44  ;;  %v7855_v48 = vor.u32 %v8253_v58, %v7852_v41  ;;  %v7919_v31 = vor.u32 %v8269_v53, %v7916_v21  ;;  %v7914_v58 = vld [vmem:[%s13016_s1 + $0x8c0] sm:$0xf] }
 0x771   : > { %6188 = vmatpush.bf16.msra.mxu2 %v7855_v48  ;;  %6277 = vmatpush.bf16.msra.mxu3 %v7919_v31 }
 0x772   : > { %v4967_v22 = vpop.f32.mrf.mxu2 }
 0x773   : > { %v5056_v55 = vpop.f32.mrf.mxu3  ;;  %v4792_v42 = vpop.f32.mrf.mxu0 }
 0x774   : > { %v5057_v38 = vadd.f32 %v5056_v55, %v4967_v22  ;;  %v4881_v46 = vpop.f32.mrf.mxu1 }
 0x775   : > { %v4882_v19 = vadd.f32 %v4881_v46, %v4792_v42 }
 0x776   : > { %v12341_v25 = vadd.f32 %v5057_v38, %v13526_v47  ;;  %5393 = vmatmul.bf16.gmra.mxu0 %v11845_v63  ;;  %v7850_v47 = vld [vmem:[%s13016_s1 + $0x840] sm:$0xf] }
 0x777   : > { %v12345_v36 = vadd.f32 %v4882_v19, %v13527_v12  ;;  %5482 = vmatmul.bf16.gmra.mxu1 %v11847_v43  ;;  %5571 = vmatmul.bf16.gmra.mxu2 %v11845_v63  ;;  %v8254_v12 = vld [vmem:[%s13016_s1 + $0x844] sm:$0xf0] }
 0x778   : > { %5660 = vmatmul.bf16.gmra.mxu3 %v11847_v43  ;;  %v7851_v41 = vor.u32 %v8254_v12, %v7850_v47 }
 0x77a   : > { %v4970_v3 = vpop.f32.mrf.mxu2  ;;  %6010 = vmatpush.bf16.msra.mxu0 %v7851_v41 }
 0x77b   : > { %v5059_v44 = vpop.f32.mrf.mxu3  ;;  %v4794_v22 = vpop.f32.mrf.mxu0 }
 0x77c   : > { %v5060_v55 = vadd.f32 %v5059_v44, %v4970_v3  ;;  %v4883_v42 = vpop.f32.mrf.mxu1 }
 0x77d   : > { %v4884_v38 = vadd.f32 %v4883_v42, %v4794_v22 }
 0x77e   : > { %v12363_v46 = vadd.f32 %v5060_v55, %v11801_v32  ;;  %v8270_v32 = vld [vmem:[%s13016_s1 + $0x8c4] sm:$0xf0]  ;;  %v13529_v55 = vld [vmem:[#allocation53_spill] sm:$0xff] }
 0x77f   : > { %v12366_v19 = vadd.f32 %v4884_v38, %v11804_v45  ;;  %v7915_v53 = vor.u32 %v8270_v32, %v7914_v58 }
 0x781   : > { %6099 = vmatpush.bf16.msra.mxu1 %v7915_v53  ;;  %v13532_v53 = vld [vmem:[#allocation16_spill] sm:$0xff] }
 0x782   : > { %v4972_v45 = vpop.f32.mrf.mxu2 }
 0x783   : > { %v5061_v48 = vpop.f32.mrf.mxu3  ;;  %v4797_v21 = vpop.f32.mrf.mxu0 }
 0x784   : > { %v5062_v3 = vadd.f32 %v5061_v48, %v4972_v45  ;;  %v4886_v31 = vpop.f32.mrf.mxu1 }
 0x785   : > { %v4887_v44 = vadd.f32 %v4886_v31, %v4797_v21 }
 0x786   : > { %v12381_v22 = vadd.f32 %v5062_v3, %v11824_v57  ;;  %5398 = vmatmul.bf16.gmra.mxu0 %v11896_v13 }
 0x787   : > { %v12385_v42 = vadd.f32 %v4887_v44, %v13529_v55  ;;  %5487 = vmatmul.bf16.gmra.mxu1 %v11898_v40  ;;  %5576 = vmatmul.bf16.gmra.mxu2 %v11896_v13 }
 0x788   : > { %13528 = vst [vmem:[#allocation50_spill] sm:$0xff] %v12381_v22  ;;  %5665 = vmatmul.bf16.gmra.mxu3 %v11898_v40 }
 0x789   : > { %13530 = vst [vmem:[#allocation11_spill] sm:$0xff] %v12385_v42  ;;  %v13534_v42 = vld [vmem:[#allocation54_spill] sm:$0xff] }
 0x78a   : > { %v4975_v38 = vpop.f32.mrf.mxu2 }
 0x78b   : > { %v5064_v47 = vpop.f32.mrf.mxu3  ;;  %v4799_v12 = vpop.f32.mrf.mxu0 }
 0x78c   : > { %v5065_v58 = vadd.f32 %v5064_v47, %v4975_v38  ;;  %v4888_v41 = vpop.f32.mrf.mxu1  ;;  %v13536_v38 = vld [vmem:[#allocation29_spill] sm:$0xff] }
 0x78d   : > { %v4889_v32 = vadd.f32 %v4888_v41, %v4799_v12  ;;  %v8267_v12 = vld [vmem:[%s13016_s1 + $0x8b4] sm:$0xf]  ;;  %v7908_v41 = vld [vmem:[%s13016_s1 + $0x8b8] sm:$0xf0] }
 0x78e   : > { %v12391_v57 = vadd.f32 %v5065_v58, %v11840_v30  ;;  %v8251_v30 = vld [vmem:[%s13016_s1 + $0x834] sm:$0xf] }
 0x78f   : > { %v12394_v45 = vadd.f32 %v4889_v32, %v13532_v53  ;;  %v7911_v53 = vor.u32 %v8267_v12, %v7908_v41  ;;  %v7906_v12 = vld [vmem:[%s13016_s1 + $0x8b0] sm:$0xf] }
 0x790   : > { %13531 = vst [vmem:[#allocation51_spill] sm:$0xff] %v12391_v57 }
 0x791   : > { %13533 = vst [vmem:[#allocation23_spill] sm:$0xff] %v12394_v45  ;;  %6278 = vmatpush.bf16.msra.mxu3 %v7911_v53  ;;  %v13550_v45 = vld [vmem:[#allocation33_spill] sm:$0xff] }
 0x792   : > { %v4977_v48 = vpop.f32.mrf.mxu2 }
 0x793   : > { %v5066_v21 = vpop.f32.mrf.mxu3  ;;  %v4802_v3 = vpop.f32.mrf.mxu0 }
 0x794   : > { %v5067_v31 = vadd.f32 %v5066_v21, %v4977_v48  ;;  %v4891_v44 = vpop.f32.mrf.mxu1 }
 0x795   : > { %v4892_v55 = vadd.f32 %v4891_v44, %v4802_v3 }
 0x796   : > { %v12397_v22 = vadd.f32 %v5067_v31, %v13534_v42  ;;  %5403 = vmatmul.bf16.gmra.mxu0 %v11923_v52  ;;  %v7844_v42 = vld [vmem:[%s13016_s1 + $0x838] sm:$0xf0] }
 0x797   : > { %v12401_v47 = vadd.f32 %v4892_v55, %v13536_v38  ;;  %5492 = vmatmul.bf16.gmra.mxu1 %v11925_v62  ;;  %5581 = vmatmul.bf16.gmra.mxu2 %v11923_v52  ;;  %v7847_v58 = vor.u32 %v8251_v30, %v7844_v42  ;;  %v13539_v38 = vld [vmem:[#allocation17_spill] sm:$0xff]  ;;  %v7842_v30 = vld [vmem:[%s13016_s1 + $0x830] sm:$0xf]  ;;  %v8252_v42 = vld [vmem:[%s13016_s1 + $0x834] sm:$0xf0] }
 0x798   : > { %13535 = vst [vmem:[#allocation52_spill] sm:$0xff] %v12397_v22  ;;  %5670 = vmatmul.bf16.gmra.mxu3 %v11925_v62 }
 0x799   : > { %13537 = vst [vmem:[#allocation24_spill] sm:$0xff] %v12401_v47  ;;  %6189 = vmatpush.bf16.msra.mxu2 %v7847_v58  ;;  %v7843_v58 = vor.u32 %v8252_v42, %v7842_v30  ;;  %v13545_v42 = vld [vmem:[#allocation6_spill] sm:$0xff] }
 0x79a   : > { %v4980_v32 = vpop.f32.mrf.mxu2 }
 0x79b   : > { %v5069_v48 = vpop.f32.mrf.mxu3  ;;  %v4804_v21 = vpop.f32.mrf.mxu0  ;;  %6011 = vmatpush.bf16.msra.mxu0 %v7843_v58 }
 0x79c   : > { %v5070_v3 = vadd.f32 %v5069_v48, %v4980_v32  ;;  %v4893_v31 = vpop.f32.mrf.mxu1 }
 0x79d   : > { %v4894_v44 = vadd.f32 %v4893_v31, %v4804_v21 }
 0x79e   : > { %v12419_v55 = vadd.f32 %v5070_v3, %v11879_v59  ;;  %v8268_v59 = vld [vmem:[%s13016_s1 + $0x8b4] sm:$0xf0] }
 0x79f   : > { %v12422_v47 = vadd.f32 %v4894_v44, %v13539_v38  ;;  %v7907_v41 = vor.u32 %v8268_v59, %v7906_v12  ;;  %v13541_v44 = vld [vmem:[#allocation30_spill] sm:$0xff] }
 0x7a0   : > { %13538 = vst [vmem:[#allocation53_spill] sm:$0xff] %v12419_v55 }
 0x7a1   : > { %13540 = vst [vmem:[#allocation16_spill] sm:$0xff] %v12422_v47  ;;  %6100 = vmatpush.bf16.msra.mxu1 %v7907_v41  ;;  %v13543_v47 = vld [vmem:[#allocation9_spill] sm:$0xff] }
 0x7a2   : > { %v4982_v32 = vpop.f32.mrf.mxu2 }
 0x7a3   : > { %v5071_v53 = vpop.f32.mrf.mxu3  ;;  %v4807_v48 = vpop.f32.mrf.mxu0 }
 0x7a4   : > { %v5072_v21 = vadd.f32 %v5071_v53, %v4982_v32  ;;  %v4896_v3 = vpop.f32.mrf.mxu1 }
 0x7a5   : > { %v4897_v31 = vadd.f32 %v4896_v3, %v4807_v48  ;;  %v13546_v48 = vld [vmem:[#allocation55_spill] sm:$0xff]  ;;  %v13548_v3 = vld [vmem:[#allocation12_spill] sm:$0xff] }
 0x7a6   : > { %v12437_v38 = vadd.f32 %v5072_v21, %v13541_v44  ;;  %5408 = vmatmul.bf16.gmra.mxu0 %v11974_v39 }
 0x7a7   : > { %v12441_v30 = vadd.f32 %v4897_v31, %v13543_v47  ;;  %5497 = vmatmul.bf16.gmra.mxu1 %v13545_v42  ;;  %5586 = vmatmul.bf16.gmra.mxu2 %v11974_v39 }
 0x7a8   : > { %13542 = vst [vmem:[#allocation54_spill] sm:$0xff] %v12437_v38  ;;  %5675 = vmatmul.bf16.gmra.mxu3 %v13545_v42  ;;  %v13552_v42 = vld [vmem:[#allocation20_spill] sm:$0xff] }
 0x7a9   : > { %13544 = vst [vmem:[#allocation29_spill] sm:$0xff] %v12441_v30 }
 0x7aa   : > { %v4985_v12 = vpop.f32.mrf.mxu2 }
 0x7ab   : > { %v5074_v58 = vpop.f32.mrf.mxu3  ;;  %v4809_v59 = vpop.f32.mrf.mxu0 }
 0x7ac   : > { %v5075_v41 = vadd.f32 %v5074_v58, %v4985_v12  ;;  %v4898_v32 = vpop.f32.mrf.mxu1  ;;  %v13553_v12 = vld [vmem:[#allocation13_spill] sm:$0xff] }
 0x7ad   : > { %v4899_v53 = vadd.f32 %v4898_v32, %v4809_v59  ;;  %v13555_v59 = vld [vmem:[#allocation21_spill] sm:$0xff] }
 0x7ae   : > { %v12447_v21 = vadd.f32 %v5075_v41, %v13546_v48  ;;  %v8249_v41 = vld [vmem:[%s13016_s1 + $0x824] sm:$0xf] }
 0x7af   : > { %v12450_v44 = vadd.f32 %v4899_v53, %v13548_v3 }
 0x7b0   : > { %13547 = vst [vmem:[#allocation17_spill] sm:$0xff] %v12447_v21 }
 0x7b1   : > { %13549 = vst [vmem:[#allocation30_spill] sm:$0xff] %v12450_v44 }
 0x7b2   : > { %v4987_v47 = vpop.f32.mrf.mxu2 }
 0x7b3   : > { %v5076_v31 = vpop.f32.mrf.mxu3  ;;  %v5374_v30 = vpop.f32.mrf.mxu0 }
 0x7b4   : > { %v5077_v38 = vadd.f32 %v5076_v31, %v4987_v47  ;;  %v5463_v55 = vpop.f32.mrf.mxu1 }
 0x7b5   : > { %v5464_v22 = vadd.f32 %v5463_v55, %v5374_v30  ;;  %v8265_v55 = vld [vmem:[%s13016_s1 + $0x8a4] sm:$0xf] }
 0x7b6   : > { %v12453_v57 = vadd.f32 %v5077_v38, %v13550_v45  ;;  %5413 = vmatmul.bf16.gmra.mxu0 %v13552_v42  ;;  %v7836_v45 = vld [vmem:[%s13016_s1 + $0x828] sm:$0xf0] }
 0x7b7   : > { %v12457_v58 = vadd.f32 %v5464_v22, %v13553_v12  ;;  %5502 = vmatmul.bf16.gmra.mxu1 %v13555_v59  ;;  %5591 = vmatmul.bf16.gmra.mxu2 %v13552_v42  ;;  %v7839_v22 = vor.u32 %v8249_v41, %v7836_v45  ;;  %v7900_v38 = vld [vmem:[%s13016_s1 + $0x8a8] sm:$0xf0]  ;;  %v7834_v41 = vld [vmem:[%s13016_s1 + $0x820] sm:$0xf]  ;;  %v8250_v45 = vld [vmem:[%s13016_s1 + $0x824] sm:$0xf0] }
 0x7b8   : > { %13551 = vst [vmem:[#allocation9_spill] sm:$0xff] %v12453_v57  ;;  %5680 = vmatmul.bf16.gmra.mxu3 %v13555_v59  ;;  %v7903_v32 = vor.u32 %v8265_v55, %v7900_v38  ;;  %v13556_v12 = vld [vmem:[#allocation34_spill] sm:$0xff]  ;;  %v13558_v57 = vld [vmem:[#allocation5_spill] sm:$0xff] }
 0x7b9   : > { %13554 = vst [vmem:[#allocation55_spill] sm:$0xff] %v12457_v58  ;;  %6190 = vmatpush.bf16.msra.mxu2 %v7839_v22  ;;  %v7898_v55 = vld [vmem:[%s13016_s1 + $0x8a0] sm:$0xf]  ;;  %v7835_v22 = vor.u32 %v8250_v45, %v7834_v41  ;;  %v8266_v38 = vld [vmem:[%s13016_s1 + $0x8a4] sm:$0xf0]  ;;  %v13565_v45 = vld [vmem:[#allocation31_spill] sm:$0xff] }
 0x7ba   : > { %v5552_v30 = vpop.f32.mrf.mxu2  ;;  %6279 = vmatpush.bf16.msra.mxu3 %v7903_v32  ;;  %v13570_v59 = vld [vmem:[#allocation22_spill] sm:$0xff] }
 0x7bb   : > { %v5641_v53 = vpop.f32.mrf.mxu3  ;;  %v5376_v48 = vpop.f32.mrf.mxu0  ;;  %6012 = vmatpush.bf16.msra.mxu0 %v7835_v22  ;;  %v13572_v42 = vld [vmem:[#allocation38_spill] sm:$0xff] }
 0x7bc   : > { %v5642_v3 = vadd.f32 %v5641_v53, %v5552_v30  ;;  %v5465_v47 = vpop.f32.mrf.mxu1  ;;  %v7899_v30 = vor.u32 %v8266_v38, %v7898_v55 }
 0x7bd   : > { %v5466_v31 = vadd.f32 %v5465_v47, %v5376_v48 }
 0x7be   : > { %v12475_v58 = vadd.f32 %v5642_v3, %v13556_v12  ;;  %6101 = vmatpush.bf16.msra.mxu1 %v7899_v30 }
 0x7bf   : > { %v12478_v44 = vadd.f32 %v5466_v31, %v13558_v57  ;;  %v13560_v31 = vld [vmem:[#allocation14_spill] sm:$0xff] }
 0x7c0   : > { %13557 = vst [vmem:[#allocation12_spill] sm:$0xff] %v12475_v58  ;;  %v13563_v58 = vld [vmem:[#allocation15_spill] sm:$0xff] }
 0x7c1   : > { %13559 = vst [vmem:[#allocation33_spill] sm:$0xff] %v12478_v44  ;;  %v13562_v44 = vld [vmem:[#allocation28_spill] sm:$0xff] }
 0x7c2   : > { %v5554_v57 = vpop.f32.mrf.mxu2 }
 0x7c3   : > { %v5643_v32 = vpop.f32.mrf.mxu3  ;;  %v5379_v53 = vpop.f32.mrf.mxu0 }
 0x7c4   : > { %v5644_v48 = vadd.f32 %v5643_v32, %v5554_v57  ;;  %v5468_v3 = vpop.f32.mrf.mxu1 }
 0x7c5   : > { %v5469_v47 = vadd.f32 %v5468_v3, %v5379_v53  ;;  %v13566_v53 = vld [vmem:[#allocation18_spill] sm:$0xff]  ;;  %v13568_v3 = vld [vmem:[#allocation8_spill] sm:$0xff] }
 0x7c6   : > { %v12493_v12 = vadd.f32 %v5644_v48, %v13560_v31  ;;  %5418 = vmatmul.bf16.gmra.mxu0 %v13562_v44 }
 0x7c7   : > { %v12497_v41 = vadd.f32 %v5469_v47, %v13563_v58  ;;  %5507 = vmatmul.bf16.gmra.mxu1 %v13565_v45  ;;  %5596 = vmatmul.bf16.gmra.mxu2 %v13562_v44 }
 0x7c8   : > { %13561 = vst [vmem:[#allocation13_spill] sm:$0xff] %v12493_v12  ;;  %5685 = vmatmul.bf16.gmra.mxu3 %v13565_v45 }
 0x7c9   : > { %13564 = vst [vmem:[#allocation34_spill] sm:$0xff] %v12497_v41 }
 0x7ca   : > { %v5557_v55 = vpop.f32.mrf.mxu2 }
 0x7cb   : > { %v5646_v22 = vpop.f32.mrf.mxu3  ;;  %v5381_v38 = vpop.f32.mrf.mxu0 }
 0x7cc   : > { %v5647_v30 = vadd.f32 %v5646_v22, %v5557_v55  ;;  %v5470_v57 = vpop.f32.mrf.mxu1  ;;  %v13573_v55 = vld [vmem:[#allocation25_spill] sm:$0xff] }
 0x7cd   : > { %v5471_v32 = vadd.f32 %v5470_v57, %v5381_v38  ;;  %v13575_v38 = vld [vmem:[#allocation39_spill] sm:$0xff] }
 0x7ce   : > { %v12503_v48 = vadd.f32 %v5647_v30, %v13566_v53  ;;  %v8247_v30 = vld [vmem:[%s13016_s1 + $0x814] sm:$0xf] }
 0x7cf   : > { %v12506_v31 = vadd.f32 %v5471_v32, %v13568_v3 }
 0x7d0   : > { %13567 = vst [vmem:[#allocation5_spill] sm:$0xff] %v12503_v48  ;;  %v13588_v48 = vld [vmem:[#allocation40_spill] sm:$0xff] }
 0x7d1   : > { %13569 = vst [vmem:[#allocation14_spill] sm:$0xff] %v12506_v31 }
 0x7d2   : > { %v5559_v58 = vpop.f32.mrf.mxu2 }
 0x7d3   : > { %v5648_v47 = vpop.f32.mrf.mxu3  ;;  %v5384_v41 = vpop.f32.mrf.mxu0 }
 0x7d4   : > { %v5649_v12 = vadd.f32 %v5648_v47, %v5559_v58  ;;  %v5473_v21 = vpop.f32.mrf.mxu1 }
 0x7d5   : > { %v5474_v44 = vadd.f32 %v5473_v21, %v5384_v41  ;;  %v7828_v21 = vld [vmem:[%s13016_s1 + $0x818] sm:$0xf0] }
 0x7d6   : > { %v12509_v45 = vadd.f32 %v5649_v12, %v13570_v59  ;;  %5423 = vmatmul.bf16.gmra.mxu0 %v13572_v42  ;;  %v8263_v59 = vld [vmem:[%s13016_s1 + $0x894] sm:$0xf]  ;;  %v7892_v12 = vld [vmem:[%s13016_s1 + $0x898] sm:$0xf0] }
 0x7d7   : > { %v12513_v22 = vadd.f32 %v5474_v44, %v13573_v55  ;;  %5512 = vmatmul.bf16.gmra.mxu1 %v13575_v38  ;;  %5601 = vmatmul.bf16.gmra.mxu2 %v13572_v42  ;;  %v7831_v44 = vor.u32 %v8247_v30, %v7828_v21  ;;  %v7895_v57 = vor.u32 %v8263_v59, %v7892_v12  ;;  %v13576_v55 = vld [vmem:[#allocation26_spill] sm:$0xff]  ;;  %v7826_v30 = vld [vmem:[%s13016_s1 + $0x810] sm:$0xf]  ;;  %v8248_v21 = vld [vmem:[%s13016_s1 + $0x814] sm:$0xf0] }
 0x7d8   : > { %13571 = vst [vmem:[#allocation15_spill] sm:$0xff] %v12509_v45  ;;  %5690 = vmatmul.bf16.gmra.mxu3 %v13575_v38  ;;  %v13578_v45 = vld [vmem:[#allocation27_spill] sm:$0xff]  ;;  %v8264_v12 = vld [vmem:[%s13016_s1 + $0x894] sm:$0xf0] }
 0x7d9   : > { %13574 = vst [vmem:[#allocation18_spill] sm:$0xff] %v12513_v22  ;;  %6191 = vmatpush.bf16.msra.mxu2 %v7831_v44  ;;  %6280 = vmatpush.bf16.msra.mxu3 %v7895_v57  ;;  %v7890_v59 = vld [vmem:[%s13016_s1 + $0x890] sm:$0xf]  ;;  %v7827_v44 = vor.u32 %v8248_v21, %v7826_v30 }
 0x7da   : > { %v5562_v41 = vpop.f32.mrf.mxu2 }
 0x7db   : > { %v5651_v32 = vpop.f32.mrf.mxu3  ;;  %v5386_v53 = vpop.f32.mrf.mxu0  ;;  %6013 = vmatpush.bf16.msra.mxu0 %v7827_v44 }
 0x7dc   : > { %v5652_v3 = vadd.f32 %v5651_v32, %v5562_v41  ;;  %v5475_v58 = vpop.f32.mrf.mxu1  ;;  %v7891_v41 = vor.u32 %v8264_v12, %v7890_v59 }
 0x7dd   : > { %v5476_v47 = vadd.f32 %v5475_v58, %v5386_v53 }
 0x7de   : > { %v12531_v22 = vadd.f32 %v5652_v3, %v13576_v55  ;;  %6102 = vmatpush.bf16.msra.mxu1 %v7891_v41 }
 0x7df   : > { %v12534_v31 = vadd.f32 %v5476_v47, %v13578_v45  ;;  %v13580_v47 = vld [vmem:[#allocation32_spill] sm:$0xff] }
 0x7e0   : > { %13577 = vst [vmem:[#allocation8_spill] sm:$0xff] %v12531_v22 }
 0x7e1   : > { %13579 = vst [vmem:[#allocation22_spill] sm:$0xff] %v12534_v31  ;;  %v13582_v31 = vld [vmem:[#allocation35_spill] sm:$0xff] }
 0x7e2   : > { %v5564_v45 = vpop.f32.mrf.mxu2 }
 0x7e3   : > { %v5653_v57 = vpop.f32.mrf.mxu3  ;;  %v5389_v32 = vpop.f32.mrf.mxu0 }
 0x7e4   : > { %v5654_v53 = vadd.f32 %v5653_v57, %v5564_v45  ;;  %v5478_v3 = vpop.f32.mrf.mxu1  ;;  %v13584_v57 = vld [vmem:[#allocation36_spill] sm:$0xff] }
 0x7e5   : > { %v5479_v58 = vadd.f32 %v5478_v3, %v5389_v32 }
 0x7e6   : > { %v12549_v55 = vadd.f32 %v5654_v53, %v13580_v47  ;;  %5428 = vmatmul.bf16.gmra.mxu0 %v12130_v20  ;;  %v13586_v53 = vld [vmem:[#allocation37_spill] sm:$0xff] }
 0x7e7   : > { %v12553_v30 = vadd.f32 %v5479_v58, %v13582_v31  ;;  %5517 = vmatmul.bf16.gmra.mxu1 %v12132_v49  ;;  %5606 = vmatmul.bf16.gmra.mxu2 %v12130_v20 }
 0x7e8   : > { %13581 = vst [vmem:[#allocation38_spill] sm:$0xff] %v12549_v55  ;;  %5695 = vmatmul.bf16.gmra.mxu3 %v12132_v49 }
 0x7e9   : > { %13583 = vst [vmem:[#allocation25_spill] sm:$0xff] %v12553_v30 }
 0x7ea   : > { %v5567_v21 = vpop.f32.mrf.mxu2 }
 0x7eb   : > { %v5656_v59 = vpop.f32.mrf.mxu3  ;;  %v5391_v44 = vpop.f32.mrf.mxu0 }
 0x7ec   : > { %v5657_v12 = vadd.f32 %v5656_v59, %v5567_v21  ;;  %v5480_v41 = vpop.f32.mrf.mxu1  ;;  %v13590_v21 = vld [vmem:[#allocation41_spill] sm:$0xff] }
 0x7ed   : > { %v5481_v45 = vadd.f32 %v5480_v41, %v5391_v44  ;;  %v8245_v44 = vld [vmem:[%s13016_s1 + $0x804] sm:$0xf] }
 0x7ee   : > { %v12559_v32 = vadd.f32 %v5657_v12, %v13584_v57 }
 0x7ef   : > { %v12562_v3 = vadd.f32 %v5481_v45, %v13586_v53 }
 0x7f0   : > { %13585 = vst [vmem:[#allocation39_spill] sm:$0xff] %v12559_v32 }
 0x7f1   : > { %13587 = vst [vmem:[#allocation26_spill] sm:$0xff] %v12562_v3 }
 0x7f2   : > { %v5569_v31 = vpop.f32.mrf.mxu2 }
 0x7f3   : > { %v5658_v58 = vpop.f32.mrf.mxu3  ;;  %v5394_v47 = vpop.f32.mrf.mxu0 }
 0x7f4   : > { %v5659_v30 = vadd.f32 %v5658_v58, %v5569_v31  ;;  %v5483_v55 = vpop.f32.mrf.mxu1 }
 0x7f5   : > { %v5484_v22 = vadd.f32 %v5483_v55, %v5394_v47  ;;  %v8261_v55 = vld [vmem:[%s13016_s1 + $0x884] sm:$0xf]  ;;  %v13592_v47 = vld [vmem:[#allocation42_spill] sm:$0xff] }
 0x7f6   : > { %v12565_v49 = vadd.f32 %v5659_v30, %v13588_v48  ;;  %5433 = vmatmul.bf16.gmra.mxu0 %v12157_v61  ;;  %v7820_v48 = vld [vmem:[%s13016_s1 + $0x808] sm:$0xf0] }
 0x7f7   : > { %v12569_v59 = vadd.f32 %v5484_v22, %v13590_v21  ;;  %5522 = vmatmul.bf16.gmra.mxu1 %v12159_v6  ;;  %5611 = vmatmul.bf16.gmra.mxu2 %v12157_v61  ;;  %v7823_v22 = vor.u32 %v8245_v44, %v7820_v48  ;;  %v7884_v30 = vld [vmem:[%s13016_s1 + $0x888] sm:$0xf0]  ;;  %v7818_v44 = vld [vmem:[%s13016_s1 + $0x800] sm:$0xf]  ;;  %v8246_v48 = vld [vmem:[%s13016_s1 + $0x804] sm:$0xf0] }
 0x7f8   : > { %13589 = vst [vmem:[#allocation27_spill] sm:$0xff] %v12565_v49  ;;  %5700 = vmatmul.bf16.gmra.mxu3 %v12159_v6  ;;  %v7887_v41 = vor.u32 %v8261_v55, %v7884_v30  ;;  %v7882_v55 = vld [vmem:[%s13016_s1 + $0x880] sm:$0xf]  ;;  %v8262_v30 = vld [vmem:[%s13016_s1 + $0x884] sm:$0xf0] }
 0x7f9   : > { %13591 = vst [vmem:[#allocation32_spill] sm:$0xff] %v12569_v59  ;;  %6192 = vmatpush.bf16.msra.mxu2 %v7823_v22  ;;  %v13594_v59 = vld [vmem:[#allocation43_spill] sm:$0xff]  ;;  %v7819_v22 = vor.u32 %v8246_v48, %v7818_v44  ;;  %v13598_v44 = vld [vmem:[#allocation46_spill] sm:$0xff] }
 0x7fa   : > { %v5572_v12 = vpop.f32.mrf.mxu2  ;;  %6281 = vmatpush.bf16.msra.mxu3 %v7887_v41 }
 0x7fb   : > { %v5661_v45 = vpop.f32.mrf.mxu3  ;;  %v5396_v57 = vpop.f32.mrf.mxu0  ;;  %6014 = vmatpush.bf16.msra.mxu0 %v7819_v22 }
 0x7fc   : > { %v5662_v53 = vadd.f32 %v5661_v45, %v5572_v12  ;;  %v5485_v31 = vpop.f32.mrf.mxu1  ;;  %v7883_v12 = vor.u32 %v8262_v30, %v7882_v55  ;;  %v8385_v55 = vld [vmem:[%s8751_s6 + $0x180] sm:$0xff] }
 0x7fd   : > { %v5486_v58 = vadd.f32 %v5485_v31, %v5396_v57  ;;  %v8384_v57 = vld [vmem:[%s8751_s6 + $0x188] sm:$0xff]  ;;  %v7684_v22 = vrot.slane %v8385_v55, 10 }
 0x7fe   : > { %v12587_v21 = vadd.f32 %v5662_v53, %v13592_v47  ;;  %v5145_v53 = vrot.slane %v8384_v57, 6  ;;  %6103 = vmatpush.bf16.msra.mxu1 %v7883_v12  ;;  %v8386_v57 = vld [vmem:[%s8751_s6 + $0x190] sm:$0xff] }
 0x7ff   : > { %v12590_v49 = vadd.f32 %v5486_v58, %v13594_v59  ;;  %v5148_v12 = vrot.slane %v8386_v57, 6 }
 0x800   : > { %13593 = vst [vmem:[#allocation35_spill] sm:$0xff] %v12587_v21  ;;  %v5147_v30 = vrot.slane %v5145_v53, 4 }
 0x801   : > { %13595 = vst [vmem:[#allocation36_spill] sm:$0xff] %v12590_v49  ;;  %v13596_v49 = vld [vmem:[#allocation45_spill] sm:$0xff] }
 0x802   : > { %v5574_v59 = vpop.f32.mrf.mxu2 }
 0x803   : > { %v5663_v41 = vpop.f32.mrf.mxu3  ;;  %v5399_v45 = vpop.f32.mrf.mxu0 }
 0x804   : > { %v5664_v31 = vadd.f32 %v5663_v41, %v5574_v59  ;;  %v5488_v58 = vpop.f32.mrf.mxu1 }
 0x805   : > { %v5489_v47 = vadd.f32 %v5488_v58, %v5399_v45  ;;  %v5146_v45 = vsel %vm11613_vm5, %v7684_v22, %v5145_v53 }
 0x806   : > { %v12606_v21 = vadd.f32 %v5664_v31, %v13596_v49  ;;  %5438 = vmatmul.bf16.gmra.mxu0 %v12208_v11  ;;  %v5149_v31 = vsel %vm11613_vm5, %v5147_v30, %v5148_v12  ;;  %v5190_v32 = vunpack.c.h.b16 %v5146_v45 }
 0x807   : > { %v12610_v48 = vadd.f32 %v5489_v47, %v13598_v44  ;;  %5527 = vmatmul.bf16.gmra.mxu1 %v12210_v0  ;;  %5616 = vmatmul.bf16.gmra.mxu2 %v12208_v11  ;;  %v5191_v57 = vunpack.c.l.b16 %v5149_v31 }
 0x808   : > { %13597 = vst [vmem:[#allocation37_spill] sm:$0xff] %v12606_v21  ;;  %5705 = vmatmul.bf16.gmra.mxu3 %v12210_v0  ;;  %v13601_v21 = vld [vmem:[#allocation47_spill] sm:$0xff]  ;;  %v5192_v0 = vunpack.c.h.b16 %v5149_v31  ;;  %v8389_v31 = vld [vmem:[%s8751_s6 + $0x1a8] sm:$0xff] }
 0x809   : > { %13599 = vst [vmem:[#allocation40_spill] sm:$0xff] %v12610_v48  ;;  %v5189_v48 = vunpack.c.l.b16 %v5146_v45 }
 0x80a   : > { %v5577_v59 = vpop.f32.mrf.mxu2  ;;  %v12629_v12 = vpack.c.b16 %v5192_v0, %v5190_v32 }
 0x80b   : > { %v5666_v41 = vpop.f32.mrf.mxu3  ;;  %v5401_v49 = vpop.f32.mrf.mxu0  ;;  %v12627_v53 = vpack.c.b16 %v5191_v57, %v5189_v48  ;;  %v8388_v48 = vld [vmem:[%s8751_s6 + $0x198] sm:$0xff] }
 0x80c   : > { %v5667_v58 = vadd.f32 %v5666_v41, %v5577_v59  ;;  %v5490_v47 = vpop.f32.mrf.mxu1  ;;  %13603 = vst [vmem:[#allocation43_spill] sm:$0xff] %v12629_v12  ;;  %v8387_v59 = vld [vmem:[%s8751_s6 + $0x1a0] sm:$0xff]  ;;  %v7685_v0 = vrot.slane %v8388_v48, 10 }
 0x80d   : > { %v5491_v44 = vadd.f32 %v5490_v47, %v5401_v49  ;;  %v5152_v41 = vrot.slane %v8387_v59, 6  ;;  %v13604_v47 = vld [vmem:[#allocation48_spill] sm:$0xff] }
 0x80e   : > { %v12622_v55 = vadd.f32 %v5667_v58, %v12152_v60 }
 0x80f   : > { %v12625_v3 = vadd.f32 %v5491_v44, %v13601_v21  ;;  %v13606_v21 = vld [vmem:[#allocation49_spill] sm:$0xff]  ;;  %v5154_v32 = vrot.slane %v5152_v41, 4  ;;  %v5155_v44 = vrot.slane %v8389_v31, 6 }
 0x810   : > { %13600 = vst [vmem:[#allocation41_spill] sm:$0xff] %v12622_v55 }
 0x811   : > { %13602 = vst [vmem:[#allocation42_spill] sm:$0xff] %v12625_v3  ;;  %v5156_v59 = vsel %vm11613_vm5, %v5154_v32, %v5155_v44 }
 0x812   : > { %v5579_v11 = vpop.f32.mrf.mxu2  ;;  %v5195_v48 = vunpack.c.l.b16 %v5156_v59 }
 0x813   : > { %v5668_v22 = vpop.f32.mrf.mxu3  ;;  %v5404_v30 = vpop.f32.mrf.mxu0 }
 0x814   : > { %v5669_v60 = vadd.f32 %v5668_v22, %v5579_v11  ;;  %v5493_v49 = vpop.f32.mrf.mxu1 }
 0x815   : > { %v5494_v58 = vadd.f32 %v5493_v49, %v5404_v30  ;;  %v5153_v30 = vsel %vm11613_vm5, %v7685_v0, %v5152_v41 }
 0x816   : > { %v12633_v55 = vadd.f32 %v5669_v60, %v13604_v47  ;;  %5443 = vmatmul.bf16.gmra.mxu0 %v12627_v53 }
 0x817   : > { %v12637_v45 = vadd.f32 %v5494_v58, %v13606_v21  ;;  %5532 = vmatmul.bf16.gmra.mxu1 %v12629_v12  ;;  %5621 = vmatmul.bf16.gmra.mxu2 %v12627_v53  ;;  %v5193_v21 = vunpack.c.l.b16 %v5153_v30 }
 0x818   : > { %13605 = vst [vmem:[#allocation45_spill] sm:$0xff] %v12633_v55  ;;  %5710 = vmatmul.bf16.gmra.mxu3 %v12629_v12  ;;  %v5196_v55 = vunpack.c.h.b16 %v5156_v59 }
 0x819   : > { %13607 = vst [vmem:[#allocation46_spill] sm:$0xff] %v12637_v45  ;;  %v5194_v45 = vunpack.c.h.b16 %v5153_v30  ;;  %v12654_v12 = vpack.c.b16 %v5195_v48, %v5193_v21 }
 0x81a   : > { %v5582_v11 = vpop.f32.mrf.mxu2 }
 0x81b   : > { %v5671_v57 = vpop.f32.mrf.mxu3  ;;  %v5406_v22 = vpop.f32.mrf.mxu0  ;;  %v12656_v34 = vpack.c.b16 %v5196_v55, %v5194_v45 }
 0x81c   : > { %v5672_v60 = vadd.f32 %v5671_v57, %v5582_v11  ;;  %v5495_v49 = vpop.f32.mrf.mxu1 }
 0x81d   : > { %v5496_v58 = vadd.f32 %v5495_v49, %v5406_v22 }
 0x81e   : > { %v12649_v47 = vadd.f32 %v5672_v60, %v12191_v28 }
 0x81f   : > { %v12652_v31 = vadd.f32 %v5496_v58, %v12194_v16 }
 0x822   : > { %v5584_v3 = vpop.f32.mrf.mxu2 }
 0x823   : > { %v5673_v41 = vpop.f32.mrf.mxu3  ;;  %v5409_v0 = vpop.f32.mrf.mxu0 }
 0x824   : > { %v5674_v32 = vadd.f32 %v5673_v41, %v5584_v3  ;;  %v5498_v44 = vpop.f32.mrf.mxu1 }
 0x825   : > { %v5499_v11 = vadd.f32 %v5498_v44, %v5409_v0 }
 0x826   : > { %v12659_v28 = vadd.f32 %v5674_v32, %v12213_v27  ;;  %5448 = vmatmul.bf16.gmra.mxu0 %v12654_v12 }
 0x827   : > { %v12663_v16 = vadd.f32 %v5499_v11, %v12217_v9  ;;  %5537 = vmatmul.bf16.gmra.mxu1 %v12656_v34  ;;  %5626 = vmatmul.bf16.gmra.mxu2 %v12654_v12 }
 0x828   : > { %5715 = vmatmul.bf16.gmra.mxu3 %v12656_v34 }
 0x82a   : > { %v5587_v57 = vpop.f32.mrf.mxu2 }
 0x82b   : > { %v5676_v55 = vpop.f32.mrf.mxu3  ;;  %v5411_v45 = vpop.f32.mrf.mxu0 }
 0x82c   : > { %v5677_v3 = vadd.f32 %v5676_v55, %v5587_v57  ;;  %v5500_v22 = vpop.f32.mrf.mxu1 }
 0x82d   : > { %v5501_v30 = vadd.f32 %v5500_v22, %v5411_v45 }
 0x82e   : > { %v12669_v27 = vadd.f32 %v5677_v3, %v12223_v7 }
 0x82f   : > { %v12672_v59 = vadd.f32 %v5501_v30, %v12226_v18 }
 0x832   : > { %v5589_v9 = vpop.f32.mrf.mxu2 }
 0x833   : > { %v5678_v60 = vpop.f32.mrf.mxu3  ;;  %v5414_v49 = vpop.f32.mrf.mxu0 }
 0x834   : > { %v5679_v58 = vadd.f32 %v5678_v60, %v5589_v9  ;;  %v5503_v21 = vpop.f32.mrf.mxu1 }
 0x835   : > { %v5504_v48 = vadd.f32 %v5503_v21, %v5414_v49 }
 0x836   : > { %v12675_v41 = vadd.f32 %v5679_v58, %v12229_v29  ;;  %6015 = vmatmul.bf16.vlgmr.msra.gmra.mxu0 %v11767_v56 }
 0x837   : > { %v12679_v0 = vadd.f32 %v5504_v48, %v12233_v35  ;;  %6104 = vmatmul.bf16.vlgmr.msra.gmra.mxu1 %v11769_v15  ;;  %6193 = vmatmul.bf16.vlgmr.msra.gmra.mxu2 %v11767_v56 }
 0x838   : > { %6282 = vmatmul.bf16.vlgmr.msra.gmra.mxu3 %v11769_v15 }
 0x83a   : > { %v5592_v7 = vpop.f32.mrf.mxu2 }
 0x83b   : > { %v5681_v18 = vpop.f32.mrf.mxu3  ;;  %v5416_v32 = vpop.f32.mrf.mxu0 }
 0x83c   : > { %v5682_v44 = vadd.f32 %v5681_v18, %v5592_v7  ;;  %v5505_v11 = vpop.f32.mrf.mxu1 }
 0x83d   : > { %v5506_v57 = vadd.f32 %v5505_v11, %v5416_v32 }
 0x83e   : > { %v12685_v29 = vadd.f32 %v5682_v44, %v12251_v33 }
 0x83f   : > { %v12688_v55 = vadd.f32 %v5506_v57, %v12254_v51 }
 0x842   : > { %v5594_v35 = vpop.f32.mrf.mxu2 }
 0x843   : > { %v5683_v45 = vpop.f32.mrf.mxu3  ;;  %v5419_v3 = vpop.f32.mrf.mxu0 }
 0x844   : > { %v5684_v22 = vadd.f32 %v5683_v45, %v5594_v35  ;;  %v5508_v30 = vpop.f32.mrf.mxu1 }
 0x845   : > { %v5509_v56 = vadd.f32 %v5508_v30, %v5419_v3 }
 0x846   : > { %v12691_v15 = vadd.f32 %v5684_v22, %v12269_v24  ;;  %6020 = vmatmul.bf16.gmra.mxu0 %v11818_v54 }
 0x847   : > { %v12695_v9 = vadd.f32 %v5509_v56, %v12273_v5  ;;  %6109 = vmatmul.bf16.gmra.mxu1 %v11820_v14  ;;  %6198 = vmatmul.bf16.gmra.mxu2 %v11818_v54 }
 0x848   : > { %6287 = vmatmul.bf16.gmra.mxu3 %v11820_v14 }
 0x84a   : > { %v5597_v33 = vpop.f32.mrf.mxu2 }
 0x84b   : > { %v5686_v51 = vpop.f32.mrf.mxu3  ;;  %v5421_v60 = vpop.f32.mrf.mxu0 }
 0x84c   : > { %v5687_v49 = vadd.f32 %v5686_v51, %v5597_v33  ;;  %v5510_v58 = vpop.f32.mrf.mxu1 }
 0x84d   : > { %v5511_v21 = vadd.f32 %v5510_v58, %v5421_v60 }
 0x84e   : > { %v12701_v24 = vadd.f32 %v5687_v49, %v12279_v4 }
 0x84f   : > { %v12704_v48 = vadd.f32 %v5511_v21, %v12282_v26 }
 0x852   : > { %v5599_v5 = vpop.f32.mrf.mxu2 }
 0x853   : > { %v5688_v7 = vpop.f32.mrf.mxu3  ;;  %v5424_v18 = vpop.f32.mrf.mxu0 }
 0x854   : > { %v5689_v32 = vadd.f32 %v5688_v7, %v5599_v5  ;;  %v5513_v44 = vpop.f32.mrf.mxu1 }
 0x855   : > { %v5514_v54 = vadd.f32 %v5513_v44, %v5424_v18 }
 0x856   : > { %v12707_v14 = vadd.f32 %v5689_v32, %v12285_v17  ;;  %6025 = vmatmul.bf16.gmra.mxu0 %v11845_v63 }
 0x857   : > { %v12711_v11 = vadd.f32 %v5514_v54, %v12289_v8  ;;  %6114 = vmatmul.bf16.gmra.mxu1 %v11847_v43  ;;  %6203 = vmatmul.bf16.gmra.mxu2 %v11845_v63 }
 0x858   : > { %6292 = vmatmul.bf16.gmra.mxu3 %v11847_v43 }
 0x85a   : > { %v5602_v4 = vpop.f32.mrf.mxu2 }
 0x85b   : > { %v5691_v26 = vpop.f32.mrf.mxu3  ;;  %v5426_v57 = vpop.f32.mrf.mxu0 }
 0x85c   : > { %v5692_v35 = vadd.f32 %v5691_v26, %v5602_v4  ;;  %v5515_v45 = vpop.f32.mrf.mxu1 }
 0x85d   : > { %v5516_v3 = vadd.f32 %v5515_v45, %v5426_v57 }
 0x85e   : > { %v12717_v17 = vadd.f32 %v5692_v35, %v12307_v50 }
 0x85f   : > { %v12720_v22 = vadd.f32 %v5516_v3, %v12310_v1 }
 0x862   : > { %v5604_v8 = vpop.f32.mrf.mxu2 }
 0x863   : > { %v5693_v30 = vpop.f32.mrf.mxu3  ;;  %v5429_v56 = vpop.f32.mrf.mxu0 }
 0x864   : > { %v5694_v33 = vadd.f32 %v5693_v30, %v5604_v8  ;;  %v5518_v51 = vpop.f32.mrf.mxu1 }
 0x865   : > { %v5519_v63 = vadd.f32 %v5518_v51, %v5429_v56  ;;  %v13608_v51 = vld [vmem:[#allocation50_spill] sm:$0xff] }
 0x866   : > { %v12723_v43 = vadd.f32 %v5694_v33, %v12325_v37  ;;  %6030 = vmatmul.bf16.gmra.mxu0 %v11896_v13 }
 0x867   : > { %v12727_v60 = vadd.f32 %v5519_v63, %v12329_v10  ;;  %6119 = vmatmul.bf16.gmra.mxu1 %v11898_v40  ;;  %6208 = vmatmul.bf16.gmra.mxu2 %v11896_v13  ;;  %v13609_v63 = vld [vmem:[#allocation11_spill] sm:$0xff] }
 0x868   : > { %6297 = vmatmul.bf16.gmra.mxu3 %v11898_v40 }
 0x86a   : > { %v5607_v50 = vpop.f32.mrf.mxu2 }
 0x86b   : > { %v5696_v1 = vpop.f32.mrf.mxu3  ;;  %v5431_v49 = vpop.f32.mrf.mxu0 }
 0x86c   : > { %v5697_v58 = vadd.f32 %v5696_v1, %v5607_v50  ;;  %v5520_v21 = vpop.f32.mrf.mxu1  ;;  %v13610_v1 = vld [vmem:[#allocation6_spill] sm:$0xff] }
 0x86d   : > { %v5521_v5 = vadd.f32 %v5520_v21, %v5431_v49 }
 0x86e   : > { %v12733_v37 = vadd.f32 %v5697_v58, %v12335_v23 }
 0x86f   : > { %v12736_v7 = vadd.f32 %v5521_v5, %v12338_v2 }
 0x872   : > { %v5609_v10 = vpop.f32.mrf.mxu2 }
 0x873   : > { %v5698_v18 = vpop.f32.mrf.mxu3  ;;  %v5434_v32 = vpop.f32.mrf.mxu0 }
 0x874   : > { %v5699_v44 = vadd.f32 %v5698_v18, %v5609_v10  ;;  %v5523_v54 = vpop.f32.mrf.mxu1  ;;  %v13611_v10 = vld [vmem:[#allocation51_spill] sm:$0xff] }
 0x875   : > { %v5524_v13 = vadd.f32 %v5523_v54, %v5434_v32  ;;  %v13612_v32 = vld [vmem:[#allocation23_spill] sm:$0xff] }
 0x876   : > { %v12739_v40 = vadd.f32 %v5699_v44, %v12341_v25  ;;  %6035 = vmatmul.bf16.gmra.mxu0 %v11923_v52 }
 0x877   : > { %v12743_v4 = vadd.f32 %v5524_v13, %v12345_v36  ;;  %6124 = vmatmul.bf16.gmra.mxu1 %v11925_v62  ;;  %6213 = vmatmul.bf16.gmra.mxu2 %v11923_v52 }
 0x878   : > { %6302 = vmatmul.bf16.gmra.mxu3 %v11925_v62 }
 0x87a   : > { %v5612_v23 = vpop.f32.mrf.mxu2 }
 0x87b   : > { %v5701_v2 = vpop.f32.mrf.mxu3  ;;  %v5436_v26 = vpop.f32.mrf.mxu0 }
 0x87c   : > { %v5702_v57 = vadd.f32 %v5701_v2, %v5612_v23  ;;  %v5525_v35 = vpop.f32.mrf.mxu1 }
 0x87d   : > { %v5526_v45 = vadd.f32 %v5525_v35, %v5436_v26 }
 0x87e   : > { %v12749_v25 = vadd.f32 %v5702_v57, %v12363_v46  ;;  %v13613_v57 = vld [vmem:[#allocation52_spill] sm:$0xff] }
 0x87f   : > { %v12752_v3 = vadd.f32 %v5526_v45, %v12366_v19  ;;  %v13614_v45 = vld [vmem:[#allocation20_spill] sm:$0xff] }
 0x882   : > { %v5614_v36 = vpop.f32.mrf.mxu2 }
 0x883   : > { %v5703_v8 = vpop.f32.mrf.mxu3  ;;  %v5439_v30 = vpop.f32.mrf.mxu0 }
 0x884   : > { %v5704_v56 = vadd.f32 %v5703_v8, %v5614_v36  ;;  %v5528_v33 = vpop.f32.mrf.mxu1  ;;  %v13615_v36 = vld [vmem:[#allocation24_spill] sm:$0xff] }
 0x885   : > { %v5529_v52 = vadd.f32 %v5528_v33, %v5439_v30  ;;  %v13616_v30 = vld [vmem:[#allocation21_spill] sm:$0xff] }
 0x886   : > { %v12755_v62 = vadd.f32 %v5704_v56, %v13608_v51  ;;  %6040 = vmatmul.bf16.gmra.mxu0 %v11974_v39 }
 0x887   : > { %v12759_v50 = vadd.f32 %v5529_v52, %v13609_v63  ;;  %6129 = vmatmul.bf16.gmra.mxu1 %v13610_v1  ;;  %6218 = vmatmul.bf16.gmra.mxu2 %v11974_v39 }
 0x888   : > { %6307 = vmatmul.bf16.gmra.mxu3 %v13610_v1 }
 0x88a   : > { %v5617_v46 = vpop.f32.mrf.mxu2 }
 0x88b   : > { %v5706_v19 = vpop.f32.mrf.mxu3  ;;  %v5441_v49 = vpop.f32.mrf.mxu0 }
 0x88c   : > { %v5707_v58 = vadd.f32 %v5706_v19, %v5617_v46  ;;  %v5530_v21 = vpop.f32.mrf.mxu1  ;;  %v13617_v46 = vld [vmem:[#allocation53_spill] sm:$0xff] }
 0x88d   : > { %v5531_v5 = vadd.f32 %v5530_v21, %v5441_v49  ;;  %v13618_v49 = vld [vmem:[#allocation16_spill] sm:$0xff] }
 0x88e   : > { %v12765_v18 = vadd.f32 %v5707_v58, %v13611_v10 }
 0x88f   : > { %v12768_v44 = vadd.f32 %v5531_v5, %v13612_v32 }
 0x892   : > { %v5619_v54 = vpop.f32.mrf.mxu2 }
 0x893   : > { %v5708_v13 = vpop.f32.mrf.mxu3  ;;  %v5444_v23 = vpop.f32.mrf.mxu0 }
 0x894   : > { %v5709_v2 = vadd.f32 %v5708_v13, %v5619_v54  ;;  %v5533_v26 = vpop.f32.mrf.mxu1 }
 0x895   : > { %v5534_v39 = vadd.f32 %v5533_v26, %v5444_v23  ;;  %v13619_v23 = vld [vmem:[#allocation54_spill] sm:$0xff]  ;;  %v13620_v26 = vld [vmem:[#allocation28_spill] sm:$0xff] }
 0x896   : > { %v12771_v35 = vadd.f32 %v5709_v2, %v13613_v57  ;;  %6045 = vmatmul.bf16.gmra.mxu0 %v13614_v45 }
 0x897   : > { %v12775_v8 = vadd.f32 %v5534_v39, %v13615_v36  ;;  %6134 = vmatmul.bf16.gmra.mxu1 %v13616_v30  ;;  %6223 = vmatmul.bf16.gmra.mxu2 %v13614_v45  ;;  %v13621_v39 = vld [vmem:[#allocation29_spill] sm:$0xff]  ;;  %v13622_v45 = vld [vmem:[#allocation31_spill] sm:$0xff] }
 0x898   : > { %6312 = vmatmul.bf16.gmra.mxu3 %v13616_v30 }
 0x89a   : > { %v5622_v56 = vpop.f32.mrf.mxu2 }
 0x89b   : > { %v5711_v33 = vpop.f32.mrf.mxu3  ;;  %v5446_v52 = vpop.f32.mrf.mxu0 }
 0x89c   : > { %v5712_v51 = vadd.f32 %v5711_v33, %v5622_v56  ;;  %v5535_v63 = vpop.f32.mrf.mxu1 }
 0x89d   : > { %v5536_v1 = vadd.f32 %v5535_v63, %v5446_v52  ;;  %v13623_v63 = vld [vmem:[#allocation17_spill] sm:$0xff] }
 0x89e   : > { %v12781_v19 = vadd.f32 %v5712_v51, %v13617_v46  ;;  %v13624_v46 = vld [vmem:[#allocation30_spill] sm:$0xff] }
 0x89f   : > { %v12784_v58 = vadd.f32 %v5536_v1, %v13618_v49 }
 0x8a2   : > { %v5624_v21 = vpop.f32.mrf.mxu2 }
 0x8a3   : > { %v5713_v5 = vpop.f32.mrf.mxu3  ;;  %v5449_v10 = vpop.f32.mrf.mxu0 }
 0x8a4   : > { %v5714_v32 = vadd.f32 %v5713_v5, %v5624_v21  ;;  %v5538_v54 = vpop.f32.mrf.mxu1 }
 0x8a5   : > { %v5539_v13 = vadd.f32 %v5538_v54, %v5449_v10 }
 0x8a6   : > { %v12787_v2 = vadd.f32 %v5714_v32, %v13619_v23  ;;  %6050 = vmatmul.bf16.gmra.mxu0 %v13620_v26  ;;  %v13625_v23 = vld [vmem:[#allocation9_spill] sm:$0xff] }
 0x8a7   : > { %v12791_v57 = vadd.f32 %v5539_v13, %v13621_v39  ;;  %6139 = vmatmul.bf16.gmra.mxu1 %v13622_v45  ;;  %6228 = vmatmul.bf16.gmra.mxu2 %v13620_v26  ;;  %v13626_v39 = vld [vmem:[#allocation55_spill] sm:$0xff] }
 0x8a8   : > { %6317 = vmatmul.bf16.gmra.mxu3 %v13622_v45 }
 0x8aa   : > { %v5627_v36 = vpop.f32.mrf.mxu2 }
 0x8ab   : > { %v5716_v30 = vpop.f32.mrf.mxu3  ;;  %v5451_v56 = vpop.f32.mrf.mxu0 }
 0x8ac   : > { %v5717_v33 = vadd.f32 %v5716_v30, %v5627_v36  ;;  %v5540_v52 = vpop.f32.mrf.mxu1 }
 0x8ad   : > { %v5541_v51 = vadd.f32 %v5540_v52, %v5451_v56 }
 0x8ae   : > { %v12797_v1 = vadd.f32 %v5717_v33, %v13623_v63  ;;  %v13627_v63 = vld [vmem:[#allocation12_spill] sm:$0xff] }
 0x8af   : > { %v12800_v49 = vadd.f32 %v5541_v51, %v13624_v46 }
 0x8b2   : > { %v5629_v21 = vpop.f32.mrf.mxu2 }
 0x8b3   : > { %v5718_v5 = vpop.f32.mrf.mxu3  ;;  %v6016_v10 = vpop.f32.mrf.mxu0 }
 0x8b4   : > { %v5719_v32 = vadd.f32 %v5718_v5, %v5629_v21  ;;  %v6105_v54 = vpop.f32.mrf.mxu1  ;;  %v13628_v21 = vld [vmem:[#allocation33_spill] sm:$0xff] }
 0x8b5   : > { %v6106_v13 = vadd.f32 %v6105_v54, %v6016_v10 }
 0x8b6   : > { %v12806_v26 = vadd.f32 %v5719_v32, %v13625_v23  ;;  %6055 = vmatmul.bf16.gmra.mxu0 %v13572_v42  ;;  %v13629_v23 = vld [vmem:[#allocation13_spill] sm:$0xff] }
 0x8b7   : > { %v6363_v45 = vadd.f32 %v6106_v13, %v13626_v39  ;;  %6144 = vmatmul.bf16.gmra.mxu1 %v13575_v38  ;;  %6233 = vmatmul.bf16.gmra.mxu2 %v13572_v42 }
 0x8b8   : > { %6322 = vmatmul.bf16.gmra.mxu3 %v13575_v38 }
 0x8b9   : > { %6427 = vst [vmem:[%s12813_s8] sm:$0xff] %v6363_v45  ;;  %v13630_v45 = vld [vmem:[#allocation34_spill] sm:$0xff] }
 0x8ba   : > { %v6194_v36 = vpop.f32.mrf.mxu2 }
 0x8bb   : > { %v6283_v30 = vpop.f32.mrf.mxu3  ;;  %v6018_v56 = vpop.f32.mrf.mxu0 }
 0x8bc   : > { %v6284_v33 = vadd.f32 %v6283_v30, %v6194_v36  ;;  %v6107_v52 = vpop.f32.mrf.mxu1  ;;  %v13631_v30 = vld [vmem:[#allocation44_spill] sm:$0xff] }
 0x8bd   : > { %v6108_v51 = vadd.f32 %v6107_v52, %v6018_v56 }
 0x8be   : > { %v6364_v46 = vadd.f32 %v6284_v33, %v13627_v63 }
 0x8bf   : > { %v6365_v5 = vadd.f32 %v6108_v51, %v13628_v21  ;;  %v13632_v21 = vld [vmem:[#allocation5_spill] sm:$0xff] }
 0x8c0   : > { %6428 = vst [vmem:[%s12813_s8 + $0x8] sm:$0xff] %v6364_v46 }
 0x8c1   : > { %6429 = vst [vmem:[%s12813_s8 + $0x10] sm:$0xff] %v6365_v5 }
 0x8c2   : > { %v6196_v42 = vpop.f32.mrf.mxu2 }
 0x8c3   : > { %v6285_v38 = vpop.f32.mrf.mxu3  ;;  %v6021_v10 = vpop.f32.mrf.mxu0 }
 0x8c4   : > { %v6286_v32 = vadd.f32 %v6285_v38, %v6196_v42  ;;  %v6110_v54 = vpop.f32.mrf.mxu1  ;;  %v13633_v42 = vld [vmem:[#allocation14_spill] sm:$0xff] }
 0x8c5   : > { %v6111_v13 = vadd.f32 %v6110_v54, %v6021_v10 }
 0x8c6   : > { %v6366_v39 = vadd.f32 %v6286_v32, %v13629_v23  ;;  %6060 = vmatmul.bf16.gmra.mxu0 %v12130_v20 }
 0x8c7   : > { %v6367_v36 = vadd.f32 %v6111_v13, %v13630_v45  ;;  %6149 = vmatmul.bf16.gmra.mxu1 %v13631_v30  ;;  %6238 = vmatmul.bf16.gmra.mxu2 %v12130_v20 }
 0x8c8   : > { %6430 = vst [vmem:[%s12813_s8 + $0x18] sm:$0xff] %v6366_v39  ;;  %6327 = vmatmul.bf16.gmra.mxu3 %v13631_v30  ;;  %v13634_v39 = vld [vmem:[#allocation15_spill] sm:$0xff] }
 0x8c9   : > { %6431 = vst [vmem:[%s12813_s8 + $0x20] sm:$0xff] %v6367_v36  ;;  %v13635_v36 = vld [vmem:[#allocation18_spill] sm:$0xff] }
 0x8ca   : > { %v6199_v56 = vpop.f32.mrf.mxu2 }
 0x8cb   : > { %v6288_v33 = vpop.f32.mrf.mxu3  ;;  %v6023_v52 = vpop.f32.mrf.mxu0 }
 0x8cc   : > { %v6289_v51 = vadd.f32 %v6288_v33, %v6199_v56  ;;  %v6112_v63 = vpop.f32.mrf.mxu1 }
 0x8cd   : > { %v6113_v46 = vadd.f32 %v6112_v63, %v6023_v52 }
 0x8ce   : > { %v6368_v5 = vadd.f32 %v6289_v51, %v13632_v21  ;;  %v13636_v21 = vld [vmem:[#allocation8_spill] sm:$0xff] }
 0x8cf   : > { %v6369_v38 = vadd.f32 %v6113_v46, %v13633_v42  ;;  %v13637_v42 = vld [vmem:[#allocation22_spill] sm:$0xff] }
 0x8d0   : > { %6432 = vst [vmem:[%s12813_s8 + $0x28] sm:$0xff] %v6368_v5 }
 0x8d1   : > { %6433 = vst [vmem:[%s12813_s8 + $0x30] sm:$0xff] %v6369_v38 }
 0x8d2   : > { %v6201_v10 = vpop.f32.mrf.mxu2 }
 0x8d3   : > { %v6290_v20 = vpop.f32.mrf.mxu3  ;;  %v6026_v32 = vpop.f32.mrf.mxu0 }
 0x8d4   : > { %v6291_v54 = vadd.f32 %v6290_v20, %v6201_v10  ;;  %v6115_v13 = vpop.f32.mrf.mxu1 }
 0x8d5   : > { %v6116_v23 = vadd.f32 %v6115_v13, %v6026_v32  ;;  %v13638_v13 = vld [vmem:[#allocation38_spill] sm:$0xff] }
 0x8d6   : > { %v6370_v45 = vadd.f32 %v6291_v54, %v13634_v39  ;;  %6065 = vmatmul.bf16.gmra.mxu0 %v12157_v61  ;;  %v13639_v39 = vld [vmem:[#allocation19_spill] sm:$0xff] }
 0x8d7   : > { %v6371_v30 = vadd.f32 %v6116_v23, %v13635_v36  ;;  %6154 = vmatmul.bf16.gmra.mxu1 %v12159_v6  ;;  %6243 = vmatmul.bf16.gmra.mxu2 %v12157_v61 }
 0x8d8   : > { %6434 = vst [vmem:[%s12813_s8 + $0x38] sm:$0xff] %v6370_v45  ;;  %6332 = vmatmul.bf16.gmra.mxu3 %v12159_v6  ;;  %v13640_v45 = vld [vmem:[#allocation25_spill] sm:$0xff] }
 0x8d9   : > { %6435 = vst [vmem:[%s12813_s8 + $0x40] sm:$0xff] %v6371_v30  ;;  %v13641_v30 = vld [vmem:[#allocation10_spill] sm:$0xff] }
 0x8da   : > { %v6204_v56 = vpop.f32.mrf.mxu2 }
 0x8db   : > { %v6293_v33 = vpop.f32.mrf.mxu3  ;;  %v6028_v52 = vpop.f32.mrf.mxu0 }
 0x8dc   : > { %v6294_v51 = vadd.f32 %v6293_v33, %v6204_v56  ;;  %v6117_v63 = vpop.f32.mrf.mxu1 }
 0x8dd   : > { %v6118_v46 = vadd.f32 %v6117_v63, %v6028_v52 }
 0x8de   : > { %v6372_v5 = vadd.f32 %v6294_v51, %v13636_v21  ;;  %v13642_v21 = vld [vmem:[#allocation39_spill] sm:$0xff] }
 0x8df   : > { %v6373_v38 = vadd.f32 %v6118_v46, %v13637_v42  ;;  %v13643_v42 = vld [vmem:[#allocation26_spill] sm:$0xff] }
 0x8e0   : > { %6436 = vst [vmem:[%s12813_s8 + $0x48] sm:$0xff] %v6372_v5 }
 0x8e1   : > { %6437 = vst [vmem:[%s12813_s8 + $0x50] sm:$0xff] %v6373_v38 }
 0x8e2   : > { %v6206_v10 = vpop.f32.mrf.mxu2 }
 0x8e3   : > { %v6295_v61 = vpop.f32.mrf.mxu3  ;;  %v6031_v20 = vpop.f32.mrf.mxu0 }
 0x8e4   : > { %v6296_v32 = vadd.f32 %v6295_v61, %v6206_v10  ;;  %v6120_v6 = vpop.f32.mrf.mxu1 }
 0x8e5   : > { %v6121_v54 = vadd.f32 %v6120_v6, %v6031_v20 }
 0x8e6   : > { %v6374_v23 = vadd.f32 %v6296_v32, %v13638_v13  ;;  %6070 = vmatmul.bf16.gmra.mxu0 %v13639_v39  ;;  %v13644_v13 = vld [vmem:[#allocation27_spill] sm:$0xff] }
 0x8e7   : > { %v6375_v36 = vadd.f32 %v6121_v54, %v13640_v45  ;;  %6159 = vmatmul.bf16.gmra.mxu1 %v13641_v30  ;;  %6248 = vmatmul.bf16.gmra.mxu2 %v13639_v39  ;;  %v13645_v39 = vld [vmem:[#allocation32_spill] sm:$0xff] }
 0x8e8   : > { %6438 = vst [vmem:[%s12813_s8 + $0x58] sm:$0xff] %v6374_v23  ;;  %6337 = vmatmul.bf16.gmra.mxu3 %v13641_v30 }
 0x8e9   : > { %6439 = vst [vmem:[%s12813_s8 + $0x60] sm:$0xff] %v6375_v36  ;;  %v13646_v36 = vld [vmem:[#allocation43_spill] sm:$0xff] }
 0x8ea   : > { %v6209_v56 = vpop.f32.mrf.mxu2 }
 0x8eb   : > { %v6298_v33 = vpop.f32.mrf.mxu3  ;;  %v6033_v52 = vpop.f32.mrf.mxu0 }
 0x8ec   : > { %v6299_v51 = vadd.f32 %v6298_v33, %v6209_v56  ;;  %v6122_v63 = vpop.f32.mrf.mxu1 }
 0x8ed   : > { %v6123_v46 = vadd.f32 %v6122_v63, %v6033_v52 }
 0x8ee   : > { %v6376_v5 = vadd.f32 %v6299_v51, %v13642_v21 }
 0x8ef   : > { %v6377_v38 = vadd.f32 %v6123_v46, %v13643_v42  ;;  %v13647_v46 = vld [vmem:[#allocation35_spill] sm:$0xff] }
 0x8f0   : > { %6440 = vst [vmem:[%s12813_s8 + $0x68] sm:$0xff] %v6376_v5  ;;  %v13648_v5 = vld [vmem:[#allocation36_spill] sm:$0xff] }
 0x8f1   : > { %6441 = vst [vmem:[%s12813_s8 + $0x70] sm:$0xff] %v6377_v38 }
 0x8f2   : > { %v6211_v10 = vpop.f32.mrf.mxu2 }
 0x8f3   : > { %v6300_v61 = vpop.f32.mrf.mxu3  ;;  %v6036_v20 = vpop.f32.mrf.mxu0 }
 0x8f4   : > { %v6301_v32 = vadd.f32 %v6300_v61, %v6211_v10  ;;  %v6125_v6 = vpop.f32.mrf.mxu1  ;;  %v8390_v61 = vld [vmem:[%s8751_s6 + $0x1b8] sm:$0xff] }
 0x8f5   : > { %v6126_v54 = vadd.f32 %v6125_v6, %v6036_v20  ;;  %v5787_v20 = vrot.slane %v8390_v61, 6 }
 0x8f6   : > { %v6378_v23 = vadd.f32 %v6301_v32, %v13644_v13  ;;  %6075 = vmatmul.bf16.gmra.mxu0 %v12627_v53  ;;  %v13649_v13 = vld [vmem:[#allocation37_spill] sm:$0xff] }
 0x8f7   : > { %v6379_v45 = vadd.f32 %v6126_v54, %v13645_v39  ;;  %6164 = vmatmul.bf16.gmra.mxu1 %v13646_v36  ;;  %6253 = vmatmul.bf16.gmra.mxu2 %v12627_v53  ;;  %v13650_v39 = vld [vmem:[#allocation40_spill] sm:$0xff] }
 0x8f8   : > { %6442 = vst [vmem:[%s12813_s8 + $0x78] sm:$0xff] %v6378_v23  ;;  %6342 = vmatmul.bf16.gmra.mxu3 %v13646_v36  ;;  %v8391_v36 = vld [vmem:[%s8751_s6 + $0x1b0] sm:$0xff] }
 0x8f9   : > { %6443 = vst [vmem:[%s12813_s8 + $0x80] sm:$0xff] %v6379_v45 }
 0x8fa   : > { %v6214_v30 = vpop.f32.mrf.mxu2 }
 0x8fb   : > { %v6303_v56 = vpop.f32.mrf.mxu3  ;;  %v6038_v33 = vpop.f32.mrf.mxu0 }
 0x8fc   : > { %v6304_v52 = vadd.f32 %v6303_v56, %v6214_v30  ;;  %v6127_v51 = vpop.f32.mrf.mxu1  ;;  %v7814_v30 = vrot.slane %v8391_v36, 10  ;;  %v5789_v56 = vrot.slane %v5787_v20, 4 }
 0x8fd   : > { %v6128_v63 = vadd.f32 %v6127_v51, %v6038_v33  ;;  %v8392_v33 = vld [vmem:[%s8751_s6 + $0x1c0] sm:$0xff] }
 0x8fe   : > { %v6380_v21 = vadd.f32 %v6304_v52, %v13647_v46  ;;  %v5790_v52 = vrot.slane %v8392_v33, 6 }
 0x8ff   : > { %v6381_v42 = vadd.f32 %v6128_v63, %v13648_v5  ;;  %v5788_v5 = vsel %vm11613_vm5, %v7814_v30, %v5787_v20 }
 0x900   : > { %6444 = vst [vmem:[%s12813_s8 + $0x88] sm:$0xff] %v6380_v21 }
 0x901   : > { %6445 = vst [vmem:[%s12813_s8 + $0x90] sm:$0xff] %v6381_v42 }
 0x902   : > { %v6216_v38 = vpop.f32.mrf.mxu2 }
 0x903   : > { %v6305_v53 = vpop.f32.mrf.mxu3  ;;  %v6041_v10 = vpop.f32.mrf.mxu0 }
 0x904   : > { %v6306_v32 = vadd.f32 %v6305_v53, %v6216_v38  ;;  %v6130_v6 = vpop.f32.mrf.mxu1 }
 0x905   : > { %v6131_v54 = vadd.f32 %v6130_v6, %v6041_v10  ;;  %v13652_v10 = vld [vmem:[#allocation41_spill] sm:$0xff]  ;;  %v13653_v6 = vld [vmem:[#allocation42_spill] sm:$0xff] }
 0x906   : > { %v6382_v23 = vadd.f32 %v6306_v32, %v13649_v13  ;;  %6080 = vmatmul.bf16.gmra.mxu0 %v12654_v12  ;;  %v5831_v32 = vunpack.c.l.b16 %v5788_v5  ;;  %v5832_v13 = vunpack.c.h.b16 %v5788_v5  ;;  %v13655_v5 = vld [vmem:[#allocation46_spill] sm:$0xff] }
 0x907   : > { %v6383_v45 = vadd.f32 %v6131_v54, %v13650_v39  ;;  %6169 = vmatmul.bf16.gmra.mxu1 %v12656_v34  ;;  %6258 = vmatmul.bf16.gmra.mxu2 %v12654_v12  ;;  %v5791_v12 = vsel %vm11613_vm5, %v5789_v56, %v5790_v52  ;;  %v8393_v56 = vld [vmem:[%s8751_s6 + $0x1d0] sm:$0xff] }
 0x908   : > { %6446 = vst [vmem:[%s12813_s8 + $0x98] sm:$0xff] %v6382_v23  ;;  %6347 = vmatmul.bf16.gmra.mxu3 %v12656_v34  ;;  %v5833_v34 = vunpack.c.l.b16 %v5791_v12  ;;  %v5834_v23 = vunpack.c.h.b16 %v5791_v12  ;;  %v5794_v33 = vrot.slane %v8393_v56, 6 }
 0x909   : > { %6447 = vst [vmem:[%s12813_s8 + $0xa0] sm:$0xff] %v6383_v45 }
 0x90a   : > { %v6219_v51 = vpop.f32.mrf.mxu2  ;;  %v5839_v20 = vpack.c.b16 %v5833_v34, %v5831_v32  ;;  %v5840_v30 = vpack.c.b16 %v5834_v23, %v5832_v13 }
 0x90b   : > { %v6308_v63 = vpop.f32.mrf.mxu3  ;;  %v6043_v46 = vpop.f32.mrf.mxu0 }
 0x90c   : > { %v6309_v42 = vadd.f32 %v6308_v63, %v6219_v51  ;;  %v6132_v38 = vpop.f32.mrf.mxu1 }
 0x90d   : > { %v6133_v53 = vadd.f32 %v6132_v38, %v6043_v46  ;;  %v13654_v46 = vld [vmem:[#allocation45_spill] sm:$0xff]  ;;  %v8394_v38 = vld [vmem:[%s8751_s6 + $0x1c8] sm:$0xff] }
 0x90e   : > { %v6384_v61 = vadd.f32 %v6309_v42, %v13652_v10  ;;  %v5796_v10 = vrot.slane %v5794_v33, 4 }
 0x90f   : > { %v6385_v54 = vadd.f32 %v6133_v53, %v13653_v6  ;;  %v7815_v53 = vrot.slane %v8394_v38, 10 }
 0x910   : > { %6448 = vst [vmem:[%s12813_s8 + $0xa8] sm:$0xff] %v6384_v61  ;;  %v8395_v61 = vld [vmem:[%s8751_s6 + $0x1d8] sm:$0xff]  ;;  %s8277_s6 = sshll.u32 %s8466_s12, 9  ;;  %s6492_s12 = scalar_lea.sflag [#allocation3], %s148_s3 }
 0x911   : > { %6449 = vst [vmem:[%s12813_s8 + $0xb0] sm:$0xff] %v6385_v54  ;;  %v5797_v32 = vrot.slane %v8395_v61, 6  ;;  %v5795_v13 = vsel %vm11613_vm5, %v7815_v53, %v5794_v33  ;;  %s6506_s18 = scalar_lea.hbm %s13017_s2, %s8277_s6 }
 0x912   : > { %v6221_v39 = vpop.f32.mrf.mxu2  ;;  %v5835_v56 = vunpack.c.l.b16 %v5795_v13  ;;  %s6509_s23 = sshll.u32 %s6506_s18, 4  ;;  %s6510_s23 = int_to_ptr.hbm [resolvable:$true] %s6509_s23 }
 0x913   : > { %v6310_v45 = vpop.f32.mrf.mxu3  ;;  %v6046_v36 = vpop.f32.mrf.mxu0  ;;  %v5798_v23 = vsel %vm11613_vm5, %v5796_v10, %v5797_v32  ;;  %s8410_s24 = sshra.s32 %s6510_s23, 4  ;;  %s8411_s24 = int_to_ptr.hbm [resolvable:$true] %s8410_s24 }
 0x914   : > { %v6311_v52 = vadd.f32 %v6310_v45, %v6221_v39  ;;  %v6135_v51 = vpop.f32.mrf.mxu1  ;;  %s8412_s25 = scalar_lea.hbm %s8411_s24, 512  ;;  %p8417_p1 = scmp.lt.s32.totalorder %s8411_s24, %s13017_s2 }
 0x915   : > { %v6136_v63 = vadd.f32 %v6135_v51, %v6046_v36  ;;  %v5836_v51 = vunpack.c.h.b16 %v5795_v13  ;;  %p8413_p12 = scmp.ne.s32.totalorder %s8411_s24, %s8412_s25  ;;  %p8418_p2 = scmp.lt.s32.totalorder %s8416_s28, %s8412_s25 }
 0x916   : > { %v6386_v42 = vadd.f32 %v6311_v52, %v13654_v46  ;;  %6085 = vmatmul.bf16.gmra.mxu0 %v5839_v20  ;;  %v5837_v52 = vunpack.c.l.b16 %v5798_v23 }
 0x917   : > { %v6387_v12 = vadd.f32 %v6136_v63, %v13655_v5  ;;  %6174 = vmatmul.bf16.gmra.mxu1 %v5840_v30  ;;  %6263 = vmatmul.bf16.gmra.mxu2 %v5839_v20  ;;  %v5838_v63 = vunpack.c.h.b16 %v5798_v23  ;;  %p8414_p13 = pnand %p8413_p12, %p8533_p4  ;;  %p8419_p3 = por %p8418_p2, %p8417_p1 }
 0x918   : > { %6450 = vst [vmem:[%s12813_s8 + $0xb8] sm:$0xff] %v6386_v42  ;;  %6352 = vmatmul.bf16.gmra.mxu3 %v5840_v30  ;;  %v5841_v33 = vpack.c.b16 %v5837_v52, %v5835_v56 }
 0x919   : > { %6451 = vst [vmem:[%s12813_s8 + $0xc0] sm:$0xff] %v6387_v12  ;;  %v5842_v5 = vpack.c.b16 %v5838_v63, %v5836_v51  ;;  %p8415_p0 = pneg %p8414_p13 }
 0x91a   : > { %v6224_v34 = vpop.f32.mrf.mxu2 }
 0x91b   : > { %v6313_v6 = vpop.f32.mrf.mxu3  ;;  %v6048_v54 = vpop.f32.mrf.mxu0  ;;  %p8420_p5 = pnand %p8419_p3, %p8415_p0 }
 0x91c   : > { %v6314_v39 = vadd.f32 %v6313_v6, %v6224_v34  ;;  %v6137_v20 = vpop.f32.mrf.mxu1 }
 0x91d   : > { %v6138_v45 = vadd.f32 %v6137_v20, %v6048_v54 }
 0x91e   : > { %v6388_v36 = vadd.f32 %v6314_v39, %v12649_v47 }
 0x91f   : > { %v6389_v30 = vadd.f32 %v6138_v45, %v12652_v31 }
 0x920   : > { %6452 = vst [vmem:[%s12813_s8 + $0xc8] sm:$0xff] %v6388_v36 }
 0x921   : > { %6453 = vst [vmem:[%s12813_s8 + $0xd0] sm:$0xff] %v6389_v30 }
 0x922   : > { %v6226_v46 = vpop.f32.mrf.mxu2 }
 0x923   : > { %v6315_v42 = vpop.f32.mrf.mxu3  ;;  %v6051_v21 = vpop.f32.mrf.mxu0 }
 0x924   : > { %v6316_v12 = vadd.f32 %v6315_v42, %v6226_v46  ;;  %v6140_v38 = vpop.f32.mrf.mxu1 }
 0x925   : > { %v6141_v53 = vadd.f32 %v6140_v38, %v6051_v21 }
 0x926   : > { %v6390_v47 = vadd.f32 %v6316_v12, %v12659_v28  ;;  %6090 = vmatmul.bf16.gmra.mxu0 %v5841_v33 }
 0x927   : > { %v6391_v31 = vadd.f32 %v6141_v53, %v12663_v16  ;;  %6179 = vmatmul.bf16.gmra.mxu1 %v5842_v5  ;;  %6268 = vmatmul.bf16.gmra.mxu2 %v5841_v33 }
 0x928   : > { %6454 = vst [vmem:[%s12813_s8 + $0xd8] sm:$0xff] %v6390_v47  ;;  %6357 = vmatmul.bf16.gmra.mxu3 %v5842_v5 }
 0x929   : > { %6455 = vst [vmem:[%s12813_s8 + $0xe0] sm:$0xff] %v6391_v31 }
 0x92a   : > { %v6229_v10 = vpop.f32.mrf.mxu2 }
 0x92b   : > { %v6318_v61 = vpop.f32.mrf.mxu3  ;;  %v6053_v32 = vpop.f32.mrf.mxu0 }
 0x92c   : > { %v6319_v34 = vadd.f32 %v6318_v61, %v6229_v10  ;;  %v6142_v6 = vpop.f32.mrf.mxu1 }
 0x92d   : > { %v6143_v54 = vadd.f32 %v6142_v6, %v6053_v32 }
 0x92e   : > { %v6392_v28 = vadd.f32 %v6319_v34, %v12669_v27 }
 0x92f   : > { %v6393_v13 = vadd.f32 %v6143_v54, %v12672_v59 }
 0x930   : > { %6456 = vst [vmem:[%s12813_s8 + $0xe8] sm:$0xff] %v6392_v28 }
 0x931   : > { %6457 = vst [vmem:[%s12813_s8 + $0xf0] sm:$0xff] %v6393_v13 }
 0x932   : > { %v6231_v16 = vpop.f32.mrf.mxu2 }
 0x933   : > { %v6320_v23 = vpop.f32.mrf.mxu3  ;;  %v6056_v39 = vpop.f32.mrf.mxu0 }
 0x934   : > { %v6321_v20 = vadd.f32 %v6320_v23, %v6231_v16  ;;  %v6145_v45 = vpop.f32.mrf.mxu1 }
 0x935   : > { %v6146_v36 = vadd.f32 %v6145_v45, %v6056_v39 }
 0x936   : > { %v6394_v56 = vadd.f32 %v6321_v20, %v12675_v41 }
 0x937   : > { %v6395_v52 = vadd.f32 %v6146_v36, %v12679_v0 }
 0x938   : > { %6458 = vst [vmem:[%s12813_s8 + $0xf8] sm:$0xff] %v6394_v56 }
 0x939   : > { %6459 = vst [vmem:[%s12813_s8 + $0x100] sm:$0xff] %v6395_v52 }
 0x93a   : > { %v6234_v30 = vpop.f32.mrf.mxu2 }
 0x93b   : > { %v6323_v27 = vpop.f32.mrf.mxu3  ;;  %v6058_v51 = vpop.f32.mrf.mxu0 }
 0x93c   : > { %v6324_v59 = vadd.f32 %v6323_v27, %v6234_v30  ;;  %v6147_v63 = vpop.f32.mrf.mxu1 }
 0x93d   : > { %v6148_v46 = vadd.f32 %v6147_v63, %v6058_v51 }
 0x93e   : > { %v6396_v33 = vadd.f32 %v6324_v59, %v12685_v29 }
 0x93f   : > { %v6397_v42 = vadd.f32 %v6148_v46, %v12688_v55 }
 0x940   : > { %6460 = vst [vmem:[%s12813_s8 + $0x108] sm:$0xff] %v6396_v33 }
 0x941   : > { %6461 = vst [vmem:[%s12813_s8 + $0x110] sm:$0xff] %v6397_v42 }
 0x942   : > { %v6236_v21 = vpop.f32.mrf.mxu2 }
 0x943   : > { %v6325_v41 = vpop.f32.mrf.mxu3  ;;  %v6061_v5 = vpop.f32.mrf.mxu0 }
 0x944   : > { %v6326_v0 = vadd.f32 %v6325_v41, %v6236_v21  ;;  %v6150_v12 = vpop.f32.mrf.mxu1 }
 0x945   : > { %v6151_v38 = vadd.f32 %v6150_v12, %v6061_v5 }
 0x946   : > { %v6398_v53 = vadd.f32 %v6326_v0, %v12691_v15 }
 0x947   : > { %v6399_v47 = vadd.f32 %v6151_v38, %v12695_v9 }
 0x948   : > { %6462 = vst [vmem:[%s12813_s8 + $0x118] sm:$0xff] %v6398_v53 }
 0x949   : > { %6463 = vst [vmem:[%s12813_s8 + $0x120] sm:$0xff] %v6399_v47 }
 0x94a   : > { %v6239_v31 = vpop.f32.mrf.mxu2 }
 0x94b   : > { %v6328_v29 = vpop.f32.mrf.mxu3  ;;  %v6063_v10 = vpop.f32.mrf.mxu0 }
 0x94c   : > { %v6329_v55 = vadd.f32 %v6328_v29, %v6239_v31  ;;  %v6152_v61 = vpop.f32.mrf.mxu1 }
 0x94d   : > { %v6153_v32 = vadd.f32 %v6152_v61, %v6063_v10 }
 0x94e   : > { %v6400_v34 = vadd.f32 %v6329_v55, %v12701_v24 }
 0x94f   : > { %v6401_v6 = vadd.f32 %v6153_v32, %v12704_v48 }
 0x950   : > { %6464 = vst [vmem:[%s12813_s8 + $0x128] sm:$0xff] %v6400_v34 }
 0x951   : > { %6465 = vst [vmem:[%s12813_s8 + $0x130] sm:$0xff] %v6401_v6 }
 0x952   : > { %v6241_v54 = vpop.f32.mrf.mxu2 }
 0x953   : > { %v6330_v15 = vpop.f32.mrf.mxu3  ;;  %v6066_v28 = vpop.f32.mrf.mxu0 }
 0x954   : > { %v6331_v9 = vadd.f32 %v6330_v15, %v6241_v54  ;;  %v6155_v13 = vpop.f32.mrf.mxu1 }
 0x955   : > { %v6156_v16 = vadd.f32 %v6155_v13, %v6066_v28 }
 0x956   : > { %v6402_v23 = vadd.f32 %v6331_v9, %v12707_v14 }
 0x957   : > { %v6403_v39 = vadd.f32 %v6156_v16, %v12711_v11 }
 0x958   : > { %6466 = vst [vmem:[%s12813_s8 + $0x138] sm:$0xff] %v6402_v23 }
 0x959   : > { %6467 = vst [vmem:[%s12813_s8 + $0x140] sm:$0xff] %v6403_v39 }
 0x95a   : > { %v6244_v20 = vpop.f32.mrf.mxu2 }
 0x95b   : > { %v6333_v24 = vpop.f32.mrf.mxu3  ;;  %v6068_v45 = vpop.f32.mrf.mxu0 }
 0x95c   : > { %v6334_v48 = vadd.f32 %v6333_v24, %v6244_v20  ;;  %v6157_v36 = vpop.f32.mrf.mxu1 }
 0x95d   : > { %v6158_v56 = vadd.f32 %v6157_v36, %v6068_v45 }
 0x95e   : > { %v6404_v52 = vadd.f32 %v6334_v48, %v12717_v17 }
 0x95f   : > { %v6405_v30 = vadd.f32 %v6158_v56, %v12720_v22 }
 0x960   : > { %6468 = vst [vmem:[%s12813_s8 + $0x148] sm:$0xff] %v6404_v52 }
 0x961   : > { %6469 = vst [vmem:[%s12813_s8 + $0x150] sm:$0xff] %v6405_v30 }
 0x962   : > { %v6246_v27 = vpop.f32.mrf.mxu2 }
 0x963   : > { %v6335_v14 = vpop.f32.mrf.mxu3  ;;  %v6071_v51 = vpop.f32.mrf.mxu0 }
 0x964   : > { %v6336_v11 = vadd.f32 %v6335_v14, %v6246_v27  ;;  %v6160_v59 = vpop.f32.mrf.mxu1 }
 0x965   : > { %v6161_v63 = vadd.f32 %v6160_v59, %v6071_v51 }
 0x966   : > { %v6406_v46 = vadd.f32 %v6336_v11, %v12723_v43 }
 0x967   : > { %v6407_v33 = vadd.f32 %v6161_v63, %v12727_v60 }
 0x968   : > { %6470 = vst [vmem:[%s12813_s8 + $0x158] sm:$0xff] %v6406_v46 }
 0x969   : > { %6471 = vst [vmem:[%s12813_s8 + $0x160] sm:$0xff] %v6407_v33 }
 0x96a   : > { %v6249_v42 = vpop.f32.mrf.mxu2 }
 0x96b   : > { %v6338_v17 = vpop.f32.mrf.mxu3  ;;  %v6073_v21 = vpop.f32.mrf.mxu0 }
 0x96c   : > { %v6339_v22 = vadd.f32 %v6338_v17, %v6249_v42  ;;  %v6162_v41 = vpop.f32.mrf.mxu1 }
 0x96d   : > { %v6163_v5 = vadd.f32 %v6162_v41, %v6073_v21 }
 0x96e   : > { %v6408_v0 = vadd.f32 %v6339_v22, %v12733_v37 }
 0x96f   : > { %v6409_v12 = vadd.f32 %v6163_v5, %v12736_v7 }
 0x970   : > { %6472 = vst [vmem:[%s12813_s8 + $0x168] sm:$0xff] %v6408_v0 }
 0x971   : > { %6473 = vst [vmem:[%s12813_s8 + $0x170] sm:$0xff] %v6409_v12 }
 0x972   : > { %v6251_v38 = vpop.f32.mrf.mxu2 }
 0x973   : > { %v6340_v43 = vpop.f32.mrf.mxu3  ;;  %v6076_v53 = vpop.f32.mrf.mxu0 }
 0x974   : > { %v6341_v60 = vadd.f32 %v6340_v43, %v6251_v38  ;;  %v6165_v47 = vpop.f32.mrf.mxu1 }
 0x975   : > { %v6166_v31 = vadd.f32 %v6165_v47, %v6076_v53 }
 0x976   : > { %v6410_v29 = vadd.f32 %v6341_v60, %v12739_v40 }
 0x977   : > { %v6411_v10 = vadd.f32 %v6166_v31, %v12743_v4 }
 0x978   : > { %6474 = vst [vmem:[%s12813_s8 + $0x178] sm:$0xff] %v6410_v29 }
 0x979   : > { %6475 = vst [vmem:[%s12813_s8 + $0x180] sm:$0xff] %v6411_v10 }
 0x97a   : > { %v6254_v55 = vpop.f32.mrf.mxu2 }
 0x97b   : > { %v6343_v37 = vpop.f32.mrf.mxu3  ;;  %v6078_v61 = vpop.f32.mrf.mxu0 }
 0x97c   : > { %v6344_v7 = vadd.f32 %v6343_v37, %v6254_v55  ;;  %v6167_v32 = vpop.f32.mrf.mxu1 }
 0x97d   : > { %v6168_v34 = vadd.f32 %v6167_v32, %v6078_v61 }
 0x97e   : > { %v6412_v6 = vadd.f32 %v6344_v7, %v12749_v25 }
 0x97f   : > { %v6413_v54 = vadd.f32 %v6168_v34, %v12752_v3 }
 0x980   : > { %6476 = vst [vmem:[%s12813_s8 + $0x188] sm:$0xff] %v6412_v6 }
 0x981   : > { %6477 = vst [vmem:[%s12813_s8 + $0x190] sm:$0xff] %v6413_v54 }
 0x982   : > { %v6256_v15 = vpop.f32.mrf.mxu2 }
 0x983   : > { %v6345_v40 = vpop.f32.mrf.mxu3  ;;  %v6081_v28 = vpop.f32.mrf.mxu0 }
 0x984   : > { %v6346_v4 = vadd.f32 %v6345_v40, %v6256_v15  ;;  %v6170_v9 = vpop.f32.mrf.mxu1 }
 0x985   : > { %v6171_v13 = vadd.f32 %v6170_v9, %v6081_v28 }
 0x986   : > { %v6414_v16 = vadd.f32 %v6346_v4, %v12755_v62 }
 0x987   : > { %v6415_v23 = vadd.f32 %v6171_v13, %v12759_v50 }
 0x988   : > { %6478 = vst [vmem:[%s12813_s8 + $0x198] sm:$0xff] %v6414_v16 }
 0x989   : > { %6479 = vst [vmem:[%s12813_s8 + $0x1a0] sm:$0xff] %v6415_v23 }
 0x98a   : > { %v6259_v39 = vpop.f32.mrf.mxu2 }
 0x98b   : > { %v6348_v25 = vpop.f32.mrf.mxu3  ;;  %v6083_v20 = vpop.f32.mrf.mxu0 }
 0x98c   : > { %v6349_v3 = vadd.f32 %v6348_v25, %v6259_v39  ;;  %v6172_v24 = vpop.f32.mrf.mxu1 }
 0x98d   : > { %v6173_v45 = vadd.f32 %v6172_v24, %v6083_v20 }
 0x98e   : > { %v6416_v48 = vadd.f32 %v6349_v3, %v12765_v18 }
 0x98f   : > { %v6417_v36 = vadd.f32 %v6173_v45, %v12768_v44 }
 0x990   : > { %6480 = vst [vmem:[%s12813_s8 + $0x1a8] sm:$0xff] %v6416_v48 }
 0x991   : > { %6481 = vst [vmem:[%s12813_s8 + $0x1b0] sm:$0xff] %v6417_v36 }
 0x992   : > { %v6261_v56 = vpop.f32.mrf.mxu2 }
 0x993   : > { %v6350_v62 = vpop.f32.mrf.mxu3  ;;  %v6086_v52 = vpop.f32.mrf.mxu0 }
 0x994   : > { %v6351_v50 = vadd.f32 %v6350_v62, %v6261_v56  ;;  %v6175_v30 = vpop.f32.mrf.mxu1 }
 0x995   : > { %v6176_v27 = vadd.f32 %v6175_v30, %v6086_v52 }
 0x996   : > { %v6418_v14 = vadd.f32 %v6351_v50, %v12771_v35 }
 0x997   : > { %v6419_v51 = vadd.f32 %v6176_v27, %v12775_v8 }
 0x998   : > { %6482 = vst [vmem:[%s12813_s8 + $0x1b8] sm:$0xff] %v6418_v14 }
 0x999   : > { %6483 = vst [vmem:[%s12813_s8 + $0x1c0] sm:$0xff] %v6419_v51 }
 0x99a   : > { %v6264_v11 = vpop.f32.mrf.mxu2 }
 0x99b   : > { %v6353_v18 = vpop.f32.mrf.mxu3  ;;  %v6088_v59 = vpop.f32.mrf.mxu0 }
 0x99c   : > { %v6354_v44 = vadd.f32 %v6353_v18, %v6264_v11  ;;  %v6177_v63 = vpop.f32.mrf.mxu1 }
 0x99d   : > { %v6178_v46 = vadd.f32 %v6177_v63, %v6088_v59 }
 0x99e   : > { %v6420_v33 = vadd.f32 %v6354_v44, %v12781_v19 }
 0x99f   : > { %v6421_v42 = vadd.f32 %v6178_v46, %v12784_v58 }
 0x9a0   : > { %6484 = vst [vmem:[%s12813_s8 + $0x1c8] sm:$0xff] %v6420_v33 }
 0x9a1   : > { %6485 = vst [vmem:[%s12813_s8 + $0x1d0] sm:$0xff] %v6421_v42 }
 0x9a2   : > { %v6266_v35 = vpop.f32.mrf.mxu2 }
 0x9a3   : > { %v6355_v17 = vpop.f32.mrf.mxu3  ;;  %v6091_v8 = vpop.f32.mrf.mxu0 }
 0x9a4   : > { %v6356_v21 = vadd.f32 %v6355_v17, %v6266_v35  ;;  %v6180_v22 = vpop.f32.mrf.mxu1 }
 0x9a5   : > { %v6181_v41 = vadd.f32 %v6180_v22, %v6091_v8 }
 0x9a6   : > { %v6422_v5 = vadd.f32 %v6356_v21, %v12787_v2 }
 0x9a7   : > { %v6423_v0 = vadd.f32 %v6181_v41, %v12791_v57 }
 0x9a8   : > { %6486 = vst [vmem:[%s12813_s8 + $0x1d8] sm:$0xff] %v6422_v5 }
 0x9a9   : > { %6487 = vst [vmem:[%s12813_s8 + $0x1e0] sm:$0xff] %v6423_v0 }
 0x9aa   : > { %v6269_v19 = vpop.f32.mrf.mxu2 }
 0x9ab   : > { %v6358_v58 = vpop.f32.mrf.mxu3  ;;  %v6093_v12 = vpop.f32.mrf.mxu0 }
 0x9ac   : > { %v6359_v38 = vadd.f32 %v6358_v58, %v6269_v19  ;;  %v6182_v43 = vpop.f32.mrf.mxu1 }
 0x9ad   : > { %v6183_v53 = vadd.f32 %v6182_v43, %v6093_v12 }
 0x9ae   : > { %v6424_v60 = vadd.f32 %v6359_v38, %v12797_v1 }
 0x9af   : > { %v6425_v47 = vadd.f32 %v6183_v53, %v12800_v49 }
 0x9b0   : > { %6488 = vst [vmem:[%s12813_s8 + $0x1e8] sm:$0xff] %v6424_v60 }
 0x9b1   : > { %6489 = vst [vmem:[%s12813_s8 + $0x1f0] sm:$0xff] %v6425_v47 }
 0x9b2   : > { %v6271_v2 = vpop.f32.mrf.mxu2 }
 0x9b3   : > { %v6360_v57 = vpop.f32.mrf.mxu3 }
 0x9b4   : > { %v6361_v31 = vadd.f32 %v6360_v57, %v6271_v2 }
 0x9b6   : > { %v6426_v29 = vadd.f32 %v6361_v31, %v12806_v26 }
 0x9b8   : > { %6490 = vst [vmem:[%s12813_s8 + $0x1f8] sm:$0xff] %v6426_v29 }
 0x9b9   : > { %8423 = shalt.err (!%p8420_p5)
}
 0x9ba   : > { %s8476_s4 = smov 256   ;;  %s8477_s5 = smov 16  }
 0x9bb   : > { %8279 = dma.vmem_to_hbm [thread:$0]  (%p8533_p4), %s6508_s20, 8192, %s6510_s23, %s6492_s12, %s8476_s4, %s8476_s4, %s8477_s5  }
 0x9bc PF: > { %p8285_p6 = scmp.ge.s32.totalorder %s8474_s14, 2  ;;  %s6524_s3 = sand.u32 1, %s8454_s9  }
 0x9bd   : > { %s6525_s7 = scalar_lea.sflag [#allocation3], %s6524_s3 }
 0x9be   : > { %p8282_p7 = pnand %p8285_p6, %p8540_p8 }
 0x9c0   : > { %p8283_p9 = pneg %p8282_p7 }
 0x9c2   : > { %8449 = dma.done.wait (%p8283_p9), %s6525_s7, 8192  }
 0x9c3   : > { %8451 = vsyncadd (%p8283_p9), %s6525_s7, 4294959104  ;;  %s15_s14 = sadd.s32 1, %s8474_s14   ;;  %s13656_s9 = smov %s8458_s10 }
 0x9c4   : > { %p12_p10 = scmp.ge.s32.totalorder %s15_s14, 4   ;;  %s13657_s10 = smov %s8462_s11 }
 0x9c5   : > { %s13658_s11 = smov %s8546_s22  ;;  %s13659_s12 = smov %s8470_s13 }
 0x9c6   : > { %s13660_s13 = smov %s13662_s17  ;;  %14 = sbr.rel (!%p12_p10) target bundleno = 4 (0x4), region = 64 }
 0x9cb   :  { %6531 = vsyncpa [#allocation3], 1 }
 0x9cc   :  { %6533 = vsyncpa [#allocation3 + $0x1], 1 }

</bundles_post_ra>
